<compile_context>
chip_gen: v5e
topology: v5e:2x2
jax: 0.10.0
libtpu: 0.0.40
codegen_flags: <defaults>
</compile_context>

<pallas_src>
import functools

import jax
import jax.numpy as jnp
from jax import lax
from jax.experimental import pallas as pl
from jax.experimental.pallas import tpu as pltpu


# ----------------------------------------------------------------------------
# Pallas kernel 1: transposed conv matmul + bias (+ InstanceNorm) (+ LeakyReLU)
#   w_ref : (Cout, K) bf16      K = Cin*4*4*4
#   b_ref : (Cout, 1) f32
#   a_ref : (K, S)    bf16      one batch instance's im2col patches (S on lanes)
#   o_ref : (Cout, S) bf16/f32
# Grid = (B,): one step per batch instance, so InstanceNorm statistics
# (per (b, c) over spatial) are a reduce over the lane axis of the f32 acc.
# ----------------------------------------------------------------------------
def _conv_block_kernel(w_ref, b_ref, a_ref, o_ref, *, instance_norm, leaky,
                       eps, slope):
    acc = jnp.dot(w_ref[...], a_ref[...], preferred_element_type=jnp.float32)
    acc = acc + b_ref[...]                                   # (Cout, S) f32
    if instance_norm:            # InstanceNorm3d: biased var, eps, no affine
        mean = jnp.mean(acc, axis=-1, keepdims=True)
        var = jnp.mean(jnp.square(acc - mean), axis=-1, keepdims=True)
        acc = (acc - mean) * lax.rsqrt(var + eps)
    if leaky:                                                # LeakyReLU(0.2)
        acc = jnp.where(acc >= 0, acc, slope * acc)
    o_ref[...] = acc.astype(o_ref.dtype)


def pallas_conv_block(a, w, b, *, instance_norm, leaky,
                      out_dtype=jnp.bfloat16, eps=1e-5, slope=0.2):
    """a: (B, K, S) bf16 patches; w: (Cout, K); b: (Cout,) -> (B, Cout, S)."""
    B, K, S = a.shape
    Cout = w.shape[0]
    w_bf = w.astype(jnp.bfloat16)
    bias = b.reshape(Cout, 1).astype(jnp.float32)
    kernel = functools.partial(_conv_block_kernel, instance_norm=instance_norm,
                               leaky=leaky, eps=eps, slope=slope)
    return pl.pallas_call(
        kernel,
        out_shape=jax.ShapeDtypeStruct((B, Cout, S), out_dtype),
        grid=(B,),
        in_specs=[
            pl.BlockSpec((Cout, K), lambda i: (0, 0)),        # weights resident
            pl.BlockSpec((Cout, 1), lambda i: (0, 0)),        # bias resident
            pl.BlockSpec((None, K, S), lambda i: (i, 0, 0)),  # per-batch patches
        ],
        out_specs=pl.BlockSpec((None, Cout, S), lambda i: (i, 0, 0)),
        compiler_params=pltpu.CompilerParams(
            dimension_semantics=("parallel",)),
    )(w_bf, bias, a)


# ----------------------------------------------------------------------------
# Conv3d(kernel=4, padding=1) = fused XLA im2col + Pallas transposed matmul
# ----------------------------------------------------------------------------
# TODO(synk): fold the stride-2 4x4x4 window gather (im2col) into the Pallas
# kernel itself; a strided tap gather is not expressible with BlockSpec index
# maps without a layout-splitting pre-reshape, so it stays as one fused XLA op.
def conv3d(x, w, b, *, stride, instance_norm=False, leaky=False,
           out_dtype=jnp.bfloat16):
    """x: (B, Cin, D, H, W) NCDHW; w: (Cout, Cin, 4, 4, 4); b: (Cout,)."""
    B = x.shape[0]
    Cout = w.shape[0]
    # Patches: (B, Cin*64, Do, Ho, Wo); channel ordering (Cin outer, taps inner)
    # matches w.reshape(Cout, Cin*64).  Cross-correlation == PyTorch Conv3d.
    pat = lax.conv_general_dilated_patches(
        x, filter_shape=(4, 4, 4), window_strides=(stride,) * 3,
        padding=((1, 1), (1, 1), (1, 1)))
    _, K, Do, Ho, Wo = pat.shape
    a = pat.reshape(B, K, Do * Ho * Wo)
    out = pallas_conv_block(a, w.reshape(Cout, K), b,
                            instance_norm=instance_norm, leaky=leaky,
                            out_dtype=out_dtype)
    return out.reshape(B, Cout, Do, Ho, Wo)


# ----------------------------------------------------------------------------
# Pallas kernel 2: the whole patch-location MLP (Linear, [ELU, Linear] x 3)
# fused into a single call (all four matmuls are tiny: M<=8, K<=32, N=32).
# ----------------------------------------------------------------------------
def _embed_mlp_kernel(x_ref, w0, b0, w1, b1, w2, b2, w3, b3, o_ref):
    def elu(h):                                              # ELU(alpha=1)
        return jnp.where(h >= 0, h, jnp.exp(jnp.minimum(h, 0.0)) - 1.0)

    h = jnp.dot(x_ref[...], w0[...], preferred_element_type=jnp.float32) + b0[...]
    h = elu(h)
    h = jnp.dot(h, w1[...], preferred_element_type=jnp.float32) + b1[...]
    h = elu(h)
    h = jnp.dot(h, w2[...], preferred_element_type=jnp.float32) + b2[...]
    h = elu(h)
    h = jnp.dot(h, w3[...], preferred_element_type=jnp.float32) + b3[...]
    o_ref[...] = h.astype(o_ref.dtype)


def pallas_embed_mlp(patchloc, params):
    """patchloc: (B, 3) -> (B, E) f32 in one pallas_call."""
    B = patchloc.shape[0]
    E = params["e0_b"].shape[0]
    Bp = max(8, B)                                  # sublane-friendly row count
    x = jnp.zeros((Bp, 3), jnp.float32).at[:B].set(patchloc.astype(jnp.float32))
    args = [x]
    for name in ("e0", "e1", "e2", "e3"):
        args.append(params[name + "_w"].T.astype(jnp.float32))   # (in, out)
        args.append(params[name + "_b"].reshape(1, E).astype(jnp.float32))
    out = pl.pallas_call(      # no grid: whole (tiny) arrays live in VMEM
        _embed_mlp_kernel,
        out_shape=jax.ShapeDtypeStruct((Bp, E), jnp.float32),
    )(*args)
    return out[:B]


# ----------------------------------------------------------------------------
# Parameters (deterministic synthetic init; shapes match the PyTorch module)
# ----------------------------------------------------------------------------
def init_params(key, input_nc=2, ndf=8):
    E = 4 * ndf  # embed_size = nf_mult(after model loop) * ndf
    shapes = {
        # self.model
        "c0_w": (ndf, input_nc, 4, 4, 4),      "c0_b": (ndf,),
        "c1_w": (2 * ndf, ndf, 4, 4, 4),       "c1_b": (2 * ndf,),
        "c2_w": (4 * ndf, 2 * ndf, 4, 4, 4),   "c2_b": (4 * ndf,),
        # self.fc
        "f0_w": (8 * ndf, 8 * ndf, 4, 4, 4),   "f0_b": (8 * ndf,),
        "f1_w": (1, 8 * ndf, 4, 4, 4),         "f1_b": (1,),
        # self.embed (patchfloat=True): Linear(3,E), [ELU, Linear(E,E)] x 3
        "e0_w": (E, 3), "e0_b": (E,),
        "e1_w": (E, E), "e1_b": (E,),
        "e2_w": (E, E), "e2_b": (E,),
        "e3_w": (E, E), "e3_b": (E,),
    }
    params = {}
    keys = jax.random.split(key, len(shapes))
    for kk, (name, shp) in zip(keys, sorted(shapes.items())):
        scale = 0.02 if name.endswith("_w") else 0.01
        params[name] = scale * jax.random.normal(kk, shp, jnp.float32)
    return params


# ----------------------------------------------------------------------------
# Forward pass (partitions=None, patchfloat=True)
# ----------------------------------------------------------------------------
def nlayer_discriminator3d_forward(params, x, patchloc):
    xb = x.astype(jnp.bfloat16)                  # bf16 MXU inputs end-to-end
    # self.model: Conv+LReLU, [Conv+IN+LReLU] x 2   (all stride 2)
    h = conv3d(xb, params["c0_w"], params["c0_b"], stride=2, leaky=True)
    h = conv3d(h, params["c1_w"], params["c1_b"], stride=2,
               instance_norm=True, leaky=True)
    enc = conv3d(h, params["c2_w"], params["c2_b"], stride=2,
                 instance_norm=True, leaky=True)
    B, C, H, W, D = enc.shape

    # self.embed: Linear, ELU, Linear, ELU, Linear, ELU, Linear (one kernel)
    e = pallas_embed_mlp(patchloc, params)                       # (B, E) f32

    # embed[..., None, None, None].repeat(1, 1, H, W, D); cat on channels
    eb = jnp.broadcast_to(e.astype(enc.dtype)[:, :, None, None, None],
                          (B, e.shape[1], H, W, D))
    enc = jnp.concatenate([enc, eb], axis=1)

    # self.fc: Conv+IN+LReLU (stride 1), Conv (stride 1)
    h = conv3d(enc, params["f0_w"], params["f0_b"], stride=1,
               instance_norm=True, leaky=True)
    dec = conv3d(h, params["f1_w"], params["f1_b"], stride=1,
                 out_dtype=jnp.float32)
    return dec


if __name__ == "__main__":
    input_nc, ndf = 2, 8
    B, S = 2, 32

    key = jax.random.PRNGKey(0)
    kp, kx, kl = jax.random.split(key, 3)
    params = init_params(kp, input_nc=input_nc, ndf=ndf)
    x = jax.random.normal(kx, (B, input_nc, S, S, S), jnp.float32)
    patchloc = jax.random.normal(kl, (B, 3), jnp.float32)

    fwd = jax.jit(nlayer_discriminator3d_forward)
    dec = jax.block_until_ready(fwd(params, x, patchloc))

    # Spatial: 32 -> 16 -> 8 -> 4 (model); fc: 4 -> 3 -> 2, channels -> 1
    assert dec.shape == (B, 1, 2, 2, 2), dec.shape
    assert dec.dtype == jnp.float32
    assert bool(jnp.all(jnp.isfinite(dec)))
    print("KERNEL_OK")
</pallas_src>

<mosaic_0001>
module attributes {stable_mosaic.version = 11 : i64} {
  func.func @_conv_block_kernel(%arg0: i32, %arg1: memref<8x128xbf16, #tpu.memory_space<vmem>>, %arg2: memref<8x1xf32, #tpu.memory_space<vmem>>, %arg3: memref<1x128x4096xbf16, #tpu.memory_space<vmem>>, %arg4: memref<1x8x4096xbf16, #tpu.memory_space<vmem>>) attributes {dimension_semantics = [#tpu.dimension_semantics<parallel>], iteration_bounds = array<i64: 2>, scalar_prefetch = 0 : i64, scratch_operands = 0 : i64, tpu.core_type = #tpu.core_type<tc>, window_params = [{pipeline_mode = #tpu.pipeline_mode<synchronous>, transform_indices = @transform_0, window_bounds = array<i64: 8, 128>}, {pipeline_mode = #tpu.pipeline_mode<synchronous>, transform_indices = @transform_1, window_bounds = array<i64: 8, 1>}, {transform_indices = @transform_2, window_bounds = array<i64: 1, 128, 4096>}, {transform_indices = @transform_3, window_bounds = array<i64: 1, 8, 4096>}]} {
    %c0 = arith.constant 0 : index
    %c0_0 = arith.constant 0 : index
    %0 = vector.load %arg1[%c0, %c0_0] : memref<8x128xbf16, #tpu.memory_space<vmem>>, vector<8x128xbf16>
    %c0_1 = arith.constant 0 : index
    %c0_2 = arith.constant 0 : index
    %c0_3 = arith.constant 0 : index
    %1 = vector.load %arg3[%c0_1, %c0_2, %c0_3] : memref<1x128x4096xbf16, #tpu.memory_space<vmem>>, vector<1x128x4096xbf16>
    %2 = vector.shape_cast %1 : vector<1x128x4096xbf16> to vector<128x4096xbf16>
    %cst = arith.constant dense<0.000000e+00> : vector<8x4096xf32>
    %3 = tpu.matmul %0, %2, %cst {dimension_numbers = #tpu.dot_dimension_numbers<[1], [0], [0], [1], [0, 0, 1, 1], [], []>} : vector<8x128xbf16>, vector<128x4096xbf16>, vector<8x4096xf32> -> vector<8x4096xf32>
    %c0_4 = arith.constant 0 : index
    %c0_5 = arith.constant 0 : index
    %4 = vector.load %arg2[%c0_4, %c0_5] : memref<8x1xf32, #tpu.memory_space<vmem>>, vector<8x1xf32>
    %5 = vector.broadcast %4 : vector<8x1xf32> to vector<8x4096xf32>
    %6 = arith.addf %3, %5 : vector<8x4096xf32>
    %cst_6 = arith.constant 0.000000e+00 : f32
    %7 = vector.broadcast %cst_6 : f32 to vector<8x4096xf32>
    %8 = arith.cmpf oge, %6, %7 : vector<8x4096xf32>
    %cst_7 = arith.constant 2.000000e-01 : f32
    %9 = vector.broadcast %cst_7 : f32 to vector<8x4096xf32>
    %10 = arith.mulf %9, %6 : vector<8x4096xf32>
    %11 = arith.select %8, %6, %10 : vector<8x4096xi1>, vector<8x4096xf32>
    %12 = arith.truncf %11 : vector<8x4096xf32> to vector<8x4096xbf16>
    %c0_8 = arith.constant 0 : index
    %c0_9 = arith.constant 0 : index
    %c0_10 = arith.constant 0 : index
    %13 = vector.load %arg4[%c0_8, %c0_9, %c0_10] : memref<1x8x4096xbf16, #tpu.memory_space<vmem>>, vector<1x8x4096xbf16>
    %14 = vector.shape_cast %13 : vector<1x8x4096xbf16> to vector<8x4096xbf16>
    %15 = vector.shape_cast %12 : vector<8x4096xbf16> to vector<1x8x4096xbf16>
    tpu.vector_store %arg4[%c0_8, %c0_9, %c0_10], %15 {strides = array<i32>} : memref<1x8x4096xbf16, #tpu.memory_space<vmem>>, vector<1x8x4096xbf16>,
    return
  }
  func.func @transform_0(%arg0: i32) -> (i32, i32) {
    %c0_i32 = arith.constant 0 : i32
    %c0_i32_0 = arith.constant 0 : i32
    %c0_i32_1 = arith.constant 0 : i32
    return %c0_i32, %c0_i32_0 : i32, i32
  }
  func.func @transform_1(%arg0: i32) -> (i32, i32) {
    %c0_i32 = arith.constant 0 : i32
    %c0_i32_0 = arith.constant 0 : i32
    %c0_i32_1 = arith.constant 0 : i32
    return %c0_i32, %c0_i32_0 : i32, i32
  }
  func.func @transform_2(%arg0: i32) -> (i32, i32, i32) {
    %c0_i32 = arith.constant 0 : i32
    %c0_i32_0 = arith.constant 0 : i32
    %c0_i32_1 = arith.constant 0 : i32
    return %arg0, %c0_i32, %c0_i32_0 : i32, i32, i32
  }
  func.func @transform_3(%arg0: i32) -> (i32, i32, i32) {
    %c0_i32 = arith.constant 0 : i32
    %c0_i32_0 = arith.constant 0 : i32
    %c0_i32_1 = arith.constant 0 : i32
    return %arg0, %c0_i32, %c0_i32_0 : i32, i32, i32
  }
}

module attributes {stable_mosaic.version = 11 : i64} {
  func.func @_conv_block_kernel(%arg0: i32, %arg1: memref<16x512xbf16, #tpu.memory_space<vmem>>, %arg2: memref<16x1xf32, #tpu.memory_space<vmem>>, %arg3: memref<1x512x512xbf16, #tpu.memory_space<vmem>>, %arg4: memref<1x16x512xbf16, #tpu.memory_space<vmem>>) attributes {dimension_semantics = [#tpu.dimension_semantics<parallel>], iteration_bounds = array<i64: 2>, scalar_prefetch = 0 : i64, scratch_operands = 0 : i64, tpu.core_type = #tpu.core_type<tc>, window_params = [{pipeline_mode = #tpu.pipeline_mode<synchronous>, transform_indices = @transform_0, window_bounds = array<i64: 16, 512>}, {pipeline_mode = #tpu.pipeline_mode<synchronous>, transform_indices = @transform_1, window_bounds = array<i64: 16, 1>}, {transform_indices = @transform_2, window_bounds = array<i64: 1, 512, 512>}, {transform_indices = @transform_3, window_bounds = array<i64: 1, 16, 512>}]} {
    %c0 = arith.constant 0 : index
    %c0_0 = arith.constant 0 : index
    %0 = vector.load %arg1[%c0, %c0_0] : memref<16x512xbf16, #tpu.memory_space<vmem>>, vector<16x512xbf16>
    %c0_1 = arith.constant 0 : index
    %c0_2 = arith.constant 0 : index
    %c0_3 = arith.constant 0 : index
    %1 = vector.load %arg3[%c0_1, %c0_2, %c0_3] : memref<1x512x512xbf16, #tpu.memory_space<vmem>>, vector<1x512x512xbf16>
    %2 = vector.shape_cast %1 : vector<1x512x512xbf16> to vector<512x512xbf16>
    %cst = arith.constant dense<0.000000e+00> : vector<16x512xf32>
    %3 = tpu.matmul %0, %2, %cst {dimension_numbers = #tpu.dot_dimension_numbers<[1], [0], [0], [1], [0, 0, 1, 1], [], []>} : vector<16x512xbf16>, vector<512x512xbf16>, vector<16x512xf32> -> vector<16x512xf32>
    %c0_4 = arith.constant 0 : index
    %c0_5 = arith.constant 0 : index
    %4 = vector.load %arg2[%c0_4, %c0_5] : memref<16x1xf32, #tpu.memory_space<vmem>>, vector<16x1xf32>
    %5 = vector.broadcast %4 : vector<16x1xf32> to vector<16x512xf32>
    %6 = arith.addf %3, %5 : vector<16x512xf32>
    %cst_6 = arith.constant dense<0.000000e+00> : vector<16xf32>
    %7 = vector.multi_reduction <add>, %6, %cst_6 [1] : vector<16x512xf32> to vector<16xf32>
    %8 = vector.shape_cast %7 : vector<16xf32> to vector<16x1xf32>
    %cst_7 = arith.constant 5.120000e+02 : f32
    %9 = vector.broadcast %cst_7 : f32 to vector<16x1xf32>
    %10 = arith.divf %8, %9 : vector<16x1xf32>
    %11 = vector.broadcast %10 : vector<16x1xf32> to vector<16x512xf32>
    %12 = arith.subf %6, %11 : vector<16x512xf32>
    %13 = arith.mulf %12, %12 : vector<16x512xf32>
    %cst_8 = arith.constant dense<0.000000e+00> : vector<16xf32>
    %14 = vector.multi_reduction <add>, %13, %cst_8 [1] : vector<16x512xf32> to vector<16xf32>
    %15 = vector.shape_cast %14 : vector<16xf32> to vector<16x1xf32>
    %cst_9 = arith.constant 5.120000e+02 : f32
    %16 = vector.broadcast %cst_9 : f32 to vector<16x1xf32>
    %17 = arith.divf %15, %16 : vector<16x1xf32>
    %18 = vector.broadcast %10 : vector<16x1xf32> to vector<16x512xf32>
    %19 = arith.subf %6, %18 : vector<16x512xf32>
    %cst_10 = arith.constant 9.99999974E-6 : f32
    %20 = vector.broadcast %cst_10 : f32 to vector<16x1xf32>
    %21 = arith.addf %17, %20 : vector<16x1xf32>
    %22 = math.rsqrt %21 : vector<16x1xf32>
    %23 = vector.broadcast %22 : vector<16x1xf32> to vector<16x512xf32>
    %24 = arith.mulf %19, %23 : vector<16x512xf32>
    %cst_11 = arith.constant 0.000000e+00 : f32
    %25 = vector.broadcast %cst_11 : f32 to vector<16x512xf32>
    %26 = arith.cmpf oge, %24, %25 : vector<16x512xf32>
    %cst_12 = arith.constant 2.000000e-01 : f32
    %27 = vector.broadcast %cst_12 : f32 to vector<16x512xf32>
    %28 = arith.mulf %27, %24 : vector<16x512xf32>
    %29 = arith.select %26, %24, %28 : vector<16x512xi1>, vector<16x512xf32>
    %30 = arith.truncf %29 : vector<16x512xf32> to vector<16x512xbf16>
    %c0_13 = arith.constant 0 : index
    %c0_14 = arith.constant 0 : index
    %c0_15 = arith.constant 0 : index
    %31 = vector.load %arg4[%c0_13, %c0_14, %c0_15] : memref<1x16x512xbf16, #tpu.memory_space<vmem>>, vector<1x16x512xbf16>
    %32 = vector.shape_cast %31 : vector<1x16x512xbf16> to vector<16x512xbf16>
    %33 = vector.shape_cast %30 : vector<16x512xbf16> to vector<1x16x512xbf16>
    tpu.vector_store %arg4[%c0_13, %c0_14, %c0_15], %33 {strides = array<i32>} : memref<1x16x512xbf16, #tpu.memory_space<vmem>>, vector<1x16x512xbf16>,
    return
  }
  func.func @transform_0(%arg0: i32) -> (i32, i32) {
    %c0_i32 = arith.constant 0 : i32
    %c0_i32_0 = arith.constant 0 : i32
    %c0_i32_1 = arith.constant 0 : i32
    return %c0_i32, %c0_i32_0 : i32, i32
  }
  func.func @transform_1(%arg0: i32) -> (i32, i32) {
    %c0_i32 = arith.constant 0 : i32
    %c0_i32_0 = arith.constant 0 : i32
    %c0_i32_1 = arith.constant 0 : i32
    return %c0_i32, %c0_i32_0 : i32, i32
  }
  func.func @transform_2(%arg0: i32) -> (i32, i32, i32) {
    %c0_i32 = arith.constant 0 : i32
    %c0_i32_0 = arith.constant 0 : i32
    %c0_i32_1 = arith.constant 0 : i32
    return %arg0, %c0_i32, %c0_i32_0 : i32, i32, i32
  }
  func.func @transform_3(%arg0: i32) -> (i32, i32, i32) {
    %c0_i32 = arith.constant 0 : i32
    %c0_i32_0 = arith.constant 0 : i32
    %c0_i32_1 = arith.constant 0 : i32
    return %arg0, %c0_i32, %c0_i32_0 : i32, i32, i32
  }
}

module attributes {stable_mosaic.version = 11 : i64} {
  func.func @_conv_block_kernel(%arg0: i32, %arg1: memref<32x1024xbf16, #tpu.memory_space<vmem>>, %arg2: memref<32x1xf32, #tpu.memory_space<vmem>>, %arg3: memref<1x1024x64xbf16, #tpu.memory_space<vmem>>, %arg4: memref<1x32x64xbf16, #tpu.memory_space<vmem>>) attributes {dimension_semantics = [#tpu.dimension_semantics<parallel>], iteration_bounds = array<i64: 2>, scalar_prefetch = 0 : i64, scratch_operands = 0 : i64, tpu.core_type = #tpu.core_type<tc>, window_params = [{pipeline_mode = #tpu.pipeline_mode<synchronous>, transform_indices = @transform_0, window_bounds = array<i64: 32, 1024>}, {pipeline_mode = #tpu.pipeline_mode<synchronous>, transform_indices = @transform_1, window_bounds = array<i64: 32, 1>}, {transform_indices = @transform_2, window_bounds = array<i64: 1, 1024, 64>}, {transform_indices = @transform_3, window_bounds = array<i64: 1, 32, 64>}]} {
    %c0 = arith.constant 0 : index
    %c0_0 = arith.constant 0 : index
    %0 = vector.load %arg1[%c0, %c0_0] : memref<32x1024xbf16, #tpu.memory_space<vmem>>, vector<32x1024xbf16>
    %c0_1 = arith.constant 0 : index
    %c0_2 = arith.constant 0 : index
    %c0_3 = arith.constant 0 : index
    %1 = vector.load %arg3[%c0_1, %c0_2, %c0_3] : memref<1x1024x64xbf16, #tpu.memory_space<vmem>>, vector<1x1024x64xbf16>
    %2 = vector.shape_cast %1 : vector<1x1024x64xbf16> to vector<1024x64xbf16>
    %cst = arith.constant dense<0.000000e+00> : vector<32x64xf32>
    %3 = tpu.matmul %0, %2, %cst {dimension_numbers = #tpu.dot_dimension_numbers<[1], [0], [0], [1], [0, 0, 1, 1], [], []>} : vector<32x1024xbf16>, vector<1024x64xbf16>, vector<32x64xf32> -> vector<32x64xf32>
    %c0_4 = arith.constant 0 : index
    %c0_5 = arith.constant 0 : index
    %4 = vector.load %arg2[%c0_4, %c0_5] : memref<32x1xf32, #tpu.memory_space<vmem>>, vector<32x1xf32>
    %5 = vector.broadcast %4 : vector<32x1xf32> to vector<32x64xf32>
    %6 = arith.addf %3, %5 : vector<32x64xf32>
    %cst_6 = arith.constant dense<0.000000e+00> : vector<32xf32>
    %7 = vector.multi_reduction <add>, %6, %cst_6 [1] : vector<32x64xf32> to vector<32xf32>
    %8 = vector.shape_cast %7 : vector<32xf32> to vector<32x1xf32>
    %cst_7 = arith.constant 6.400000e+01 : f32
    %9 = vector.broadcast %cst_7 : f32 to vector<32x1xf32>
    %10 = arith.divf %8, %9 : vector<32x1xf32>
    %11 = vector.broadcast %10 : vector<32x1xf32> to vector<32x64xf32>
    %12 = arith.subf %6, %11 : vector<32x64xf32>
    %13 = arith.mulf %12, %12 : vector<32x64xf32>
    %cst_8 = arith.constant dense<0.000000e+00> : vector<32xf32>
    %14 = vector.multi_reduction <add>, %13, %cst_8 [1] : vector<32x64xf32> to vector<32xf32>
    %15 = vector.shape_cast %14 : vector<32xf32> to vector<32x1xf32>
    %cst_9 = arith.constant 6.400000e+01 : f32
    %16 = vector.broadcast %cst_9 : f32 to vector<32x1xf32>
    %17 = arith.divf %15, %16 : vector<32x1xf32>
    %18 = vector.broadcast %10 : vector<32x1xf32> to vector<32x64xf32>
    %19 = arith.subf %6, %18 : vector<32x64xf32>
    %cst_10 = arith.constant 9.99999974E-6 : f32
    %20 = vector.broadcast %cst_10 : f32 to vector<32x1xf32>
    %21 = arith.addf %17, %20 : vector<32x1xf32>
    %22 = math.rsqrt %21 : vector<32x1xf32>
    %23 = vector.broadcast %22 : vector<32x1xf32> to vector<32x64xf32>
    %24 = arith.mulf %19, %23 : vector<32x64xf32>
    %cst_11 = arith.constant 0.000000e+00 : f32
    %25 = vector.broadcast %cst_11 : f32 to vector<32x64xf32>
    %26 = arith.cmpf oge, %24, %25 : vector<32x64xf32>
    %cst_12 = arith.constant 2.000000e-01 : f32
    %27 = vector.broadcast %cst_12 : f32 to vector<32x64xf32>
    %28 = arith.mulf %27, %24 : vector<32x64xf32>
    %29 = arith.select %26, %24, %28 : vector<32x64xi1>, vector<32x64xf32>
    %30 = arith.truncf %29 : vector<32x64xf32> to vector<32x64xbf16>
    %c0_13 = arith.constant 0 : index
    %c0_14 = arith.constant 0 : index
    %c0_15 = arith.constant 0 : index
    %31 = vector.load %arg4[%c0_13, %c0_14, %c0_15] : memref<1x32x64xbf16, #tpu.memory_space<vmem>>, vector<1x32x64xbf16>
    %32 = vector.shape_cast %31 : vector<1x32x64xbf16> to vector<32x64xbf16>
    %33 = vector.shape_cast %30 : vector<32x64xbf16> to vector<1x32x64xbf16>
    tpu.vector_store %arg4[%c0_13, %c0_14, %c0_15], %33 {strides = array<i32>} : memref<1x32x64xbf16, #tpu.memory_space<vmem>>, vector<1x32x64xbf16>,
    return
  }
  func.func @transform_0(%arg0: i32) -> (i32, i32) {
    %c0_i32 = arith.constant 0 : i32
    %c0_i32_0 = arith.constant 0 : i32
    %c0_i32_1 = arith.constant 0 : i32
    return %c0_i32, %c0_i32_0 : i32, i32
  }
  func.func @transform_1(%arg0: i32) -> (i32, i32) {
    %c0_i32 = arith.constant 0 : i32
    %c0_i32_0 = arith.constant 0 : i32
    %c0_i32_1 = arith.constant 0 : i32
    return %c0_i32, %c0_i32_0 : i32, i32
  }
  func.func @transform_2(%arg0: i32) -> (i32, i32, i32) {
    %c0_i32 = arith.constant 0 : i32
    %c0_i32_0 = arith.constant 0 : i32
    %c0_i32_1 = arith.constant 0 : i32
    return %arg0, %c0_i32, %c0_i32_0 : i32, i32, i32
  }
  func.func @transform_3(%arg0: i32) -> (i32, i32, i32) {
    %c0_i32 = arith.constant 0 : i32
    %c0_i32_0 = arith.constant 0 : i32
    %c0_i32_1 = arith.constant 0 : i32
    return %arg0, %c0_i32, %c0_i32_0 : i32, i32, i32
  }
}

module attributes {stable_mosaic.version = 11 : i64} {
  func.func @_embed_mlp_kernel(%arg0: memref<8x3xf32, #tpu.memory_space<vmem>>, %arg1: memref<3x32xf32, #tpu.memory_space<vmem>>, %arg2: memref<1x32xf32, #tpu.memory_space<vmem>>, %arg3: memref<32x32xf32, #tpu.memory_space<vmem>>, %arg4: memref<1x32xf32, #tpu.memory_space<vmem>>, %arg5: memref<32x32xf32, #tpu.memory_space<vmem>>, %arg6: memref<1x32xf32, #tpu.memory_space<vmem>>, %arg7: memref<32x32xf32, #tpu.memory_space<vmem>>, %arg8: memref<1x32xf32, #tpu.memory_space<vmem>>, %arg9: memref<8x32xf32, #tpu.memory_space<vmem>>) attributes {dimension_semantics = [], scalar_prefetch = 0 : i64, scratch_operands = 0 : i64, tpu.core_type = #tpu.core_type<tc>} {
    %c0 = arith.constant 0 : index
    %c0_0 = arith.constant 0 : index
    %0 = vector.load %arg0[%c0, %c0_0] : memref<8x3xf32, #tpu.memory_space<vmem>>, vector<8x3xf32>
    %c0_1 = arith.constant 0 : index
    %c0_2 = arith.constant 0 : index
    %1 = vector.load %arg1[%c0_1, %c0_2] : memref<3x32xf32, #tpu.memory_space<vmem>>, vector<3x32xf32>
    %cst = arith.constant dense<0.000000e+00> : vector<8x32xf32>
    %2 = tpu.matmul %0, %1, %cst {dimension_numbers = #tpu.dot_dimension_numbers<[1], [0], [0], [1], [0, 0, 1, 1], [], []>} : vector<8x3xf32>, vector<3x32xf32>, vector<8x32xf32> -> vector<8x32xf32>
    %c0_3 = arith.constant 0 : index
    %c0_4 = arith.constant 0 : index
    %3 = vector.load %arg2[%c0_3, %c0_4] : memref<1x32xf32, #tpu.memory_space<vmem>>, vector<1x32xf32>
    %4 = vector.broadcast %3 : vector<1x32xf32> to vector<8x32xf32>
    %5 = arith.addf %2, %4 : vector<8x32xf32>
    %cst_5 = arith.constant 0.000000e+00 : f32
    %6 = vector.broadcast %cst_5 : f32 to vector<8x32xf32>
    %7 = arith.cmpf oge, %5, %6 : vector<8x32xf32>
    %cst_6 = arith.constant 0.000000e+00 : f32
    %8 = vector.broadcast %cst_6 : f32 to vector<8x32xf32>
    %9 = arith.minimumf %5, %8 : vector<8x32xf32>
    %10 = math.exp %9 : vector<8x32xf32>
    %cst_7 = arith.constant 1.000000e+00 : f32
    %11 = vector.broadcast %cst_7 : f32 to vector<8x32xf32>
    %12 = arith.subf %10, %11 : vector<8x32xf32>
    %13 = arith.select %7, %5, %12 : vector<8x32xi1>, vector<8x32xf32>
    %c0_8 = arith.constant 0 : index
    %c0_9 = arith.constant 0 : index
    %14 = vector.load %arg3[%c0_8, %c0_9] : memref<32x32xf32, #tpu.memory_space<vmem>>, vector<32x32xf32>
    %cst_10 = arith.constant dense<0.000000e+00> : vector<8x32xf32>
    %15 = tpu.matmul %13, %14, %cst_10 {dimension_numbers = #tpu.dot_dimension_numbers<[1], [0], [0], [1], [0, 0, 1, 1], [], []>} : vector<8x32xf32>, vector<32x32xf32>, vector<8x32xf32> -> vector<8x32xf32>
    %c0_11 = arith.constant 0 : index
    %c0_12 = arith.constant 0 : index
    %16 = vector.load %arg4[%c0_11, %c0_12] : memref<1x32xf32, #tpu.memory_space<vmem>>, vector<1x32xf32>
    %17 = vector.broadcast %16 : vector<1x32xf32> to vector<8x32xf32>
    %18 = arith.addf %15, %17 : vector<8x32xf32>
    %cst_13 = arith.constant 0.000000e+00 : f32
    %19 = vector.broadcast %cst_13 : f32 to vector<8x32xf32>
    %20 = arith.cmpf oge, %18, %19 : vector<8x32xf32>
    %cst_14 = arith.constant 0.000000e+00 : f32
    %21 = vector.broadcast %cst_14 : f32 to vector<8x32xf32>
    %22 = arith.minimumf %18, %21 : vector<8x32xf32>
    %23 = math.exp %22 : vector<8x32xf32>
    %cst_15 = arith.constant 1.000000e+00 : f32
    %24 = vector.broadcast %cst_15 : f32 to vector<8x32xf32>
    %25 = arith.subf %23, %24 : vector<8x32xf32>
    %26 = arith.select %20, %18, %25 : vector<8x32xi1>, vector<8x32xf32>
    %c0_16 = arith.constant 0 : index
    %c0_17 = arith.constant 0 : index
    %27 = vector.load %arg5[%c0_16, %c0_17] : memref<32x32xf32, #tpu.memory_space<vmem>>, vector<32x32xf32>
    %cst_18 = arith.constant dense<0.000000e+00> : vector<8x32xf32>
    %28 = tpu.matmul %26, %27, %cst_18 {dimension_numbers = #tpu.dot_dimension_numbers<[1], [0], [0], [1], [0, 0, 1, 1], [], []>} : vector<8x32xf32>, vector<32x32xf32>, vector<8x32xf32> -> vector<8x32xf32>
    %c0_19 = arith.constant 0 : index
    %c0_20 = arith.constant 0 : index
    %29 = vector.load %arg6[%c0_19, %c0_20] : memref<1x32xf32, #tpu.memory_space<vmem>>, vector<1x32xf32>
    %30 = vector.broadcast %29 : vector<1x32xf32> to vector<8x32xf32>
    %31 = arith.addf %28, %30 : vector<8x32xf32>
    %cst_21 = arith.constant 0.000000e+00 : f32
    %32 = vector.broadcast %cst_21 : f32 to vector<8x32xf32>
    %33 = arith.cmpf oge, %31, %32 : vector<8x32xf32>
    %cst_22 = arith.constant 0.000000e+00 : f32
    %34 = vector.broadcast %cst_22 : f32 to vector<8x32xf32>
    %35 = arith.minimumf %31, %34 : vector<8x32xf32>
    %36 = math.exp %35 : vector<8x32xf32>
    %cst_23 = arith.constant 1.000000e+00 : f32
    %37 = vector.broadcast %cst_23 : f32 to vector<8x32xf32>
    %38 = arith.subf %36, %37 : vector<8x32xf32>
    %39 = arith.select %33, %31, %38 : vector<8x32xi1>, vector<8x32xf32>
    %c0_24 = arith.constant 0 : index
    %c0_25 = arith.constant 0 : index
    %40 = vector.load %arg7[%c0_24, %c0_25] : memref<32x32xf32, #tpu.memory_space<vmem>>, vector<32x32xf32>
    %cst_26 = arith.constant dense<0.000000e+00> : vector<8x32xf32>
    %41 = tpu.matmul %39, %40, %cst_26 {dimension_numbers = #tpu.dot_dimension_numbers<[1], [0], [0], [1], [0, 0, 1, 1], [], []>} : vector<8x32xf32>, vector<32x32xf32>, vector<8x32xf32> -> vector<8x32xf32>
    %c0_27 = arith.constant 0 : index
    %c0_28 = arith.constant 0 : index
    %42 = vector.load %arg8[%c0_27, %c0_28] : memref<1x32xf32, #tpu.memory_space<vmem>>, vector<1x32xf32>
    %43 = vector.broadcast %42 : vector<1x32xf32> to vector<8x32xf32>
    %44 = arith.addf %41, %43 : vector<8x32xf32>
    %c0_29 = arith.constant 0 : index
    %c0_30 = arith.constant 0 : index
    %45 = vector.load %arg9[%c0_29, %c0_30] : memref<8x32xf32, #tpu.memory_space<vmem>>, vector<8x32xf32>
    tpu.vector_store %arg9[%c0_29, %c0_30], %44 {strides = array<i32>} : memref<8x32xf32, #tpu.memory_space<vmem>>, vector<8x32xf32>,
    return
  }
}

module attributes {stable_mosaic.version = 11 : i64} {
  func.func @_conv_block_kernel(%arg0: i32, %arg1: memref<64x4096xbf16, #tpu.memory_space<vmem>>, %arg2: memref<64x1xf32, #tpu.memory_space<vmem>>, %arg3: memref<1x4096x27xbf16, #tpu.memory_space<vmem>>, %arg4: memref<1x64x27xbf16, #tpu.memory_space<vmem>>) attributes {dimension_semantics = [#tpu.dimension_semantics<parallel>], iteration_bounds = array<i64: 2>, scalar_prefetch = 0 : i64, scratch_operands = 0 : i64, tpu.core_type = #tpu.core_type<tc>, window_params = [{pipeline_mode = #tpu.pipeline_mode<synchronous>, transform_indices = @transform_0, window_bounds = array<i64: 64, 4096>}, {pipeline_mode = #tpu.pipeline_mode<synchronous>, transform_indices = @transform_1, window_bounds = array<i64: 64, 1>}, {transform_indices = @transform_2, window_bounds = array<i64: 1, 4096, 27>}, {transform_indices = @transform_3, window_bounds = array<i64: 1, 64, 27>}]} {
    %c0 = arith.constant 0 : index
    %c0_0 = arith.constant 0 : index
    %0 = vector.load %arg1[%c0, %c0_0] : memref<64x4096xbf16, #tpu.memory_space<vmem>>, vector<64x4096xbf16>
    %c0_1 = arith.constant 0 : index
    %c0_2 = arith.constant 0 : index
    %c0_3 = arith.constant 0 : index
    %1 = vector.load %arg3[%c0_1, %c0_2, %c0_3] : memref<1x4096x27xbf16, #tpu.memory_space<vmem>>, vector<1x4096x27xbf16>
    %2 = vector.shape_cast %1 : vector<1x4096x27xbf16> to vector<4096x27xbf16>
    %cst = arith.constant dense<0.000000e+00> : vector<64x27xf32>
    %3 = tpu.matmul %0, %2, %cst {dimension_numbers = #tpu.dot_dimension_numbers<[1], [0], [0], [1], [0, 0, 1, 1], [], []>} : vector<64x4096xbf16>, vector<4096x27xbf16>, vector<64x27xf32> -> vector<64x27xf32>
    %c0_4 = arith.constant 0 : index
    %c0_5 = arith.constant 0 : index
    %4 = vector.load %arg2[%c0_4, %c0_5] : memref<64x1xf32, #tpu.memory_space<vmem>>, vector<64x1xf32>
    %5 = vector.broadcast %4 : vector<64x1xf32> to vector<64x27xf32>
    %6 = arith.addf %3, %5 : vector<64x27xf32>
    %cst_6 = arith.constant dense<0.000000e+00> : vector<64xf32>
    %7 = vector.multi_reduction <add>, %6, %cst_6 [1] : vector<64x27xf32> to vector<64xf32>
    %8 = vector.shape_cast %7 : vector<64xf32> to vector<64x1xf32>
    %cst_7 = arith.constant 2.700000e+01 : f32
    %9 = vector.broadcast %cst_7 : f32 to vector<64x1xf32>
    %10 = arith.divf %8, %9 : vector<64x1xf32>
    %11 = vector.broadcast %10 : vector<64x1xf32> to vector<64x27xf32>
    %12 = arith.subf %6, %11 : vector<64x27xf32>
    %13 = arith.mulf %12, %12 : vector<64x27xf32>
    %cst_8 = arith.constant dense<0.000000e+00> : vector<64xf32>
    %14 = vector.multi_reduction <add>, %13, %cst_8 [1] : vector<64x27xf32> to vector<64xf32>
    %15 = vector.shape_cast %14 : vector<64xf32> to vector<64x1xf32>
    %cst_9 = arith.constant 2.700000e+01 : f32
    %16 = vector.broadcast %cst_9 : f32 to vector<64x1xf32>
    %17 = arith.divf %15, %16 : vector<64x1xf32>
    %18 = vector.broadcast %10 : vector<64x1xf32> to vector<64x27xf32>
    %19 = arith.subf %6, %18 : vector<64x27xf32>
    %cst_10 = arith.constant 9.99999974E-6 : f32
    %20 = vector.broadcast %cst_10 : f32 to vector<64x1xf32>
    %21 = arith.addf %17, %20 : vector<64x1xf32>
    %22 = math.rsqrt %21 : vector<64x1xf32>
    %23 = vector.broadcast %22 : vector<64x1xf32> to vector<64x27xf32>
    %24 = arith.mulf %19, %23 : vector<64x27xf32>
    %cst_11 = arith.constant 0.000000e+00 : f32
    %25 = vector.broadcast %cst_11 : f32 to vector<64x27xf32>
    %26 = arith.cmpf oge, %24, %25 : vector<64x27xf32>
    %cst_12 = arith.constant 2.000000e-01 : f32
    %27 = vector.broadcast %cst_12 : f32 to vector<64x27xf32>
    %28 = arith.mulf %27, %24 : vector<64x27xf32>
    %29 = arith.select %26, %24, %28 : vector<64x27xi1>, vector<64x27xf32>
    %30 = arith.truncf %29 : vector<64x27xf32> to vector<64x27xbf16>
    %c0_13 = arith.constant 0 : index
    %c0_14 = arith.constant 0 : index
    %c0_15 = arith.constant 0 : index
    %31 = vector.load %arg4[%c0_13, %c0_14, %c0_15] : memref<1x64x27xbf16, #tpu.memory_space<vmem>>, vector<1x64x27xbf16>
    %32 = vector.shape_cast %31 : vector<1x64x27xbf16> to vector<64x27xbf16>
    %33 = vector.shape_cast %30 : vector<64x27xbf16> to vector<1x64x27xbf16>
    tpu.vector_store %arg4[%c0_13, %c0_14, %c0_15], %33 {strides = array<i32>} : memref<1x64x27xbf16, #tpu.memory_space<vmem>>, vector<1x64x27xbf16>,
    return
  }
  func.func @transform_0(%arg0: i32) -> (i32, i32) {
    %c0_i32 = arith.constant 0 : i32
    %c0_i32_0 = arith.constant 0 : i32
    %c0_i32_1 = arith.constant 0 : i32
    return %c0_i32, %c0_i32_0 : i32, i32
  }
  func.func @transform_1(%arg0: i32) -> (i32, i32) {
    %c0_i32 = arith.constant 0 : i32
    %c0_i32_0 = arith.constant 0 : i32
    %c0_i32_1 = arith.constant 0 : i32
    return %c0_i32, %c0_i32_0 : i32, i32
  }
  func.func @transform_2(%arg0: i32) -> (i32, i32, i32) {
    %c0_i32 = arith.constant 0 : i32
    %c0_i32_0 = arith.constant 0 : i32
    %c0_i32_1 = arith.constant 0 : i32
    return %arg0, %c0_i32, %c0_i32_0 : i32, i32, i32
  }
  func.func @transform_3(%arg0: i32) -> (i32, i32, i32) {
    %c0_i32 = arith.constant 0 : i32
    %c0_i32_0 = arith.constant 0 : i32
    %c0_i32_1 = arith.constant 0 : i32
    return %arg0, %c0_i32, %c0_i32_0 : i32, i32, i32
  }
}

module attributes {stable_mosaic.version = 11 : i64} {
  func.func @_conv_block_kernel(%arg0: i32, %arg1: memref<1x4096xbf16, #tpu.memory_space<vmem>>, %arg2: memref<1x1xf32, #tpu.memory_space<vmem>>, %arg3: memref<1x4096x8xbf16, #tpu.memory_space<vmem>>, %arg4: memref<1x1x8xf32, #tpu.memory_space<vmem>>) attributes {dimension_semantics = [#tpu.dimension_semantics<parallel>], iteration_bounds = array<i64: 2>, scalar_prefetch = 0 : i64, scratch_operands = 0 : i64, tpu.core_type = #tpu.core_type<tc>, window_params = [{pipeline_mode = #tpu.pipeline_mode<synchronous>, transform_indices = @transform_0, window_bounds = array<i64: 1, 4096>}, {pipeline_mode = #tpu.pipeline_mode<synchronous>, transform_indices = @transform_1, window_bounds = array<i64: 1, 1>}, {transform_indices = @transform_2, window_bounds = array<i64: 1, 4096, 8>}, {transform_indices = @transform_3, window_bounds = array<i64: 1, 1, 8>}]} {
    %c0 = arith.constant 0 : index
    %c0_0 = arith.constant 0 : index
    %0 = vector.load %arg1[%c0, %c0_0] : memref<1x4096xbf16, #tpu.memory_space<vmem>>, vector<1x4096xbf16>
    %c0_1 = arith.constant 0 : index
    %c0_2 = arith.constant 0 : index
    %c0_3 = arith.constant 0 : index
    %1 = vector.load %arg3[%c0_1, %c0_2, %c0_3] : memref<1x4096x8xbf16, #tpu.memory_space<vmem>>, vector<1x4096x8xbf16>
    %2 = vector.shape_cast %1 : vector<1x4096x8xbf16> to vector<4096x8xbf16>
    %cst = arith.constant dense<0.000000e+00> : vector<1x8xf32>
    %3 = tpu.matmul %0, %2, %cst {dimension_numbers = #tpu.dot_dimension_numbers<[1], [0], [0], [1], [0, 0, 1, 1], [], []>} : vector<1x4096xbf16>, vector<4096x8xbf16>, vector<1x8xf32> -> vector<1x8xf32>
    %c0_4 = arith.constant 0 : index
    %c0_5 = arith.constant 0 : index
    %4 = vector.load %arg2[%c0_4, %c0_5] : memref<1x1xf32, #tpu.memory_space<vmem>>, vector<1x1xf32>
    %5 = vector.broadcast %4 : vector<1x1xf32> to vector<1x8xf32>
    %6 = arith.addf %3, %5 : vector<1x8xf32>
    %c0_6 = arith.constant 0 : index
    %c0_7 = arith.constant 0 : index
    %c0_8 = arith.constant 0 : index
    %7 = vector.load %arg4[%c0_6, %c0_7, %c0_8] : memref<1x1x8xf32, #tpu.memory_space<vmem>>, vector<1x1x8xf32>
    %8 = vector.shape_cast %7 : vector<1x1x8xf32> to vector<1x8xf32>
    %9 = vector.shape_cast %6 : vector<1x8xf32> to vector<1x1x8xf32>
    tpu.vector_store %arg4[%c0_6, %c0_7, %c0_8], %9 {strides = array<i32>} : memref<1x1x8xf32, #tpu.memory_space<vmem>>, vector<1x1x8xf32>,
    return
  }
  func.func @transform_0(%arg0: i32) -> (i32, i32) {
    %c0_i32 = arith.constant 0 : i32
    %c0_i32_0 = arith.constant 0 : i32
    %c0_i32_1 = arith.constant 0 : i32
    return %c0_i32, %c0_i32_0 : i32, i32
  }
  func.func @transform_1(%arg0: i32) -> (i32, i32) {
    %c0_i32 = arith.constant 0 : i32
    %c0_i32_0 = arith.constant 0 : i32
    %c0_i32_1 = arith.constant 0 : i32
    return %c0_i32, %c0_i32_0 : i32, i32
  }
  func.func @transform_2(%arg0: i32) -> (i32, i32, i32) {
    %c0_i32 = arith.constant 0 : i32
    %c0_i32_0 = arith.constant 0 : i32
    %c0_i32_1 = arith.constant 0 : i32
    return %arg0, %c0_i32, %c0_i32_0 : i32, i32, i32
  }
  func.func @transform_3(%arg0: i32) -> (i32, i32, i32) {
    %c0_i32 = arith.constant 0 : i32
    %c0_i32_0 = arith.constant 0 : i32
    %c0_i32_1 = arith.constant 0 : i32
    return %arg0, %c0_i32, %c0_i32_0 : i32, i32, i32
  }
}

</mosaic_0001>

<bundles_post_ra>
// kernel: nlayer_discriminator3d_forward.6
= control target key start
LH: loop header
LB: loop body
LE: loop exit
PB: predicated region body
PF: predicated region fallthrough
CT: control target
= control target key end

     0   :  { %s3646_s12 = smov 0   ;;  %s4286_s0 = inlined_call_operand.vmem [shape: bf16[8,128], index: 0, kind: input, shape index: {}]   ;;  %s4287_s1 = inlined_call_operand.vmem [shape: f32[8,1], index: 1, kind: input, shape index: {}]   ;;  %s4288_s2 = inlined_call_operand.vmem [shape: bf16[2,128,4096], index: 2, kind: input, shape index: {}]   ;;  %s4289_s3 = inlined_call_operand.vmem [shape: bf16[2,8,4096], index: 3, kind: output, shape index: {}]  }
   0x1 LB: > { %s2313_s13 = sadd.s32 4294967295, %s3623_s12   ;;  %p2317_p0 = scmp.ge.s32.totalorder %s3623_s12, 1  ;;  %s3623_s12 = sphi %s3646_s12, %s13_s12  }
   0x2   : > { %p137_p1 = scmp.lt.s32.totalorder %s3623_s12, 3 }
   0x4   : > { %p138_p2 = pnand %p2317_p0, %p137_p1 }
   0x5   : > { %p161_p3 = scmp.lt.s32.totalorder (!%p138_p2), %s2313_s13, 1 }
   0x6   : > { %141 = sbr.rel (%p138_p2) target bundleno = 415 (0x19f), region = 32 }
   0xb   : > { %s4291_s13 = smov (!%p161_p3, %s2313_s13), 1 }
   0xc   : > { %s3348_s14 = sshll.u32 %s4291_s13, 11  ;;  %s3349_s24 = sshll.u32 %s4291_s13, 7 }
   0xd   : > { %s3660_s17 = scalar_lea.vmem %s4288_s2, %s3348_s14  ;;  %s4110_s27 = scalar_lea.vmem %s4289_s3, %s3349_s24 }
   0xe   : > { %v3220_v0 = vld [vmem:[%s3660_s17 + $0x700] sm:$0xf]  ;;  %v3574_v2 = vld [vmem:[%s3660_s17 + $0x704] sm:$0xf]  ;;  %v3228_v5 = vld [vmem:[%s3660_s17 + $0x708] sm:$0xf] }
   0xf   : > { %v3590_v1 = vld [vmem:[%s3660_s17 + $0x77c] sm:$0xf0]  ;;  %v3222_v4 = vld [vmem:[%s3660_s17 + $0x780] sm:$0xf0]  ;;  %v3591_v6 = vld [vmem:[%s3660_s17 + $0x784] sm:$0xf0] }
  0x10   : > { %v3221_v3 = vor.u32 %v3590_v1, %v3220_v0  ;;  %v3225_v7 = vor.u32 %v3574_v2, %v3222_v4  ;;  %v3229_v8 = vor.u32 %v3591_v6, %v3228_v5  ;;  %v3575_v9 = vld [vmem:[%s3660_s17 + $0x70c] sm:$0xf]  ;;  %v3092_v11 = vld [vmem:[%s3660_s17 + $0x600] sm:$0xf]  ;;  %v3542_v14 = vld [vmem:[%s3660_s17 + $0x604] sm:$0xf] }
  0x11   : > { %v3230_v10 = vld [vmem:[%s3660_s17 + $0x788] sm:$0xf0]  ;;  %v3558_v13 = vld [vmem:[%s3660_s17 + $0x67c] sm:$0xf0]  ;;  %v3094_v15 = vld [vmem:[%s3660_s17 + $0x680] sm:$0xf0] }
  0x12   : > { %1714 = vmatpush.bf16.msra.mxu0 %v3221_v3  ;;  %v3233_v12 = vor.u32 %v3575_v9, %v3230_v10  ;;  %1727 = vmatpush.bf16.msra.mxu1 %v3225_v7  ;;  %v3093_v16 = vor.u32 %v3558_v13, %v3092_v11  ;;  %v3097_v17 = vor.u32 %v3542_v14, %v3094_v15  ;;  %v3100_v18 = vld [vmem:[%s3660_s17 + $0x608] sm:$0xf]  ;;  %v3543_v20 = vld [vmem:[%s3660_s17 + $0x60c] sm:$0xf]  ;;  %v2964_v23 = vld [vmem:[%s3660_s17 + $0x500] sm:$0xf] }
  0x13   : > { %1740 = vmatpush.bf16.msra.mxu2 %v3229_v8  ;;  %v3559_v19 = vld [vmem:[%s3660_s17 + $0x684] sm:$0xf0]  ;;  %v3102_v22 = vld [vmem:[%s3660_s17 + $0x688] sm:$0xf0]  ;;  %v3526_v24 = vld [vmem:[%s3660_s17 + $0x57c] sm:$0xf0] }
  0x14   : > { %1753 = vmatpush.bf16.msra.mxu3 %v3233_v12  ;;  %v3101_v21 = vor.u32 %v3559_v19, %v3100_v18  ;;  %v3105_v25 = vor.u32 %v3543_v20, %v3102_v22  ;;  %v3510_v26 = vld [vmem:[%s3660_s17 + $0x504] sm:$0xf]  ;;  %v2972_v28 = vld [vmem:[%s3660_s17 + $0x508] sm:$0xf]  ;;  %v2965_v29 = vor.u32 %v3526_v24, %v2964_v23  ;;  %v3511_v31 = vld [vmem:[%s3660_s17 + $0x50c] sm:$0xf] }
  0x15   : > { %v2966_v27 = vld [vmem:[%s3660_s17 + $0x580] sm:$0xf0]  ;;  %v3527_v30 = vld [vmem:[%s3660_s17 + $0x584] sm:$0xf0]  ;;  %v2974_v32 = vld [vmem:[%s3660_s17 + $0x588] sm:$0xf0] }
  0x16   : > { %1715 = vmatpush.bf16.msra.mxu0 %v3093_v16  ;;  %1728 = vmatpush.bf16.msra.mxu1 %v3097_v17  ;;  %v2969_v33 = vor.u32 %v3510_v26, %v2966_v27  ;;  %v2973_v34 = vor.u32 %v3527_v30, %v2972_v28  ;;  %v2836_v35 = vld [vmem:[%s3660_s17 + $0x400] sm:$0xf]  ;;  %v3478_v37 = vld [vmem:[%s3660_s17 + $0x404] sm:$0xf]  ;;  %v2977_v38 = vor.u32 %v3511_v31, %v2974_v32  ;;  %v2844_v40 = vld [vmem:[%s3660_s17 + $0x408] sm:$0xf] }
  0x17   : > { %1741 = vmatpush.bf16.msra.mxu2 %v3101_v21  ;;  %v3494_v36 = vld [vmem:[%s3660_s17 + $0x47c] sm:$0xf0]  ;;  %v2838_v39 = vld [vmem:[%s3660_s17 + $0x480] sm:$0xf0]  ;;  %v3495_v41 = vld [vmem:[%s3660_s17 + $0x484] sm:$0xf0] }
  0x18   : > { %1754 = vmatpush.bf16.msra.mxu3 %v3105_v25  ;;  %v3479_v42 = vld [vmem:[%s3660_s17 + $0x40c] sm:$0xf]  ;;  %v2837_v44 = vor.u32 %v3494_v36, %v2836_v35  ;;  %v2841_v45 = vor.u32 %v3478_v37, %v2838_v39  ;;  %v2845_v46 = vor.u32 %v3495_v41, %v2844_v40  ;;  %v2708_v47 = vld [vmem:[%s3660_s17 + $0x300] sm:$0xf]  ;;  %v3446_v49 = vld [vmem:[%s3660_s17 + $0x304] sm:$0xf] }
  0x19   : > { %v2846_v43 = vld [vmem:[%s3660_s17 + $0x488] sm:$0xf0]  ;;  %v3462_v48 = vld [vmem:[%s3660_s17 + $0x37c] sm:$0xf0]  ;;  %v2710_v51 = vld [vmem:[%s3660_s17 + $0x380] sm:$0xf0] }
  0x1a   : > { %1716 = vmatpush.bf16.msra.mxu0 %v2965_v29  ;;  %1729 = vmatpush.bf16.msra.mxu1 %v2969_v33  ;;  %v2849_v50 = vor.u32 %v3479_v42, %v2846_v43  ;;  %v2716_v52 = vld [vmem:[%s3660_s17 + $0x308] sm:$0xf]  ;;  %v3447_v54 = vld [vmem:[%s3660_s17 + $0x30c] sm:$0xf]  ;;  %v2709_v56 = vor.u32 %v3462_v48, %v2708_v47  ;;  %v2713_v57 = vor.u32 %v3446_v49, %v2710_v51  ;;  %v2580_v59 = vld [vmem:[%s3660_s17 + $0x200] sm:$0xf] }
  0x1b   : > { %1742 = vmatpush.bf16.msra.mxu2 %v2973_v34  ;;  %v3463_v53 = vld [vmem:[%s3660_s17 + $0x384] sm:$0xf0]  ;;  %v2718_v55 = vld [vmem:[%s3660_s17 + $0x388] sm:$0xf0]  ;;  %v3430_v60 = vld [vmem:[%s3660_s17 + $0x27c] sm:$0xf0] }
  0x1c   : > { %1755 = vmatpush.bf16.msra.mxu3 %v2977_v38  ;;  %v2717_v58 = vor.u32 %v3463_v53, %v2716_v52  ;;  %v3414_v61 = vld [vmem:[%s3660_s17 + $0x204] sm:$0xf]  ;;  %v2721_v62 = vor.u32 %v3447_v54, %v2718_v55  ;;  %v2588_v0 = vld [vmem:[%s3660_s17 + $0x208] sm:$0xf]  ;;  %v3415_v2 = vld [vmem:[%s3660_s17 + $0x20c] sm:$0xf]  ;;  %v2581_v4 = vor.u32 %v3430_v60, %v2580_v59 }
  0x1d   : > { %v2582_v63 = vld [vmem:[%s3660_s17 + $0x280] sm:$0xf0]  ;;  %v3431_v1 = vld [vmem:[%s3660_s17 + $0x284] sm:$0xf0]  ;;  %v2590_v3 = vld [vmem:[%s3660_s17 + $0x288] sm:$0xf0] }
  0x1e   : > { %1717 = vmatpush.bf16.msra.mxu0 %v2837_v44  ;;  %1730 = vmatpush.bf16.msra.mxu1 %v2841_v45  ;;  %v2585_v5 = vor.u32 %v3414_v61, %v2582_v63  ;;  %v2589_v6 = vor.u32 %v3431_v1, %v2588_v0  ;;  %v2452_v7 = vld [vmem:[%s3660_s17 + $0x100] sm:$0xf]  ;;  %v3382_v9 = vld [vmem:[%s3660_s17 + $0x104] sm:$0xf]  ;;  %v2593_v10 = vor.u32 %v3415_v2, %v2590_v3  ;;  %v2460_v12 = vld [vmem:[%s3660_s17 + $0x108] sm:$0xf] }
  0x1f   : > { %1743 = vmatpush.bf16.msra.mxu2 %v2845_v46  ;;  %v3398_v8 = vld [vmem:[%s3660_s17 + $0x17c] sm:$0xf0]  ;;  %v2454_v11 = vld [vmem:[%s3660_s17 + $0x180] sm:$0xf0]  ;;  %v3399_v13 = vld [vmem:[%s3660_s17 + $0x184] sm:$0xf0] }
  0x20   : > { %1756 = vmatpush.bf16.msra.mxu3 %v2849_v50  ;;  %v3383_v14 = vld [vmem:[%s3660_s17 + $0x10c] sm:$0xf]  ;;  %v2453_v16 = vor.u32 %v3398_v8, %v2452_v7  ;;  %v2324_v17 = vld [vmem:[%s3660_s17] sm:$0xf]  ;;  %v2457_v19 = vor.u32 %v3382_v9, %v2454_v11  ;;  %v2461_v20 = vor.u32 %v3399_v13, %v2460_v12  ;;  %v3350_v21 = vld [vmem:[%s3660_s17 + $0x4] sm:$0xf] }
  0x21   : > { %v2462_v15 = vld [vmem:[%s3660_s17 + $0x188] sm:$0xf0]  ;;  %v3366_v18 = vld [vmem:[%s3660_s17 + $0x7c] sm:$0xf0]  ;;  %v2326_v22 = vld [vmem:[%s3660_s17 + $0x80] sm:$0xf0] }
  0x22   : > { %1718 = vmatpush.bf16.msra.mxu0 %v2709_v56  ;;  %1731 = vmatpush.bf16.msra.mxu1 %v2713_v57  ;;  %v2332_v23 = vld [vmem:[%s3660_s17 + $0x8] sm:$0xf]  ;;  %v2465_v24 = vor.u32 %v3383_v14, %v2462_v15  ;;  %v3351_v26 = vld [vmem:[%s3660_s17 + $0xc] sm:$0xf]  ;;  %v3236_v28 = vld [vmem:[%s3660_s17 + $0x710] sm:$0xf]  ;;  %v2325_v31 = vor.u32 %v3366_v18, %v2324_v17  ;;  %v2329_v35 = vor.u32 %v3350_v21, %v2326_v22 }
  0x23   : > { %1744 = vmatpush.bf16.msra.mxu2 %v2717_v58  ;;  %v3367_v25 = vld [vmem:[%s3660_s17 + $0x84] sm:$0xf0]  ;;  %v2334_v27 = vld [vmem:[%s3660_s17 + $0x88] sm:$0xf0]  ;;  %v3592_v29 = vld [vmem:[%s3660_s17 + $0x78c] sm:$0xf0] }
  0x24   : > { %1757 = vmatpush.bf16.msra.mxu3 %v2721_v62  ;;  %v3576_v30 = vld [vmem:[%s3660_s17 + $0x714] sm:$0xf]  ;;  %v3244_v33 = vld [vmem:[%s3660_s17 + $0x718] sm:$0xf]  ;;  %v2333_v36 = vor.u32 %v3367_v25, %v2332_v23  ;;  %v3577_v37 = vld [vmem:[%s3660_s17 + $0x71c] sm:$0xf]  ;;  %v2337_v39 = vor.u32 %v3351_v26, %v2334_v27  ;;  %v3237_v40 = vor.u32 %v3592_v29, %v3236_v28 }
  0x25   : > { %v3238_v32 = vld [vmem:[%s3660_s17 + $0x790] sm:$0xf0]  ;;  %v3593_v34 = vld [vmem:[%s3660_s17 + $0x794] sm:$0xf0]  ;;  %v3246_v38 = vld [vmem:[%s3660_s17 + $0x798] sm:$0xf0] }
  0x26   : > { %1719 = vmatpush.bf16.msra.mxu0 %v2581_v4  ;;  %1732 = vmatpush.bf16.msra.mxu1 %v2585_v5  ;;  %v3241_v41 = vor.u32 %v3576_v30, %v3238_v32  ;;  %v3245_v42 = vor.u32 %v3593_v34, %v3244_v33  ;;  %v3108_v43 = vld [vmem:[%s3660_s17 + $0x610] sm:$0xf]  ;;  %v3544_v45 = vld [vmem:[%s3660_s17 + $0x614] sm:$0xf]  ;;  %v3249_v46 = vor.u32 %v3577_v37, %v3246_v38  ;;  %v3116_v48 = vld [vmem:[%s3660_s17 + $0x618] sm:$0xf] }
  0x27   : > { %1745 = vmatpush.bf16.msra.mxu2 %v2589_v6  ;;  %v3560_v44 = vld [vmem:[%s3660_s17 + $0x68c] sm:$0xf0]  ;;  %v3110_v47 = vld [vmem:[%s3660_s17 + $0x690] sm:$0xf0]  ;;  %v3561_v49 = vld [vmem:[%s3660_s17 + $0x694] sm:$0xf0] }
  0x28   : > { %1758 = vmatpush.bf16.msra.mxu3 %v2593_v10  ;;  %v3545_v50 = vld [vmem:[%s3660_s17 + $0x61c] sm:$0xf]  ;;  %v3109_v52 = vor.u32 %v3560_v44, %v3108_v43  ;;  %v3113_v53 = vor.u32 %v3544_v45, %v3110_v47  ;;  %v3117_v54 = vor.u32 %v3561_v49, %v3116_v48  ;;  %v2980_v55 = vld [vmem:[%s3660_s17 + $0x510] sm:$0xf]  ;;  %v3512_v57 = vld [vmem:[%s3660_s17 + $0x514] sm:$0xf] }
  0x29   : > { %v3118_v51 = vld [vmem:[%s3660_s17 + $0x698] sm:$0xf0]  ;;  %v3528_v56 = vld [vmem:[%s3660_s17 + $0x58c] sm:$0xf0]  ;;  %v2982_v59 = vld [vmem:[%s3660_s17 + $0x590] sm:$0xf0] }
  0x2a   : > { %1720 = vmatpush.bf16.msra.mxu0 %v2453_v16  ;;  %1733 = vmatpush.bf16.msra.mxu1 %v2457_v19  ;;  %v3121_v58 = vor.u32 %v3545_v50, %v3118_v51  ;;  %v2988_v60 = vld [vmem:[%s3660_s17 + $0x518] sm:$0xf]  ;;  %v3513_v62 = vld [vmem:[%s3660_s17 + $0x51c] sm:$0xf]  ;;  %v2981_v0 = vor.u32 %v3528_v56, %v2980_v55  ;;  %v3753_v1 = vld [vmem:[%s4286_s0] sm:$0xf]  ;;  %v2985_v2 = vor.u32 %v3512_v57, %v2982_v59 }
  0x2b   : > { %1746 = vmatpush.bf16.msra.mxu2 %v2461_v20  ;;  %v3529_v61 = vld [vmem:[%s3660_s17 + $0x594] sm:$0xf0]  ;;  %v2990_v63 = vld [vmem:[%s3660_s17 + $0x598] sm:$0xf0]  ;;  %v2852_v4 = vld [vmem:[%s3660_s17 + $0x410] sm:$0xf] }
  0x2c   : > { %1759 = vmatpush.bf16.msra.mxu3 %v2465_v24  ;;  %v2989_v3 = vor.u32 %v3529_v61, %v2988_v60  ;;  %v3496_v5 = vld [vmem:[%s3660_s17 + $0x48c] sm:$0xf0]  ;;  %v3480_v6 = vld [vmem:[%s3660_s17 + $0x414] sm:$0xf]  ;;  %v2993_v7 = vor.u32 %v3513_v62, %v2990_v63  ;;  %v2860_v9 = vld [vmem:[%s3660_s17 + $0x418] sm:$0xf] }
  0x2d   : > { %v2854_v8 = vld [vmem:[%s3660_s17 + $0x490] sm:$0xf0]  ;;  %v3497_v10 = vld [vmem:[%s3660_s17 + $0x494] sm:$0xf0]  ;;  %v3481_v11 = vld [vmem:[%s3660_s17 + $0x41c] sm:$0xf]  ;;  %v2853_v13 = vor.u32 %v3496_v5, %v2852_v4 }
  0x2e   : > { %1721 = vmatpush.bf16.msra.mxu0 %v2325_v31  ;;  %1734 = vmatpush.bf16.msra.mxu1 %v2329_v35  ;;  %v2862_v12 = vld [vmem:[%s3660_s17 + $0x498] sm:$0xf0]  ;;  %v2857_v14 = vor.u32 %v3480_v6, %v2854_v8  ;;  %v2861_v15 = vor.u32 %v3497_v10, %v2860_v9  ;;  %v2724_v16 = vld [vmem:[%s3660_s17 + $0x310] sm:$0xf]  ;;  %v3448_v18 = vld [vmem:[%s3660_s17 + $0x314] sm:$0xf] }
  0x2f   : > { %1747 = vmatpush.bf16.msra.mxu2 %v2333_v36  ;;  %v3464_v17 = vld [vmem:[%s3660_s17 + $0x38c] sm:$0xf0]  ;;  %v2865_v19 = vor.u32 %v3481_v11, %v2862_v12  ;;  %v2726_v20 = vld [vmem:[%s3660_s17 + $0x390] sm:$0xf0]  ;;  %v2732_v21 = vld [vmem:[%s3660_s17 + $0x318] sm:$0xf] }
  0x30   : > { %1760 = vmatpush.bf16.msra.mxu3 %v2337_v39  ;;  %v3465_v22 = vld [vmem:[%s3660_s17 + $0x394] sm:$0xf0]  ;;  %v3449_v23 = vld [vmem:[%s3660_s17 + $0x31c] sm:$0xf]  ;;  %v2725_v25 = vor.u32 %v3464_v17, %v2724_v16  ;;  %v2729_v26 = vor.u32 %v3448_v18, %v2726_v20  ;;  %v2596_v28 = vld [vmem:[%s3660_s17 + $0x210] sm:$0xf] }
  0x31   : > { %1722 = vmatmul.bf16.vlgmr.msra.gmra.mxu0 %v3753_v1  ;;  %1735 = vmatmul.bf16.vlgmr.msra.gmra.mxu1 %v3753_v1  ;;  %v2734_v24 = vld [vmem:[%s3660_s17 + $0x398] sm:$0xf0]  ;;  %v2733_v27 = vor.u32 %v3465_v22, %v2732_v21  ;;  %v3432_v29 = vld [vmem:[%s3660_s17 + $0x28c] sm:$0xf0]  ;;  %v3416_v30 = vld [vmem:[%s3660_s17 + $0x214] sm:$0xf] }
  0x32   : > { %1766 = vmatpush.bf16.msrb.mxu0 %v3237_v40  ;;  %1779 = vmatpush.bf16.msrb.mxu1 %v3241_v41  ;;  %v2737_v31 = vor.u32 %v3449_v23, %v2734_v24  ;;  %v2598_v32 = vld [vmem:[%s3660_s17 + $0x290] sm:$0xf0]  ;;  %v2604_v33 = vld [vmem:[%s3660_s17 + $0x218] sm:$0xf]  ;;  %v3417_v35 = vld [vmem:[%s3660_s17 + $0x21c] sm:$0xf]  ;;  %v2597_v37 = vor.u32 %v3432_v29, %v2596_v28 }
  0x33   : > { %1792 = vmatpush.bf16.msrb.mxu2 %v3245_v42  ;;  %1761 = vmatmul.bf16.vlgmr.msra.gmra.mxu3 %v3753_v1  ;;  %v3433_v34 = vld [vmem:[%s3660_s17 + $0x294] sm:$0xf0]  ;;  %v2606_v36 = vld [vmem:[%s3660_s17 + $0x298] sm:$0xf0]  ;;  %v2601_v38 = vor.u32 %v3416_v30, %v2598_v32  ;;  %v2468_v40 = vld [vmem:[%s3660_s17 + $0x110] sm:$0xf] }
  0x34   : > { %1805 = vmatpush.bf16.msrb.mxu3 %v3249_v46  ;;  %1748 = vmatmul.bf16.vlgmr.msra.gmra.mxu2 %v3753_v1  ;;  %v2605_v39 = vor.u32 %v3433_v34, %v2604_v33  ;;  %v3400_v41 = vld [vmem:[%s3660_s17 + $0x18c] sm:$0xf0]  ;;  %v3384_v42 = vld [vmem:[%s3660_s17 + $0x114] sm:$0xf]  ;;  %v2609_v43 = vor.u32 %v3417_v35, %v2606_v36  ;;  %v2476_v45 = vld [vmem:[%s3660_s17 + $0x118] sm:$0xf] }
  0x35   : > { %v2470_v44 = vld [vmem:[%s3660_s17 + $0x190] sm:$0xf0]  ;;  %v3401_v46 = vld [vmem:[%s3660_s17 + $0x194] sm:$0xf0]  ;;  %v3385_v47 = vld [vmem:[%s3660_s17 + $0x11c] sm:$0xf]  ;;  %v2469_v49 = vor.u32 %v3400_v41, %v2468_v40 }
  0x36   : > { %1767 = vmatpush.bf16.msrb.mxu0 %v3109_v52  ;;  %1780 = vmatpush.bf16.msrb.mxu1 %v3113_v53  ;;  %v2478_v48 = vld [vmem:[%s3660_s17 + $0x198] sm:$0xf0]  ;;  %v2340_v50 = vld [vmem:[%s3660_s17 + $0x10] sm:$0xf]  ;;  %v428_v52 = vld [vmem:[%s4287_s1] sm:$0xff]  ;;  %v2473_v53 = vor.u32 %v3384_v42, %v2470_v44  ;;  %v3625_v62 = vmov 0  }
  0x37   : > { %1793 = vmatpush.bf16.msrb.mxu2 %v3117_v54  ;;  %v3368_v51 = vld [vmem:[%s3660_s17 + $0x8c] sm:$0xf0]  ;;  %v2477_v54 = vor.u32 %v3401_v46, %v2476_v45  ;;  %v3352_v55 = vld [vmem:[%s3660_s17 + $0x14] sm:$0xf]  ;;  %v2348_v57 = vld [vmem:[%s3660_s17 + $0x18] sm:$0xf]  ;;  %3615 = vset.pattern.permute.xlu0 %v3625_v62 }
  0x38   : > { %1806 = vmatpush.bf16.msrb.mxu3 %v3121_v58  ;;  %v2342_v56 = vld [vmem:[%s3660_s17 + $0x90] sm:$0xf0]  ;;  %v2481_v58 = vor.u32 %v3385_v47, %v2478_v48  ;;  %v3369_v59 = vld [vmem:[%s3660_s17 + $0x94] sm:$0xf0]  ;;  %v3353_v60 = vld [vmem:[%s3660_s17 + $0x1c] sm:$0xf]  ;;  %431 = vperm.xlu0 %3615, %v428_v52  }
  0x39   : > { %v2350_v61 = vld [vmem:[%s3660_s17 + $0x98] sm:$0xf0]  ;;  %v3252_v63 = vld [vmem:[%s3660_s17 + $0x720] sm:$0xf]  ;;  %v3254_v4 = vld [vmem:[%s3660_s17 + $0x7a0] sm:$0xf0]  ;;  %v2349_v8 = vor.u32 %v3369_v59, %v2348_v57 }
  0x3a   : > { %1768 = vmatpush.bf16.msrb.mxu0 %v2981_v0  ;;  %1781 = vmatpush.bf16.msrb.mxu1 %v2985_v2  ;;  %v3594_v0 = vld [vmem:[%s3660_s17 + $0x79c] sm:$0xf0]  ;;  %v3578_v2 = vld [vmem:[%s3660_s17 + $0x724] sm:$0xf]  ;;  %v3260_v5 = vld [vmem:[%s3660_s17 + $0x728] sm:$0xf]  ;;  %v2353_v11 = vor.u32 %v3353_v60, %v2350_v61 }
  0x3b   : > { %1794 = vmatpush.bf16.msrb.mxu2 %v2989_v3  ;;  %v2341_v3 = vor.u32 %v3368_v51, %v2340_v50  ;;  %v3595_v6 = vld [vmem:[%s3660_s17 + $0x7a4] sm:$0xf0]  ;;  %v3579_v9 = vld [vmem:[%s3660_s17 + $0x72c] sm:$0xf]  ;;  %v3253_v12 = vor.u32 %v3594_v0, %v3252_v63  ;;  %v3562_v16 = vld [vmem:[%s3660_s17 + $0x69c] sm:$0xf0] }
  0x3c   : > { %1807 = vmatpush.bf16.msrb.mxu3 %v2993_v7  ;;  %v2345_v7 = vor.u32 %v3352_v55, %v2342_v56  ;;  %v3262_v10 = vld [vmem:[%s3660_s17 + $0x7a8] sm:$0xf0]  ;;  %v3546_v17 = vld [vmem:[%s3660_s17 + $0x624] sm:$0xf]  ;;  %v3132_v20 = vld [vmem:[%s3660_s17 + $0x628] sm:$0xf] }
  0x3d   : > { %v3265_v18 = vor.u32 %v3579_v9, %v3262_v10  ;;  %v3563_v21 = vld [vmem:[%s3660_s17 + $0x6a4] sm:$0xf0]  ;;  %v3547_v22 = vld [vmem:[%s3660_s17 + $0x62c] sm:$0xf]  ;;  %v3530_v28 = vld [vmem:[%s3660_s17 + $0x59c] sm:$0xf0] }
  0x3e   : > { %1769 = vmatpush.bf16.msrb.mxu0 %v2853_v13  ;;  %1782 = vmatpush.bf16.msrb.mxu1 %v2857_v14  ;;  %v3257_v13 = vor.u32 %v3578_v2, %v3254_v4  ;;  %v3261_v14 = vor.u32 %v3595_v6, %v3260_v5  ;;  %v3134_v23 = vld [vmem:[%s3660_s17 + $0x6a8] sm:$0xf0]  ;;  %v3514_v29 = vld [vmem:[%s3660_s17 + $0x524] sm:$0xf]  ;;  %v3004_v32 = vld [vmem:[%s3660_s17 + $0x528] sm:$0xf] }
  0x3f   : > { %1795 = vmatpush.bf16.msrb.mxu2 %v2861_v15  ;;  %v3124_v15 = vld [vmem:[%s3660_s17 + $0x620] sm:$0xf]  ;;  %v3137_v30 = vor.u32 %v3547_v22, %v3134_v23  ;;  %v3531_v33 = vld [vmem:[%s3660_s17 + $0x5a4] sm:$0xf0]  ;;  %v3515_v34 = vld [vmem:[%s3660_s17 + $0x52c] sm:$0xf] }
  0x40   : > { %1808 = vmatpush.bf16.msrb.mxu3 %v2865_v19  ;;  %v3126_v19 = vld [vmem:[%s3660_s17 + $0x6a0] sm:$0xf0]  ;;  %v3125_v24 = vor.u32 %v3562_v16, %v3124_v15  ;;  %v3006_v35 = vld [vmem:[%s3660_s17 + $0x5a8] sm:$0xf0]  ;;  %v3498_v40 = vld [vmem:[%s3660_s17 + $0x49c] sm:$0xf0] }
  0x41   : > { %v3482_v41 = vld [vmem:[%s3660_s17 + $0x424] sm:$0xf]  ;;  %v3009_v42 = vor.u32 %v3515_v34, %v3006_v35  ;;  %v2876_v44 = vld [vmem:[%s3660_s17 + $0x428] sm:$0xf]  ;;  %v3483_v46 = vld [vmem:[%s3660_s17 + $0x42c] sm:$0xf] }
  0x42   : > { %1770 = vmatpush.bf16.msrb.mxu0 %v2725_v25  ;;  %1783 = vmatpush.bf16.msrb.mxu1 %v2729_v26  ;;  %v3129_v25 = vor.u32 %v3546_v17, %v3126_v19  ;;  %v3133_v26 = vor.u32 %v3563_v21, %v3132_v20  ;;  %v3499_v45 = vld [vmem:[%s3660_s17 + $0x4a4] sm:$0xf0]  ;;  %v2878_v47 = vld [vmem:[%s3660_s17 + $0x4a8] sm:$0xf0]  ;;  %v2740_v51 = vld [vmem:[%s3660_s17 + $0x320] sm:$0xf] }
  0x43   : > { %1796 = vmatpush.bf16.msrb.mxu2 %v2733_v27  ;;  %v2996_v27 = vld [vmem:[%s3660_s17 + $0x520] sm:$0xf]  ;;  %v2877_v50 = vor.u32 %v3499_v45, %v2876_v44  ;;  %v2742_v55 = vld [vmem:[%s3660_s17 + $0x3a0] sm:$0xf0]  ;;  %v2748_v56 = vld [vmem:[%s3660_s17 + $0x328] sm:$0xf] }
  0x44   : > { %1809 = vmatpush.bf16.msrb.mxu3 %v2737_v31  ;;  %v2998_v31 = vld [vmem:[%s3660_s17 + $0x5a0] sm:$0xf0]  ;;  %v2997_v36 = vor.u32 %v3530_v28, %v2996_v27  ;;  %v3466_v52 = vld [vmem:[%s3660_s17 + $0x39c] sm:$0xf0]  ;;  %v3467_v57 = vld [vmem:[%s3660_s17 + $0x3a4] sm:$0xf0] }
  0x45   : > { %v2750_v59 = vld [vmem:[%s3660_s17 + $0x3a8] sm:$0xf0]  ;;  %v2741_v60 = vor.u32 %v3466_v52, %v2740_v51  ;;  %v2749_v62 = vor.u32 %v3467_v57, %v2748_v56  ;;  %v2612_v63 = vld [vmem:[%s3660_s17 + $0x220] sm:$0xf]  ;;  %v3418_v2 = vld [vmem:[%s3660_s17 + $0x224] sm:$0xf] }
  0x46   : > { %1771 = vmatpush.bf16.msrb.mxu0 %v2597_v37  ;;  %1784 = vmatpush.bf16.msrb.mxu1 %v2601_v38  ;;  %v3001_v37 = vor.u32 %v3514_v29, %v2998_v31  ;;  %v3005_v38 = vor.u32 %v3531_v33, %v3004_v32  ;;  %v3434_v0 = vld [vmem:[%s3660_s17 + $0x29c] sm:$0xf0]  ;;  %v2614_v4 = vld [vmem:[%s3660_s17 + $0x2a0] sm:$0xf0]  ;;  %v2620_v5 = vld [vmem:[%s3660_s17 + $0x228] sm:$0xf] }
  0x47   : > { %1797 = vmatpush.bf16.msrb.mxu2 %v2605_v39  ;;  %v2868_v39 = vld [vmem:[%s3660_s17 + $0x420] sm:$0xf]  ;;  %v3435_v6 = vld [vmem:[%s3660_s17 + $0x2a4] sm:$0xf0]  ;;  %v2613_v9 = vor.u32 %v3434_v0, %v2612_v63  ;;  %v2617_v10 = vor.u32 %v3418_v2, %v2614_v4  ;;  %v2486_v16 = vld [vmem:[%s3660_s17 + $0x1a0] sm:$0xf0] }
  0x48   : > { %1810 = vmatpush.bf16.msrb.mxu3 %v2609_v43  ;;  %v2870_v43 = vld [vmem:[%s3660_s17 + $0x4a0] sm:$0xf0]  ;;  %v2869_v48 = vor.u32 %v3498_v40, %v2868_v39  ;;  %v2492_v17 = vld [vmem:[%s3660_s17 + $0x128] sm:$0xf]  ;;  %v3387_v19 = vld [vmem:[%s3660_s17 + $0x12c] sm:$0xf] }
  0x49   : > { %v2494_v20 = vld [vmem:[%s3660_s17 + $0x1a8] sm:$0xf0]  ;;  %v2356_v22 = vld [vmem:[%s3660_s17 + $0x20] sm:$0xf]  ;;  %v2358_v27 = vld [vmem:[%s3660_s17 + $0xa0] sm:$0xf0] }
  0x4a   : > { %1772 = vmatpush.bf16.msrb.mxu0 %v2469_v49  ;;  %1785 = vmatpush.bf16.msrb.mxu1 %v2473_v53  ;;  %v2873_v49 = vor.u32 %v3482_v41, %v2870_v43  ;;  %v3450_v53 = vld [vmem:[%s3660_s17 + $0x324] sm:$0xf]  ;;  %v3370_v23 = vld [vmem:[%s3660_s17 + $0x9c] sm:$0xf0]  ;;  %v2364_v28 = vld [vmem:[%s3660_s17 + $0x28] sm:$0xf]  ;;  %v2497_v29 = vor.u32 %v3387_v19, %v2494_v20 }
  0x4b   : > { %1798 = vmatpush.bf16.msrb.mxu2 %v2477_v54  ;;  %v2881_v54 = vor.u32 %v3483_v46, %v2878_v47  ;;  %v2745_v61 = vor.u32 %v3450_v53, %v2742_v55  ;;  %v3355_v31 = vld [vmem:[%s3660_s17 + $0x2c] sm:$0xf]  ;;  %v3268_v33 = vld [vmem:[%s3660_s17 + $0x730] sm:$0xf]  ;;  %v3580_v35 = vld [vmem:[%s3660_s17 + $0x734] sm:$0xf] }
  0x4c   : > { %1811 = vmatpush.bf16.msrb.mxu3 %v2481_v58  ;;  %v3451_v58 = vld [vmem:[%s3660_s17 + $0x32c] sm:$0xf]  ;;  %v3596_v34 = vld [vmem:[%s3660_s17 + $0x7ac] sm:$0xf0]  ;;  %v3597_v39 = vld [vmem:[%s3660_s17 + $0x7b4] sm:$0xf0] }
  0x4d   : > { %v2366_v32 = vld [vmem:[%s3660_s17 + $0xa8] sm:$0xf0]  ;;  %v3278_v43 = vld [vmem:[%s3660_s17 + $0x7b8] sm:$0xf0]  ;;  %v3269_v45 = vor.u32 %v3596_v34, %v3268_v33  ;;  %v3142_v52 = vld [vmem:[%s3660_s17 + $0x6b0] sm:$0xf0] }
  0x4e   : > { %1773 = vmatpush.bf16.msrb.mxu0 %v2341_v3  ;;  %1786 = vmatpush.bf16.msrb.mxu1 %v2345_v7  ;;  %v2753_v3 = vor.u32 %v3451_v58, %v2750_v59  ;;  %v3419_v7 = vld [vmem:[%s3660_s17 + $0x22c] sm:$0xf]  ;;  %v2369_v44 = vor.u32 %v3355_v31, %v2366_v32  ;;  %v3148_v53 = vld [vmem:[%s3660_s17 + $0x638] sm:$0xf]  ;;  %v3549_v55 = vld [vmem:[%s3660_s17 + $0x63c] sm:$0xf] }
  0x4f   : > { %1799 = vmatpush.bf16.msrb.mxu2 %v2349_v8  ;;  %v2622_v8 = vld [vmem:[%s3660_s17 + $0x2a8] sm:$0xf0]  ;;  %v3150_v56 = vld [vmem:[%s3660_s17 + $0x6b8] sm:$0xf0]  ;;  %v3014_v0 = vld [vmem:[%s3660_s17 + $0x5b0] sm:$0xf0] }
  0x50   : > { %1812 = vmatpush.bf16.msrb.mxu3 %v2353_v11  ;;  %v2621_v11 = vor.u32 %v3435_v6, %v2620_v5  ;;  %v2625_v15 = vor.u32 %v3419_v7, %v2622_v8  ;;  %v3153_v63 = vor.u32 %v3549_v55, %v3150_v56  ;;  %v3020_v2 = vld [vmem:[%s3660_s17 + $0x538] sm:$0xf]  ;;  %v3517_v4 = vld [vmem:[%s3660_s17 + $0x53c] sm:$0xf]  ;;  %v2628_v33 = vld [vmem:[%s3660_s17 + $0x230] sm:$0xf] }
  0x51   : > { %1774 = vmatmul.bf16.vlgmr.msrb.gmra.mxu0 %v3753_v1  ;;  %1787 = vmatmul.bf16.vlgmr.msrb.gmra.mxu1 %v3753_v1  ;;  %v3022_v5 = vld [vmem:[%s3660_s17 + $0x5b8] sm:$0xf0]  ;;  %v3436_v34 = vld [vmem:[%s3660_s17 + $0x2ac] sm:$0xf0] }
  0x52   : > { %1818 = vmatpush.bf16.msra.mxu0 %v3253_v12  ;;  %1831 = vmatpush.bf16.msra.mxu1 %v3257_v13  ;;  %v2484_v12 = vld [vmem:[%s3660_s17 + $0x120] sm:$0xf]  ;;  %v2372_v55 = vld [vmem:[%s3660_s17 + $0x30] sm:$0xf] }
  0x53   : > { %1844 = vmatpush.bf16.msra.mxu2 %v3261_v14  ;;  %1813 = vmatmul.bf16.vlgmr.msrb.gmra.mxu3 %v3753_v1  ;;  %v3402_v13 = vld [vmem:[%s3660_s17 + $0x19c] sm:$0xf0]  ;;  %v3386_v14 = vld [vmem:[%s3660_s17 + $0x124] sm:$0xf]  ;;  %v3372_v56 = vld [vmem:[%s3660_s17 + $0xac] sm:$0xf0] }
  0x54   : > { %1857 = vmatpush.bf16.msra.mxu3 %v3265_v18  ;;  %1800 = vmatmul.bf16.vlgmr.msrb.gmra.mxu2 %v3753_v1  ;;  %v3403_v18 = vld [vmem:[%s3660_s17 + $0x1a4] sm:$0xf0]  ;;  %v2485_v21 = vor.u32 %v3402_v13, %v2484_v12  ;;  %v3025_v12 = vor.u32 %v3517_v4, %v3022_v5  ;;  %v2886_v13 = vld [vmem:[%s3660_s17 + $0x4b0] sm:$0xf0]  ;;  %v3598_v4 = vld [vmem:[%s3660_s17 + $0x7bc] sm:$0xf0] }
  0x55   : > { %v3582_v5 = vld [vmem:[%s3660_s17 + $0x744] sm:$0xf] }
  0x56   : > { %1819 = vmatpush.bf16.msra.mxu0 %v3125_v24  ;;  %1832 = vmatpush.bf16.msra.mxu1 %v3129_v25  ;;  %v2489_v24 = vor.u32 %v3386_v14, %v2486_v16  ;;  %v2493_v25 = vor.u32 %v3403_v18, %v2492_v17  ;;  %v2892_v14 = vld [vmem:[%s3660_s17 + $0x438] sm:$0xf]  ;;  %v3485_v16 = vld [vmem:[%s3660_s17 + $0x43c] sm:$0xf] }
  0x57   : > { %1845 = vmatpush.bf16.msra.mxu2 %v3133_v26  ;;  %v3354_v26 = vld [vmem:[%s3660_s17 + $0x24] sm:$0xf]  ;;  %v2894_v17 = vld [vmem:[%s3660_s17 + $0x4b8] sm:$0xf0] }
  0x58   : > { %1858 = vmatpush.bf16.msra.mxu3 %v3137_v30  ;;  %v3371_v30 = vld [vmem:[%s3660_s17 + $0xa4] sm:$0xf0]  ;;  %v2361_v40 = vor.u32 %v3354_v26, %v2358_v27  ;;  %v2764_v26 = vld [vmem:[%s3660_s17 + $0x338] sm:$0xf] }
  0x59   : > { %v2365_v41 = vor.u32 %v3371_v30, %v2364_v28  ;;  %v3469_v27 = vld [vmem:[%s3660_s17 + $0x3b4] sm:$0xf0]  ;;  %v3453_v28 = vld [vmem:[%s3660_s17 + $0x33c] sm:$0xf] }
  0x5a   : > { %1820 = vmatpush.bf16.msra.mxu0 %v2997_v36  ;;  %1833 = vmatpush.bf16.msra.mxu1 %v3001_v37  ;;  %v2357_v36 = vor.u32 %v3370_v23, %v2356_v22  ;;  %v3270_v37 = vld [vmem:[%s3660_s17 + $0x7b0] sm:$0xf0]  ;;  %v3468_v22 = vld [vmem:[%s3660_s17 + $0x3ac] sm:$0xf0]  ;;  %v2765_v32 = vor.u32 %v3469_v27, %v2764_v26  ;;  %v3166_v26 = vld [vmem:[%s3660_s17 + $0x6c8] sm:$0xf0] }
  0x5b   : > { %1846 = vmatpush.bf16.msra.mxu2 %v3005_v38  ;;  %v3276_v38 = vld [vmem:[%s3660_s17 + $0x738] sm:$0xf]  ;;  %v3273_v46 = vor.u32 %v3580_v35, %v3270_v37  ;;  %v3452_v23 = vld [vmem:[%s3660_s17 + $0x334] sm:$0xf] }
  0x5c   : > { %1859 = vmatpush.bf16.msra.mxu3 %v3009_v42  ;;  %v3581_v42 = vld [vmem:[%s3660_s17 + $0x73c] sm:$0xf]  ;;  %v3277_v47 = vor.u32 %v3597_v39, %v3276_v38  ;;  %v3420_v35 = vld [vmem:[%s3660_s17 + $0x234] sm:$0xf]  ;;  %v2636_v38 = vld [vmem:[%s3660_s17 + $0x238] sm:$0xf] }
  0x5d   : > { %v3281_v51 = vor.u32 %v3581_v42, %v3278_v43  ;;  %v2630_v37 = vld [vmem:[%s3660_s17 + $0x2b0] sm:$0xf0]  ;;  %v3437_v39 = vld [vmem:[%s3660_s17 + $0x2b4] sm:$0xf0]  ;;  %v2629_v42 = vor.u32 %v3436_v34, %v2628_v33  ;;  %v3030_v34 = vld [vmem:[%s3660_s17 + $0x5c0] sm:$0xf0] }
  0x5e   : > { %1821 = vmatpush.bf16.msra.mxu0 %v2869_v48  ;;  %1834 = vmatpush.bf16.msra.mxu1 %v2873_v49  ;;  %v3140_v48 = vld [vmem:[%s3660_s17 + $0x630] sm:$0xf]  ;;  %v2633_v43 = vor.u32 %v3420_v35, %v2630_v37  ;;  %v3036_v35 = vld [vmem:[%s3660_s17 + $0x548] sm:$0xf]  ;;  %v3519_v37 = vld [vmem:[%s3660_s17 + $0x54c] sm:$0xf] }
  0x5f   : > { %1847 = vmatpush.bf16.msra.mxu2 %v2877_v50  ;;  %v3564_v49 = vld [vmem:[%s3660_s17 + $0x6ac] sm:$0xf0]  ;;  %v3548_v50 = vld [vmem:[%s3660_s17 + $0x634] sm:$0xf] }
  0x60   : > { %1860 = vmatpush.bf16.msra.mxu3 %v2881_v54  ;;  %v3565_v54 = vld [vmem:[%s3660_s17 + $0x6b4] sm:$0xf0]  ;;  %v3141_v57 = vor.u32 %v3564_v49, %v3140_v48  ;;  %v3145_v58 = vor.u32 %v3548_v50, %v3142_v52  ;;  %v2502_v49 = vld [vmem:[%s3660_s17 + $0x1b0] sm:$0xf0]  ;;  %v3389_v52 = vld [vmem:[%s3660_s17 + $0x13c] sm:$0xf] }
  0x61   : > { %v3149_v59 = vor.u32 %v3565_v54, %v3148_v53  ;;  %v2508_v50 = vld [vmem:[%s3660_s17 + $0x138] sm:$0xf]  ;;  %v2510_v53 = vld [vmem:[%s3660_s17 + $0x1b8] sm:$0xf0] }
  0x62   : > { %1822 = vmatpush.bf16.msra.mxu0 %v2741_v60  ;;  %1835 = vmatpush.bf16.msra.mxu1 %v2745_v61  ;;  %v3012_v60 = vld [vmem:[%s3660_s17 + $0x530] sm:$0xf] }
  0x63   : > { %1848 = vmatpush.bf16.msra.mxu2 %v2749_v62  ;;  %v3532_v61 = vld [vmem:[%s3660_s17 + $0x5ac] sm:$0xf0]  ;;  %v3516_v62 = vld [vmem:[%s3660_s17 + $0x534] sm:$0xf] }
  0x64   : > { %1861 = vmatpush.bf16.msra.mxu3 %v2753_v3  ;;  %v3533_v3 = vld [vmem:[%s3660_s17 + $0x5b4] sm:$0xf0]  ;;  %v3013_v6 = vor.u32 %v3532_v61, %v3012_v60  ;;  %v3017_v7 = vor.u32 %v3516_v62, %v3014_v0  ;;  %v2374_v60 = vld [vmem:[%s3660_s17 + $0xb0] sm:$0xf0]  ;;  %v2513_v62 = vor.u32 %v3389_v52, %v2510_v53  ;;  %v3357_v0 = vld [vmem:[%s3660_s17 + $0x3c] sm:$0xf] }
  0x65   : > { %v3021_v8 = vor.u32 %v3533_v3, %v3020_v2  ;;  %v2380_v61 = vld [vmem:[%s3660_s17 + $0x38] sm:$0xf]  ;;  %v2382_v2 = vld [vmem:[%s3660_s17 + $0xb8] sm:$0xf0]  ;;  %v3284_v3 = vld [vmem:[%s3660_s17 + $0x740] sm:$0xf] }
  0x66   : > { %1823 = vmatpush.bf16.msra.mxu0 %v2613_v9  ;;  %1836 = vmatpush.bf16.msra.mxu1 %v2617_v10  ;;  %v2884_v9 = vld [vmem:[%s3660_s17 + $0x430] sm:$0xf]  ;;  %v2772_v53 = vld [vmem:[%s3660_s17 + $0x340] sm:$0xf] }
  0x67   : > { %1849 = vmatpush.bf16.msra.mxu2 %v2621_v11  ;;  %v3500_v10 = vld [vmem:[%s3660_s17 + $0x4ac] sm:$0xf0]  ;;  %v3484_v11 = vld [vmem:[%s3660_s17 + $0x434] sm:$0xf] }
  0x68   : > { %1862 = vmatpush.bf16.msra.mxu3 %v2625_v15  ;;  %v3501_v15 = vld [vmem:[%s3660_s17 + $0x4b4] sm:$0xf0]  ;;  %v2885_v18 = vor.u32 %v3500_v10, %v2884_v9  ;;  %v2889_v19 = vor.u32 %v3484_v11, %v2886_v13  ;;  %v3599_v9 = vld [vmem:[%s3660_s17 + $0x7c4] sm:$0xf0]  ;;  %v3294_v13 = vld [vmem:[%s3660_s17 + $0x7c8] sm:$0xf0] }
  0x69   : > { %v2893_v20 = vor.u32 %v3501_v15, %v2892_v14  ;;  %v2385_v14 = vor.u32 %v3357_v0, %v2382_v2  ;;  %v3285_v15 = vor.u32 %v3598_v4, %v3284_v3  ;;  %v2644_v2 = vld [vmem:[%s3660_s17 + $0x240] sm:$0xf]  ;;  %v3422_v4 = vld [vmem:[%s3660_s17 + $0x244] sm:$0xf] }
  0x6a   : > { %1824 = vmatpush.bf16.msra.mxu0 %v2485_v21  ;;  %1837 = vmatpush.bf16.msra.mxu1 %v2489_v24  ;;  %v2756_v21 = vld [vmem:[%s3660_s17 + $0x330] sm:$0xf]  ;;  %v2897_v24 = vor.u32 %v3485_v16, %v2894_v17  ;;  %v3438_v3 = vld [vmem:[%s3660_s17 + $0x2bc] sm:$0xf0] }
  0x6b   : > { %1850 = vmatpush.bf16.msra.mxu2 %v2493_v25  ;;  %v2758_v25 = vld [vmem:[%s3660_s17 + $0x3b0] sm:$0xf0]  ;;  %v2757_v30 = vor.u32 %v3468_v22, %v2756_v21  ;;  %v3158_v22 = vld [vmem:[%s3660_s17 + $0x6c0] sm:$0xf0] }
  0x6c   : > { %1863 = vmatpush.bf16.msra.mxu3 %v2497_v29  ;;  %v2766_v29 = vld [vmem:[%s3660_s17 + $0x3b8] sm:$0xf0]  ;;  %v2761_v31 = vor.u32 %v3452_v23, %v2758_v25  ;;  %v3164_v23 = vld [vmem:[%s3660_s17 + $0x648] sm:$0xf]  ;;  %v3551_v25 = vld [vmem:[%s3660_s17 + $0x64c] sm:$0xf] }
  0x6d   : > { %v3169_v33 = vor.u32 %v3551_v25, %v3166_v26  ;;  %v3374_v25 = vld [vmem:[%s3660_s17 + $0xbc] sm:$0xf0] }
  0x6e   : > { %1825 = vmatpush.bf16.msra.mxu0 %v2357_v36  ;;  %1838 = vmatpush.bf16.msra.mxu1 %v2361_v40  ;;  %v2769_v36 = vor.u32 %v3453_v28, %v2766_v29  ;;  %v3421_v40 = vld [vmem:[%s3660_s17 + $0x23c] sm:$0xf] }
  0x6f   : > { %1851 = vmatpush.bf16.msra.mxu2 %v2365_v41  ;;  %v2638_v41 = vld [vmem:[%s3660_s17 + $0x2b8] sm:$0xf0] }
  0x70   : > { %1864 = vmatpush.bf16.msra.mxu3 %v2369_v44  ;;  %v2637_v44 = vor.u32 %v3437_v39, %v2636_v38  ;;  %v2641_v48 = vor.u32 %v3421_v40, %v2638_v41  ;;  %v3038_v38 = vld [vmem:[%s3660_s17 + $0x5c8] sm:$0xf0] }
  0x71   : > { %1826 = vmatmul.bf16.vlgmr.msra.gmra.mxu0 %v3753_v1  ;;  %1839 = vmatmul.bf16.vlgmr.msra.gmra.mxu1 %v3753_v1 }
  0x72   : > { %1870 = vmatpush.bf16.msrb.mxu0 %v3269_v45  ;;  %1883 = vmatpush.bf16.msrb.mxu1 %v3273_v46  ;;  %v2500_v45 = vld [vmem:[%s3660_s17 + $0x130] sm:$0xf] }
  0x73   : > { %1896 = vmatpush.bf16.msrb.mxu2 %v3277_v47  ;;  %1865 = vmatmul.bf16.vlgmr.msra.gmra.mxu3 %v3753_v1  ;;  %v3404_v46 = vld [vmem:[%s3660_s17 + $0x1ac] sm:$0xf0]  ;;  %v3388_v47 = vld [vmem:[%s3660_s17 + $0x134] sm:$0xf] }
  0x74   : > { %1909 = vmatpush.bf16.msrb.mxu3 %v3281_v51  ;;  %1852 = vmatmul.bf16.vlgmr.msra.gmra.mxu2 %v3753_v1  ;;  %v3405_v51 = vld [vmem:[%s3660_s17 + $0x1b4] sm:$0xf0]  ;;  %v2501_v54 = vor.u32 %v3404_v46, %v2500_v45  ;;  %v3041_v45 = vor.u32 %v3519_v37, %v3038_v38  ;;  %v2902_v46 = vld [vmem:[%s3660_s17 + $0x4c0] sm:$0xf0]  ;;  %v3584_v37 = vld [vmem:[%s3660_s17 + $0x754] sm:$0xf] }
  0x76   : > { %1871 = vmatpush.bf16.msrb.mxu0 %v3141_v57  ;;  %1884 = vmatpush.bf16.msrb.mxu1 %v3145_v58  ;;  %v2505_v57 = vor.u32 %v3388_v47, %v2502_v49  ;;  %v2509_v58 = vor.u32 %v3405_v51, %v2508_v50  ;;  %v2908_v47 = vld [vmem:[%s3660_s17 + $0x448] sm:$0xf]  ;;  %v3487_v49 = vld [vmem:[%s3660_s17 + $0x44c] sm:$0xf] }
  0x77   : > { %1897 = vmatpush.bf16.msrb.mxu2 %v3149_v59  ;;  %v3356_v59 = vld [vmem:[%s3660_s17 + $0x34] sm:$0xf] }
  0x78   : > { %1910 = vmatpush.bf16.msrb.mxu3 %v3153_v63  ;;  %v3373_v63 = vld [vmem:[%s3660_s17 + $0xb4] sm:$0xf0]  ;;  %v2377_v10 = vor.u32 %v3356_v59, %v2374_v60  ;;  %v3471_v59 = vld [vmem:[%s3660_s17 + $0x3c4] sm:$0xf0]  ;;  %v3455_v60 = vld [vmem:[%s3660_s17 + $0x34c] sm:$0xf] }
  0x79   : > { %v2381_v11 = vor.u32 %v3373_v63, %v2380_v61  ;;  %v2782_v61 = vld [vmem:[%s3660_s17 + $0x3c8] sm:$0xf0] }
  0x7a   : > { %1872 = vmatpush.bf16.msrb.mxu0 %v3013_v6  ;;  %1885 = vmatpush.bf16.msrb.mxu1 %v3017_v7  ;;  %v2373_v6 = vor.u32 %v3372_v56, %v2372_v55  ;;  %v3286_v7 = vld [vmem:[%s3660_s17 + $0x7c0] sm:$0xf0] }
  0x7b   : > { %1898 = vmatpush.bf16.msrb.mxu2 %v3021_v8  ;;  %v3292_v8 = vld [vmem:[%s3660_s17 + $0x748] sm:$0xf]  ;;  %v3289_v16 = vor.u32 %v3582_v5, %v3286_v7  ;;  %v3454_v55 = vld [vmem:[%s3660_s17 + $0x344] sm:$0xf]  ;;  %v2785_v5 = vor.u32 %v3455_v60, %v2782_v61  ;;  %v3044_v61 = vld [vmem:[%s3660_s17 + $0x550] sm:$0xf] }
  0x7c   : > { %1911 = vmatpush.bf16.msrb.mxu3 %v3025_v12  ;;  %v3583_v12 = vld [vmem:[%s3660_s17 + $0x74c] sm:$0xf]  ;;  %v3293_v17 = vor.u32 %v3599_v9, %v3292_v8  ;;  %v2652_v7 = vld [vmem:[%s3660_s17 + $0x248] sm:$0xf] }
  0x7d   : > { %v3297_v21 = vor.u32 %v3583_v12, %v3294_v13  ;;  %v3439_v8 = vld [vmem:[%s3660_s17 + $0x2c4] sm:$0xf0]  ;;  %v3423_v9 = vld [vmem:[%s3660_s17 + $0x24c] sm:$0xf] }
  0x7e   : > { %1873 = vmatpush.bf16.msrb.mxu0 %v2885_v18  ;;  %1886 = vmatpush.bf16.msrb.mxu1 %v2889_v19  ;;  %v3156_v18 = vld [vmem:[%s3660_s17 + $0x640] sm:$0xf]  ;;  %v2653_v13 = vor.u32 %v3439_v8, %v2652_v7  ;;  %v3054_v7 = vld [vmem:[%s3660_s17 + $0x5d8] sm:$0xf0] }
  0x7f   : > { %1899 = vmatpush.bf16.msrb.mxu2 %v2893_v20  ;;  %v3566_v19 = vld [vmem:[%s3660_s17 + $0x6bc] sm:$0xf0]  ;;  %v3550_v20 = vld [vmem:[%s3660_s17 + $0x644] sm:$0xf] }
  0x80   : > { %1912 = vmatpush.bf16.msrb.mxu3 %v2897_v24  ;;  %v3567_v24 = vld [vmem:[%s3660_s17 + $0x6c4] sm:$0xf0]  ;;  %v3157_v27 = vor.u32 %v3566_v19, %v3156_v18  ;;  %v3161_v28 = vor.u32 %v3550_v20, %v3158_v22  ;;  %v2518_v18 = vld [vmem:[%s3660_s17 + $0x1c0] sm:$0xf0]  ;;  %v2526_v22 = vld [vmem:[%s3660_s17 + $0x1c8] sm:$0xf0] }
  0x81   : > { %v3165_v29 = vor.u32 %v3567_v24, %v3164_v23  ;;  %v2524_v19 = vld [vmem:[%s3660_s17 + $0x148] sm:$0xf]  ;;  %v2388_v24 = vld [vmem:[%s3660_s17 + $0x40] sm:$0xf] }
  0x82   : > { %1874 = vmatpush.bf16.msrb.mxu0 %v2757_v30  ;;  %1887 = vmatpush.bf16.msrb.mxu1 %v2761_v31  ;;  %v3028_v30 = vld [vmem:[%s3660_s17 + $0x540] sm:$0xf]  ;;  %v3407_v20 = vld [vmem:[%s3660_s17 + $0x1c4] sm:$0xf0]  ;;  %v2389_v38 = vor.u32 %v3374_v25, %v2388_v24  ;;  %v3472_v24 = vld [vmem:[%s3660_s17 + $0x3cc] sm:$0xf0] }
  0x83   : > { %1900 = vmatpush.bf16.msrb.mxu2 %v2765_v32  ;;  %v3534_v31 = vld [vmem:[%s3660_s17 + $0x5bc] sm:$0xf0]  ;;  %v3518_v32 = vld [vmem:[%s3660_s17 + $0x544] sm:$0xf]  ;;  %v3456_v25 = vld [vmem:[%s3660_s17 + $0x354] sm:$0xf] }
  0x84   : > { %1913 = vmatpush.bf16.msrb.mxu3 %v2769_v36  ;;  %v3535_v36 = vld [vmem:[%s3660_s17 + $0x5c4] sm:$0xf0]  ;;  %v3029_v39 = vor.u32 %v3534_v31, %v3028_v30  ;;  %v3033_v40 = vor.u32 %v3518_v32, %v3030_v34  ;;  %v2398_v34 = vld [vmem:[%s3660_s17 + $0xc8] sm:$0xf0] }
  0x85   : > { %v3037_v41 = vor.u32 %v3535_v36, %v3036_v35  ;;  %v2396_v30 = vld [vmem:[%s3660_s17 + $0x48] sm:$0xf]  ;;  %v3300_v35 = vld [vmem:[%s3660_s17 + $0x750] sm:$0xf] }
  0x86   : > { %1875 = vmatpush.bf16.msrb.mxu0 %v2629_v42  ;;  %1888 = vmatpush.bf16.msrb.mxu1 %v2633_v43  ;;  %v2900_v42 = vld [vmem:[%s3660_s17 + $0x440] sm:$0xf]  ;;  %v3375_v32 = vld [vmem:[%s3660_s17 + $0xc4] sm:$0xf0]  ;;  %v3600_v36 = vld [vmem:[%s3660_s17 + $0x7cc] sm:$0xf0] }
  0x87   : > { %1901 = vmatpush.bf16.msrb.mxu2 %v2637_v44  ;;  %v3502_v43 = vld [vmem:[%s3660_s17 + $0x4bc] sm:$0xf0]  ;;  %v3486_v44 = vld [vmem:[%s3660_s17 + $0x444] sm:$0xf] }
  0x88   : > { %1914 = vmatpush.bf16.msrb.mxu3 %v2641_v48  ;;  %v3503_v48 = vld [vmem:[%s3660_s17 + $0x4c4] sm:$0xf0]  ;;  %v2901_v50 = vor.u32 %v3502_v43, %v2900_v42  ;;  %v2905_v51 = vor.u32 %v3486_v44, %v2902_v46  ;;  %v2397_v43 = vor.u32 %v3375_v32, %v2396_v30  ;;  %v3585_v44 = vld [vmem:[%s3660_s17 + $0x75c] sm:$0xf] }
  0x89   : > { %v2909_v52 = vor.u32 %v3503_v48, %v2908_v47  ;;  %v3301_v47 = vor.u32 %v3600_v36, %v3300_v35  ;;  %v3457_v30 = vld [vmem:[%s3660_s17 + $0x35c] sm:$0xf]  ;;  %v2660_v36 = vld [vmem:[%s3660_s17 + $0x250] sm:$0xf] }
  0x8a   : > { %1876 = vmatpush.bf16.msrb.mxu0 %v2501_v54  ;;  %1889 = vmatpush.bf16.msrb.mxu1 %v2505_v57  ;;  %v3470_v54 = vld [vmem:[%s3660_s17 + $0x3bc] sm:$0xf0]  ;;  %v2774_v57 = vld [vmem:[%s3660_s17 + $0x3c0] sm:$0xf0] }
  0x8b   : > { %1902 = vmatpush.bf16.msrb.mxu2 %v2509_v58  ;;  %v2780_v58 = vld [vmem:[%s3660_s17 + $0x348] sm:$0xf]  ;;  %v2777_v63 = vor.u32 %v3454_v55, %v2774_v57  ;;  %v3569_v55 = vld [vmem:[%s3660_s17 + $0x6d4] sm:$0xf0]  ;;  %v3182_v57 = vld [vmem:[%s3660_s17 + $0x6d8] sm:$0xf0] }
  0x8c   : > { %1915 = vmatpush.bf16.msrb.mxu3 %v2513_v62  ;;  %v2773_v62 = vor.u32 %v3470_v54, %v2772_v53  ;;  %v2781_v0 = vor.u32 %v3471_v59, %v2780_v58  ;;  %v3174_v53 = vld [vmem:[%s3660_s17 + $0x6d0] sm:$0xf0]  ;;  %v3180_v54 = vld [vmem:[%s3660_s17 + $0x658] sm:$0xf] }
  0x8d   : > { %v3181_v60 = vor.u32 %v3569_v55, %v3180_v54  ;;  %v2540_v54 = vld [vmem:[%s3660_s17 + $0x158] sm:$0xf] }
  0x8e   : > { %1877 = vmatpush.bf16.msrb.mxu0 %v2373_v6  ;;  %1890 = vmatpush.bf16.msrb.mxu1 %v2377_v10  ;;  %v2646_v6 = vld [vmem:[%s3660_s17 + $0x2c0] sm:$0xf0]  ;;  %v2654_v10 = vld [vmem:[%s3660_s17 + $0x2c8] sm:$0xf0]  ;;  %v3409_v55 = vld [vmem:[%s3660_s17 + $0x1d4] sm:$0xf0] }
  0x8f   : > { %1903 = vmatpush.bf16.msrb.mxu2 %v2381_v11  ;;  %v2645_v11 = vor.u32 %v3438_v3, %v2644_v2  ;;  %v2649_v12 = vor.u32 %v3422_v4, %v2646_v6  ;;  %v3046_v2 = vld [vmem:[%s3660_s17 + $0x5d0] sm:$0xf0]  ;;  %v3052_v3 = vld [vmem:[%s3660_s17 + $0x558] sm:$0xf]  ;;  %v3521_v6 = vld [vmem:[%s3660_s17 + $0x55c] sm:$0xf] }
  0x90   : > { %1916 = vmatpush.bf16.msrb.mxu3 %v2385_v14  ;;  %v2516_v14 = vld [vmem:[%s3660_s17 + $0x140] sm:$0xf]  ;;  %v3537_v4 = vld [vmem:[%s3660_s17 + $0x5d4] sm:$0xf0] }
  0x91   : > { %1878 = vmatmul.bf16.vlgmr.msrb.gmra.mxu0 %v3753_v1  ;;  %1891 = vmatmul.bf16.vlgmr.msrb.gmra.mxu1 %v3753_v1 }
  0x92   : > { %1922 = vmatpush.bf16.msra.mxu0 %v3285_v15  ;;  %1935 = vmatpush.bf16.msra.mxu1 %v3289_v16  ;;  %v3406_v15 = vld [vmem:[%s3660_s17 + $0x1bc] sm:$0xf0]  ;;  %v3390_v16 = vld [vmem:[%s3660_s17 + $0x144] sm:$0xf] }
  0x93   : > { %1948 = vmatpush.bf16.msra.mxu2 %v3293_v17  ;;  %1917 = vmatmul.bf16.vlgmr.msrb.gmra.mxu3 %v3753_v1  ;;  %v2657_v17 = vor.u32 %v3423_v9, %v2654_v10  ;;  %v2517_v23 = vor.u32 %v3406_v15, %v2516_v14  ;;  %v2521_v26 = vor.u32 %v3390_v16, %v2518_v18  ;;  %v2918_v15 = vld [vmem:[%s3660_s17 + $0x4d0] sm:$0xf0]  ;;  %v2924_v16 = vld [vmem:[%s3660_s17 + $0x458] sm:$0xf]  ;;  %v3489_v18 = vld [vmem:[%s3660_s17 + $0x45c] sm:$0xf] }
  0x94   : > { %1961 = vmatpush.bf16.msra.mxu3 %v3297_v21  ;;  %1904 = vmatmul.bf16.vlgmr.msrb.gmra.mxu2 %v3753_v1  ;;  %v2910_v1 = vld [vmem:[%s3660_s17 + $0x4c8] sm:$0xf0]  ;;  %v3053_v10 = vor.u32 %v3537_v4, %v3052_v3  ;;  %v3057_v14 = vor.u32 %v3521_v6, %v3054_v7  ;;  %v3360_v3 = vld [vmem:[%s3660_s17 + $0x54] sm:$0xf]  ;;  %v2412_v6 = vld [vmem:[%s3660_s17 + $0x58] sm:$0xf] }
  0x95   : > { %v2913_v56 = vor.u32 %v3487_v49, %v2910_v1  ;;  %v3391_v21 = vld [vmem:[%s3660_s17 + $0x14c] sm:$0xf]  ;;  %v3172_v1 = vld [vmem:[%s3660_s17 + $0x650] sm:$0xf]  ;;  %v2406_v4 = vld [vmem:[%s3660_s17 + $0xd0] sm:$0xf0] }
  0x96   : > { %1923 = vmatpush.bf16.msra.mxu0 %v3157_v27  ;;  %1936 = vmatpush.bf16.msra.mxu1 %v3161_v28  ;;  %v2525_v27 = vor.u32 %v3407_v20, %v2524_v19  ;;  %v3358_v28 = vld [vmem:[%s3660_s17 + $0x44] sm:$0xf]  ;;  %v2529_v31 = vor.u32 %v3391_v21, %v2526_v22  ;;  %v2926_v19 = vld [vmem:[%s3660_s17 + $0x4d8] sm:$0xf0] }
  0x97   : > { %1949 = vmatpush.bf16.msra.mxu2 %v3165_v29  ;;  %v2390_v29 = vld [vmem:[%s3660_s17 + $0xc0] sm:$0xf0] }
  0x98   : > { %1962 = vmatpush.bf16.msra.mxu3 %v3169_v33  ;;  %v3359_v33 = vld [vmem:[%s3660_s17 + $0x4c] sm:$0xf]  ;;  %v2393_v42 = vor.u32 %v3358_v28, %v2390_v29  ;;  %v2796_v28 = vld [vmem:[%s3660_s17 + $0x358] sm:$0xf] }
  0x99   : > { %v2401_v46 = vor.u32 %v3359_v33, %v2398_v34  ;;  %v3473_v29 = vld [vmem:[%s3660_s17 + $0x3d4] sm:$0xf0] }
  0x9a   : > { %1924 = vmatpush.bf16.msra.mxu0 %v3029_v39  ;;  %1937 = vmatpush.bf16.msra.mxu1 %v3033_v40  ;;  %v3302_v39 = vld [vmem:[%s3660_s17 + $0x7d0] sm:$0xf0]  ;;  %v3308_v40 = vld [vmem:[%s3660_s17 + $0x758] sm:$0xf]  ;;  %v2797_v35 = vor.u32 %v3473_v29, %v2796_v28  ;;  %v3188_v29 = vld [vmem:[%s3660_s17 + $0x660] sm:$0xf] }
  0x9b   : > { %1950 = vmatpush.bf16.msra.mxu2 %v3037_v41  ;;  %v3601_v41 = vld [vmem:[%s3660_s17 + $0x7d4] sm:$0xf0]  ;;  %v3305_v48 = vor.u32 %v3584_v37, %v3302_v39  ;;  %v3440_v37 = vld [vmem:[%s3660_s17 + $0x2cc] sm:$0xf0] }
  0x9c   : > { %1963 = vmatpush.bf16.msra.mxu3 %v3041_v45  ;;  %v3310_v45 = vld [vmem:[%s3660_s17 + $0x7d8] sm:$0xf0]  ;;  %v3309_v49 = vor.u32 %v3601_v41, %v3308_v40  ;;  %v2662_v41 = vld [vmem:[%s3660_s17 + $0x2d0] sm:$0xf0] }
  0x9e   : > { %1925 = vmatpush.bf16.msra.mxu0 %v2901_v50  ;;  %1938 = vmatpush.bf16.msra.mxu1 %v2905_v51  ;;  %v3568_v50 = vld [vmem:[%s3660_s17 + $0x6cc] sm:$0xf0]  ;;  %v3552_v51 = vld [vmem:[%s3660_s17 + $0x654] sm:$0xf] }
  0x9f   : > { %1951 = vmatpush.bf16.msra.mxu2 %v2909_v52  ;;  %v3313_v52 = vor.u32 %v3585_v44, %v3310_v45  ;;  %v3173_v58 = vor.u32 %v3568_v50, %v3172_v1  ;;  %v3177_v59 = vor.u32 %v3552_v51, %v3174_v53  ;;  %v3425_v44 = vld [vmem:[%s3660_s17 + $0x25c] sm:$0xf]  ;;  %v3408_v1 = vld [vmem:[%s3660_s17 + $0x1cc] sm:$0xf0]  ;;  %v3392_v50 = vld [vmem:[%s3660_s17 + $0x154] sm:$0xf] }
  0xa0   : > { %1964 = vmatpush.bf16.msra.mxu3 %v2913_v56  ;;  %v3553_v56 = vld [vmem:[%s3660_s17 + $0x65c] sm:$0xf]  ;;  %v2534_v53 = vld [vmem:[%s3660_s17 + $0x1d0] sm:$0xf0] }
  0xa1   : > { %v2670_v45 = vld [vmem:[%s3660_s17 + $0x2d8] sm:$0xf0] }
  0xa2   : > { %1926 = vmatpush.bf16.msra.mxu0 %v2773_v62  ;;  %1939 = vmatpush.bf16.msra.mxu1 %v2777_v63  ;;  %v3536_v62 = vld [vmem:[%s3660_s17 + $0x5cc] sm:$0xf0]  ;;  %v3520_v63 = vld [vmem:[%s3660_s17 + $0x554] sm:$0xf] }
  0xa3   : > { %1952 = vmatpush.bf16.msra.mxu2 %v2781_v0  ;;  %v3185_v0 = vor.u32 %v3553_v56, %v3182_v57  ;;  %v3045_v8 = vor.u32 %v3536_v62, %v3044_v61  ;;  %v3049_v9 = vor.u32 %v3520_v63, %v3046_v2  ;;  %v2404_v61 = vld [vmem:[%s3660_s17 + $0x50] sm:$0xf]  ;;  %v2541_v2 = vor.u32 %v3409_v55, %v2540_v54  ;;  %v3068_v54 = vld [vmem:[%s3660_s17 + $0x568] sm:$0xf] }
  0xa4   : > { %1965 = vmatpush.bf16.msra.mxu3 %v2785_v5  ;;  %v4031_v5 = vld [vmem:[%s4286_s0] sm:$0xf]  ;;  %v3376_v62 = vld [vmem:[%s3660_s17 + $0xcc] sm:$0xf0]  ;;  %v3539_v55 = vld [vmem:[%s3660_s17 + $0x5e4] sm:$0xf0] }
  0xa6   : > { %1927 = vmatpush.bf16.msra.mxu0 %v2645_v11  ;;  %1940 = vmatpush.bf16.msra.mxu1 %v2649_v12  ;;  %v2916_v11 = vld [vmem:[%s3660_s17 + $0x450] sm:$0xf] }
  0xa7   : > { %1953 = vmatpush.bf16.msra.mxu2 %v2653_v13  ;;  %v3504_v12 = vld [vmem:[%s3660_s17 + $0x4cc] sm:$0xf0]  ;;  %v3488_v13 = vld [vmem:[%s3660_s17 + $0x454] sm:$0xf] }
  0xa8   : > { %1966 = vmatpush.bf16.msra.mxu3 %v2657_v17  ;;  %v3505_v17 = vld [vmem:[%s3660_s17 + $0x4d4] sm:$0xf0]  ;;  %v2917_v20 = vor.u32 %v3504_v12, %v2916_v11  ;;  %v2921_v21 = vor.u32 %v3488_v13, %v2918_v15  ;;  %v3361_v11 = vld [vmem:[%s3660_s17 + $0x5c] sm:$0xf]  ;;  %v3316_v13 = vld [vmem:[%s3660_s17 + $0x760] sm:$0xf] }
  0xa9   : > { %v2925_v22 = vor.u32 %v3505_v17, %v2924_v16  ;;  %v2414_v12 = vld [vmem:[%s3660_s17 + $0xd8] sm:$0xf0]  ;;  %v3586_v15 = vld [vmem:[%s3660_s17 + $0x764] sm:$0xf]  ;;  %v2405_v16 = vor.u32 %v3376_v62, %v2404_v61 }
  0xaa   : > { %1928 = vmatpush.bf16.msra.mxu0 %v2517_v23  ;;  %1941 = vmatpush.bf16.msra.mxu1 %v2521_v26  ;;  %v2788_v23 = vld [vmem:[%s3660_s17 + $0x350] sm:$0xf]  ;;  %v2929_v26 = vor.u32 %v3489_v18, %v2926_v19  ;;  %v4069_v57 = vpop.permute.xlu0 %431  ;;  %v3318_v17 = vld [vmem:[%s3660_s17 + $0x7e0] sm:$0xf0]  ;;  %v3324_v18 = vld [vmem:[%s3660_s17 + $0x768] sm:$0xf] }
  0xab   : > { %1954 = vmatpush.bf16.msra.mxu2 %v2525_v27  ;;  %v2790_v27 = vld [vmem:[%s3660_s17 + $0x3d0] sm:$0xf0]  ;;  %v2789_v32 = vor.u32 %v3472_v24, %v2788_v23  ;;  %v3603_v19 = vld [vmem:[%s3660_s17 + $0x7e4] sm:$0xf0]  ;;  %v3587_v23 = vld [vmem:[%s3660_s17 + $0x76c] sm:$0xf] }
  0xac   : > { %1967 = vmatpush.bf16.msra.mxu3 %v2529_v31  ;;  %v2798_v31 = vld [vmem:[%s3660_s17 + $0x3d8] sm:$0xf0]  ;;  %v2793_v34 = vor.u32 %v3456_v25, %v2790_v27  ;;  %v3326_v24 = vld [vmem:[%s3660_s17 + $0x7e8] sm:$0xf0]  ;;  %v2417_v27 = vor.u32 %v3361_v11, %v2414_v12 }
  0xad   : > { %v2801_v40 = vor.u32 %v3457_v30, %v2798_v31  ;;  %v3491_v12 = vld [vmem:[%s3660_s17 + $0x46c] sm:$0xf] }
  0xae   : > { %1929 = vmatpush.bf16.msra.mxu0 %v2389_v38  ;;  %1942 = vmatpush.bf16.msra.mxu1 %v2393_v42  ;;  %v1723_v33 = vpop.f32.mrf.mxu0  ;;  %v3424_v38 = vld [vmem:[%s3660_s17 + $0x254] sm:$0xf]  ;;  %v1736_v39 = vpop.f32.mrf.mxu1  ;;  %v2668_v42 = vld [vmem:[%s3660_s17 + $0x258] sm:$0xf] }
  0xaf   : > { %1955 = vmatpush.bf16.msra.mxu2 %v2397_v43  ;;  %v3441_v43 = vld [vmem:[%s3660_s17 + $0x2d4] sm:$0xf0] }
  0xb0   : > { %1968 = vmatpush.bf16.msra.mxu3 %v2401_v46  ;;  %v2661_v46 = vor.u32 %v3440_v37, %v2660_v36  ;;  %v3190_v36 = vld [vmem:[%s3660_s17 + $0x6e0] sm:$0xf0]  ;;  %v3329_v37 = vor.u32 %v3587_v23, %v3326_v24 }
  0xb1   : > { %1930 = vmatmul.bf16.vlgmr.msra.gmra.mxu0 %v4031_v5  ;;  %1943 = vmatmul.bf16.vlgmr.msra.gmra.mxu1 %v4031_v5 }
  0xb2   : > { %1974 = vmatpush.bf16.msrb.mxu0 %v3301_v47  ;;  %1987 = vmatpush.bf16.msrb.mxu1 %v3305_v48  ;;  %v2665_v47 = vor.u32 %v3424_v38, %v2662_v41  ;;  %v2669_v48 = vor.u32 %v3441_v43, %v2668_v42  ;;  %v3196_v38 = vld [vmem:[%s3660_s17 + $0x668] sm:$0xf]  ;;  %v3555_v41 = vld [vmem:[%s3660_s17 + $0x66c] sm:$0xf] }
  0xb3   : > { %2000 = vmatpush.bf16.msrb.mxu2 %v3309_v49  ;;  %1969 = vmatmul.bf16.vlgmr.msra.gmra.mxu3 %v4031_v5  ;;  %v2532_v49 = vld [vmem:[%s3660_s17 + $0x150] sm:$0xf]  ;;  %v3198_v42 = vld [vmem:[%s3660_s17 + $0x6e8] sm:$0xf0] }
  0xb4   : > { %2013 = vmatpush.bf16.msrb.mxu3 %v3313_v52  ;;  %1956 = vmatmul.bf16.vlgmr.msra.gmra.mxu2 %v4031_v5  ;;  %v2673_v52 = vor.u32 %v3425_v44, %v2670_v45 }
  0xb6   : > { %1975 = vmatpush.bf16.msrb.mxu0 %v3173_v58  ;;  %1988 = vmatpush.bf16.msrb.mxu1 %v3177_v59  ;;  %v1762_v56 = vpop.f32.mrf.mxu3  ;;  %v3393_v58 = vld [vmem:[%s3660_s17 + $0x15c] sm:$0xf]  ;;  %v1725_v63 = vpop.f32.mrf.mxu0 }
  0xb7   : > { %2001 = vmatpush.bf16.msrb.mxu2 %v3181_v60  ;;  %v1749_v51 = vpop.f32.mrf.mxu2  ;;  %v2542_v59 = vld [vmem:[%s3660_s17 + $0x1d8] sm:$0xf0]  ;;  %v2533_v60 = vor.u32 %v3408_v1, %v2532_v49  ;;  %v1738_v7 = vpop.f32.mrf.mxu1  ;;  %v3538_v1 = vld [vmem:[%s3660_s17 + $0x5dc] sm:$0xf0] }
  0xb8   : > { %2014 = vmatpush.bf16.msrb.mxu3 %v3185_v0  ;;  %v2537_v0 = vor.u32 %v3392_v50, %v2534_v53  ;;  %v1750_v31 = vadd.f32 %v1749_v51, %v4069_v57  ;;  %v3522_v50 = vld [vmem:[%s3660_s17 + $0x564] sm:$0xf]  ;;  %v3201_v53 = vor.u32 %v3555_v41, %v3198_v42  ;;  %v2684_v42 = vld [vmem:[%s3660_s17 + $0x268] sm:$0xf] }
  0xb9   : > { %v3062_v51 = vld [vmem:[%s3660_s17 + $0x5e0] sm:$0xf0] }
  0xba   : > { %1976 = vmatpush.bf16.msrb.mxu0 %v3045_v8  ;;  %1989 = vmatpush.bf16.msrb.mxu1 %v3049_v9  ;;  %v1724_v8 = vadd.f32 %v1723_v33, %v4069_v57  ;;  %v2545_v9 = vor.u32 %v3393_v58, %v2542_v59  ;;  %v3325_v33 = vor.u32 %v3603_v19, %v3324_v18  ;;  %vm2132_vm2 = vcmp.ge.f32.partialorder %v1750_v31, 0.0  ;;  %v3523_v58 = vld [vmem:[%s3660_s17 + $0x56c] sm:$0xf]  ;;  %v3474_v19 = vld [vmem:[%s3660_s17 + $0x3dc] sm:$0xf0] }
  0xbb   : > { %2002 = vmatpush.bf16.msrb.mxu2 %v3053_v10  ;;  %v3377_v10 = vld [vmem:[%s3660_s17 + $0xd4] sm:$0xf0]  ;;  %v3070_v59 = vld [vmem:[%s3660_s17 + $0x5e8] sm:$0xf0]  ;;  %v3065_v63 = vor.u32 %v3522_v50, %v3062_v51  ;;  %v2678_v41 = vld [vmem:[%s3660_s17 + $0x2e0] sm:$0xf0] }
  0xbc   : > { %2015 = vmatpush.bf16.msrb.mxu3 %v3057_v14  ;;  %v3602_v14 = vld [vmem:[%s3660_s17 + $0x7dc] sm:$0xf0]  ;;  %vm2130_vm0 = vcmp.ge.f32.partialorder %v1724_v8, 0.0  ;;  %v3073_v7 = vor.u32 %v3523_v58, %v3070_v59  ;;  %v3394_v58 = vld [vmem:[%s3660_s17 + $0x164] sm:$0xf] }
  0xbd   : > { %v3317_v28 = vor.u32 %v3602_v14, %v3316_v13  ;;  %v2942_v13 = vld [vmem:[%s3660_s17 + $0x4e8] sm:$0xf0] }
  0xbe   : > { %1977 = vmatpush.bf16.msrb.mxu0 %v2917_v20  ;;  %1990 = vmatpush.bf16.msrb.mxu1 %v2921_v21  ;;  %v1737_v20 = vadd.f32 %v1736_v39, %v4069_v57  ;;  %v2409_v21 = vor.u32 %v3360_v3, %v2406_v4  ;;  %v1764_v30 = vpop.f32.mrf.mxu3  ;;  %v3571_v39 = vld [vmem:[%s3660_s17 + $0x6e4] sm:$0xf0]  ;;  %v3506_v3 = vld [vmem:[%s3660_s17 + $0x4dc] sm:$0xf0]  ;;  %v3490_v4 = vld [vmem:[%s3660_s17 + $0x464] sm:$0xf]  ;;  %v2945_v24 = vor.u32 %v3491_v12, %v2942_v13 }
  0xbf   : > { %2003 = vmatpush.bf16.msrb.mxu2 %v2925_v22  ;;  %v2413_v22 = vor.u32 %v3377_v10, %v2412_v6  ;;  %v1751_v25 = vpop.f32.mrf.mxu2  ;;  %v3197_v49 = vor.u32 %v3571_v39, %v3196_v38  ;;  %v3507_v10 = vld [vmem:[%s3660_s17 + $0x4e4] sm:$0xf0] }
  0xc0   : > { %2016 = vmatpush.bf16.msrb.mxu3 %v2929_v26  ;;  %v2162_v26 = vmul.f32 0.2, %v1724_v8  ;;  %vm2131_vm1 = vcmp.ge.f32.partialorder %v1737_v20, 0.0  ;;  %v2163_v43 = vmul.f32 0.2, %v1737_v20 }
  0xc1   : > { %v2812_v25 = vld [vmem:[%s3660_s17 + $0x368] sm:$0xf] }
  0xc2   : > { %1978 = vmatpush.bf16.msrb.mxu0 %v2789_v32  ;;  %1991 = vmatpush.bf16.msrb.mxu1 %v2793_v34  ;;  %v3321_v32 = vor.u32 %v3586_v15, %v3318_v17  ;;  %v3570_v34 = vld [vmem:[%s3660_s17 + $0x6dc] sm:$0xf0]  ;;  %v2194_v44 = vsel %vm2130_vm0, %v1724_v8, %v2162_v26  ;;  %v2934_v8 = vld [vmem:[%s3660_s17 + $0x4e0] sm:$0xf0]  ;;  %v3475_v26 = vld [vmem:[%s3660_s17 + $0x3e4] sm:$0xf0] }
  0xc3   : > { %2004 = vmatpush.bf16.msrb.mxu2 %v2797_v35  ;;  %v3554_v35 = vld [vmem:[%s3660_s17 + $0x664] sm:$0xf]  ;;  %v3189_v45 = vor.u32 %v3570_v34, %v3188_v29  ;;  %v2804_v15 = vld [vmem:[%s3660_s17 + $0x360] sm:$0xf]  ;;  %v2937_v17 = vor.u32 %v3490_v4, %v2934_v8  ;;  %v2814_v29 = vld [vmem:[%s3660_s17 + $0x3e8] sm:$0xf0]  ;;  %v2813_v34 = vor.u32 %v3475_v26, %v2812_v25 }
  0xc4   : > { %2017 = vmatpush.bf16.msrb.mxu3 %v2801_v40  ;;  %v1763_v40 = vadd.f32 %v1762_v56, %v4069_v57  ;;  %v2558_v4 = vld [vmem:[%s3660_s17 + $0x1e8] sm:$0xf0]  ;;  %v2420_v8 = vld [vmem:[%s3660_s17 + $0x60] sm:$0xf]  ;;  %v3334_v26 = vld [vmem:[%s3660_s17 + $0x7f0] sm:$0xf0] }
  0xc6   : > { %1979 = vmatpush.bf16.msrb.mxu0 %v2661_v46  ;;  %1992 = vmatpush.bf16.msrb.mxu1 %v2665_v47  ;;  %v3060_v46 = vld [vmem:[%s3660_s17 + $0x560] sm:$0xf]  ;;  %v2164_v47 = vmul.f32 0.2, %v1750_v31  ;;  %vm2133_vm3 = vcmp.ge.f32.partialorder %v1763_v40, 0.0 }
  0xc7   : > { %2005 = vmatpush.bf16.msrb.mxu2 %v2669_v48  ;;  %v3193_v48 = vor.u32 %v3554_v35, %v3190_v36  ;;  %v3061_v62 = vor.u32 %v3538_v1, %v3060_v46  ;;  %v2676_v35 = vld [vmem:[%s3660_s17 + $0x260] sm:$0xf] }
  0xc8   : > { %2018 = vmatpush.bf16.msrb.mxu3 %v2673_v52  ;;  %v2195_v52 = vsel %vm2131_vm1, %v1737_v20, %v2163_v43  ;;  %v2196_v61 = vsel %vm2132_vm2, %v1750_v31, %v2164_v47  ;;  %v3458_v20 = vld [vmem:[%s3660_s17 + $0x364] sm:$0xf]  ;;  %v2805_v31 = vor.u32 %v3474_v19, %v2804_v15  ;;  %v3442_v36 = vld [vmem:[%s3660_s17 + $0x2dc] sm:$0xf0]  ;;  %v3443_v43 = vld [vmem:[%s3660_s17 + $0x2e4] sm:$0xf0] }
  0xc9   : > { %v2226_v56 = vpack.c.bf16 %v2195_v52, %v2194_v44  ;;  %v3427_v47 = vld [vmem:[%s3660_s17 + $0x26c] sm:$0xf]  ;;  %v2677_v51 = vor.u32 %v3442_v36, %v2676_v35  ;;  %v3410_v52 = vld [vmem:[%s3660_s17 + $0x1dc] sm:$0xf0]  ;;  %v2428_v15 = vld [vmem:[%s3660_s17 + $0x68] sm:$0xf] }
  0xca   : > { %1980 = vmatpush.bf16.msrb.mxu0 %v2533_v60  ;;  %1993 = vmatpush.bf16.msrb.mxu1 %v2537_v0  ;;  %v2165_v60 = vmul.f32 0.2, %v1763_v40  ;;  %v3069_v0 = vor.u32 %v3539_v55, %v3068_v54  ;;  %v3363_v19 = vld [vmem:[%s3660_s17 + $0x6c] sm:$0xf] }
  0xcb   : > { %2006 = vmatpush.bf16.msrb.mxu2 %v2541_v2  ;;  %2242 = vst [vmem:[%s4110_s27] sm:$0xff] %v2226_v56  ;;  %v2932_v2 = vld [vmem:[%s3660_s17 + $0x460] sm:$0xf]  ;;  %v2685_v56 = vor.u32 %v3443_v43, %v2684_v42  ;;  %v3212_v42 = vld [vmem:[%s3660_s17 + $0x678] sm:$0xf] }
  0xcc   : > { %2019 = vmatpush.bf16.msrb.mxu3 %v2545_v9  ;;  %v2197_v6 = vsel %vm2133_vm3, %v1763_v40, %v2165_v60  ;;  %v2940_v9 = vld [vmem:[%s3660_s17 + $0x468] sm:$0xf]  ;;  %v2933_v14 = vor.u32 %v3506_v3, %v2932_v2  ;;  %v3395_v3 = vld [vmem:[%s3660_s17 + $0x16c] sm:$0xf]  ;;  %v3573_v43 = vld [vmem:[%s3660_s17 + $0x6f4] sm:$0xf0] }
  0xcd   : > { %v2227_v11 = vpack.c.bf16 %v2197_v6, %v2196_v61  ;;  %v2941_v18 = vor.u32 %v3507_v10, %v2940_v9  ;;  %v3378_v9 = vld [vmem:[%s3660_s17 + $0xdc] sm:$0xf0]  ;;  %v3362_v10 = vld [vmem:[%s3660_s17 + $0x64] sm:$0xf] }
  0xce   : > { %1981 = vmatpush.bf16.msrb.mxu0 %v2405_v16  ;;  %1994 = vmatpush.bf16.msrb.mxu1 %v2409_v21  ;;  %v1775_v16 = vpop.f32.mrf.mxu0  ;;  %v2806_v21 = vld [vmem:[%s3660_s17 + $0x3e0] sm:$0xf0]  ;;  %v1788_v23 = vpop.f32.mrf.mxu1  ;;  %v2421_v25 = vor.u32 %v3378_v9, %v2420_v8  ;;  %v2820_v9 = vld [vmem:[%s3660_s17 + $0x370] sm:$0xf] }
  0xcf   : > { %2007 = vmatpush.bf16.msrb.mxu2 %v2413_v22  ;;  %2243 = vst [vmem:[%s4110_s27 + $0x8] sm:$0xff] %v2227_v11  ;;  %v1776_v22 = vadd.f32 %v1775_v16, %v4069_v57  ;;  %v3379_v16 = vld [vmem:[%s3660_s17 + $0xe4] sm:$0xf0] }
  0xd0   : > { %2020 = vmatpush.bf16.msrb.mxu3 %v2417_v27  ;;  %v3459_v27 = vld [vmem:[%s3660_s17 + $0x36c] sm:$0xf] }
  0xd1   : > { %1982 = vmatmul.bf16.vlgmr.msrb.gmra.mxu0 %v4031_v5  ;;  %1995 = vmatmul.bf16.vlgmr.msrb.gmra.mxu1 %v4031_v5  ;;  %vm2134_vm4 = vcmp.ge.f32.partialorder %v1776_v22, 0.0  ;;  %v2166_v30 = vmul.f32 0.2, %v1776_v22  ;;  %v2817_v40 = vor.u32 %v3459_v27, %v2814_v29  ;;  %v3340_v27 = vld [vmem:[%s3660_s17 + $0x778] sm:$0xf] }
  0xd2   : > { %2026 = vmatpush.bf16.msra.mxu0 %v3317_v28  ;;  %2039 = vmatpush.bf16.msra.mxu1 %v3321_v32  ;;  %v1789_v28 = vadd.f32 %v1788_v23, %v4069_v57  ;;  %v3604_v23 = vld [vmem:[%s3660_s17 + $0x7ec] sm:$0xf0] }
  0xd3   : > { %2052 = vmatpush.bf16.msra.mxu2 %v3325_v33  ;;  %2021 = vmatmul.bf16.vlgmr.msrb.gmra.mxu3 %v4031_v5  ;;  %v2809_v33 = vor.u32 %v3458_v20, %v2806_v21  ;;  %v2198_v38 = vsel %vm2134_vm4, %v1776_v22, %v2166_v30  ;;  %v2430_v20 = vld [vmem:[%s3660_s17 + $0xe8] sm:$0xf0]  ;;  %v3332_v22 = vld [vmem:[%s3660_s17 + $0x770] sm:$0xf]  ;;  %v2429_v30 = vor.u32 %v3379_v16, %v2428_v15  ;;  %v2822_v15 = vld [vmem:[%s3660_s17 + $0x3f0] sm:$0xf0] }
  0xd4   : > { %2065 = vmatpush.bf16.msra.mxu3 %v3329_v37  ;;  %2008 = vmatmul.bf16.vlgmr.msrb.gmra.mxu2 %v4031_v5  ;;  %vm2135_vm5 = vcmp.ge.f32.partialorder %v1789_v28, 0.0  ;;  %v2167_v32 = vmul.f32 0.2, %v1789_v28  ;;  %v3426_v37 = vld [vmem:[%s3660_s17 + $0x264] sm:$0xf] }
  0xd5   : > { %v2681_v55 = vor.u32 %v3426_v37, %v2678_v41  ;;  %v3204_v37 = vld [vmem:[%s3660_s17 + $0x670] sm:$0xf]  ;;  %v3206_v41 = vld [vmem:[%s3660_s17 + $0x6f0] sm:$0xf0] }
  0xd6   : > { %2027 = vmatpush.bf16.msra.mxu0 %v3189_v45  ;;  %2040 = vmatpush.bf16.msra.mxu1 %v3193_v48  ;;  %v2199_v44 = vsel %vm2135_vm5, %v1789_v28, %v2167_v32  ;;  %v1814_v46 = vpop.f32.mrf.mxu3  ;;  %v2686_v48 = vld [vmem:[%s3660_s17 + $0x2e8] sm:$0xf0]  ;;  %v1777_v54 = vpop.f32.mrf.mxu0  ;;  %v3605_v28 = vld [vmem:[%s3660_s17 + $0x7f4] sm:$0xf0]  ;;  %v3342_v32 = vld [vmem:[%s3660_s17 + $0x7f8] sm:$0xf0] }
  0xd7   : > { %2053 = vmatpush.bf16.msra.mxu2 %v3197_v49  ;;  %v1801_v39 = vpop.f32.mrf.mxu2  ;;  %v2548_v49 = vld [vmem:[%s3660_s17 + $0x160] sm:$0xf]  ;;  %v2228_v1 = vpack.c.bf16 %v2199_v44, %v2198_v38  ;;  %v1815_v50 = vadd.f32 %v1814_v46, %v4069_v57  ;;  %v1790_v60 = vpop.f32.mrf.mxu1  ;;  %v2689_v61 = vor.u32 %v3427_v47, %v2686_v48  ;;  %v3341_v36 = vor.u32 %v3605_v28, %v3340_v27  ;;  %v3572_v38 = vld [vmem:[%s3660_s17 + $0x6ec] sm:$0xf0]  ;;  %v3557_v44 = vld [vmem:[%s3660_s17 + $0x67c] sm:$0xf] }
  0xd8   : > { %2066 = vmatpush.bf16.msra.mxu3 %v3201_v53  ;;  %v1802_v45 = vadd.f32 %v1801_v39, %v4069_v57  ;;  %v3556_v39 = vld [vmem:[%s3660_s17 + $0x674] sm:$0xf]  ;;  %v3205_v46 = vor.u32 %v3572_v38, %v3204_v37  ;;  %v3213_v48 = vor.u32 %v3573_v43, %v3212_v42  ;;  %v3541_v54 = vld [vmem:[%s3660_s17 + $0x5f4] sm:$0xf0]  ;;  %v2702_v42 = vld [vmem:[%s3660_s17 + $0x2f8] sm:$0xf0] }
  0xd9   : > { %2244 = vst [vmem:[%s4110_s27 + $0x10] sm:$0xff] %v2228_v1  ;;  %vm2137_vm7 = vcmp.ge.f32.partialorder %v1815_v50, 0.0  ;;  %v2169_v59 = vmul.f32 0.2, %v1815_v50  ;;  %v3209_v47 = vor.u32 %v3556_v39, %v3206_v41  ;;  %v3540_v1 = vld [vmem:[%s3660_s17 + $0x5ec] sm:$0xf0] }
  0xda   : > { %2028 = vmatpush.bf16.msra.mxu0 %v3061_v62  ;;  %2041 = vmatpush.bf16.msra.mxu1 %v3065_v63  ;;  %vm2136_vm6 = vcmp.ge.f32.partialorder %v1802_v45, 0.0  ;;  %v2168_v53 = vmul.f32 0.2, %v1802_v45  ;;  %v2550_v62 = vld [vmem:[%s3660_s17 + $0x1e0] sm:$0xf0] }
  0xdb   : > { %2054 = vmatpush.bf16.msra.mxu2 %v3069_v0  ;;  %v2556_v63 = vld [vmem:[%s3660_s17 + $0x168] sm:$0xf]  ;;  %v2201_v6 = vsel %vm2137_vm7, %v1815_v50, %v2169_v59  ;;  %v2553_v12 = vor.u32 %v3394_v58, %v2550_v62  ;;  %v3524_v50 = vld [vmem:[%s3660_s17 + $0x574] sm:$0xf]  ;;  %v3508_v62 = vld [vmem:[%s3660_s17 + $0x4ec] sm:$0xf0] }
  0xdc   : > { %2067 = vmatpush.bf16.msra.mxu3 %v3073_v7  ;;  %v3411_v0 = vld [vmem:[%s3660_s17 + $0x1e4] sm:$0xf0]  ;;  %v2200_v2 = vsel %vm2136_vm6, %v1802_v45, %v2168_v53  ;;  %v2549_v7 = vor.u32 %v3410_v52, %v2548_v49  ;;  %v3214_v45 = vld [vmem:[%s3660_s17 + $0x6f8] sm:$0xf0]  ;;  %v3076_v49 = vld [vmem:[%s3660_s17 + $0x570] sm:$0xf] }
  0xdd   : > { %v2229_v11 = vpack.c.bf16 %v2201_v6, %v2200_v2  ;;  %v2557_v13 = vor.u32 %v3411_v0, %v2556_v63  ;;  %v3078_v52 = vld [vmem:[%s3660_s17 + $0x5f0] sm:$0xf0]  ;;  %v3084_v53 = vld [vmem:[%s3660_s17 + $0x578] sm:$0xf]  ;;  %v3077_v58 = vor.u32 %v3540_v1, %v3076_v49  ;;  %v3493_v6 = vld [vmem:[%s3660_s17 + $0x47c] sm:$0xf] }
  0xde   : > { %2029 = vmatpush.bf16.msra.mxu0 %v2933_v14  ;;  %2042 = vmatpush.bf16.msra.mxu1 %v2937_v17  ;;  %v2422_v14 = vld [vmem:[%s3660_s17 + $0xe0] sm:$0xf0]  ;;  %v1816_v21 = vpop.f32.mrf.mxu3  ;;  %v3081_v59 = vor.u32 %v3524_v50, %v3078_v52  ;;  %v3085_v60 = vor.u32 %v3541_v54, %v3084_v53  ;;  %v3492_v63 = vld [vmem:[%s3660_s17 + $0x474] sm:$0xf]  ;;  %v3445_v37 = vld [vmem:[%s3660_s17 + $0x2f4] sm:$0xf0] }
  0xdf   : > { %2055 = vmatpush.bf16.msra.mxu2 %v2941_v18  ;;  %v1803_v17 = vpop.f32.mrf.mxu2  ;;  %v2561_v18 = vor.u32 %v3395_v3, %v2558_v4  ;;  %2245 = vst [vmem:[%s4110_s27 + $0x18] sm:$0xff] %v2229_v11  ;;  %v2425_v29 = vor.u32 %v3362_v10, %v2422_v14  ;;  %v2950_v2 = vld [vmem:[%s3660_s17 + $0x4f0] sm:$0xf0]  ;;  %v2956_v3 = vld [vmem:[%s3660_s17 + $0x478] sm:$0xf] }
  0xe0   : > { %2068 = vmatpush.bf16.msra.mxu3 %v2945_v24  ;;  %v3588_v24 = vld [vmem:[%s3660_s17 + $0x774] sm:$0xf]  ;;  %v3509_v4 = vld [vmem:[%s3660_s17 + $0x4f4] sm:$0xf0]  ;;  %v2953_v11 = vor.u32 %v3492_v63, %v2950_v2  ;;  %v3461_v21 = vld [vmem:[%s3660_s17 + $0x37c] sm:$0xf] }
  0xe1   : > { %v3337_v35 = vor.u32 %v3588_v24, %v3334_v26  ;;  %v3460_v14 = vld [vmem:[%s3660_s17 + $0x374] sm:$0xf]  ;;  %v3429_v41 = vld [vmem:[%s3660_s17 + $0x27c] sm:$0xf]  ;;  %v2564_v43 = vld [vmem:[%s3660_s17 + $0x170] sm:$0xf] }
  0xe2   : > { %2030 = vmatpush.bf16.msra.mxu0 %v2805_v31  ;;  %2043 = vmatpush.bf16.msra.mxu1 %v2809_v33  ;;  %v3589_v31 = vld [vmem:[%s3660_s17 + $0x77c] sm:$0xf]  ;;  %v2433_v33 = vor.u32 %v3363_v19, %v2430_v20  ;;  %v2828_v19 = vld [vmem:[%s3660_s17 + $0x378] sm:$0xf]  ;;  %v2825_v27 = vor.u32 %v3460_v14, %v2822_v15  ;;  %v2705_v54 = vor.u32 %v3429_v41, %v2702_v42 }
  0xe3   : > { %2056 = vmatpush.bf16.msra.mxu2 %v2813_v34  ;;  %v3333_v34 = vor.u32 %v3604_v23, %v3332_v22  ;;  %v3477_v20 = vld [vmem:[%s3660_s17 + $0x3f4] sm:$0xf0]  ;;  %v2830_v23 = vld [vmem:[%s3660_s17 + $0x3f8] sm:$0xf0] }
  0xe4   : > { %2069 = vmatpush.bf16.msra.mxu3 %v2817_v40  ;;  %v3345_v40 = vor.u32 %v3589_v31, %v3342_v32  ;;  %v2829_v28 = vor.u32 %v3477_v20, %v2828_v19  ;;  %v3428_v31 = vld [vmem:[%s3660_s17 + $0x274] sm:$0xf]  ;;  %v3365_v14 = vld [vmem:[%s3660_s17 + $0x7c] sm:$0xf] }
  0xe5   : > { %v2446_v15 = vld [vmem:[%s3660_s17 + $0xf8] sm:$0xf0] }
  0xe6   : > { %2031 = vmatpush.bf16.msra.mxu0 %v2677_v51  ;;  %2044 = vmatpush.bf16.msra.mxu1 %v2681_v55  ;;  %v3217_v51 = vor.u32 %v3557_v44, %v3214_v45  ;;  %v3525_v55 = vld [vmem:[%s3660_s17 + $0x57c] sm:$0xf]  ;;  %v2449_v19 = vor.u32 %v3365_v14, %v2446_v15 }
  0xe7   : > { %2057 = vmatpush.bf16.msra.mxu2 %v2685_v56  ;;  %v3086_v56 = vld [vmem:[%s3660_s17 + $0x5f8] sm:$0xf0] }
  0xe8   : > { %2070 = vmatpush.bf16.msra.mxu3 %v2689_v61  ;;  %v2948_v61 = vld [vmem:[%s3660_s17 + $0x470] sm:$0xf]  ;;  %v3089_v0 = vor.u32 %v3525_v55, %v3086_v56  ;;  %v2566_v55 = vld [vmem:[%s3660_s17 + $0x1f0] sm:$0xf0]  ;;  %v2572_v56 = vld [vmem:[%s3660_s17 + $0x178] sm:$0xf] }
  0xe9   : > { %v2949_v8 = vor.u32 %v3508_v62, %v2948_v61  ;;  %v2574_v61 = vld [vmem:[%s3660_s17 + $0x1f8] sm:$0xf0] }
  0xea   : > { %2032 = vmatpush.bf16.msra.mxu0 %v2549_v7  ;;  %2045 = vmatpush.bf16.msra.mxu1 %v2553_v12  ;;  %v2958_v7 = vld [vmem:[%s3660_s17 + $0x4f8] sm:$0xf0]  ;;  %v2957_v12 = vor.u32 %v3509_v4, %v2956_v3 }
  0xeb   : > { %2058 = vmatpush.bf16.msra.mxu2 %v2557_v13  ;;  %v3476_v13 = vld [vmem:[%s3660_s17 + $0x3ec] sm:$0xf0] }
  0xec   : > { %2071 = vmatpush.bf16.msra.mxu3 %v2561_v18  ;;  %v2961_v18 = vor.u32 %v3493_v6, %v2958_v7  ;;  %v3380_v6 = vld [vmem:[%s3660_s17 + $0xec] sm:$0xf0]  ;;  %v3364_v7 = vld [vmem:[%s3660_s17 + $0x74] sm:$0xf] }
  0xee   : > { %2033 = vmatpush.bf16.msra.mxu0 %v2421_v25  ;;  %2046 = vmatpush.bf16.msra.mxu1 %v2425_v29  ;;  %v1827_v10 = vpop.f32.mrf.mxu0  ;;  %v1840_v17 = vpop.f32.mrf.mxu1  ;;  %v2821_v25 = vor.u32 %v3476_v13, %v2820_v9  ;;  %v2692_v29 = vld [vmem:[%s3660_s17 + $0x270] sm:$0xf] }
  0xef   : > { %2059 = vmatpush.bf16.msra.mxu2 %v2429_v30  ;;  %v1828_v16 = vadd.f32 %v1827_v10, %v4069_v57  ;;  %v1841_v22 = vadd.f32 %v1840_v17, %v4069_v57  ;;  %v3444_v30 = vld [vmem:[%s3660_s17 + $0x2ec] sm:$0xf0] }
  0xf0   : > { %2072 = vmatpush.bf16.msra.mxu3 %v2433_v33 }
  0xf1   : > { %2034 = vmatmul.bf16.vlgmr.msra.gmra.mxu0 %v4031_v5  ;;  %2047 = vmatmul.bf16.vlgmr.msra.gmra.mxu1 %v4031_v5  ;;  %vm2138_vm8 = vcmp.ge.f32.partialorder %v1828_v16, 0.0  ;;  %v2170_v24 = vmul.f32 0.2, %v1828_v16  ;;  %vm2139_vm9 = vcmp.ge.f32.partialorder %v1841_v22, 0.0  ;;  %v2171_v26 = vmul.f32 0.2, %v1841_v22 }
  0xf2   : > { %2078 = vmatpush.bf16.msrb.mxu0 %v3333_v34  ;;  %2091 = vmatpush.bf16.msrb.mxu1 %v3337_v35  ;;  %v2833_v34 = vor.u32 %v3461_v21, %v2830_v23  ;;  %v2694_v35 = vld [vmem:[%s3660_s17 + $0x2f0] sm:$0xf0] }
  0xf3   : > { %2104 = vmatpush.bf16.msrb.mxu2 %v3341_v36  ;;  %2073 = vmatmul.bf16.vlgmr.msra.gmra.mxu3 %v4031_v5  ;;  %v2202_v32 = vsel %vm2138_vm8, %v1828_v16, %v2170_v24  ;;  %v2700_v36 = vld [vmem:[%s3660_s17 + $0x278] sm:$0xf]  ;;  %v2203_v38 = vsel %vm2139_vm9, %v1841_v22, %v2171_v26  ;;  %v2697_v1 = vor.u32 %v3428_v31, %v2694_v35 }
  0xf4   : > { %2117 = vmatpush.bf16.msrb.mxu3 %v3345_v40  ;;  %2060 = vmatmul.bf16.vlgmr.msra.gmra.mxu2 %v4031_v5  ;;  %v2230_v44 = vpack.c.bf16 %v2203_v38, %v2202_v32  ;;  %v2701_v50 = vor.u32 %v3445_v37, %v2700_v36 }
  0xf6   : > { %2079 = vmatpush.bf16.msrb.mxu0 %v3205_v46  ;;  %2092 = vmatpush.bf16.msrb.mxu1 %v3209_v47  ;;  %v1866_v40 = vpop.f32.mrf.mxu3  ;;  %v2693_v46 = vor.u32 %v3444_v30, %v2692_v29  ;;  %v3412_v47 = vld [vmem:[%s3660_s17 + $0x1ec] sm:$0xf0]  ;;  %v1829_v49 = vpop.f32.mrf.mxu0  ;;  %2246 = vst [vmem:[%s4110_s27 + $0x20] sm:$0xff] %v2230_v44 }
  0xf7   : > { %2105 = vmatpush.bf16.msrb.mxu2 %v3213_v48  ;;  %v1853_v33 = vpop.f32.mrf.mxu2  ;;  %v1867_v45 = vadd.f32 %v1866_v40, %v4069_v57  ;;  %v1842_v53 = vpop.f32.mrf.mxu1  ;;  %v2565_v63 = vor.u32 %v3412_v47, %v2564_v43 }
  0xf8   : > { %2118 = vmatpush.bf16.msrb.mxu3 %v3217_v51  ;;  %v1854_v39 = vadd.f32 %v1853_v33, %v4069_v57  ;;  %v3396_v51 = vld [vmem:[%s3660_s17 + $0x174] sm:$0xf] }
  0xf9   : > { %vm2141_vm11 = vcmp.ge.f32.partialorder %v1867_v45, 0.0  ;;  %v2173_v52 = vmul.f32 0.2, %v1867_v45  ;;  %v2569_v3 = vor.u32 %v3396_v51, %v2566_v55 }
  0xfa   : > { %2080 = vmatpush.bf16.msrb.mxu0 %v3077_v58  ;;  %2093 = vmatpush.bf16.msrb.mxu1 %v3081_v59  ;;  %vm2140_vm10 = vcmp.ge.f32.partialorder %v1854_v39, 0.0  ;;  %v2172_v48 = vmul.f32 0.2, %v1854_v39  ;;  %v3413_v58 = vld [vmem:[%s3660_s17 + $0x1f4] sm:$0xf0] }
  0xfb   : > { %2106 = vmatpush.bf16.msrb.mxu2 %v3085_v60  ;;  %v3397_v60 = vld [vmem:[%s3660_s17 + $0x17c] sm:$0xf]  ;;  %v2205_v62 = vsel %vm2141_vm11, %v1867_v45, %v2173_v52  ;;  %v2573_v4 = vor.u32 %v3413_v58, %v2572_v56 }
  0xfc   : > { %2119 = vmatpush.bf16.msrb.mxu3 %v3089_v0  ;;  %v2204_v59 = vsel %vm2140_vm10, %v1854_v39, %v2172_v48  ;;  %v2436_v0 = vld [vmem:[%s3660_s17 + $0x70] sm:$0xf]  ;;  %v2577_v10 = vor.u32 %v3397_v60, %v2574_v61 }
  0xfd   : > { %v2231_v2 = vpack.c.bf16 %v2205_v62, %v2204_v59  ;;  %v2437_v16 = vor.u32 %v3380_v6, %v2436_v0 }
  0xfe   : > { %2081 = vmatpush.bf16.msrb.mxu0 %v2949_v8  ;;  %2094 = vmatpush.bf16.msrb.mxu1 %v2953_v11  ;;  %v2438_v8 = vld [vmem:[%s3660_s17 + $0xf0] sm:$0xf0]  ;;  %v2444_v11 = vld [vmem:[%s3660_s17 + $0x78] sm:$0xf]  ;;  %v1868_v13 = vpop.f32.mrf.mxu3 }
  0xff   : > { %2107 = vmatpush.bf16.msrb.mxu2 %v2957_v12  ;;  %v1855_v9 = vpop.f32.mrf.mxu2  ;;  %v3381_v12 = vld [vmem:[%s3660_s17 + $0xf4] sm:$0xf0]  ;;  %2247 = vst [vmem:[%s4110_s27 + $0x28] sm:$0xff] %v2231_v2  ;;  %v2441_v17 = vor.u32 %v3364_v7, %v2438_v8 }
 0x100   : > { %2120 = vmatpush.bf16.msrb.mxu3 %v2961_v18  ;;  %v2445_v18 = vor.u32 %v3381_v12, %v2444_v11 }
 0x102   : > { %2082 = vmatpush.bf16.msrb.mxu0 %v2821_v25  ;;  %2095 = vmatpush.bf16.msrb.mxu1 %v2825_v27 }
 0x103   : > { %2108 = vmatpush.bf16.msrb.mxu2 %v2829_v28 }
 0x104   : > { %2121 = vmatpush.bf16.msrb.mxu3 %v2833_v34 }
 0x106   : > { %2083 = vmatpush.bf16.msrb.mxu0 %v2693_v46  ;;  %2096 = vmatpush.bf16.msrb.mxu1 %v2697_v1 }
 0x107   : > { %2109 = vmatpush.bf16.msrb.mxu2 %v2701_v50 }
 0x108   : > { %2122 = vmatpush.bf16.msrb.mxu3 %v2705_v54 }
 0x10a   : > { %2084 = vmatpush.bf16.msrb.mxu0 %v2565_v63  ;;  %2097 = vmatpush.bf16.msrb.mxu1 %v2569_v3 }
 0x10b   : > { %2110 = vmatpush.bf16.msrb.mxu2 %v2573_v4 }
 0x10c   : > { %2123 = vmatpush.bf16.msrb.mxu3 %v2577_v10 }
 0x10e   : > { %2085 = vmatpush.bf16.msrb.mxu0 %v2437_v16  ;;  %2098 = vmatpush.bf16.msrb.mxu1 %v2441_v17  ;;  %v1879_v20 = vpop.f32.mrf.mxu0  ;;  %v1892_v22 = vpop.f32.mrf.mxu1 }
 0x10f   : > { %2111 = vmatpush.bf16.msrb.mxu2 %v2445_v18  ;;  %v1880_v21 = vadd.f32 %v1879_v20, %v4069_v57  ;;  %v1893_v23 = vadd.f32 %v1892_v22, %v4069_v57 }
 0x110   : > { %2124 = vmatpush.bf16.msrb.mxu3 %v2449_v19 }
 0x111   : > { %2086 = vmatmul.bf16.vlgmr.msrb.gmra.mxu0 %v4031_v5  ;;  %2099 = vmatmul.bf16.vlgmr.msrb.gmra.mxu1 %v4031_v5  ;;  %vm2142_vm12 = vcmp.ge.f32.partialorder %v1880_v21, 0.0  ;;  %v2174_v24 = vmul.f32 0.2, %v1880_v21  ;;  %vm2143_vm13 = vcmp.ge.f32.partialorder %v1893_v23, 0.0  ;;  %v2175_v25 = vmul.f32 0.2, %v1893_v23 }
 0x112   : > { %2112 = vmatmul.bf16.vlgmr.msrb.gmra.mxu2 %v4031_v5 }
 0x113   : > { %2125 = vmatmul.bf16.vlgmr.msrb.gmra.mxu3 %v4031_v5  ;;  %v2206_v26 = vsel %vm2142_vm12, %v1880_v21, %v2174_v24  ;;  %v2207_v28 = vsel %vm2143_vm13, %v1893_v23, %v2175_v25 }
 0x114   : > { %v2232_v31 = vpack.c.bf16 %v2207_v28, %v2206_v26 }
 0x116   : > { %v1918_v30 = vpop.f32.mrf.mxu3  ;;  %v1881_v33 = vpop.f32.mrf.mxu0  ;;  %2248 = vst [vmem:[%s4110_s27 + $0x30] sm:$0xff] %v2232_v31 }
 0x117   : > { %v1905_v27 = vpop.f32.mrf.mxu2  ;;  %v1919_v5 = vadd.f32 %v1918_v30, %v4069_v57  ;;  %v1894_v35 = vpop.f32.mrf.mxu1 }
 0x118   : > { %v1906_v29 = vadd.f32 %v1905_v27, %v4069_v57 }
 0x119   : > { %vm2145_vm15 = vcmp.ge.f32.partialorder %v1919_v5, 0.0  ;;  %v2177_v34 = vmul.f32 0.2, %v1919_v5 }
 0x11a   : > { %vm2144_vm14 = vcmp.ge.f32.partialorder %v1906_v29, 0.0  ;;  %v2176_v32 = vmul.f32 0.2, %v1906_v29 }
 0x11b   : > { %v2209_v37 = vsel %vm2145_vm15, %v1919_v5, %v2177_v34 }
 0x11c   : > { %v2208_v36 = vsel %vm2144_vm14, %v1906_v29, %v2176_v32 }
 0x11d   : > { %v2233_v38 = vpack.c.bf16 %v2209_v37, %v2208_v36 }
 0x11e   : > { %v1920_v40 = vpop.f32.mrf.mxu3 }
 0x11f   : > { %v1907_v39 = vpop.f32.mrf.mxu2  ;;  %2249 = vst [vmem:[%s4110_s27 + $0x38] sm:$0xff] %v2233_v38 }
 0x12e   : > { %v1931_v41 = vpop.f32.mrf.mxu0  ;;  %v1944_v43 = vpop.f32.mrf.mxu1 }
 0x12f   : > { %v1932_v42 = vadd.f32 %v1931_v41, %v4069_v57  ;;  %v1945_v44 = vadd.f32 %v1944_v43, %v4069_v57 }
 0x131   : > { %vm2146_vm0 = vcmp.ge.f32.partialorder %v1932_v42, 0.0  ;;  %v2178_v45 = vmul.f32 0.2, %v1932_v42  ;;  %vm2147_vm1 = vcmp.ge.f32.partialorder %v1945_v44, 0.0  ;;  %v2179_v46 = vmul.f32 0.2, %v1945_v44 }
 0x133   : > { %v2210_v47 = vsel %vm2146_vm0, %v1932_v42, %v2178_v45  ;;  %v2211_v49 = vsel %vm2147_vm1, %v1945_v44, %v2179_v46 }
 0x134   : > { %v2234_v51 = vpack.c.bf16 %v2211_v49, %v2210_v47 }
 0x136   : > { %v1970_v50 = vpop.f32.mrf.mxu3  ;;  %v1933_v54 = vpop.f32.mrf.mxu0  ;;  %2250 = vst [vmem:[%s4110_s27 + $0x40] sm:$0xff] %v2234_v51 }
 0x137   : > { %v1957_v48 = vpop.f32.mrf.mxu2  ;;  %v1971_v52 = vadd.f32 %v1970_v50, %v4069_v57  ;;  %v1946_v56 = vpop.f32.mrf.mxu1 }
 0x138   : > { %v1958_v1 = vadd.f32 %v1957_v48, %v4069_v57 }
 0x139   : > { %vm2149_vm3 = vcmp.ge.f32.partialorder %v1971_v52, 0.0  ;;  %v2181_v55 = vmul.f32 0.2, %v1971_v52 }
 0x13a   : > { %vm2148_vm2 = vcmp.ge.f32.partialorder %v1958_v1, 0.0  ;;  %v2180_v53 = vmul.f32 0.2, %v1958_v1 }
 0x13b   : > { %v2213_v59 = vsel %vm2149_vm3, %v1971_v52, %v2181_v55 }
 0x13c   : > { %v2212_v58 = vsel %vm2148_vm2, %v1958_v1, %v2180_v53 }
 0x13d   : > { %v2235_v60 = vpack.c.bf16 %v2213_v59, %v2212_v58 }
 0x13e   : > { %v1972_v62 = vpop.f32.mrf.mxu3 }
 0x13f   : > { %v1959_v61 = vpop.f32.mrf.mxu2  ;;  %2251 = vst [vmem:[%s4110_s27 + $0x48] sm:$0xff] %v2235_v60 }
 0x14e   : > { %v1983_v63 = vpop.f32.mrf.mxu0  ;;  %v1996_v2 = vpop.f32.mrf.mxu1 }
 0x14f   : > { %v1984_v0 = vadd.f32 %v1983_v63, %v4069_v57  ;;  %v1997_v3 = vadd.f32 %v1996_v2, %v4069_v57 }
 0x151   : > { %vm2150_vm4 = vcmp.ge.f32.partialorder %v1984_v0, 0.0  ;;  %v2182_v4 = vmul.f32 0.2, %v1984_v0  ;;  %vm2151_vm5 = vcmp.ge.f32.partialorder %v1997_v3, 0.0  ;;  %v2183_v6 = vmul.f32 0.2, %v1997_v3 }
 0x153   : > { %v2214_v7 = vsel %vm2150_vm4, %v1984_v0, %v2182_v4  ;;  %v2215_v9 = vsel %vm2151_vm5, %v1997_v3, %v2183_v6 }
 0x154   : > { %v2236_v12 = vpack.c.bf16 %v2215_v9, %v2214_v7 }
 0x156   : > { %v2022_v11 = vpop.f32.mrf.mxu3  ;;  %v1985_v15 = vpop.f32.mrf.mxu0  ;;  %2252 = vst [vmem:[%s4110_s27 + $0x50] sm:$0xff] %v2236_v12 }
 0x157   : > { %v2009_v8 = vpop.f32.mrf.mxu2  ;;  %v2023_v13 = vadd.f32 %v2022_v11, %v4069_v57  ;;  %v1998_v17 = vpop.f32.mrf.mxu1 }
 0x158   : > { %v2010_v10 = vadd.f32 %v2009_v8, %v4069_v57 }
 0x159   : > { %vm2153_vm7 = vcmp.ge.f32.partialorder %v2023_v13, 0.0  ;;  %v2185_v16 = vmul.f32 0.2, %v2023_v13 }
 0x15a   : > { %vm2152_vm6 = vcmp.ge.f32.partialorder %v2010_v10, 0.0  ;;  %v2184_v14 = vmul.f32 0.2, %v2010_v10 }
 0x15b   : > { %v2217_v19 = vsel %vm2153_vm7, %v2023_v13, %v2185_v16 }
 0x15c   : > { %v2216_v18 = vsel %vm2152_vm6, %v2010_v10, %v2184_v14 }
 0x15d   : > { %v2237_v20 = vpack.c.bf16 %v2217_v19, %v2216_v18 }
 0x15e   : > { %v2024_v22 = vpop.f32.mrf.mxu3 }
 0x15f   : > { %v2011_v21 = vpop.f32.mrf.mxu2  ;;  %2253 = vst [vmem:[%s4110_s27 + $0x58] sm:$0xff] %v2237_v20 }
 0x16e   : > { %v2035_v23 = vpop.f32.mrf.mxu0  ;;  %v2048_v25 = vpop.f32.mrf.mxu1 }
 0x16f   : > { %v2036_v24 = vadd.f32 %v2035_v23, %v4069_v57  ;;  %v2049_v26 = vadd.f32 %v2048_v25, %v4069_v57 }
 0x171   : > { %vm2154_vm8 = vcmp.ge.f32.partialorder %v2036_v24, 0.0  ;;  %v2186_v27 = vmul.f32 0.2, %v2036_v24  ;;  %vm2155_vm9 = vcmp.ge.f32.partialorder %v2049_v26, 0.0  ;;  %v2187_v28 = vmul.f32 0.2, %v2049_v26 }
 0x173   : > { %v2218_v29 = vsel %vm2154_vm8, %v2036_v24, %v2186_v27  ;;  %v2219_v31 = vsel %vm2155_vm9, %v2049_v26, %v2187_v28 }
 0x174   : > { %v2238_v33 = vpack.c.bf16 %v2219_v31, %v2218_v29 }
 0x176   : > { %v2074_v32 = vpop.f32.mrf.mxu3  ;;  %v2037_v36 = vpop.f32.mrf.mxu0  ;;  %2254 = vst [vmem:[%s4110_s27 + $0x60] sm:$0xff] %v2238_v33 }
 0x177   : > { %v2061_v30 = vpop.f32.mrf.mxu2  ;;  %v2075_v34 = vadd.f32 %v2074_v32, %v4069_v57  ;;  %v2050_v38 = vpop.f32.mrf.mxu1 }
 0x178   : > { %v2062_v5 = vadd.f32 %v2061_v30, %v4069_v57 }
 0x179   : > { %vm2157_vm11 = vcmp.ge.f32.partialorder %v2075_v34, 0.0  ;;  %v2189_v37 = vmul.f32 0.2, %v2075_v34 }
 0x17a   : > { %vm2156_vm10 = vcmp.ge.f32.partialorder %v2062_v5, 0.0  ;;  %v2188_v35 = vmul.f32 0.2, %v2062_v5 }
 0x17b   : > { %v2221_v40 = vsel %vm2157_vm11, %v2075_v34, %v2189_v37 }
 0x17c   : > { %v2220_v39 = vsel %vm2156_vm10, %v2062_v5, %v2188_v35 }
 0x17d   : > { %v2239_v41 = vpack.c.bf16 %v2221_v40, %v2220_v39 }
 0x17e   : > { %v2076_v43 = vpop.f32.mrf.mxu3 }
 0x17f   : > { %v2063_v42 = vpop.f32.mrf.mxu2  ;;  %2255 = vst [vmem:[%s4110_s27 + $0x68] sm:$0xff] %v2239_v41 }
 0x18e   : > { %v2087_v44 = vpop.f32.mrf.mxu0  ;;  %v2100_v46 = vpop.f32.mrf.mxu1 }
 0x18f   : > { %v2088_v45 = vadd.f32 %v2087_v44, %v4069_v57  ;;  %v2101_v47 = vadd.f32 %v2100_v46, %v4069_v57 }
 0x191   : > { %vm2158_vm12 = vcmp.ge.f32.partialorder %v2088_v45, 0.0  ;;  %v2190_v48 = vmul.f32 0.2, %v2088_v45  ;;  %vm2159_vm13 = vcmp.ge.f32.partialorder %v2101_v47, 0.0  ;;  %v2191_v49 = vmul.f32 0.2, %v2101_v47 }
 0x193   : > { %v2222_v1 = vsel %vm2158_vm12, %v2088_v45, %v2190_v48  ;;  %v2223_v50 = vsel %vm2159_vm13, %v2101_v47, %v2191_v49 }
 0x194   : > { %v2240_v51 = vpack.c.bf16 %v2223_v50, %v2222_v1 }
 0x195   : > { %v2113_v52 = vpop.f32.mrf.mxu2 }
 0x196   : > { %v2114_v53 = vadd.f32 %v2113_v52, %v4069_v57  ;;  %v2126_v54 = vpop.f32.mrf.mxu3  ;;  %v2089_v55 = vpop.f32.mrf.mxu0  ;;  %2256 = vst [vmem:[%s4110_s27 + $0x70] sm:$0xff] %v2240_v51 }
 0x197   : > { %v2127_v56 = vadd.f32 %v2126_v54, %v4069_v57  ;;  %v2102_v58 = vpop.f32.mrf.mxu1 }
 0x198   : > { %vm2160_vm14 = vcmp.ge.f32.partialorder %v2114_v53, 0.0  ;;  %v2192_v59 = vmul.f32 0.2, %v2114_v53 }
 0x199   : > { %vm2161_vm15 = vcmp.ge.f32.partialorder %v2127_v56, 0.0  ;;  %v2193_v60 = vmul.f32 0.2, %v2127_v56 }
 0x19a   : > { %v2224_v61 = vsel %vm2160_vm14, %v2114_v53, %v2192_v59 }
 0x19b   : > { %v2225_v62 = vsel %vm2161_vm15, %v2127_v56, %v2193_v60 }
 0x19c   : > { %v2241_v63 = vpack.c.bf16 %v2225_v62, %v2224_v61 }
 0x19d   : > { %v2115_v0 = vpop.f32.mrf.mxu2 }
 0x19e   : > { %2257 = vst [vmem:[%s4110_s27 + $0x78] sm:$0xff] %v2241_v63  ;;  %v2128_v2 = vpop.f32.mrf.mxu3 }
 0x19f PF: > { %s13_s12 = sadd.s32 1, %s3623_s12  }
 0x1a0   : > { %p10_p4 = scmp.ge.s32.totalorder %s13_s12, 4  }
 0x1a2   :  { %12 = sbr.rel (!%p10_p4) target bundleno = 1 (0x1), region = 62 }

// kernel: nlayer_discriminator3d_forward.7
= control target key start
LH: loop header
LB: loop body
LE: loop exit
PB: predicated region body
PF: predicated region fallthrough
CT: control target
= control target key end

     0   :  { %s2083_s12 = smov 0   ;;  %s2437_s0 = inlined_call_operand.vmem [shape: bf16[16,512], index: 0, kind: input, shape index: {}]   ;;  %s2438_s1 = inlined_call_operand.vmem [shape: f32[16,1], index: 1, kind: input, shape index: {}]   ;;  %s2439_s2 = inlined_call_operand.vmem [shape: bf16[2,512,512], index: 2, kind: input, shape index: {}]   ;;  %s2440_s3 = inlined_call_operand.vmem [shape: bf16[2,16,512], index: 3, kind: output, shape index: {}]  }
   0x1 LB: > { %s1363_s13 = sadd.s32 4294967295, %s2059_s12   ;;  %p1367_p0 = scmp.ge.s32.totalorder %s2059_s12, 1  ;;  %s2059_s12 = sphi %s2083_s12, %s13_s12  }
   0x2   : > { %p137_p1 = scmp.lt.s32.totalorder %s2059_s12, 3 }
   0x4   : > { %p138_p2 = pnand %p1367_p0, %p137_p1 }
   0x5   : > { %p161_p3 = scmp.lt.s32.totalorder (!%p138_p2), %s1363_s13, 1 }
   0x6   : > { %141 = sbr.rel (%p138_p2) target bundleno = 569 (0x239), region = 32 }
   0xb   : > { %s2442_s13 = smov (!%p161_p3, %s1363_s13), 1 }
   0xc   : > { %s1902_s14 = sshll.u32 %s2442_s13, 10  ;;  %s1903_s11 = sshll.u32 %s2442_s13, 5 }
   0xd   : > { %s2097_s17 = scalar_lea.vmem %s2439_s2, %s1902_s14  ;;  %s2425_s16 = scalar_lea.vmem %s2440_s3, %s1903_s11 }
   0xe   : > { %v1502_v0 = vld [vmem:[%s2097_s17 + $0xe0] sm:$0xf]  ;;  %v1938_v1 = vld [vmem:[%s2097_s17 + $0xec] sm:$0xf0] }
   0xf   : > { %v1630_v2 = vld [vmem:[%s2097_s17 + $0x1e0] sm:$0xf]  ;;  %v1503_v3 = vor.u32 %v1938_v1, %v1502_v0  ;;  %v1970_v4 = vld [vmem:[%s2097_s17 + $0x1ec] sm:$0xf0] }
  0x10   : > { %v1758_v5 = vld [vmem:[%s2097_s17 + $0x2e0] sm:$0xf]  ;;  %v2002_v6 = vld [vmem:[%s2097_s17 + $0x2ec] sm:$0xf0]  ;;  %v1631_v7 = vor.u32 %v1970_v4, %v1630_v2 }
  0x11   : > { %v1759_v8 = vor.u32 %v2002_v6, %v1758_v5  ;;  %v1886_v9 = vld [vmem:[%s2097_s17 + $0x3e0] sm:$0xf]  ;;  %v2034_v10 = vld [vmem:[%s2097_s17 + $0x3ec] sm:$0xf0]  ;;  %975 = vmatpush.bf16.msra.mxu0 %v1503_v3 }
  0x12   : > { %v1486_v11 = vld [vmem:[%s2097_s17 + $0xc0] sm:$0xf]  ;;  %v1887_v12 = vor.u32 %v2034_v10, %v1886_v9  ;;  %v1934_v13 = vld [vmem:[%s2097_s17 + $0xcc] sm:$0xf0]  ;;  %989 = vmatpush.bf16.msra.mxu1 %v1631_v7 }
  0x13   : > { %v1614_v14 = vld [vmem:[%s2097_s17 + $0x1c0] sm:$0xf]  ;;  %v1966_v15 = vld [vmem:[%s2097_s17 + $0x1cc] sm:$0xf0]  ;;  %1003 = vmatpush.bf16.msra.mxu2 %v1759_v8  ;;  %v1487_v16 = vor.u32 %v1934_v13, %v1486_v11 }
  0x14   : > { %v1615_v17 = vor.u32 %v1966_v15, %v1614_v14  ;;  %v1742_v18 = vld [vmem:[%s2097_s17 + $0x2c0] sm:$0xf]  ;;  %v1998_v19 = vld [vmem:[%s2097_s17 + $0x2cc] sm:$0xf0]  ;;  %1017 = vmatpush.bf16.msra.mxu3 %v1887_v12 }
  0x15   : > { %v1870_v20 = vld [vmem:[%s2097_s17 + $0x3c0] sm:$0xf]  ;;  %v1743_v21 = vor.u32 %v1998_v19, %v1742_v18  ;;  %v2030_v22 = vld [vmem:[%s2097_s17 + $0x3cc] sm:$0xf0]  ;;  %976 = vmatpush.bf16.msra.mxu0 %v1487_v16 }
  0x16   : > { %v1470_v23 = vld [vmem:[%s2097_s17 + $0xa0] sm:$0xf]  ;;  %v1930_v24 = vld [vmem:[%s2097_s17 + $0xac] sm:$0xf0]  ;;  %v1871_v25 = vor.u32 %v2030_v22, %v1870_v20  ;;  %990 = vmatpush.bf16.msra.mxu1 %v1615_v17 }
  0x17   : > { %v1598_v26 = vld [vmem:[%s2097_s17 + $0x1a0] sm:$0xf]  ;;  %v1962_v27 = vld [vmem:[%s2097_s17 + $0x1ac] sm:$0xf0]  ;;  %v1471_v29 = vor.u32 %v1930_v24, %v1470_v23  ;;  %1004 = vmatpush.bf16.msra.mxu2 %v1743_v21 }
  0x18   : > { %v1726_v28 = vld [vmem:[%s2097_s17 + $0x2a0] sm:$0xf]  ;;  %v1994_v30 = vld [vmem:[%s2097_s17 + $0x2ac] sm:$0xf0]  ;;  %v1599_v33 = vor.u32 %v1962_v27, %v1598_v26  ;;  %1018 = vmatpush.bf16.msra.mxu3 %v1871_v25 }
  0x19   : > { %v1854_v31 = vld [vmem:[%s2097_s17 + $0x3a0] sm:$0xf]  ;;  %v2026_v32 = vld [vmem:[%s2097_s17 + $0x3ac] sm:$0xf0]  ;;  %v1727_v34 = vor.u32 %v1994_v30, %v1726_v28  ;;  %977 = vmatpush.bf16.msra.mxu0 %v1471_v29  ;;  %v1936_v28 = vld [vmem:[%s2097_s17 + $0xe4] sm:$0xf] }
  0x1a   : > { %v1454_v35 = vld [vmem:[%s2097_s17 + $0x80] sm:$0xf]  ;;  %v1926_v36 = vld [vmem:[%s2097_s17 + $0x8c] sm:$0xf0]  ;;  %v1855_v38 = vor.u32 %v2026_v32, %v1854_v31  ;;  %991 = vmatpush.bf16.msra.mxu1 %v1599_v33  ;;  %v1504_v29 = vld [vmem:[%s2097_s17 + $0xf0] sm:$0xf0] }
  0x1b   : > { %v1582_v37 = vld [vmem:[%s2097_s17 + $0x180] sm:$0xf]  ;;  %v1958_v39 = vld [vmem:[%s2097_s17 + $0x18c] sm:$0xf0]  ;;  %v1455_v44 = vor.u32 %v1926_v36, %v1454_v35  ;;  %1005 = vmatpush.bf16.msra.mxu2 %v1727_v34  ;;  %v1968_v30 = vld [vmem:[%s2097_s17 + $0x1e4] sm:$0xf] }
  0x1c   : > { %v1710_v40 = vld [vmem:[%s2097_s17 + $0x280] sm:$0xf]  ;;  %v1990_v41 = vld [vmem:[%s2097_s17 + $0x28c] sm:$0xf0]  ;;  %v1583_v45 = vor.u32 %v1958_v39, %v1582_v37  ;;  %1019 = vmatpush.bf16.msra.mxu3 %v1855_v38  ;;  %v1632_v32 = vld [vmem:[%s2097_s17 + $0x1f0] sm:$0xf0] }
  0x1d   : > { %v1838_v42 = vld [vmem:[%s2097_s17 + $0x380] sm:$0xf]  ;;  %v2022_v43 = vld [vmem:[%s2097_s17 + $0x38c] sm:$0xf0]  ;;  %v1711_v46 = vor.u32 %v1990_v41, %v1710_v40  ;;  %978 = vmatpush.bf16.msra.mxu0 %v1455_v44  ;;  %v2000_v33 = vld [vmem:[%s2097_s17 + $0x2e4] sm:$0xf]  ;;  %v1507_v40 = vor.u32 %v1936_v28, %v1504_v29 }
  0x1e   : > { %v1438_v47 = vld [vmem:[%s2097_s17 + $0x60] sm:$0xf]  ;;  %v1922_v48 = vld [vmem:[%s2097_s17 + $0x6c] sm:$0xf0]  ;;  %v1839_v50 = vor.u32 %v2022_v43, %v1838_v42  ;;  %992 = vmatpush.bf16.msra.mxu1 %v1583_v45  ;;  %v1760_v34 = vld [vmem:[%s2097_s17 + $0x2f0] sm:$0xf0]  ;;  %v1635_v43 = vor.u32 %v1968_v30, %v1632_v32 }
  0x1f   : > { %v1566_v49 = vld [vmem:[%s2097_s17 + $0x160] sm:$0xf]  ;;  %v1954_v51 = vld [vmem:[%s2097_s17 + $0x16c] sm:$0xf0]  ;;  %v1439_v56 = vor.u32 %v1922_v48, %v1438_v47  ;;  %1006 = vmatpush.bf16.msra.mxu2 %v1711_v46  ;;  %v2032_v37 = vld [vmem:[%s2097_s17 + $0x3e4] sm:$0xf]  ;;  %v1763_v44 = vor.u32 %v2000_v33, %v1760_v34 }
  0x20   : > { %v1694_v52 = vld [vmem:[%s2097_s17 + $0x260] sm:$0xf]  ;;  %v1986_v53 = vld [vmem:[%s2097_s17 + $0x26c] sm:$0xf0]  ;;  %v1567_v57 = vor.u32 %v1954_v51, %v1566_v49  ;;  %1020 = vmatpush.bf16.msra.mxu3 %v1839_v50  ;;  %v1888_v38 = vld [vmem:[%s2097_s17 + $0x3f0] sm:$0xf0] }
  0x21   : > { %v1822_v54 = vld [vmem:[%s2097_s17 + $0x360] sm:$0xf]  ;;  %v2018_v55 = vld [vmem:[%s2097_s17 + $0x36c] sm:$0xf0]  ;;  %v1695_v58 = vor.u32 %v1986_v53, %v1694_v52  ;;  %979 = vmatpush.bf16.msra.mxu0 %v1439_v56  ;;  %v1932_v41 = vld [vmem:[%s2097_s17 + $0xc4] sm:$0xf]  ;;  %v1891_v48 = vor.u32 %v2032_v37, %v1888_v38 }
  0x22   : > { %v1422_v59 = vld [vmem:[%s2097_s17 + $0x40] sm:$0xf]  ;;  %v1918_v60 = vld [vmem:[%s2097_s17 + $0x4c] sm:$0xf0]  ;;  %v1823_v62 = vor.u32 %v2018_v55, %v1822_v54  ;;  %993 = vmatpush.bf16.msra.mxu1 %v1567_v57  ;;  %v1488_v42 = vld [vmem:[%s2097_s17 + $0xd0] sm:$0xf0] }
  0x23   : > { %v1550_v61 = vld [vmem:[%s2097_s17 + $0x140] sm:$0xf]  ;;  %v1950_v63 = vld [vmem:[%s2097_s17 + $0x14c] sm:$0xf0]  ;;  %v1423_v4 = vor.u32 %v1918_v60, %v1422_v59  ;;  %1007 = vmatpush.bf16.msra.mxu2 %v1695_v58  ;;  %v1964_v45 = vld [vmem:[%s2097_s17 + $0x1c4] sm:$0xf]  ;;  %v1491_v55 = vor.u32 %v1932_v41, %v1488_v42 }
  0x24   : > { %v1678_v0 = vld [vmem:[%s2097_s17 + $0x240] sm:$0xf]  ;;  %v1982_v1 = vld [vmem:[%s2097_s17 + $0x24c] sm:$0xf0]  ;;  %v1551_v5 = vor.u32 %v1950_v63, %v1550_v61  ;;  %1021 = vmatpush.bf16.msra.mxu3 %v1823_v62  ;;  %v1616_v46 = vld [vmem:[%s2097_s17 + $0x1d0] sm:$0xf0] }
  0x25   : > { %v1806_v2 = vld [vmem:[%s2097_s17 + $0x340] sm:$0xf]  ;;  %v2014_v3 = vld [vmem:[%s2097_s17 + $0x34c] sm:$0xf0]  ;;  %v1679_v6 = vor.u32 %v1982_v1, %v1678_v0  ;;  %980 = vmatpush.bf16.msra.mxu0 %v1423_v4  ;;  %v1996_v47 = vld [vmem:[%s2097_s17 + $0x2c4] sm:$0xf]  ;;  %v1619_v60 = vor.u32 %v1964_v45, %v1616_v46 }
  0x26   : > { %v1406_v7 = vld [vmem:[%s2097_s17 + $0x20] sm:$0xf]  ;;  %v1914_v8 = vld [vmem:[%s2097_s17 + $0x2c] sm:$0xf0]  ;;  %v1807_v10 = vor.u32 %v2014_v3, %v1806_v2  ;;  %994 = vmatpush.bf16.msra.mxu1 %v1551_v5  ;;  %v1744_v49 = vld [vmem:[%s2097_s17 + $0x2d0] sm:$0xf0] }
  0x27   : > { %v1534_v9 = vld [vmem:[%s2097_s17 + $0x120] sm:$0xf]  ;;  %v1946_v11 = vld [vmem:[%s2097_s17 + $0x12c] sm:$0xf0]  ;;  %v1407_v16 = vor.u32 %v1914_v8, %v1406_v7  ;;  %1008 = vmatpush.bf16.msra.mxu2 %v1679_v6  ;;  %v2028_v50 = vld [vmem:[%s2097_s17 + $0x3c4] sm:$0xf]  ;;  %v1747_v61 = vor.u32 %v1996_v47, %v1744_v49 }
  0x28   : > { %v1662_v12 = vld [vmem:[%s2097_s17 + $0x220] sm:$0xf]  ;;  %v1978_v13 = vld [vmem:[%s2097_s17 + $0x22c] sm:$0xf0]  ;;  %v1535_v19 = vor.u32 %v1946_v11, %v1534_v9  ;;  %1022 = vmatpush.bf16.msra.mxu3 %v1807_v10  ;;  %v1872_v51 = vld [vmem:[%s2097_s17 + $0x3d0] sm:$0xf0] }
  0x29   : > { %v1790_v14 = vld [vmem:[%s2097_s17 + $0x320] sm:$0xf]  ;;  %v2010_v15 = vld [vmem:[%s2097_s17 + $0x32c] sm:$0xf0]  ;;  %v1663_v20 = vor.u32 %v1978_v13, %v1662_v12  ;;  %981 = vmatpush.bf16.msra.mxu0 %v1407_v16  ;;  %v1928_v52 = vld [vmem:[%s2097_s17 + $0xa4] sm:$0xf]  ;;  %v1875_v1 = vor.u32 %v2028_v50, %v1872_v51 }
  0x2a   : > { %v1390_v17 = vld [vmem:[%s2097_s17] sm:$0xf]  ;;  %v1910_v18 = vld [vmem:[%s2097_s17 + $0xc] sm:$0xf0]  ;;  %v1791_v24 = vor.u32 %v2010_v15, %v1790_v14  ;;  %995 = vmatpush.bf16.msra.mxu1 %v1535_v19  ;;  %v1382_v53 = vld [vmem:[%s2437_s0 + $0x8] sm:$0xf] }
  0x2b   : > { %v1518_v21 = vld [vmem:[%s2097_s17 + $0x100] sm:$0xf]  ;;  %v1942_v22 = vld [vmem:[%s2097_s17 + $0x10c] sm:$0xf0]  ;;  %v1391_v31 = vor.u32 %v1910_v18, %v1390_v17  ;;  %1009 = vmatpush.bf16.msra.mxu2 %v1663_v20  ;;  %v1907_v54 = vld [vmem:[%s2437_s0 + $0x14] sm:$0xf0] }
  0x2c   : > { %v1646_v23 = vld [vmem:[%s2097_s17 + $0x200] sm:$0xf]  ;;  %v1974_v25 = vld [vmem:[%s2097_s17 + $0x20c] sm:$0xf0]  ;;  %v1519_v35 = vor.u32 %v1942_v22, %v1518_v21  ;;  %1023 = vmatpush.bf16.msra.mxu3 %v1791_v24  ;;  %v1472_v56 = vld [vmem:[%s2097_s17 + $0xb0] sm:$0xf0]  ;;  %v2189_v59 = vor.u32 %v1907_v54, %v1382_v53 }
  0x2d   : > { %v1774_v26 = vld [vmem:[%s2097_s17 + $0x300] sm:$0xf]  ;;  %v2006_v27 = vld [vmem:[%s2097_s17 + $0x30c] sm:$0xf0]  ;;  %v1647_v36 = vor.u32 %v1974_v25, %v1646_v23  ;;  %982 = vmatpush.bf16.msra.mxu0 %v1391_v31  ;;  %v1960_v57 = vld [vmem:[%s2097_s17 + $0x1a4] sm:$0xf]  ;;  %v1475_v9 = vor.u32 %v1928_v52, %v1472_v56 }
  0x2e   : > { %v1775_v39 = vor.u32 %v2006_v27, %v1774_v26  ;;  %996 = vmatpush.bf16.msra.mxu1 %v1519_v35  ;;  %v1600_v58 = vld [vmem:[%s2097_s17 + $0x1b0] sm:$0xf0]  ;;  %v1992_v62 = vld [vmem:[%s2097_s17 + $0x2a4] sm:$0xf]  ;;  %v1374_v3 = vld [vmem:[%s2437_s0] sm:$0xf] }
  0x2f   : > { %1010 = vmatpush.bf16.msra.mxu2 %v1647_v36  ;;  %v1728_v63 = vld [vmem:[%s2097_s17 + $0x2b0] sm:$0xf0]  ;;  %v2024_v0 = vld [vmem:[%s2097_s17 + $0x3a4] sm:$0xf]  ;;  %v1906_v4 = vld [vmem:[%s2437_s0 + $0xc] sm:$0xf0]  ;;  %v1603_v12 = vor.u32 %v1960_v57, %v1600_v58 }
  0x30   : > { %1024 = vmatpush.bf16.msra.mxu3 %v1775_v39  ;;  %v1856_v2 = vld [vmem:[%s2097_s17 + $0x3b0] sm:$0xf0]  ;;  %v2202_v5 = vor.u32 %v1906_v4, %v1374_v3  ;;  %v1905_v6 = vld [vmem:[%s2437_s0 + $0xc] sm:$0xf]  ;;  %v1384_v7 = vld [vmem:[%s2437_s0 + $0x18] sm:$0xf0]  ;;  %v1731_v13 = vor.u32 %v1992_v62, %v1728_v63 }
  0x31   : > { %1031 = vmatpush.bf16.msrb.mxu0 %v1507_v40  ;;  %v1904_v8 = vld [vmem:[%s2437_s0 + $0x4] sm:$0xf]  ;;  %v2213_v10 = vor.u32 %v1905_v6, %v1384_v7  ;;  %v1376_v11 = vld [vmem:[%s2437_s0 + $0x10] sm:$0xf0]  ;;  %v1859_v18 = vor.u32 %v2024_v0, %v1856_v2  ;;  %v2061_v50 = vmov 0  }
  0x32   : > { %1045 = vmatpush.bf16.msrb.mxu1 %v1635_v43  ;;  %1011 = vmatmul.bf16.vlgmr.msra.gmra.mxu2 %v2189_v59  ;;  %v1924_v14 = vld [vmem:[%s2097_s17 + $0x84] sm:$0xf]  ;;  %v1456_v15 = vld [vmem:[%s2097_s17 + $0x90] sm:$0xf0]  ;;  %v2221_v17 = vor.u32 %v1904_v8, %v1376_v11 }
  0x33   : > { %1059 = vmatpush.bf16.msrb.mxu2 %v1763_v44  ;;  %v1956_v16 = vld [vmem:[%s2097_s17 + $0x184] sm:$0xf]  ;;  %v1584_v19 = vld [vmem:[%s2097_s17 + $0x190] sm:$0xf0]  ;;  %983 = vmatmul.bf16.vlgmr.msra.gmra.mxu0 %v2202_v5  ;;  %v1459_v24 = vor.u32 %v1924_v14, %v1456_v15  ;;  %v1939_v14 = vld [vmem:[%s2097_s17 + $0xf4] sm:$0xf0] }
  0x34   : > { %1073 = vmatpush.bf16.msrb.mxu3 %v1891_v48  ;;  %v1988_v20 = vld [vmem:[%s2097_s17 + $0x284] sm:$0xf]  ;;  %v1712_v21 = vld [vmem:[%s2097_s17 + $0x290] sm:$0xf0]  ;;  %997 = vmatmul.bf16.vlgmr.msra.gmra.mxu1 %v2221_v17  ;;  %v1587_v25 = vor.u32 %v1956_v16, %v1584_v19  ;;  %v1638_v15 = vld [vmem:[%s2097_s17 + $0x1e8] sm:$0xf] }
  0x35   : > { %1032 = vmatpush.bf16.msrb.mxu0 %v1491_v55  ;;  %v2020_v22 = vld [vmem:[%s2097_s17 + $0x384] sm:$0xf]  ;;  %v1840_v23 = vld [vmem:[%s2097_s17 + $0x390] sm:$0xf0]  ;;  %1025 = vmatmul.bf16.vlgmr.msra.gmra.mxu3 %v2213_v10  ;;  %v1715_v26 = vor.u32 %v1988_v20, %v1712_v21  ;;  %v304_v16 = vld [vmem:[%s2438_s1 + $0x8] sm:$0xff] }
  0x36   : > { %1046 = vmatpush.bf16.msrb.mxu1 %v1619_v60  ;;  %v1920_v27 = vld [vmem:[%s2097_s17 + $0x64] sm:$0xf]  ;;  %v1440_v28 = vld [vmem:[%s2097_s17 + $0x70] sm:$0xf0]  ;;  %v1843_v30 = vor.u32 %v2020_v22, %v1840_v23  ;;  %2046 = vset.pattern.permute.xlu0 %v2061_v50  ;;  %v1971_v19 = vld [vmem:[%s2097_s17 + $0x1f4] sm:$0xf0] }
  0x37   : > { %1060 = vmatpush.bf16.msrb.mxu2 %v1747_v61  ;;  %v1952_v29 = vld [vmem:[%s2097_s17 + $0x164] sm:$0xf]  ;;  %v1568_v31 = vld [vmem:[%s2097_s17 + $0x170] sm:$0xf0]  ;;  %v1443_v36 = vor.u32 %v1920_v27, %v1440_v28  ;;  %v1766_v20 = vld [vmem:[%s2097_s17 + $0x2e8] sm:$0xf]  ;;  %v1639_v28 = vor.u32 %v1971_v19, %v1638_v15 }
  0x38   : > { %1074 = vmatpush.bf16.msrb.mxu3 %v1875_v1  ;;  %v1984_v32 = vld [vmem:[%s2097_s17 + $0x264] sm:$0xf]  ;;  %v1696_v33 = vld [vmem:[%s2097_s17 + $0x270] sm:$0xf0]  ;;  %v1571_v37 = vor.u32 %v1952_v29, %v1568_v31  ;;  %v2003_v21 = vld [vmem:[%s2097_s17 + $0x2f4] sm:$0xf0] }
  0x39   : > { %1033 = vmatpush.bf16.msrb.mxu0 %v1475_v9  ;;  %v2016_v34 = vld [vmem:[%s2097_s17 + $0x364] sm:$0xf]  ;;  %v1824_v35 = vld [vmem:[%s2097_s17 + $0x370] sm:$0xf0]  ;;  %v1699_v38 = vor.u32 %v1984_v32, %v1696_v33  ;;  %v1767_v29 = vor.u32 %v2003_v21, %v1766_v20  ;;  %v1935_v31 = vld [vmem:[%s2097_s17 + $0xd4] sm:$0xf0] }
  0x3a   : > { %1047 = vmatpush.bf16.msrb.mxu1 %v1603_v12  ;;  %v1916_v39 = vld [vmem:[%s2097_s17 + $0x44] sm:$0xf]  ;;  %v1424_v40 = vld [vmem:[%s2097_s17 + $0x50] sm:$0xf0]  ;;  %v1827_v42 = vor.u32 %v2016_v34, %v1824_v35  ;;  %v1622_v32 = vld [vmem:[%s2097_s17 + $0x1c8] sm:$0xf] }
  0x3b   : > { %1061 = vmatpush.bf16.msrb.mxu2 %v1731_v13  ;;  %v1948_v41 = vld [vmem:[%s2097_s17 + $0x144] sm:$0xf]  ;;  %v1552_v43 = vld [vmem:[%s2097_s17 + $0x150] sm:$0xf0]  ;;  %v1427_v49 = vor.u32 %v1916_v39, %v1424_v40  ;;  %v1510_v13 = vld [vmem:[%s2097_s17 + $0xe8] sm:$0xf] }
  0x3c   : > { %1075 = vmatpush.bf16.msrb.mxu3 %v1859_v18  ;;  %v1980_v44 = vld [vmem:[%s2097_s17 + $0x244] sm:$0xf]  ;;  %v1680_v45 = vld [vmem:[%s2097_s17 + $0x250] sm:$0xf0]  ;;  %v1555_v51 = vor.u32 %v1948_v41, %v1552_v43  ;;  %v1511_v27 = vor.u32 %v1939_v14, %v1510_v13  ;;  %v1967_v34 = vld [vmem:[%s2097_s17 + $0x1d4] sm:$0xf0] }
  0x3d   : > { %1034 = vmatpush.bf16.msrb.mxu0 %v1459_v24  ;;  %v2012_v46 = vld [vmem:[%s2097_s17 + $0x344] sm:$0xf]  ;;  %v1808_v47 = vld [vmem:[%s2097_s17 + $0x350] sm:$0xf0]  ;;  %v1683_v52 = vor.u32 %v1980_v44, %v1680_v45  ;;  %v1894_v24 = vld [vmem:[%s2097_s17 + $0x3e8] sm:$0xf]  ;;  %v1623_v40 = vor.u32 %v1967_v34, %v1622_v32 }
  0x3e   : > { %1048 = vmatpush.bf16.msrb.mxu1 %v1587_v25  ;;  %v303_v48 = vld [vmem:[%s2438_s1] sm:$0xff]  ;;  %v1408_v54 = vld [vmem:[%s2097_s17 + $0x30] sm:$0xf0]  ;;  %v1811_v56 = vor.u32 %v2012_v46, %v1808_v47  ;;  %v2035_v25 = vld [vmem:[%s2097_s17 + $0x3f4] sm:$0xf0] }
  0x3f   : > { %1062 = vmatpush.bf16.msrb.mxu2 %v1715_v26  ;;  %v1912_v53 = vld [vmem:[%s2097_s17 + $0x24] sm:$0xf]  ;;  %v1536_v57 = vld [vmem:[%s2097_s17 + $0x130] sm:$0xf0]  ;;  %307 = vperm.xlu0 %2046, %v303_v48   ;;  %v1895_v33 = vor.u32 %v2035_v25, %v1894_v24  ;;  %v1750_v35 = vld [vmem:[%s2097_s17 + $0x2c8] sm:$0xf] }
  0x40   : > { %1076 = vmatpush.bf16.msrb.mxu3 %v1843_v30  ;;  %v1944_v55 = vld [vmem:[%s2097_s17 + $0x124] sm:$0xf]  ;;  %v1664_v60 = vld [vmem:[%s2097_s17 + $0x230] sm:$0xf0]  ;;  %v1411_v63 = vor.u32 %v1912_v53, %v1408_v54  ;;  %v1494_v30 = vld [vmem:[%s2097_s17 + $0xc8] sm:$0xf] }
  0x41   : > { %1035 = vmatpush.bf16.msrb.mxu0 %v1443_v36  ;;  %v1976_v58 = vld [vmem:[%s2097_s17 + $0x224] sm:$0xf]  ;;  %v1792_v62 = vld [vmem:[%s2097_s17 + $0x330] sm:$0xf0]  ;;  %v1539_v3 = vor.u32 %v1944_v55, %v1536_v57  ;;  %v1999_v36 = vld [vmem:[%s2097_s17 + $0x2d4] sm:$0xf0]  ;;  %v1495_v39 = vor.u32 %v1935_v31, %v1494_v30 }
  0x42   : > { %1049 = vmatpush.bf16.msrb.mxu1 %v1571_v37  ;;  %v2008_v61 = vld [vmem:[%s2097_s17 + $0x324] sm:$0xf]  ;;  %v1392_v1 = vld [vmem:[%s2097_s17 + $0x10] sm:$0xf0]  ;;  %v1667_v4 = vor.u32 %v1976_v58, %v1664_v60  ;;  %v1878_v37 = vld [vmem:[%s2097_s17 + $0x3c8] sm:$0xf]  ;;  %v1751_v41 = vor.u32 %v1999_v36, %v1750_v35 }
  0x43   : > { %1063 = vmatpush.bf16.msrb.mxu2 %v1699_v38  ;;  %v1908_v0 = vld [vmem:[%s2097_s17 + $0x4] sm:$0xf]  ;;  %v1520_v6 = vld [vmem:[%s2097_s17 + $0x110] sm:$0xf0]  ;;  %v1795_v9 = vor.u32 %v2008_v61, %v1792_v62  ;;  %v2031_v38 = vld [vmem:[%s2097_s17 + $0x3d4] sm:$0xf0] }
  0x44   : > { %1077 = vmatpush.bf16.msrb.mxu3 %v1827_v42  ;;  %v1940_v2 = vld [vmem:[%s2097_s17 + $0x104] sm:$0xf]  ;;  %v1648_v8 = vld [vmem:[%s2097_s17 + $0x210] sm:$0xf0]  ;;  %v1395_v18 = vor.u32 %v1908_v0, %v1392_v1  ;;  %v1478_v42 = vld [vmem:[%s2097_s17 + $0xa8] sm:$0xf]  ;;  %v1879_v45 = vor.u32 %v2031_v38, %v1878_v37 }
  0x45   : > { %1036 = vmatpush.bf16.msrb.mxu0 %v1427_v49  ;;  %v1972_v7 = vld [vmem:[%s2097_s17 + $0x204] sm:$0xf]  ;;  %v1776_v12 = vld [vmem:[%s2097_s17 + $0x310] sm:$0xf0]  ;;  %v1523_v22 = vor.u32 %v1940_v2, %v1520_v6  ;;  %v1931_v43 = vld [vmem:[%s2097_s17 + $0xb4] sm:$0xf0] }
  0x46   : > { %1050 = vmatpush.bf16.msrb.mxu1 %v1555_v51  ;;  %v2004_v11 = vld [vmem:[%s2097_s17 + $0x304] sm:$0xf]  ;;  %v1651_v23 = vor.u32 %v1972_v7, %v1648_v8  ;;  %v1606_v44 = vld [vmem:[%s2097_s17 + $0x1a8] sm:$0xf]  ;;  %v1963_v46 = vld [vmem:[%s2097_s17 + $0x1b4] sm:$0xf0]  ;;  %v1479_v51 = vor.u32 %v1931_v43, %v1478_v42 }
  0x47   : > { %1064 = vmatpush.bf16.msrb.mxu2 %v1683_v52  ;;  %v1779_v26 = vor.u32 %v2004_v11, %v1776_v12  ;;  %312 = vperm.xlu0 %2046, %v304_v16   ;;  %v1734_v47 = vld [vmem:[%s2097_s17 + $0x2a8] sm:$0xf]  ;;  %v1995_v48 = vld [vmem:[%s2097_s17 + $0x2b4] sm:$0xf0]  ;;  %v1607_v52 = vor.u32 %v1963_v46, %v1606_v44 }
  0x48   : > { %1078 = vmatpush.bf16.msrb.mxu3 %v1811_v56  ;;  %v1862_v49 = vld [vmem:[%s2097_s17 + $0x3a8] sm:$0xf]  ;;  %v2027_v50 = vld [vmem:[%s2097_s17 + $0x3b4] sm:$0xf0]  ;;  %v1735_v53 = vor.u32 %v1995_v48, %v1734_v47 }
  0x49   : > { %1037 = vmatpush.bf16.msrb.mxu0 %v1411_v63  ;;  %v1462_v54 = vld [vmem:[%s2097_s17 + $0x88] sm:$0xf]  ;;  %v1927_v55 = vld [vmem:[%s2097_s17 + $0x94] sm:$0xf0]  ;;  %v1863_v57 = vor.u32 %v2027_v50, %v1862_v49 }
  0x4a   : > { %1051 = vmatpush.bf16.msrb.mxu1 %v1539_v3  ;;  %v1590_v56 = vld [vmem:[%s2097_s17 + $0x188] sm:$0xf]  ;;  %v1959_v58 = vld [vmem:[%s2097_s17 + $0x194] sm:$0xf0]  ;;  %v1463_v0 = vor.u32 %v1927_v55, %v1462_v54  ;;  %v1640_v55 = vld [vmem:[%s2097_s17 + $0x1f8] sm:$0xf0] }
  0x4b   : > { %1065 = vmatpush.bf16.msrb.mxu2 %v1667_v4  ;;  %v1718_v60 = vld [vmem:[%s2097_s17 + $0x288] sm:$0xf]  ;;  %v1991_v61 = vld [vmem:[%s2097_s17 + $0x294] sm:$0xf0]  ;;  %v1591_v1 = vor.u32 %v1959_v58, %v1590_v56  ;;  %v2001_v56 = vld [vmem:[%s2097_s17 + $0x2ec] sm:$0xf] }
  0x4c   : > { %1079 = vmatpush.bf16.msrb.mxu3 %v1795_v9  ;;  %v1846_v62 = vld [vmem:[%s2097_s17 + $0x388] sm:$0xf]  ;;  %v2023_v63 = vld [vmem:[%s2097_s17 + $0x394] sm:$0xf0]  ;;  %v1719_v2 = vor.u32 %v1991_v61, %v1718_v60  ;;  %v2033_v61 = vld [vmem:[%s2097_s17 + $0x3ec] sm:$0xf] }
  0x4d   : > { %1038 = vmatpush.bf16.msrb.mxu0 %v1395_v18  ;;  %v1446_v3 = vld [vmem:[%s2097_s17 + $0x68] sm:$0xf]  ;;  %v1923_v4 = vld [vmem:[%s2097_s17 + $0x74] sm:$0xf0]  ;;  %v1847_v7 = vor.u32 %v2023_v63, %v1846_v62  ;;  %v1896_v62 = vld [vmem:[%s2097_s17 + $0x3f8] sm:$0xf0] }
  0x4e   : > { %1052 = vmatpush.bf16.msrb.mxu1 %v1523_v22  ;;  %v1574_v6 = vld [vmem:[%s2097_s17 + $0x168] sm:$0xf]  ;;  %v1955_v8 = vld [vmem:[%s2097_s17 + $0x174] sm:$0xf0]  ;;  %v1447_v14 = vor.u32 %v1923_v4, %v1446_v3  ;;  %v1933_v3 = vld [vmem:[%s2097_s17 + $0xcc] sm:$0xf] }
  0x4f   : > { %1066 = vmatpush.bf16.msrb.mxu2 %v1651_v23  ;;  %v1702_v9 = vld [vmem:[%s2097_s17 + $0x268] sm:$0xf]  ;;  %v1987_v11 = vld [vmem:[%s2097_s17 + $0x274] sm:$0xf0]  ;;  %v1575_v15 = vor.u32 %v1955_v8, %v1574_v6  ;;  %v1496_v4 = vld [vmem:[%s2097_s17 + $0xd8] sm:$0xf0] }
  0x50   : > { %1080 = vmatpush.bf16.msrb.mxu3 %v1779_v26  ;;  %1039 = vmatmul.bf16.vlgmr.msrb.gmra.mxu0 %v2202_v5  ;;  %v1830_v12 = vld [vmem:[%s2097_s17 + $0x368] sm:$0xf]  ;;  %v2019_v13 = vld [vmem:[%s2097_s17 + $0x374] sm:$0xf0]  ;;  %v1703_v16 = vor.u32 %v1987_v11, %v1702_v9  ;;  %v1965_v6 = vld [vmem:[%s2097_s17 + $0x1cc] sm:$0xf] }
  0x51   : > { %1087 = vmatpush.bf16.msra.mxu0 %v1511_v27  ;;  %1053 = vmatmul.bf16.vlgmr.msrb.gmra.mxu1 %v2221_v17  ;;  %v1430_v18 = vld [vmem:[%s2097_s17 + $0x48] sm:$0xf]  ;;  %v1919_v19 = vld [vmem:[%s2097_s17 + $0x54] sm:$0xf0]  ;;  %v1831_v21 = vor.u32 %v2019_v13, %v1830_v12  ;;  %v1624_v8 = vld [vmem:[%s2097_s17 + $0x1d8] sm:$0xf0] }
  0x52   : > { %1101 = vmatpush.bf16.msra.mxu1 %v1639_v28  ;;  %1067 = vmatmul.bf16.vlgmr.msrb.gmra.mxu2 %v2189_v59  ;;  %v1558_v20 = vld [vmem:[%s2097_s17 + $0x148] sm:$0xf]  ;;  %v1951_v22 = vld [vmem:[%s2097_s17 + $0x154] sm:$0xf0]  ;;  %v1431_v27 = vor.u32 %v1919_v19, %v1430_v18  ;;  %v1997_v9 = vld [vmem:[%s2097_s17 + $0x2cc] sm:$0xf] }
  0x53   : > { %1115 = vmatpush.bf16.msra.mxu2 %v1767_v29  ;;  %1081 = vmatmul.bf16.vlgmr.msrb.gmra.mxu3 %v2213_v10  ;;  %v1686_v23 = vld [vmem:[%s2097_s17 + $0x248] sm:$0xf]  ;;  %v1983_v24 = vld [vmem:[%s2097_s17 + $0x254] sm:$0xf0]  ;;  %v1559_v28 = vor.u32 %v1951_v22, %v1558_v20  ;;  %v1752_v11 = vld [vmem:[%s2097_s17 + $0x2d8] sm:$0xf0] }
  0x54   : > { %1129 = vmatpush.bf16.msra.mxu3 %v1895_v33  ;;  %v1814_v25 = vld [vmem:[%s2097_s17 + $0x348] sm:$0xf]  ;;  %v2015_v26 = vld [vmem:[%s2097_s17 + $0x354] sm:$0xf0]  ;;  %v1687_v29 = vor.u32 %v1983_v24, %v1686_v23  ;;  %v2029_v12 = vld [vmem:[%s2097_s17 + $0x3cc] sm:$0xf] }
  0x55   : > { %1088 = vmatpush.bf16.msra.mxu0 %v1495_v39  ;;  %v1414_v30 = vld [vmem:[%s2097_s17 + $0x28] sm:$0xf]  ;;  %v1915_v31 = vld [vmem:[%s2097_s17 + $0x34] sm:$0xf0]  ;;  %v1815_v33 = vor.u32 %v2015_v26, %v1814_v25  ;;  %v1880_v13 = vld [vmem:[%s2097_s17 + $0x3d8] sm:$0xf0] }
  0x56   : > { %1102 = vmatpush.bf16.msra.mxu1 %v1623_v40  ;;  %v1542_v32 = vld [vmem:[%s2097_s17 + $0x128] sm:$0xf]  ;;  %v1947_v34 = vld [vmem:[%s2097_s17 + $0x134] sm:$0xf0]  ;;  %v1415_v39 = vor.u32 %v1915_v31, %v1414_v30  ;;  %v1929_v18 = vld [vmem:[%s2097_s17 + $0xac] sm:$0xf] }
  0x57   : > { %1116 = vmatpush.bf16.msra.mxu2 %v1751_v41  ;;  %v1670_v35 = vld [vmem:[%s2097_s17 + $0x228] sm:$0xf]  ;;  %v1979_v36 = vld [vmem:[%s2097_s17 + $0x234] sm:$0xf0]  ;;  %v1543_v42 = vor.u32 %v1947_v34, %v1542_v32  ;;  %v1480_v19 = vld [vmem:[%s2097_s17 + $0xb8] sm:$0xf0] }
  0x58   : > { %1130 = vmatpush.bf16.msra.mxu3 %v1879_v45  ;;  %v1798_v37 = vld [vmem:[%s2097_s17 + $0x328] sm:$0xf]  ;;  %v2011_v38 = vld [vmem:[%s2097_s17 + $0x334] sm:$0xf0]  ;;  %v1671_v43 = vor.u32 %v1979_v36, %v1670_v35  ;;  %v1961_v20 = vld [vmem:[%s2097_s17 + $0x1ac] sm:$0xf] }
  0x59   : > { %1089 = vmatpush.bf16.msra.mxu0 %v1479_v51  ;;  %v1398_v40 = vld [vmem:[%s2097_s17 + $0x8] sm:$0xf]  ;;  %v1911_v41 = vld [vmem:[%s2097_s17 + $0x14] sm:$0xf0]  ;;  %v1799_v47 = vor.u32 %v2011_v38, %v1798_v37  ;;  %v1937_v51 = vld [vmem:[%s2097_s17 + $0xec] sm:$0xf] }
  0x5a   : > { %1103 = vmatpush.bf16.msra.mxu1 %v1607_v52  ;;  %v1526_v44 = vld [vmem:[%s2097_s17 + $0x108] sm:$0xf]  ;;  %v1943_v45 = vld [vmem:[%s2097_s17 + $0x114] sm:$0xf0]  ;;  %v1512_v52 = vld [vmem:[%s2097_s17 + $0xf8] sm:$0xf0]  ;;  %v1399_v54 = vor.u32 %v1911_v41, %v1398_v40 }
  0x5b   : > { %1117 = vmatpush.bf16.msra.mxu2 %v1735_v53  ;;  %v1654_v46 = vld [vmem:[%s2097_s17 + $0x208] sm:$0xf]  ;;  %v1975_v48 = vld [vmem:[%s2097_s17 + $0x214] sm:$0xf0]  ;;  %v1969_v53 = vld [vmem:[%s2097_s17 + $0x1ec] sm:$0xf]  ;;  %v1527_v58 = vor.u32 %v1943_v45, %v1526_v44 }
  0x5c   : > { %1131 = vmatpush.bf16.msra.mxu3 %v1863_v57  ;;  %v1782_v49 = vld [vmem:[%s2097_s17 + $0x308] sm:$0xf]  ;;  %v2007_v50 = vld [vmem:[%s2097_s17 + $0x314] sm:$0xf0]  ;;  %v1768_v57 = vld [vmem:[%s2097_s17 + $0x2f8] sm:$0xf0]  ;;  %v1655_v60 = vor.u32 %v1975_v48, %v1654_v46 }
  0x5d   : > { %1090 = vmatpush.bf16.msra.mxu0 %v1463_v0  ;;  %v1783_v63 = vor.u32 %v2007_v50, %v1782_v49  ;;  %v1515_v0 = vor.u32 %v1937_v51, %v1512_v52  ;;  %v1608_v22 = vld [vmem:[%s2097_s17 + $0x1b8] sm:$0xf0]  ;;  %v1993_v23 = vld [vmem:[%s2097_s17 + $0x2ac] sm:$0xf] }
  0x5e   : > { %1104 = vmatpush.bf16.msra.mxu1 %v1591_v1  ;;  %v1643_v1 = vor.u32 %v1969_v53, %v1640_v55  ;;  %v1736_v24 = vld [vmem:[%s2097_s17 + $0x2b8] sm:$0xf0]  ;;  %v2025_v25 = vld [vmem:[%s2097_s17 + $0x3ac] sm:$0xf] }
  0x5f   : > { %1118 = vmatpush.bf16.msra.mxu2 %v1719_v2  ;;  %v1771_v2 = vor.u32 %v2001_v56, %v1768_v57  ;;  %v1864_v26 = vld [vmem:[%s2097_s17 + $0x3b8] sm:$0xf0]  ;;  %v1925_v30 = vld [vmem:[%s2097_s17 + $0x8c] sm:$0xf] }
  0x60   : > { %1132 = vmatpush.bf16.msra.mxu3 %v1847_v7  ;;  %v1899_v7 = vor.u32 %v2033_v61, %v1896_v62  ;;  %v1464_v31 = vld [vmem:[%s2097_s17 + $0x98] sm:$0xf0]  ;;  %v1957_v32 = vld [vmem:[%s2097_s17 + $0x18c] sm:$0xf] }
  0x61   : > { %1091 = vmatpush.bf16.msra.mxu0 %v1447_v14  ;;  %v1499_v14 = vor.u32 %v1933_v3, %v1496_v4  ;;  %v1592_v34 = vld [vmem:[%s2097_s17 + $0x198] sm:$0xf0]  ;;  %v1989_v35 = vld [vmem:[%s2097_s17 + $0x28c] sm:$0xf] }
  0x62   : > { %1105 = vmatpush.bf16.msra.mxu1 %v1575_v15  ;;  %v1627_v15 = vor.u32 %v1965_v6, %v1624_v8  ;;  %v1720_v36 = vld [vmem:[%s2097_s17 + $0x298] sm:$0xf0]  ;;  %v2021_v37 = vld [vmem:[%s2097_s17 + $0x38c] sm:$0xf]  ;;  %v1595_v40 = vor.u32 %v1957_v32, %v1592_v34 }
  0x63   : > { %1119 = vmatpush.bf16.msra.mxu2 %v1703_v16  ;;  %v1755_v16 = vor.u32 %v1997_v9, %v1752_v11  ;;  %v1848_v38 = vld [vmem:[%s2097_s17 + $0x398] sm:$0xf0]  ;;  %v1723_v41 = vor.u32 %v1989_v35, %v1720_v36  ;;  %v1953_v44 = vld [vmem:[%s2097_s17 + $0x16c] sm:$0xf] }
  0x64   : > { %1133 = vmatpush.bf16.msra.mxu3 %v1831_v21  ;;  %v1883_v21 = vor.u32 %v2029_v12, %v1880_v13  ;;  %v1851_v45 = vor.u32 %v2021_v37, %v1848_v38  ;;  %v1576_v46 = vld [vmem:[%s2097_s17 + $0x178] sm:$0xf0]  ;;  %v2017_v49 = vld [vmem:[%s2097_s17 + $0x36c] sm:$0xf] }
  0x65   : > { %1092 = vmatpush.bf16.msra.mxu0 %v1431_v27  ;;  %v1483_v27 = vor.u32 %v1929_v18, %v1480_v19  ;;  %v1704_v48 = vld [vmem:[%s2097_s17 + $0x278] sm:$0xf0]  ;;  %v1579_v52 = vor.u32 %v1953_v44, %v1576_v46  ;;  %v1949_v56 = vld [vmem:[%s2097_s17 + $0x14c] sm:$0xf] }
  0x66   : > { %1106 = vmatpush.bf16.msra.mxu1 %v1559_v28  ;;  %v1611_v28 = vor.u32 %v1961_v20, %v1608_v22  ;;  %v1832_v50 = vld [vmem:[%s2097_s17 + $0x378] sm:$0xf0]  ;;  %v2013_v62 = vld [vmem:[%s2097_s17 + $0x34c] sm:$0xf] }
  0x67   : > { %1120 = vmatpush.bf16.msra.mxu2 %v1687_v29  ;;  %v1739_v29 = vor.u32 %v1993_v23, %v1736_v24  ;;  %v1432_v55 = vld [vmem:[%s2097_s17 + $0x58] sm:$0xf0]  ;;  %v1835_v57 = vor.u32 %v2017_v49, %v1832_v50  ;;  %v1913_v3 = vld [vmem:[%s2097_s17 + $0x2c] sm:$0xf] }
  0x68   : > { %1134 = vmatpush.bf16.msra.mxu3 %v1815_v33  ;;  %v1867_v33 = vor.u32 %v2025_v25, %v1864_v26  ;;  %v1688_v61 = vld [vmem:[%s2097_s17 + $0x258] sm:$0xf0]  ;;  %v1945_v6 = vld [vmem:[%s2097_s17 + $0x12c] sm:$0xf] }
  0x69   : > { %1093 = vmatpush.bf16.msra.mxu0 %v1415_v39  ;;  %v1467_v39 = vor.u32 %v1925_v30, %v1464_v31  ;;  %v1416_v4 = vld [vmem:[%s2097_s17 + $0x38] sm:$0xf0]  ;;  %v1977_v9 = vld [vmem:[%s2097_s17 + $0x22c] sm:$0xf] }
  0x6a   : > { %1107 = vmatpush.bf16.msra.mxu1 %v1543_v42  ;;  %v1921_v42 = vld [vmem:[%s2097_s17 + $0x6c] sm:$0xf]  ;;  %v1544_v8 = vld [vmem:[%s2097_s17 + $0x138] sm:$0xf0] }
  0x6b   : > { %1121 = vmatpush.bf16.msra.mxu2 %v1671_v43  ;;  %v1448_v43 = vld [vmem:[%s2097_s17 + $0x78] sm:$0xf0]  ;;  %v2009_v12 = vld [vmem:[%s2097_s17 + $0x32c] sm:$0xf] }
  0x6c   : > { %1135 = vmatpush.bf16.msra.mxu3 %v1799_v47  ;;  %v1985_v47 = vld [vmem:[%s2097_s17 + $0x26c] sm:$0xf]  ;;  %v1451_v51 = vor.u32 %v1921_v42, %v1448_v43  ;;  %v1672_v11 = vld [vmem:[%s2097_s17 + $0x238] sm:$0xf0] }
  0x6d   : > { %1094 = vmatpush.bf16.msra.mxu0 %v1399_v54  ;;  %v1707_v53 = vor.u32 %v1985_v47, %v1704_v48  ;;  %v1917_v54 = vld [vmem:[%s2097_s17 + $0x4c] sm:$0xf]  ;;  %v1800_v13 = vld [vmem:[%s2097_s17 + $0x338] sm:$0xf0] }
  0x6e   : > { %1108 = vmatpush.bf16.msra.mxu1 %v1527_v58  ;;  %v1560_v58 = vld [vmem:[%s2097_s17 + $0x158] sm:$0xf0]  ;;  %v1909_v18 = vld [vmem:[%s2097_s17 + $0xc] sm:$0xf] }
  0x6f   : > { %1122 = vmatpush.bf16.msra.mxu2 %v1655_v60  ;;  %v1981_v60 = vld [vmem:[%s2097_s17 + $0x24c] sm:$0xf]  ;;  %v1400_v19 = vld [vmem:[%s2097_s17 + $0x18] sm:$0xf0] }
  0x70   : > { %1136 = vmatpush.bf16.msra.mxu3 %v1783_v63  ;;  %1095 = vmatmul.bf16.vlgmr.msra.gmra.mxu0 %v2202_v5  ;;  %v1816_v63 = vld [vmem:[%s2097_s17 + $0x358] sm:$0xf0]  ;;  %v1941_v20 = vld [vmem:[%s2097_s17 + $0x10c] sm:$0xf] }
  0x71   : > { %1143 = vmatpush.bf16.msrb.mxu0 %v1515_v0  ;;  %1109 = vmatmul.bf16.vlgmr.msra.gmra.mxu1 %v2221_v17  ;;  %v1435_v0 = vor.u32 %v1917_v54, %v1432_v55  ;;  %v1528_v22 = vld [vmem:[%s2097_s17 + $0x118] sm:$0xf0]  ;;  %v1973_v23 = vld [vmem:[%s2097_s17 + $0x20c] sm:$0xf] }
  0x72   : > { %1157 = vmatpush.bf16.msrb.mxu1 %v1643_v1  ;;  %1123 = vmatmul.bf16.vlgmr.msra.gmra.mxu2 %v2189_v59  ;;  %v1563_v1 = vor.u32 %v1949_v56, %v1560_v58  ;;  %v1656_v24 = vld [vmem:[%s2097_s17 + $0x218] sm:$0xf0]  ;;  %v2005_v25 = vld [vmem:[%s2097_s17 + $0x30c] sm:$0xf] }
  0x73   : > { %1171 = vmatpush.bf16.msrb.mxu2 %v1771_v2  ;;  %1137 = vmatmul.bf16.vlgmr.msra.gmra.mxu3 %v2213_v10  ;;  %v1691_v2 = vor.u32 %v1981_v60, %v1688_v61  ;;  %v1784_v26 = vld [vmem:[%s2097_s17 + $0x318] sm:$0xf0] }
  0x74   : > { %1185 = vmatpush.bf16.msrb.mxu3 %v1899_v7  ;;  %v1819_v7 = vor.u32 %v2013_v62, %v1816_v63  ;;  %v1787_v30 = vor.u32 %v2005_v25, %v1784_v26 }
  0x75   : > { %1144 = vmatpush.bf16.msrb.mxu0 %v1499_v14  ;;  %v1419_v14 = vor.u32 %v1913_v3, %v1416_v4 }
  0x76   : > { %1158 = vmatpush.bf16.msrb.mxu1 %v1627_v15  ;;  %v1547_v15 = vor.u32 %v1945_v6, %v1544_v8 }
  0x77   : > { %1172 = vmatpush.bf16.msrb.mxu2 %v1755_v16  ;;  %v1675_v16 = vor.u32 %v1977_v9, %v1672_v11 }
  0x78   : > { %1186 = vmatpush.bf16.msrb.mxu3 %v1883_v21  ;;  %v1803_v21 = vor.u32 %v2009_v12, %v1800_v13 }
  0x79   : > { %1145 = vmatpush.bf16.msrb.mxu0 %v1483_v27  ;;  %v1403_v27 = vor.u32 %v1909_v18, %v1400_v19 }
  0x7a   : > { %1159 = vmatpush.bf16.msrb.mxu1 %v1611_v28  ;;  %v1531_v28 = vor.u32 %v1941_v20, %v1528_v22 }
  0x7b   : > { %1173 = vmatpush.bf16.msrb.mxu2 %v1739_v29  ;;  %v1659_v29 = vor.u32 %v1973_v23, %v1656_v24 }
  0x7c   : > { %1187 = vmatpush.bf16.msrb.mxu3 %v1867_v33 }
  0x7d   : > { %1146 = vmatpush.bf16.msrb.mxu0 %v1467_v39 }
  0x7e   : > { %1160 = vmatpush.bf16.msrb.mxu1 %v1595_v40 }
  0x7f   : > { %1174 = vmatpush.bf16.msrb.mxu2 %v1723_v41 }
  0x80   : > { %1188 = vmatpush.bf16.msrb.mxu3 %v1851_v45 }
  0x81   : > { %1147 = vmatpush.bf16.msrb.mxu0 %v1451_v51 }
  0x82   : > { %1161 = vmatpush.bf16.msrb.mxu1 %v1579_v52 }
  0x83   : > { %1175 = vmatpush.bf16.msrb.mxu2 %v1707_v53 }
  0x84   : > { %1189 = vmatpush.bf16.msrb.mxu3 %v1835_v57 }
  0x85   : > { %1148 = vmatpush.bf16.msrb.mxu0 %v1435_v0 }
  0x86   : > { %1162 = vmatpush.bf16.msrb.mxu1 %v1563_v1 }
  0x87   : > { %1176 = vmatpush.bf16.msrb.mxu2 %v1691_v2 }
  0x88   : > { %1190 = vmatpush.bf16.msrb.mxu3 %v1819_v7 }
  0x89   : > { %1149 = vmatpush.bf16.msrb.mxu0 %v1419_v14 }
  0x8a   : > { %1163 = vmatpush.bf16.msrb.mxu1 %v1547_v15 }
  0x8b   : > { %1177 = vmatpush.bf16.msrb.mxu2 %v1675_v16 }
  0x8c   : > { %1191 = vmatpush.bf16.msrb.mxu3 %v1803_v21 }
  0x8d   : > { %1150 = vmatpush.bf16.msrb.mxu0 %v1403_v27 }
  0x8e   : > { %1164 = vmatpush.bf16.msrb.mxu1 %v1531_v28 }
  0x8f   : > { %1178 = vmatpush.bf16.msrb.mxu2 %v1659_v29 }
  0x90   : > { %1192 = vmatpush.bf16.msrb.mxu3 %v1787_v30  ;;  %1151 = vmatmul.bf16.vlgmr.msrb.gmra.mxu0 %v2202_v5 }
  0x91   : > { %1165 = vmatmul.bf16.vlgmr.msrb.gmra.mxu1 %v2221_v17 }
  0x92   : > { %1179 = vmatmul.bf16.vlgmr.msrb.gmra.mxu2 %v2189_v59 }
  0x93   : > { %1193 = vmatmul.bf16.vlgmr.msrb.gmra.mxu3 %v2213_v10 }
  0xb0   : > { %v984_v31 = vpop.f32.mrf.mxu0 }
  0xb1   : > { %v998_v32 = vpop.f32.mrf.mxu1  ;;  %v308_v46 = vpop.permute.xlu0 %307 }
  0xb2   : > { %v985_v50 = vadd.f32 %v984_v31, %v308_v46 }
  0xb4   : > { %v999_v54 = vadd.f32 %v998_v32, %v985_v50 }
  0xb5   : > { %v1012_v33 = vpop.f32.mrf.mxu2 }
  0xb6   : > { %v1013_v0 = vadd.f32 %v1012_v33, %v999_v54 }
  0xb8   : > { %v1026_v34 = vpop.f32.mrf.mxu3  ;;  %v986_v35 = vpop.f32.mrf.mxu0 }
  0xb9   : > { %v1000_v36 = vpop.f32.mrf.mxu1  ;;  %v313_v55 = vpop.permute.xlu0 %312  ;;  %v1027_v9 = vadd.f32 %v1026_v34, %v1013_v0 }
  0xba   : > { %v987_v63 = vadd.f32 %v986_v35, %v313_v55 }
  0xbc   : > { %v1001_v8 = vadd.f32 %v1000_v36, %v987_v63 }
  0xbd   : > { %v1014_v37 = vpop.f32.mrf.mxu2 }
  0xbe   : > { %v1015_v21 = vadd.f32 %v1014_v37, %v1001_v8  ;;  %v2062_v37 = vmov 512.0  }
  0xbf   : > { %2047 = vrcp.f32 %v2062_v37 }
  0xc0   : > { %v1028_v38 = vpop.f32.mrf.mxu3 }
  0xc1   : > { %v1029_v29 = vadd.f32 %v1028_v38, %v1015_v21 }
  0xcd   : > { %v1040_v39 = vpop.f32.mrf.mxu0 }
  0xce   : > { %v1054_v40 = vpop.f32.mrf.mxu1  ;;  %v1041_v48 = vadd.f32 %v1040_v39, %v308_v46 }
  0xd0   : > { %v1055_v53 = vadd.f32 %v1054_v40, %v1041_v48 }
  0xd5   : > { %v1068_v41 = vpop.f32.mrf.mxu2  ;;  %v1042_v43 = vpop.f32.mrf.mxu0 }
  0xd6   : > { %v1082_v42 = vpop.f32.mrf.mxu3  ;;  %v1056_v5 = vpop.f32.mrf.mxu1  ;;  %v1069_v58 = vadd.f32 %v1068_v41, %v1055_v53  ;;  %v1043_v60 = vadd.f32 %v1042_v43, %v313_v55 }
  0xd7   : > { %v2048_v41 = vpop.eup %2047 }
  0xd8   : > { %v1083_v6 = vadd.f32 %v1082_v42, %v1069_v58  ;;  %v1057_v7 = vadd.f32 %v1056_v5, %v1043_v60  ;;  %v1210_v42 = vmul.f32 512.0, %v2048_v41  ;;  %vm1214_vm0 = vweird.f32 %v2048_v41 }
  0xda   : > { %v1199_v15 = vadd.f32 %v1083_v6, %v1027_v9  ;;  %v1211_v43 = vsub.f32 1.0, %v1210_v42 }
  0xdc   : > { %v1212_v5 = vmul.f32 %v2048_v41, %v1211_v43 }
  0xdd   : > { %v1070_v44 = vpop.f32.mrf.mxu2 }
  0xde   : > { %v1084_v17 = vpop.f32.mrf.mxu3  ;;  %v1071_v16 = vadd.f32 %v1070_v44, %v1057_v7  ;;  %v1213_v44 = vadd.f32 %v2048_v41, %v1212_v5 }
  0xe0   : > { %v1085_v26 = vadd.f32 %v1084_v17, %v1071_v16  ;;  %v1215_v38 = vsel %vm1214_vm0, %v2048_v41, %v1213_v44 }
  0xe2   : > { %v1204_v33 = vadd.f32 %v1085_v26, %v1029_v29 }
  0xed   : > { %v1096_v45 = vpop.f32.mrf.mxu0 }
  0xee   : > { %v1110_v59 = vpop.f32.mrf.mxu1  ;;  %v1097_v51 = vadd.f32 %v1096_v45, %v308_v46 }
  0xf0   : > { %v1111_v56 = vadd.f32 %v1110_v59, %v1097_v51 }
  0xf5   : > { %v1124_v10 = vpop.f32.mrf.mxu2  ;;  %v1098_v49 = vpop.f32.mrf.mxu0 }
  0xf6   : > { %v1138_v47 = vpop.f32.mrf.mxu3  ;;  %v1112_v52 = vpop.f32.mrf.mxu1  ;;  %v1125_v1 = vadd.f32 %v1124_v10, %v1111_v56  ;;  %v1099_v2 = vadd.f32 %v1098_v49, %v313_v55 }
  0xf8   : > { %v1139_v11 = vadd.f32 %v1138_v47, %v1125_v1  ;;  %v1113_v12 = vadd.f32 %v1112_v52, %v1099_v2 }
  0xfa   : > { %v1200_v25 = vadd.f32 %v1199_v15, %v1139_v11 }
  0xfd   : > { %v1126_v57 = vpop.f32.mrf.mxu2 }
  0xfe   : > { %v1140_v61 = vpop.f32.mrf.mxu3  ;;  %v1127_v22 = vadd.f32 %v1126_v57, %v1113_v12 }
 0x100   : > { %v1141_v30 = vadd.f32 %v1140_v61, %v1127_v22 }
 0x102   : > { %v1205_v36 = vadd.f32 %v1204_v33, %v1141_v30 }
 0x10d   : > { %v1152_v62 = vpop.f32.mrf.mxu0 }
 0x10e   : > { %v1153_v3 = vadd.f32 %v1152_v62, %v308_v46  ;;  %v1166_v4 = vpop.f32.mrf.mxu1 }
 0x110   : > { %v1167_v13 = vadd.f32 %v1166_v4, %v1153_v3 }
 0x115   : > { %v1180_v14 = vpop.f32.mrf.mxu2  ;;  %v1154_v20 = vpop.f32.mrf.mxu0 }
 0x116   : > { %v1181_v18 = vadd.f32 %v1180_v14, %v1167_v13  ;;  %v1194_v19 = vpop.f32.mrf.mxu3  ;;  %v1155_v24 = vadd.f32 %v1154_v20, %v313_v55  ;;  %v1168_v28 = vpop.f32.mrf.mxu1 }
 0x118   : > { %v1195_v23 = vadd.f32 %v1194_v19, %v1181_v18  ;;  %v1169_v31 = vadd.f32 %v1168_v28, %v1155_v24 }
 0x11a   : > { %v1201_v27 = vadd.f32 %v1200_v25, %v1195_v23 }
 0x11c   : > { %1202 = vadd.xlane.f32.xlu1 %v1201_v27 }
 0x11d   : > { %v1182_v32 = vpop.f32.mrf.mxu2 }
 0x11e   : > { %v1183_v34 = vadd.f32 %v1182_v32, %v1169_v31  ;;  %v1196_v35 = vpop.f32.mrf.mxu3 }
 0x120   : > { %v1197_v39 = vadd.f32 %v1196_v35, %v1183_v34 }
 0x122   : > { %v1206_v40 = vadd.f32 %v1205_v36, %v1197_v39 }
 0x124   : > { %1207 = vadd.xlane.f32.xlu1 %v1206_v40 }
 0x18f   : > { %v1203_v17 = vpop.xlane.xlu1 %1202 }
 0x190   : > { %v1216_v45 = vmul.f32 %v1215_v38, %v1203_v17 }
 0x192   : > { %v1218_v59 = vsub.f32 %v1027_v9, %v1216_v45  ;;  %v1219_v46 = vsub.f32 %v1083_v6, %v1216_v45  ;;  %v1220_v10 = vsub.f32 %v1139_v11, %v1216_v45  ;;  %v1221_v47 = vsub.f32 %v1195_v23, %v1216_v45 }
 0x194   : > { %v1226_v48 = vmul.f32 %v1218_v59, %v1218_v59  ;;  %v1227_v49 = vmul.f32 %v1219_v46, %v1219_v46  ;;  %v1228_v50 = vmul.f32 %v1220_v10, %v1220_v10  ;;  %v1229_v54 = vmul.f32 %v1221_v47, %v1221_v47 }
 0x196   : > { %v1234_v51 = vadd.f32 %v1227_v49, %v1226_v48 }
 0x197   : > { %v1208_v52 = vpop.xlane.xlu1 %1207 }
 0x198   : > { %v1217_v53 = vmul.f32 %v1215_v38, %v1208_v52  ;;  %v1235_v55 = vadd.f32 %v1234_v51, %v1228_v50 }
 0x19a   : > { %v2409_v56 = vsub.f32 %v1029_v29, %v1217_v53  ;;  %v2411_v57 = vsub.f32 %v1085_v26, %v1217_v53  ;;  %v1236_v58 = vadd.f32 %v1235_v55, %v1229_v54  ;;  %v2413_v60 = vsub.f32 %v1141_v30, %v1217_v53 }
 0x19b   : > { %v1225_v61 = vsub.f32 %v1197_v39, %v1217_v53 }
 0x19c   : > { %1237 = vadd.xlane.f32.xlu2 %v1236_v58  ;;  %v1230_v62 = vmul.f32 %v2409_v56, %v2409_v56  ;;  %v1231_v63 = vmul.f32 %v2411_v57, %v2411_v57  ;;  %v1232_v0 = vmul.f32 %v2413_v60, %v2413_v60 }
 0x19d   : > { %v1233_v2 = vmul.f32 %v1225_v61, %v1225_v61 }
 0x19e   : > { %v1239_v1 = vadd.f32 %v1231_v63, %v1230_v62 }
 0x1a0   : > { %v1240_v3 = vadd.f32 %v1239_v1, %v1232_v0 }
 0x1a2   : > { %v1241_v4 = vadd.f32 %v1240_v3, %v1233_v2 }
 0x1a4   : > { %1242 = vadd.xlane.f32.xlu2 %v1241_v4 }
 0x20f   : > { %v1238_v6 = vpop.xlane.xlu2 %1237 }
 0x210   : > { %v1244_v7 = vmul.f32 %v1238_v6, %v1215_v38 }
 0x212   : > { %v1246_v8 = vadd.f32 1e-05, %v1244_v7 }
 0x214   : > { %2049 = vrsqrt.f32 %v1246_v8  ;;  %vm1254_vm2 = vweird.f32 %v1246_v8 }
 0x217   : > { %v1243_v9 = vpop.xlane.xlu2 %1242 }
 0x218   : > { %v1245_v11 = vmul.f32 %v1243_v9, %v1215_v38 }
 0x21a   : > { %v2050_v12 = vpop.eup %2049  ;;  %v1247_v13 = vadd.f32 1e-05, %v1245_v11 }
 0x21b   : > { %v1249_v14 = vmul.f32 %v2050_v12, %v1246_v8  ;;  %vm1255_vm1 = vweird.f32 %v2050_v12 }
 0x21c   : > { %2051 = vrsqrt.f32 %v1247_v13  ;;  %vm1256_vm3 = vmor %vm1254_vm2, %vm1255_vm1  ;;  %vm1264_vm9 = vweird.f32 %v1247_v13 }
 0x21d   : > { %v1250_v15 = vmul.f32 %v2050_v12, %v1249_v14 }
 0x21f   : > { %v1251_v16 = vmul.f32 0.5, %v1250_v15 }
 0x221   : > { %v1252_v18 = vsub.f32 1.5, %v1251_v16 }
 0x222   : > { %v2052_v19 = vpop.eup %2051 }
 0x223   : > { %v1253_v20 = vmul.f32 %v2050_v12, %v1252_v18  ;;  %v1259_v21 = vmul.f32 %v2052_v19, %v1247_v13  ;;  %vm1265_vm8 = vweird.f32 %v2052_v19 }
 0x224   : > { %vm1266_vm10 = vmor %vm1264_vm9, %vm1265_vm8 }
 0x225   : > { %v1257_v22 = vsel %vm1256_vm3, %v2050_v12, %v1253_v20  ;;  %v1260_v23 = vmul.f32 %v2052_v19, %v1259_v21 }
 0x226   : > { %v1268_v24 = vmul.f32 %v1257_v22, %v1218_v59  ;;  %v1269_v25 = vmul.f32 %v1257_v22, %v1219_v46  ;;  %v1270_v26 = vmul.f32 %v1257_v22, %v1220_v10  ;;  %v1271_v27 = vmul.f32 %v1257_v22, %v1221_v47 }
 0x227   : > { %v1261_v28 = vmul.f32 0.5, %v1260_v23 }
 0x228   : > { %vm1276_vm4 = vcmp.ge.f32.partialorder %v1268_v24, 0.0  ;;  %vm1277_vm5 = vcmp.ge.f32.partialorder %v1269_v25, 0.0  ;;  %vm1278_vm6 = vcmp.ge.f32.partialorder %v1270_v26, 0.0  ;;  %vm1279_vm7 = vcmp.ge.f32.partialorder %v1271_v27, 0.0 }
 0x229   : > { %v1284_v29 = vmul.f32 0.2, %v1268_v24  ;;  %v1285_v30 = vmul.f32 0.2, %v1269_v25  ;;  %v1286_v31 = vmul.f32 0.2, %v1270_v26 }
 0x22a   : > { %v1287_v32 = vmul.f32 0.2, %v1271_v27  ;;  %v1262_v33 = vsub.f32 1.5, %v1261_v28 }
 0x22b   : > { %v1292_v34 = vsel %vm1276_vm4, %v1268_v24, %v1284_v29  ;;  %v1293_v35 = vsel %vm1277_vm5, %v1269_v25, %v1285_v30  ;;  %v1294_v36 = vsel %vm1278_vm6, %v1270_v26, %v1286_v31 }
 0x22c   : > { %v1295_v39 = vsel %vm1279_vm7, %v1271_v27, %v1287_v32  ;;  %v1300_v40 = vpack.c.bf16 %v1293_v35, %v1292_v34  ;;  %v1263_v37 = vmul.f32 %v2052_v19, %v1262_v33 }
 0x22d   : > { %v1301_v41 = vpack.c.bf16 %v1295_v39, %v1294_v36 }
 0x22e   : > { %1304 = vst [vmem:[%s2425_s16] sm:$0xff] %v1300_v40  ;;  %v1267_v42 = vsel %vm1266_vm10, %v2052_v19, %v1263_v37 }
 0x22f   : > { %1305 = vst [vmem:[%s2425_s16 + $0x8] sm:$0xff] %v1301_v41  ;;  %v1272_v43 = vmul.f32 %v1267_v42, %v2409_v56  ;;  %v1273_v5 = vmul.f32 %v1267_v42, %v2411_v57  ;;  %v1274_v44 = vmul.f32 %v1267_v42, %v2413_v60  ;;  %v1275_v38 = vmul.f32 %v1267_v42, %v1225_v61 }
 0x231   : > { %vm1280_vm11 = vcmp.ge.f32.partialorder %v1272_v43, 0.0  ;;  %vm1281_vm12 = vcmp.ge.f32.partialorder %v1273_v5, 0.0  ;;  %vm1282_vm13 = vcmp.ge.f32.partialorder %v1274_v44, 0.0  ;;  %vm1283_vm14 = vcmp.ge.f32.partialorder %v1275_v38, 0.0 }
 0x232   : > { %v1288_v17 = vmul.f32 0.2, %v1272_v43  ;;  %v1289_v45 = vmul.f32 0.2, %v1273_v5  ;;  %v1290_v59 = vmul.f32 0.2, %v1274_v44 }
 0x233   : > { %v1291_v46 = vmul.f32 0.2, %v1275_v38 }
 0x234   : > { %v1296_v10 = vsel %vm1280_vm11, %v1272_v43, %v1288_v17  ;;  %v1297_v47 = vsel %vm1281_vm12, %v1273_v5, %v1289_v45  ;;  %v1298_v48 = vsel %vm1282_vm13, %v1274_v44, %v1290_v59 }
 0x235   : > { %v1299_v49 = vsel %vm1283_vm14, %v1275_v38, %v1291_v46  ;;  %v1302_v50 = vpack.c.bf16 %v1297_v47, %v1296_v10 }
 0x236   : > { %v1303_v51 = vpack.c.bf16 %v1299_v49, %v1298_v48 }
 0x237   : > { %1306 = vst [vmem:[%s2425_s16 + $0x10] sm:$0xff] %v1302_v50 }
 0x238   : > { %1307 = vst [vmem:[%s2425_s16 + $0x18] sm:$0xff] %v1303_v51 }
 0x239 PF: > { %s13_s12 = sadd.s32 1, %s2059_s12  }
 0x23a   : > { %p10_p4 = scmp.ge.s32.totalorder %s13_s12, 4  }
 0x23c   :  { %12 = sbr.rel (!%p10_p4) target bundleno = 1 (0x1), region = 62 }

// kernel: nlayer_discriminator3d_forward.8
= control target key start
LH: loop header
LB: loop body
LE: loop exit
PB: predicated region body
PF: predicated region fallthrough
CT: control target
= control target key end

     0   :  { %s1592_s12 = smov 0   ;;  %s1820_s0 = inlined_call_operand.vmem [shape: bf16[32,1024], index: 0, kind: input, shape index: {}]   ;;  %s1821_s1 = inlined_call_operand.vmem [shape: f32[32,1], index: 1, kind: input, shape index: {}]   ;;  %s1822_s2 = inlined_call_operand.vmem [shape: bf16[2,1024,64], index: 2, kind: input, shape index: {}]   ;;  %s1823_s3 = inlined_call_operand.vmem [shape: bf16[2,32,64], index: 3, kind: output, shape index: {}]  }
   0x1 LB: > { %s1127_s13 = sadd.s32 4294967295, %s1568_s12   ;;  %p1131_p0 = scmp.ge.s32.totalorder %s1568_s12, 1  ;;  %s1568_s12 = sphi %s1592_s12, %s13_s12  }
   0x2   : > { %p137_p1 = scmp.lt.s32.totalorder %s1568_s12, 3 }
   0x4   : > { %p138_p2 = pnand %p1131_p0, %p137_p1 }
   0x5   : > { %p161_p3 = scmp.lt.s32.totalorder (!%p138_p2), %s1127_s13, 1 }
   0x6   : > { %141 = sbr.rel (%p138_p2) target bundleno = 510 (0x1fe), region = 32 }
   0xb   : > { %s1825_s13 = smov (!%p161_p3, %s1127_s13), 1  ;;  %v1570_v16 = vmov 0   ;;  %v315_v21 = vld [vmem:[%s1821_s1] sm:$0xff]  ;;  %v316_v28 = vld [vmem:[%s1821_s1 + $0x8] sm:$0xff]  ;;  %v317_v43 = vld [vmem:[%s1821_s1 + $0x10] sm:$0xff]  ;;  %vm955_vm0 = vcmask 523264  }
   0xc   : > { %s1458_s14 = sshll.u32 %s1825_s13, 9  ;;  %1550 = vset.pattern.permute.xlu0 %v1570_v16  ;;  %1551 = vset.pattern.permute.xlu1 %v1570_v16  ;;  %v1138_v32 = vld [vmem:[%s1820_s0] sm:$0xf]  ;;  %v1460_v34 = vld [vmem:[%s1820_s0 + $0x4] sm:$0xf]  ;;  %v318_v56 = vld [vmem:[%s1821_s1 + $0x18] sm:$0xff] }
   0xd   : > { %s1606_s17 = scalar_lea.vmem %s1822_s2, %s1458_s14  ;;  %321 = vperm.xlu0 %1550, %v315_v21   ;;  %v1464_v33 = vld [vmem:[%s1820_s0 + $0x1c] sm:$0xf0]  ;;  %v1140_v38 = vld [vmem:[%s1820_s0 + $0x20] sm:$0xf0]  ;;  %v1146_v39 = vld [vmem:[%s1820_s0 + $0x8] sm:$0xf]  ;;  %331 = vperm.xlu1 %1551, %v317_v43  }
   0xe   : > { %v1483_v0 = vld [vmem:[%s1606_s17 + $0x38] sm:$0xff]  ;;  %v1482_v4 = vld [vmem:[%s1606_s17 + $0x30] sm:$0xff]  ;;  %v1481_v8 = vld [vmem:[%s1606_s17 + $0x28] sm:$0xff]  ;;  %v1139_v46 = vor.u32 %v1464_v33, %v1138_v32  ;;  %v1143_v47 = vor.u32 %v1460_v34, %v1140_v38  ;;  %s1459_s16 = sshll.u32 %s1825_s13, 4  ;;  %vm1067_vm7 = vcmask 519168  }
   0xf   : > { %v1491_v1 = vld [vmem:[%s1606_s17 + $0x78] sm:$0xff]  ;;  %803 = vmatpush.bf16.msra.mxu0 %v1483_v0  ;;  %v1490_v5 = vld [vmem:[%s1606_s17 + $0x70] sm:$0xff]  ;;  %v1489_v9 = vld [vmem:[%s1606_s17 + $0x68] sm:$0xff]  ;;  %s1804_s19 = scalar_lea.vmem %s1823_s3, %s1459_s16 }
  0x10   : > { %v1499_v2 = vld [vmem:[%s1606_s17 + $0xb8] sm:$0xff]  ;;  %822 = vmatpush.bf16.msra.mxu1 %v1491_v1  ;;  %v1498_v6 = vld [vmem:[%s1606_s17 + $0xb0] sm:$0xff]  ;;  %v1497_v10 = vld [vmem:[%s1606_s17 + $0xa8] sm:$0xff] }
  0x11   : > { %v1507_v3 = vld [vmem:[%s1606_s17 + $0xf8] sm:$0xff]  ;;  %841 = vmatpush.bf16.msra.mxu2 %v1499_v2  ;;  %v1506_v7 = vld [vmem:[%s1606_s17 + $0xf0] sm:$0xff]  ;;  %v1505_v11 = vld [vmem:[%s1606_s17 + $0xe8] sm:$0xff] }
  0x12   : > { %860 = vmatpush.bf16.msra.mxu3 %v1507_v3  ;;  %v1480_v12 = vld [vmem:[%s1606_s17 + $0x20] sm:$0xff]  ;;  %v1479_v17 = vld [vmem:[%s1606_s17 + $0x18] sm:$0xff]  ;;  %v1478_v22 = vld [vmem:[%s1606_s17 + $0x10] sm:$0xff] }
  0x13   : > { %804 = vmatpush.bf16.msra.mxu0 %v1482_v4  ;;  %v1488_v13 = vld [vmem:[%s1606_s17 + $0x60] sm:$0xff]  ;;  %v1487_v18 = vld [vmem:[%s1606_s17 + $0x58] sm:$0xff]  ;;  %v1486_v23 = vld [vmem:[%s1606_s17 + $0x50] sm:$0xff] }
  0x14   : > { %823 = vmatpush.bf16.msra.mxu1 %v1490_v5  ;;  %v1496_v14 = vld [vmem:[%s1606_s17 + $0xa0] sm:$0xff]  ;;  %v1495_v19 = vld [vmem:[%s1606_s17 + $0x98] sm:$0xff]  ;;  %v1494_v24 = vld [vmem:[%s1606_s17 + $0x90] sm:$0xff] }
  0x15   : > { %842 = vmatpush.bf16.msra.mxu2 %v1498_v6  ;;  %v1504_v15 = vld [vmem:[%s1606_s17 + $0xe0] sm:$0xff]  ;;  %v1503_v20 = vld [vmem:[%s1606_s17 + $0xd8] sm:$0xff]  ;;  %v1502_v25 = vld [vmem:[%s1606_s17 + $0xd0] sm:$0xff]  ;;  %326 = vperm.xlu0 %1550, %v316_v28  }
  0x16   : > { %861 = vmatpush.bf16.msra.mxu3 %v1506_v7  ;;  %v1477_v26 = vld [vmem:[%s1606_s17 + $0x8] sm:$0xff]  ;;  %v1476_v31 = vld [vmem:[%s1606_s17] sm:$0xff]  ;;  %v1531_v44 = vld [vmem:[%s1606_s17 + $0x1b8] sm:$0xff]  ;;  %336 = vperm.xlu1 %1551, %v318_v56  }
  0x17   : > { %805 = vmatpush.bf16.msra.mxu0 %v1481_v8  ;;  %v1485_v27 = vld [vmem:[%s1606_s17 + $0x48] sm:$0xff]  ;;  %v1484_v35 = vld [vmem:[%s1606_s17 + $0x40] sm:$0xff]  ;;  %v1515_v45 = vld [vmem:[%s1606_s17 + $0x138] sm:$0xff] }
  0x18   : > { %824 = vmatpush.bf16.msra.mxu1 %v1489_v9  ;;  %v1493_v29 = vld [vmem:[%s1606_s17 + $0x88] sm:$0xff]  ;;  %v1492_v36 = vld [vmem:[%s1606_s17 + $0x80] sm:$0xff]  ;;  %v1523_v50 = vld [vmem:[%s1606_s17 + $0x178] sm:$0xff] }
  0x19   : > { %843 = vmatpush.bf16.msra.mxu2 %v1497_v10  ;;  %v1501_v30 = vld [vmem:[%s1606_s17 + $0xc8] sm:$0xff]  ;;  %v1500_v37 = vld [vmem:[%s1606_s17 + $0xc0] sm:$0xff]  ;;  %v1539_v51 = vld [vmem:[%s1606_s17 + $0x1f8] sm:$0xff] }
  0x1a   : > { %862 = vmatpush.bf16.msra.mxu3 %v1505_v11  ;;  %v1465_v40 = vld [vmem:[%s1820_s0 + $0x24] sm:$0xf0]  ;;  %v1461_v41 = vld [vmem:[%s1820_s0 + $0xc] sm:$0xf]  ;;  %v1530_v52 = vld [vmem:[%s1606_s17 + $0x1b0] sm:$0xff] }
  0x1b   : > { %806 = vmatpush.bf16.msra.mxu0 %v1480_v12  ;;  %v1148_v42 = vld [vmem:[%s1820_s0 + $0x28] sm:$0xf0]  ;;  %v1147_v48 = vor.u32 %v1465_v40, %v1146_v39  ;;  %v1514_v53 = vld [vmem:[%s1606_s17 + $0x130] sm:$0xff]  ;;  %v1528_v61 = vld [vmem:[%s1606_s17 + $0x1a0] sm:$0xff] }
  0x1c   : > { %825 = vmatpush.bf16.msra.mxu1 %v1488_v13  ;;  %v1151_v49 = vor.u32 %v1461_v41, %v1148_v42  ;;  %v1522_v54 = vld [vmem:[%s1606_s17 + $0x170] sm:$0xff]  ;;  %v1529_v57 = vld [vmem:[%s1606_s17 + $0x1a8] sm:$0xff]  ;;  %v1512_v62 = vld [vmem:[%s1606_s17 + $0x120] sm:$0xff] }
  0x1d   : > { %844 = vmatpush.bf16.msra.mxu2 %v1496_v14  ;;  %v1538_v55 = vld [vmem:[%s1606_s17 + $0x1f0] sm:$0xff]  ;;  %v1513_v58 = vld [vmem:[%s1606_s17 + $0x128] sm:$0xff]  ;;  %v1520_v63 = vld [vmem:[%s1606_s17 + $0x160] sm:$0xff] }
  0x1e   : > { %863 = vmatpush.bf16.msra.mxu3 %v1504_v15  ;;  %v1521_v59 = vld [vmem:[%s1606_s17 + $0x168] sm:$0xff]  ;;  %v1536_v0 = vld [vmem:[%s1606_s17 + $0x1e0] sm:$0xff]  ;;  %v1527_v9 = vld [vmem:[%s1606_s17 + $0x198] sm:$0xff] }
  0x1f   : > { %807 = vmatpush.bf16.msra.mxu0 %v1479_v17  ;;  %v1537_v60 = vld [vmem:[%s1606_s17 + $0x1e8] sm:$0xff]  ;;  %v1170_v1 = vld [vmem:[%s1820_s0 + $0x40] sm:$0xf]  ;;  %v1468_v3 = vld [vmem:[%s1820_s0 + $0x44] sm:$0xf] }
  0x20   : > { %826 = vmatpush.bf16.msra.mxu1 %v1487_v18  ;;  %v1472_v2 = vld [vmem:[%s1820_s0 + $0x5c] sm:$0xf0]  ;;  %v1172_v4 = vld [vmem:[%s1820_s0 + $0x60] sm:$0xf0]  ;;  %v1178_v5 = vld [vmem:[%s1820_s0 + $0x48] sm:$0xf] }
  0x21   : > { %845 = vmatpush.bf16.msra.mxu2 %v1495_v19  ;;  %v1473_v6 = vld [vmem:[%s1820_s0 + $0x64] sm:$0xf0]  ;;  %v1469_v7 = vld [vmem:[%s1820_s0 + $0x4c] sm:$0xf]  ;;  %v1511_v10 = vld [vmem:[%s1606_s17 + $0x118] sm:$0xff]  ;;  %v1171_v11 = vor.u32 %v1472_v2, %v1170_v1  ;;  %v1175_v12 = vor.u32 %v1468_v3, %v1172_v4 }
  0x22   : > { %864 = vmatpush.bf16.msra.mxu3 %v1503_v20  ;;  %v1180_v8 = vld [vmem:[%s1820_s0 + $0x68] sm:$0xf0]  ;;  %v1179_v13 = vor.u32 %v1473_v6, %v1178_v5  ;;  %v1519_v15 = vld [vmem:[%s1606_s17 + $0x158] sm:$0xff]  ;;  %v1526_v17 = vld [vmem:[%s1606_s17 + $0x190] sm:$0xff] }
  0x23   : > { %808 = vmatpush.bf16.msra.mxu0 %v1478_v22  ;;  %v1183_v14 = vor.u32 %v1469_v7, %v1180_v8  ;;  %v1535_v16 = vld [vmem:[%s1606_s17 + $0x1d8] sm:$0xff]  ;;  %v1510_v18 = vld [vmem:[%s1606_s17 + $0x110] sm:$0xff]  ;;  %v1525_v21 = vld [vmem:[%s1606_s17 + $0x188] sm:$0xff] }
  0x24   : > { %827 = vmatpush.bf16.msra.mxu1 %v1486_v23  ;;  %v1518_v19 = vld [vmem:[%s1606_s17 + $0x150] sm:$0xff]  ;;  %v1509_v22 = vld [vmem:[%s1606_s17 + $0x108] sm:$0xff]  ;;  %v1532_v28 = vld [vmem:[%s1606_s17 + $0x1c0] sm:$0xff] }
  0x25   : > { %846 = vmatpush.bf16.msra.mxu2 %v1494_v24  ;;  %v1534_v20 = vld [vmem:[%s1606_s17 + $0x1d0] sm:$0xff]  ;;  %v1517_v23 = vld [vmem:[%s1606_s17 + $0x148] sm:$0xff]  ;;  %v1162_v33 = vld [vmem:[%s1820_s0 + $0x18] sm:$0xf] }
  0x26   : > { %865 = vmatpush.bf16.msra.mxu3 %v1502_v25  ;;  %v1533_v24 = vld [vmem:[%s1606_s17 + $0x1c8] sm:$0xff]  ;;  %v1524_v25 = vld [vmem:[%s1606_s17 + $0x180] sm:$0xff]  ;;  %v1156_v32 = vld [vmem:[%s1820_s0 + $0x30] sm:$0xf0] }
  0x27   : > { %809 = vmatpush.bf16.msra.mxu0 %v1477_v26  ;;  %v1508_v26 = vld [vmem:[%s1606_s17 + $0x100] sm:$0xff]  ;;  %v1467_v34 = vld [vmem:[%s1820_s0 + $0x34] sm:$0xf0]  ;;  %v1186_v41 = vld [vmem:[%s1820_s0 + $0x50] sm:$0xf] }
  0x28   : > { %828 = vmatpush.bf16.msra.mxu1 %v1485_v27  ;;  %v1516_v27 = vld [vmem:[%s1606_s17 + $0x140] sm:$0xff]  ;;  %v1163_v39 = vor.u32 %v1467_v34, %v1162_v33  ;;  %v1474_v42 = vld [vmem:[%s1820_s0 + $0x6c] sm:$0xf0]  ;;  %v1470_v43 = vld [vmem:[%s1820_s0 + $0x54] sm:$0xf] }
  0x29   : > { %847 = vmatpush.bf16.msra.mxu2 %v1493_v29  ;;  %v1154_v29 = vld [vmem:[%s1820_s0 + $0x10] sm:$0xf] }
  0x2a   : > { %866 = vmatpush.bf16.msra.mxu3 %v1501_v30  ;;  %v1466_v30 = vld [vmem:[%s1820_s0 + $0x2c] sm:$0xf0] }
  0x2b   : > { %810 = vmatpush.bf16.msra.mxu0 %v1476_v31  ;;  %v1462_v31 = vld [vmem:[%s1820_s0 + $0x14] sm:$0xf] }
  0x2c   : > { %829 = vmatpush.bf16.msra.mxu1 %v1484_v35  ;;  %v1463_v35 = vld [vmem:[%s1820_s0 + $0x1c] sm:$0xf]  ;;  %v1159_v38 = vor.u32 %v1462_v31, %v1156_v32 }
  0x2d   : > { %848 = vmatpush.bf16.msra.mxu2 %v1492_v36  ;;  %v1164_v36 = vld [vmem:[%s1820_s0 + $0x38] sm:$0xf0] }
  0x2e   : > { %867 = vmatpush.bf16.msra.mxu3 %v1500_v37  ;;  %811 = vmatmul.bf16.vlgmr.msra.gmra.mxu0 %v1139_v46  ;;  %v1155_v37 = vor.u32 %v1466_v30, %v1154_v29  ;;  %v1167_v40 = vor.u32 %v1463_v35, %v1164_v36  ;;  %v1475_v46 = vld [vmem:[%s1820_s0 + $0x74] sm:$0xf0] }
  0x2f   : > { %879 = vmatpush.bf16.msrb.mxu0 %v1515_v45  ;;  %830 = vmatmul.bf16.vlgmr.msra.gmra.mxu1 %v1143_v47  ;;  %v1194_v45 = vld [vmem:[%s1820_s0 + $0x58] sm:$0xf]  ;;  %v1471_v47 = vld [vmem:[%s1820_s0 + $0x5c] sm:$0xf] }
  0x30   : > { %849 = vmatmul.bf16.vlgmr.msra.gmra.mxu2 %v1147_v48  ;;  %898 = vmatpush.bf16.msrb.mxu1 %v1523_v50  ;;  %v1196_v48 = vld [vmem:[%s1820_s0 + $0x78] sm:$0xf0] }
  0x31   : > { %917 = vmatpush.bf16.msrb.mxu2 %v1531_v44  ;;  %868 = vmatmul.bf16.vlgmr.msra.gmra.mxu3 %v1151_v49  ;;  %v1188_v44 = vld [vmem:[%s1820_s0 + $0x70] sm:$0xf0]  ;;  %v1187_v49 = vor.u32 %v1474_v42, %v1186_v41 }
  0x32   : > { %936 = vmatpush.bf16.msrb.mxu3 %v1539_v51  ;;  %v1191_v50 = vor.u32 %v1470_v43, %v1188_v44  ;;  %v1195_v51 = vor.u32 %v1475_v46, %v1194_v45 }
  0x33   : > { %880 = vmatpush.bf16.msrb.mxu0 %v1514_v53 }
  0x34   : > { %899 = vmatpush.bf16.msrb.mxu1 %v1522_v54 }
  0x35   : > { %918 = vmatpush.bf16.msrb.mxu2 %v1530_v52  ;;  %v1199_v52 = vor.u32 %v1471_v47, %v1196_v48 }
  0x36   : > { %937 = vmatpush.bf16.msrb.mxu3 %v1538_v55 }
  0x37   : > { %881 = vmatpush.bf16.msrb.mxu0 %v1513_v58 }
  0x38   : > { %900 = vmatpush.bf16.msrb.mxu1 %v1521_v59 }
  0x39   : > { %919 = vmatpush.bf16.msrb.mxu2 %v1529_v57 }
  0x3a   : > { %938 = vmatpush.bf16.msrb.mxu3 %v1537_v60 }
  0x3b   : > { %882 = vmatpush.bf16.msrb.mxu0 %v1512_v62 }
  0x3c   : > { %901 = vmatpush.bf16.msrb.mxu1 %v1520_v63 }
  0x3d   : > { %920 = vmatpush.bf16.msrb.mxu2 %v1528_v61 }
  0x3e   : > { %939 = vmatpush.bf16.msrb.mxu3 %v1536_v0  ;;  %816 = vmatmul.bf16.gmra.mxu0 %v1171_v11 }
  0x3f   : > { %883 = vmatpush.bf16.msrb.mxu0 %v1511_v10  ;;  %835 = vmatmul.bf16.gmra.mxu1 %v1175_v12 }
  0x40   : > { %854 = vmatmul.bf16.gmra.mxu2 %v1179_v13  ;;  %902 = vmatpush.bf16.msrb.mxu1 %v1519_v15 }
  0x41   : > { %921 = vmatpush.bf16.msrb.mxu2 %v1527_v9  ;;  %873 = vmatmul.bf16.gmra.mxu3 %v1183_v14 }
  0x42   : > { %940 = vmatpush.bf16.msrb.mxu3 %v1535_v16 }
  0x43   : > { %884 = vmatpush.bf16.msrb.mxu0 %v1510_v18 }
  0x44   : > { %903 = vmatpush.bf16.msrb.mxu1 %v1518_v19 }
  0x45   : > { %922 = vmatpush.bf16.msrb.mxu2 %v1526_v17 }
  0x46   : > { %941 = vmatpush.bf16.msrb.mxu3 %v1534_v20 }
  0x47   : > { %885 = vmatpush.bf16.msrb.mxu0 %v1509_v22 }
  0x48   : > { %904 = vmatpush.bf16.msrb.mxu1 %v1517_v23 }
  0x49   : > { %923 = vmatpush.bf16.msrb.mxu2 %v1525_v21 }
  0x4a   : > { %942 = vmatpush.bf16.msrb.mxu3 %v1533_v24 }
  0x4b   : > { %886 = vmatpush.bf16.msrb.mxu0 %v1508_v26 }
  0x4c   : > { %905 = vmatpush.bf16.msrb.mxu1 %v1516_v27 }
  0x4d   : > { %924 = vmatpush.bf16.msrb.mxu2 %v1524_v25 }
  0x4e   : > { %943 = vmatpush.bf16.msrb.mxu3 %v1532_v28  ;;  %887 = vmatmul.bf16.vlgmr.msrb.gmra.mxu0 %v1155_v37 }
  0x4f   : > { %906 = vmatmul.bf16.vlgmr.msrb.gmra.mxu1 %v1159_v38 }
  0x50   : > { %925 = vmatmul.bf16.vlgmr.msrb.gmra.mxu2 %v1163_v39 }
  0x51   : > { %944 = vmatmul.bf16.vlgmr.msrb.gmra.mxu3 %v1167_v40 }
  0x5e   : > { %892 = vmatmul.bf16.gmra.mxu0 %v1187_v49 }
  0x5f   : > { %911 = vmatmul.bf16.gmra.mxu1 %v1191_v50 }
  0x60   : > { %930 = vmatmul.bf16.gmra.mxu2 %v1195_v51 }
  0x61   : > { %949 = vmatmul.bf16.gmra.mxu3 %v1199_v52 }
  0x7f   : > { %v322_v63 = vpop.permute.xlu0 %321  ;;  %v332_v13 = vpop.permute.xlu1 %331 }
  0x87   : > { %v327_v6 = vpop.permute.xlu0 %326 }
  0x88   : > { %v337_v29 = vpop.permute.xlu1 %336 }
  0xab   : > { %v812_v53 = vpop.f32.mrf.mxu0 }
  0xac   : > { %v831_v54 = vpop.f32.mrf.mxu1  ;;  %v813_v0 = vadd.f32 %v812_v53, %v322_v63 }
  0xae   : > { %v832_v3 = vadd.f32 %v831_v54, %v813_v0 }
  0xb3   : > { %v850_v55 = vpop.f32.mrf.mxu2  ;;  %v814_v57 = vpop.f32.mrf.mxu0 }
  0xb4   : > { %v869_v56 = vpop.f32.mrf.mxu3  ;;  %v833_v58 = vpop.f32.mrf.mxu1  ;;  %v851_v7 = vadd.f32 %v850_v55, %v832_v3  ;;  %v815_v8 = vadd.f32 %v814_v57, %v327_v6 }
  0xb6   : > { %v870_v11 = vadd.f32 %v869_v56, %v851_v7  ;;  %v834_v15 = vadd.f32 %v833_v58, %v815_v8 }
  0xbb   : > { %v852_v59 = vpop.f32.mrf.mxu2  ;;  %v817_v61 = vpop.f32.mrf.mxu0 }
  0xbc   : > { %v871_v60 = vpop.f32.mrf.mxu3  ;;  %v836_v62 = vpop.f32.mrf.mxu1  ;;  %v853_v17 = vadd.f32 %v852_v59, %v834_v15  ;;  %v818_v18 = vadd.f32 %v817_v61, %v332_v13  ;;  %v1571_v61 = vmov 64.0  }
  0xbd   : > { %1552 = vrcp.f32 %v1571_v61 }
  0xbe   : > { %v872_v21 = vadd.f32 %v871_v60, %v853_v17  ;;  %v837_v22 = vadd.f32 %v836_v62, %v818_v18 }
  0xc3   : > { %v855_v1 = vpop.f32.mrf.mxu2  ;;  %v819_v4 = vpop.f32.mrf.mxu0 }
  0xc4   : > { %v874_v2 = vpop.f32.mrf.mxu3  ;;  %v838_v5 = vpop.f32.mrf.mxu1  ;;  %v856_v30 = vadd.f32 %v855_v1, %v837_v22  ;;  %v820_v32 = vadd.f32 %v819_v4, %v337_v29 }
  0xc5   : > { %v1553_v62 = vpop.eup %1552 }
  0xc6   : > { %v875_v35 = vadd.f32 %v874_v2, %v856_v30  ;;  %v839_v39 = vadd.f32 %v838_v5, %v820_v32  ;;  %v969_v63 = vmul.f32 64.0, %v1553_v62  ;;  %vm973_vm1 = vweird.f32 %v1553_v62 }
  0xc8   : > { %v970_v0 = vsub.f32 1.0, %v969_v63 }
  0xca   : > { %v971_v1 = vmul.f32 %v1553_v62, %v970_v0 }
  0xcb   : > { %v857_v9 = vpop.f32.mrf.mxu2  ;;  %v888_v12 = vpop.f32.mrf.mxu0 }
  0xcc   : > { %v876_v10 = vpop.f32.mrf.mxu3  ;;  %v907_v14 = vpop.f32.mrf.mxu1  ;;  %v889_v16 = vadd.f32 %v888_v12, %v870_v11  ;;  %v858_v43 = vadd.f32 %v857_v9, %v839_v39  ;;  %v972_v2 = vadd.f32 %v1553_v62, %v971_v1 }
  0xce   : > { %v908_v19 = vadd.f32 %v907_v14, %v889_v16  ;;  %v877_v47 = vadd.f32 %v876_v10, %v858_v43  ;;  %v974_v3 = vsel %vm973_vm1, %v1553_v62, %v972_v2 }
  0xd3   : > { %v926_v20 = vpop.f32.mrf.mxu2  ;;  %v890_v25 = vpop.f32.mrf.mxu0 }
  0xd4   : > { %v927_v23 = vadd.f32 %v926_v20, %v908_v19  ;;  %v945_v24 = vpop.f32.mrf.mxu3  ;;  %v909_v26 = vpop.f32.mrf.mxu1  ;;  %v891_v28 = vadd.f32 %v890_v25, %v872_v21 }
  0xd6   : > { %v946_v27 = vadd.f32 %v945_v24, %v927_v23  ;;  %v910_v33 = vadd.f32 %v909_v26, %v891_v28 }
  0xd8   : > { %v956_v31 = vsel %vm955_vm0, %v946_v27, 0.0 }
  0xd9   : > { %957 = vadd.xlane.f32.xlu2 %v956_v31 }
  0xdb   : > { %v928_v34 = vpop.f32.mrf.mxu2  ;;  %v893_v38 = vpop.f32.mrf.mxu0 }
  0xdc   : > { %v929_v36 = vadd.f32 %v928_v34, %v910_v33  ;;  %v947_v37 = vpop.f32.mrf.mxu3  ;;  %v894_v41 = vadd.f32 %v893_v38, %v875_v35  ;;  %v912_v42 = vpop.f32.mrf.mxu1 }
  0xde   : > { %v948_v40 = vadd.f32 %v947_v37, %v929_v36  ;;  %v913_v45 = vadd.f32 %v912_v42, %v894_v41 }
  0xe0   : > { %v959_v44 = vsel %vm955_vm0, %v948_v40, 0.0 }
  0xe1   : > { %960 = vadd.xlane.f32.xlu2 %v959_v44 }
  0xe3   : > { %v931_v46 = vpop.f32.mrf.mxu2  ;;  %v895_v50 = vpop.f32.mrf.mxu0 }
  0xe4   : > { %v932_v48 = vadd.f32 %v931_v46, %v913_v45  ;;  %v950_v49 = vpop.f32.mrf.mxu3  ;;  %v896_v52 = vadd.f32 %v895_v50, %v877_v47  ;;  %v914_v54 = vpop.f32.mrf.mxu1 }
  0xe6   : > { %v951_v51 = vadd.f32 %v950_v49, %v932_v48  ;;  %v915_v55 = vadd.f32 %v914_v54, %v896_v52 }
  0xe8   : > { %v962_v53 = vsel %vm955_vm0, %v951_v51, 0.0 }
  0xe9   : > { %963 = vadd.xlane.f32.xlu0 %v962_v53 }
  0xeb   : > { %v933_v56 = vpop.f32.mrf.mxu2 }
  0xec   : > { %v934_v57 = vadd.f32 %v933_v56, %v915_v55  ;;  %v952_v58 = vpop.f32.mrf.mxu3 }
  0xee   : > { %v953_v59 = vadd.f32 %v952_v58, %v934_v57 }
  0xf0   : > { %v965_v60 = vsel %vm955_vm0, %v953_v59, 0.0 }
  0xf1   : > { %966 = vadd.xlane.f32.xlu1 %v965_v60 }
 0x14c   : > { %v958_v4 = vpop.xlane.xlu2 %957 }
 0x14d   : > { %v975_v5 = vmul.f32 %v974_v3, %v958_v4 }
 0x14f   : > { %v979_v6 = vsub.f32 %v946_v27, %v975_v5 }
 0x151   : > { %v983_v7 = vmul.f32 %v979_v6, %v979_v6 }
 0x153   : > { %v987_v8 = vsel %vm955_vm0, %v983_v7, 0.0 }
 0x154   : > { %988 = vadd.xlane.f32.xlu2 %v987_v8  ;;  %v961_v9 = vpop.xlane.xlu2 %960 }
 0x155   : > { %v976_v10 = vmul.f32 %v974_v3, %v961_v9 }
 0x157   : > { %v1785_v11 = vsub.f32 %v948_v40, %v976_v10 }
 0x159   : > { %v984_v12 = vmul.f32 %v1785_v11, %v1785_v11 }
 0x15b   : > { %v990_v13 = vsel %vm955_vm0, %v984_v12, 0.0 }
 0x15c   : > { %v964_v14 = vpop.xlane.xlu0 %963  ;;  %991 = vadd.xlane.f32.xlu2 %v990_v13 }
 0x15d   : > { %v977_v15 = vmul.f32 %v974_v3, %v964_v14 }
 0x15f   : > { %v1790_v16 = vsub.f32 %v951_v51, %v977_v15 }
 0x161   : > { %v985_v17 = vmul.f32 %v1790_v16, %v1790_v16 }
 0x163   : > { %v993_v18 = vsel %vm955_vm0, %v985_v17, 0.0 }
 0x164   : > { %v967_v19 = vpop.xlane.xlu1 %966  ;;  %994 = vadd.xlane.f32.xlu2 %v993_v18 }
 0x165   : > { %v978_v20 = vmul.f32 %v974_v3, %v967_v19 }
 0x167   : > { %v1795_v21 = vsub.f32 %v953_v59, %v978_v20 }
 0x169   : > { %v986_v22 = vmul.f32 %v1795_v21, %v1795_v21 }
 0x16b   : > { %v996_v23 = vsel %vm955_vm0, %v986_v22, 0.0 }
 0x16c   : > { %997 = vadd.xlane.f32.xlu2 %v996_v23 }
 0x1c7   : > { %v989_v24 = vpop.xlane.xlu2 %988 }
 0x1c8   : > { %v999_v25 = vmul.f32 %v989_v24, %v974_v3 }
 0x1ca   : > { %v1003_v26 = vadd.f32 1e-05, %v999_v25 }
 0x1cc   : > { %1554 = vrsqrt.f32 %v1003_v26  ;;  %vm1013_vm3 = vweird.f32 %v1003_v26 }
 0x1cf   : > { %v992_v27 = vpop.xlane.xlu2 %991 }
 0x1d0   : > { %v1000_v28 = vmul.f32 %v992_v27, %v974_v3 }
 0x1d2   : > { %v1555_v29 = vpop.eup %1554  ;;  %v1004_v30 = vadd.f32 1e-05, %v1000_v28 }
 0x1d3   : > { %v1008_v31 = vmul.f32 %v1555_v29, %v1003_v26  ;;  %vm1014_vm2 = vweird.f32 %v1555_v29 }
 0x1d4   : > { %1556 = vrsqrt.f32 %v1004_v30  ;;  %vm1015_vm4 = vmor %vm1013_vm3, %vm1014_vm2  ;;  %vm1023_vm8 = vweird.f32 %v1004_v30 }
 0x1d5   : > { %v1009_v32 = vmul.f32 %v1555_v29, %v1008_v31 }
 0x1d7   : > { %v1010_v33 = vmul.f32 0.5, %v1009_v32  ;;  %v995_v34 = vpop.xlane.xlu2 %994 }
 0x1d8   : > { %v1001_v35 = vmul.f32 %v995_v34, %v974_v3 }
 0x1d9   : > { %v1011_v36 = vsub.f32 1.5, %v1010_v33 }
 0x1da   : > { %v1557_v37 = vpop.eup %1556  ;;  %v1005_v38 = vadd.f32 1e-05, %v1001_v35 }
 0x1db   : > { %v1012_v39 = vmul.f32 %v1555_v29, %v1011_v36  ;;  %v1018_v40 = vmul.f32 %v1557_v37, %v1004_v30  ;;  %vm1024_vm6 = vweird.f32 %v1557_v37 }
 0x1dc   : > { %1558 = vrsqrt.f32 %v1005_v38  ;;  %vm1025_vm9 = vmor %vm1023_vm8, %vm1024_vm6  ;;  %vm1033_vm12 = vweird.f32 %v1005_v38 }
 0x1dd   : > { %v1016_v41 = vsel %vm1015_vm4, %v1555_v29, %v1012_v39  ;;  %v1019_v42 = vmul.f32 %v1557_v37, %v1018_v40 }
 0x1de   : > { %v1047_v43 = vmul.f32 %v1016_v41, %v979_v6 }
 0x1df   : > { %v1020_v44 = vmul.f32 0.5, %v1019_v42  ;;  %v998_v45 = vpop.xlane.xlu2 %997 }
 0x1e0   : > { %vm1051_vm5 = vcmp.ge.f32.partialorder %v1047_v43, 0.0  ;;  %v1055_v46 = vmul.f32 0.2, %v1047_v43  ;;  %v1002_v47 = vmul.f32 %v998_v45, %v974_v3 }
 0x1e1   : > { %v1021_v48 = vsub.f32 1.5, %v1020_v44 }
 0x1e2   : > { %v1559_v49 = vpop.eup %1558  ;;  %v1059_v50 = vsel %vm1051_vm5, %v1047_v43, %v1055_v46  ;;  %v1006_v51 = vadd.f32 1e-05, %v1002_v47 }
 0x1e3   : > { %v1063_v52 = vpack.c.bf16 %v1059_v50, %v1059_v50  ;;  %v1022_v53 = vmul.f32 %v1557_v37, %v1021_v48  ;;  %v1028_v54 = vmul.f32 %v1559_v49, %v1005_v38  ;;  %vm1034_vm11 = vweird.f32 %v1559_v49 }
 0x1e4   : > { %1560 = vrsqrt.f32 %v1006_v51  ;;  %vm1035_vm13 = vmor %vm1033_vm12, %vm1034_vm11  ;;  %vm1043_vm0 = vweird.f32 %v1006_v51 }
 0x1e5   : > { %1068 = vst.msk [vmem:[%s1804_s19] sm:$0xf] %vm1067_vm7, %v1063_v52  ;;  %v1026_v55 = vsel %vm1025_vm9, %v1557_v37, %v1022_v53  ;;  %v1029_v56 = vmul.f32 %v1559_v49, %v1028_v54 }
 0x1e6   : > { %v1048_v57 = vmul.f32 %v1026_v55, %v1785_v11 }
 0x1e7   : > { %v1030_v58 = vmul.f32 0.5, %v1029_v56 }
 0x1e8   : > { %vm1052_vm10 = vcmp.ge.f32.partialorder %v1048_v57, 0.0  ;;  %v1056_v59 = vmul.f32 0.2, %v1048_v57 }
 0x1e9   : > { %v1031_v60 = vsub.f32 1.5, %v1030_v58 }
 0x1ea   : > { %v1561_v61 = vpop.eup %1560  ;;  %v1060_v62 = vsel %vm1052_vm10, %v1048_v57, %v1056_v59 }
 0x1eb   : > { %v1064_v63 = vpack.c.bf16 %v1060_v62, %v1060_v62  ;;  %v1032_v0 = vmul.f32 %v1559_v49, %v1031_v60  ;;  %v1038_v1 = vmul.f32 %v1561_v61, %v1006_v51  ;;  %vm1044_vm15 = vweird.f32 %v1561_v61 }
 0x1ec   : > { %vm1045_vm1 = vmor %vm1043_vm0, %vm1044_vm15 }
 0x1ed   : > { %1069 = vst.msk [vmem:[%s1804_s19 + $0x4] sm:$0xf] %vm1067_vm7, %v1064_v63  ;;  %v1036_v2 = vsel %vm1035_vm13, %v1559_v49, %v1032_v0  ;;  %v1039_v3 = vmul.f32 %v1561_v61, %v1038_v1 }
 0x1ee   : > { %v1049_v4 = vmul.f32 %v1036_v2, %v1790_v16 }
 0x1ef   : > { %v1040_v5 = vmul.f32 0.5, %v1039_v3 }
 0x1f0   : > { %vm1053_vm14 = vcmp.ge.f32.partialorder %v1049_v4, 0.0  ;;  %v1057_v6 = vmul.f32 0.2, %v1049_v4 }
 0x1f1   : > { %v1041_v7 = vsub.f32 1.5, %v1040_v5 }
 0x1f2   : > { %v1061_v8 = vsel %vm1053_vm14, %v1049_v4, %v1057_v6 }
 0x1f3   : > { %v1065_v9 = vpack.c.bf16 %v1061_v8, %v1061_v8  ;;  %v1042_v10 = vmul.f32 %v1561_v61, %v1041_v7 }
 0x1f5   : > { %1070 = vst.msk [vmem:[%s1804_s19 + $0x8] sm:$0xf] %vm1067_vm7, %v1065_v9  ;;  %v1046_v11 = vsel %vm1045_vm1, %v1561_v61, %v1042_v10 }
 0x1f6   : > { %v1050_v12 = vmul.f32 %v1046_v11, %v1795_v21 }
 0x1f8   : > { %vm1054_vm2 = vcmp.ge.f32.partialorder %v1050_v12, 0.0  ;;  %v1058_v13 = vmul.f32 0.2, %v1050_v12 }
 0x1fa   : > { %v1062_v14 = vsel %vm1054_vm2, %v1050_v12, %v1058_v13 }
 0x1fb   : > { %v1066_v15 = vpack.c.bf16 %v1062_v14, %v1062_v14 }
 0x1fd   : > { %1071 = vst.msk [vmem:[%s1804_s19 + $0xc] sm:$0xf] %vm1067_vm7, %v1066_v15 }
 0x1fe PF: > { %s13_s12 = sadd.s32 1, %s1568_s12  }
 0x1ff   : > { %p10_p4 = scmp.ge.s32.totalorder %s13_s12, 4  }
 0x201   :  { %12 = sbr.rel (!%p10_p4) target bundleno = 1 (0x1), region = 62 }

// kernel: nlayer_discriminator3d_forward.9
= control target key start
LH: loop header
LB: loop body
LE: loop exit
PB: predicated region body
PF: predicated region fallthrough
CT: control target
= control target key end

     0   :  { %vm42_vm0 = vcmask 1042432   ;;  %vm38_vm1 = vcmask 23552   ;;  %vm80_vm2 = vcmask 261120   ;;  %s312_s1 = inlined_call_operand.vmem [shape: f32[3,32], index: 1, kind: input, shape index: {}]   ;;  %s313_s0 = inlined_call_operand.vmem [shape: f32[8,3], index: 0, kind: input, shape index: {}]   ;;  %s314_s2 = inlined_call_operand.vmem [shape: f32[1,32], index: 2, kind: input, shape index: {}]   ;;  %s315_s4 = inlined_call_operand.vmem [shape: f32[1,32], index: 4, kind: input, shape index: {}]   ;;  %s316_s3 = inlined_call_operand.vmem [shape: f32[32,32], index: 3, kind: input, shape index: {}]   ;;  %s317_s6 = inlined_call_operand.vmem [shape: f32[1,32], index: 6, kind: input, shape index: {}]   ;;  %s318_s5 = inlined_call_operand.vmem [shape: f32[32,32], index: 5, kind: input, shape index: {}]   ;;  %s319_s8 = inlined_call_operand.vmem [shape: f32[1,32], index: 8, kind: input, shape index: {}]   ;;  %s320_s7 = inlined_call_operand.vmem [shape: f32[32,32], index: 7, kind: input, shape index: {}]   ;;  %s321_s9 = inlined_call_operand.vmem [shape: f32[8,32], index: 9, kind: output, shape index: {}]  }
   0x1   :  { %v33_v0 = vld [vmem:[%s312_s1] sm:$0x7]  ;;  %v75_v2 = vld [vmem:[%s316_s3 + $0x18] sm:$0xff]  ;;  %v74_v3 = vld [vmem:[%s316_s3 + $0x10] sm:$0xff] }
   0x2   :  { %v32_v1 = vld [vmem:[%s313_s0] sm:$0xff]  ;;  %183 = vmatpush.msk.msra.mxu0 %vm42_vm0, %v33_v0  ;;  %96 = vmatpush.msra.mxu1 %v75_v2  ;;  %v73_v4 = vld [vmem:[%s316_s3 + $0x8] sm:$0xff]  ;;  %v113_v14 = vld [vmem:[%s318_s5 + $0x18] sm:$0xff] }
   0x3   :  { %184 = vmatmul.msk.f32.vlgmr.msra.gmra.mxu0 %vm38_vm1, %v32_v1  ;;  %v72_v5 = vld [vmem:[%s316_s3] sm:$0xff]  ;;  %v112_v15 = vld [vmem:[%s318_s5 + $0x10] sm:$0xff]  ;;  %133 = vmatpush.msra.mxu2 %v113_v14  ;;  %v111_v16 = vld [vmem:[%s318_s5 + $0x8] sm:$0xff] }
   0x4   :  { %97 = vmatpush.msra.mxu1 %v74_v3  ;;  %v191_v6 = vld [vmem:[%s314_s2] ss:$0 sm:$0xff]  ;;  %v150_v26 = vld [vmem:[%s320_s7 + $0x18] sm:$0xff]  ;;  %v149_v27 = vld [vmem:[%s320_s7 + $0x10] sm:$0xff] }
   0x5   :  { %134 = vmatpush.msra.mxu2 %v112_v15  ;;  %v110_v17 = vld [vmem:[%s318_s5] sm:$0xff]  ;;  %170 = vmatpush.msra.mxu3 %v150_v26  ;;  %v148_v28 = vld [vmem:[%s320_s7 + $0x8] sm:$0xff] }
   0x6   :  { %98 = vmatpush.msra.mxu1 %v73_v4  ;;  %v192_v18 = vld [vmem:[%s315_s4] ss:$0 sm:$0xff] }
   0x7   :  { %135 = vmatpush.msra.mxu2 %v111_v16  ;;  %171 = vmatpush.msra.mxu3 %v149_v27  ;;  %v147_v29 = vld [vmem:[%s320_s7] sm:$0xff] }
   0x8   :  { %99 = vmatpush.msra.mxu1 %v72_v5  ;;  %v193_v30 = vld [vmem:[%s317_s6] ss:$0 sm:$0xff] }
   0x9   :  { %136 = vmatpush.msra.mxu2 %v110_v17  ;;  %172 = vmatpush.msra.mxu3 %v148_v28  ;;  %v194_v38 = vld [vmem:[%s319_s8] ss:$0 sm:$0xff] }
   0xb   :  { %173 = vmatpush.msra.mxu3 %v147_v29 }
  0x80   :  { %v63_v7 = vpop.f32.mrf.mxu0 }
  0x81   :  { %v64_v8 = vadd.f32 %v191_v6, %v63_v7 }
  0x83   :  { %v67_v9 = vmin.f32 %v64_v8, 0.0  ;;  %vm66_vm3 = vcmp.ge.f32.partialorder %v64_v8, 0.0 }
  0x85   :  { %v68_v10 = vmul.f32 1.442695, %v67_v9 }
  0x87   :  { %195 = vpow2.f32 %v68_v10 }
  0x8d   :  { %v196_v11 = vpop.eup %195 }
  0x8e   :  { %v185_v12 = vadd.f32 -1.0, %v196_v11 }
  0x90   :  { %v71_v13 = vsel %vm66_vm3, %v64_v8, %v185_v12 }
  0x91   :  { %186 = vmatmul.msk.f32.vlgmr.msra.gmra.mxu1 %vm80_vm2, %v71_v13 }
 0x10e   :  { %v101_v19 = vpop.f32.mrf.mxu1 }
 0x10f   :  { %v102_v20 = vadd.f32 %v192_v18, %v101_v19 }
 0x111   :  { %v105_v21 = vmin.f32 %v102_v20, 0.0  ;;  %vm104_vm4 = vcmp.ge.f32.partialorder %v102_v20, 0.0 }
 0x113   :  { %v106_v22 = vmul.f32 1.442695, %v105_v21 }
 0x115   :  { %197 = vpow2.f32 %v106_v22 }
 0x11b   :  { %v198_v23 = vpop.eup %197 }
 0x11c   :  { %v187_v24 = vadd.f32 -1.0, %v198_v23 }
 0x11e   :  { %v109_v25 = vsel %vm104_vm4, %v102_v20, %v187_v24 }
 0x11f   :  { %188 = vmatmul.msk.f32.vlgmr.msra.gmra.mxu2 %vm80_vm2, %v109_v25 }
 0x1a2   :  { %v138_v31 = vpop.f32.mrf.mxu2 }
 0x1a3   :  { %v139_v32 = vadd.f32 %v193_v30, %v138_v31 }
 0x1a5   :  { %v142_v33 = vmin.f32 %v139_v32, 0.0  ;;  %vm141_vm5 = vcmp.ge.f32.partialorder %v139_v32, 0.0 }
 0x1a7   :  { %v143_v34 = vmul.f32 1.442695, %v142_v33 }
 0x1a9   :  { %199 = vpow2.f32 %v143_v34 }
 0x1af   :  { %v200_v35 = vpop.eup %199 }
 0x1b0   :  { %v189_v36 = vadd.f32 -1.0, %v200_v35 }
 0x1b2   :  { %v146_v37 = vsel %vm141_vm5, %v139_v32, %v189_v36 }
 0x1b3   :  { %190 = vmatmul.msk.f32.vlgmr.msra.gmra.mxu3 %vm80_vm2, %v146_v37 }
 0x236   :  { %v175_v39 = vpop.f32.mrf.mxu3 }
 0x237   :  { %v176_v40 = vadd.f32 %v194_v38, %v175_v39 }
 0x239   :  { %178 = vst.msk [vmem:[%s321_s9] sm:$0xff] %vm80_vm2, %v176_v40 }

// kernel: nlayer_discriminator3d_forward.10
= control target key start
LH: loop header
LB: loop body
LE: loop exit
PB: predicated region body
PF: predicated region fallthrough
CT: control target
= control target key end

     0   :  { %s6237_s12 = smov 0   ;;  %s7610_s0 = inlined_call_operand.vmem [shape: bf16[64,4096], index: 0, kind: input, shape index: {}]   ;;  %s7611_s1 = inlined_call_operand.vmem [shape: f32[64,1], index: 1, kind: input, shape index: {}]   ;;  %s7612_s2 = inlined_call_operand.vmem [shape: bf16[2,4096,27], index: 2, kind: input, shape index: {}]   ;;  %s7613_s3 = inlined_call_operand.vmem [shape: bf16[2,64,27], index: 3, kind: output, shape index: {}]  }
   0x1 LB: > { %s4243_s13 = sadd.s32 4294967295, %s6213_s12   ;;  %p4247_p0 = scmp.ge.s32.totalorder %s6213_s12, 1  ;;  %s6213_s12 = sphi %s6237_s12, %s13_s12  }
   0x2   : > { %p137_p1 = scmp.lt.s32.totalorder %s6213_s12, 3 }
   0x4   : > { %p138_p2 = pnand %p4247_p0, %p137_p1 }
   0x5   : > { %p161_p3 = scmp.lt.s32.totalorder (!%p138_p2), %s4243_s13, 1 }
   0x6   : > { %141 = sbr.rel (%p138_p2) target bundleno = 958 (0x3be), region = 32 }
   0xb   : > { %s7615_s13 = smov (!%p161_p3, %s4243_s13), 1  ;;  %v6215_v8 = vmov 0   ;;  %v811_v19 = vld [vmem:[%s7611_s1] sm:$0xff]  ;;  %v813_v26 = vld [vmem:[%s7611_s1 + $0x10] sm:$0xff]  ;;  %v812_v27 = vld [vmem:[%s7611_s1 + $0x8] sm:$0xff]  ;;  %vm3963_vm0 = vcmask 220160  }
   0xc   : > { %s5790_s14 = sshll.u32 %s7615_s13, 11  ;;  %6186 = vset.pattern.permute.xlu0 %v6215_v8  ;;  %6187 = vset.pattern.permute.xlu1 %v6215_v8  ;;  %v4254_v32 = vld [vmem:[%s7610_s0] sm:$0xf]  ;;  %v5792_v34 = vld [vmem:[%s7610_s0 + $0x4] sm:$0xf]  ;;  %v814_v56 = vld [vmem:[%s7611_s1 + $0x18] sm:$0xff] }
   0xd   : > { %s6251_s17 = scalar_lea.vmem %s7612_s2, %s5790_s14  ;;  %6188 = vset.pattern.permute.xlu2 %v6215_v8  ;;  %821 = vperm.xlu0 %6186, %v811_v19   ;;  %v5808_v33 = vld [vmem:[%s7610_s0 + $0x7c] sm:$0xf0]  ;;  %v4256_v39 = vld [vmem:[%s7610_s0 + $0x80] sm:$0xf0]  ;;  %v4262_v40 = vld [vmem:[%s7610_s0 + $0x8] sm:$0xf] }
   0xe   : > { %v5927_v0 = vld [vmem:[%s6251_s17 + $0x38] sm:$0xff]  ;;  %v5926_v4 = vld [vmem:[%s6251_s17 + $0x30] sm:$0xff]  ;;  %v5925_v9 = vld [vmem:[%s6251_s17 + $0x28] sm:$0xff]  ;;  %831 = vperm.xlu1 %6187, %v813_v26   ;;  %v4255_v46 = vor.u32 %v5808_v33, %v4254_v32  ;;  %v4259_v47 = vor.u32 %v5792_v34, %v4256_v39  ;;  %s5791_s11 = sshll.u32 %s7615_s13, 5  ;;  %vm4179_vm7 = vcmask 216064  }
   0xf   : > { %v5935_v1 = vld [vmem:[%s6251_s17 + $0x78] sm:$0xff]  ;;  %3035 = vmatpush.bf16.msra.mxu0 %v5927_v0  ;;  %v5934_v5 = vld [vmem:[%s6251_s17 + $0x70] sm:$0xff]  ;;  %v5933_v10 = vld [vmem:[%s6251_s17 + $0x68] sm:$0xff]  ;;  %s7578_s16 = scalar_lea.vmem %s7613_s3, %s5791_s11 }
  0x10   : > { %v5943_v2 = vld [vmem:[%s6251_s17 + $0xb8] sm:$0xff]  ;;  %3064 = vmatpush.bf16.msra.mxu1 %v5935_v1  ;;  %v5942_v6 = vld [vmem:[%s6251_s17 + $0xb0] sm:$0xff]  ;;  %v5941_v11 = vld [vmem:[%s6251_s17 + $0xa8] sm:$0xff] }
  0x11   : > { %v5951_v3 = vld [vmem:[%s6251_s17 + $0xf8] sm:$0xff]  ;;  %3093 = vmatpush.bf16.msra.mxu2 %v5943_v2  ;;  %v5950_v7 = vld [vmem:[%s6251_s17 + $0xf0] sm:$0xff]  ;;  %v5949_v12 = vld [vmem:[%s6251_s17 + $0xe8] sm:$0xff] }
  0x12   : > { %3122 = vmatpush.bf16.msra.mxu3 %v5951_v3  ;;  %v5924_v13 = vld [vmem:[%s6251_s17 + $0x20] sm:$0xff]  ;;  %v5923_v17 = vld [vmem:[%s6251_s17 + $0x18] sm:$0xff]  ;;  %v5922_v22 = vld [vmem:[%s6251_s17 + $0x10] sm:$0xff] }
  0x13   : > { %3036 = vmatpush.bf16.msra.mxu0 %v5926_v4  ;;  %v5932_v14 = vld [vmem:[%s6251_s17 + $0x60] sm:$0xff]  ;;  %v5931_v18 = vld [vmem:[%s6251_s17 + $0x58] sm:$0xff]  ;;  %v5930_v23 = vld [vmem:[%s6251_s17 + $0x50] sm:$0xff] }
  0x14   : > { %3065 = vmatpush.bf16.msra.mxu1 %v5934_v5  ;;  %v5940_v15 = vld [vmem:[%s6251_s17 + $0xa0] sm:$0xff]  ;;  %v5939_v20 = vld [vmem:[%s6251_s17 + $0x98] sm:$0xff]  ;;  %v5938_v24 = vld [vmem:[%s6251_s17 + $0x90] sm:$0xff] }
  0x15   : > { %3094 = vmatpush.bf16.msra.mxu2 %v5942_v6  ;;  %v5948_v16 = vld [vmem:[%s6251_s17 + $0xe0] sm:$0xff]  ;;  %v5947_v21 = vld [vmem:[%s6251_s17 + $0xd8] sm:$0xff]  ;;  %v5946_v25 = vld [vmem:[%s6251_s17 + $0xd0] sm:$0xff]  ;;  %826 = vperm.xlu0 %6186, %v812_v27  }
  0x16   : > { %3123 = vmatpush.bf16.msra.mxu3 %v5950_v7  ;;  %v5921_v28 = vld [vmem:[%s6251_s17 + $0x8] sm:$0xff]  ;;  %v5920_v35 = vld [vmem:[%s6251_s17] sm:$0xff]  ;;  %v5975_v44 = vld [vmem:[%s6251_s17 + $0x1b8] sm:$0xff]  ;;  %836 = vperm.xlu1 %6187, %v814_v56  }
  0x17   : > { %3037 = vmatpush.bf16.msra.mxu0 %v5925_v9  ;;  %v5929_v29 = vld [vmem:[%s6251_s17 + $0x48] sm:$0xff]  ;;  %v5928_v36 = vld [vmem:[%s6251_s17 + $0x40] sm:$0xff]  ;;  %v5959_v45 = vld [vmem:[%s6251_s17 + $0x138] sm:$0xff] }
  0x18   : > { %3066 = vmatpush.bf16.msra.mxu1 %v5933_v10  ;;  %v5937_v30 = vld [vmem:[%s6251_s17 + $0x88] sm:$0xff]  ;;  %v5936_v37 = vld [vmem:[%s6251_s17 + $0x80] sm:$0xff]  ;;  %v5983_v50 = vld [vmem:[%s6251_s17 + $0x1f8] sm:$0xff] }
  0x19   : > { %3095 = vmatpush.bf16.msra.mxu2 %v5941_v11  ;;  %v5945_v31 = vld [vmem:[%s6251_s17 + $0xc8] sm:$0xff]  ;;  %v5944_v38 = vld [vmem:[%s6251_s17 + $0xc0] sm:$0xff]  ;;  %v5967_v51 = vld [vmem:[%s6251_s17 + $0x178] sm:$0xff] }
  0x1a   : > { %3124 = vmatpush.bf16.msra.mxu3 %v5949_v12  ;;  %v5809_v41 = vld [vmem:[%s7610_s0 + $0x84] sm:$0xf0]  ;;  %v5793_v42 = vld [vmem:[%s7610_s0 + $0xc] sm:$0xf]  ;;  %v5974_v52 = vld [vmem:[%s6251_s17 + $0x1b0] sm:$0xff] }
  0x1b   : > { %3038 = vmatpush.bf16.msra.mxu0 %v5924_v13  ;;  %v4264_v43 = vld [vmem:[%s7610_s0 + $0x88] sm:$0xf0]  ;;  %v4263_v48 = vor.u32 %v5809_v41, %v4262_v40  ;;  %v5958_v53 = vld [vmem:[%s6251_s17 + $0x130] sm:$0xff]  ;;  %v4382_v61 = vld [vmem:[%s7610_s0 + $0x100] sm:$0xf] }
  0x1c   : > { %3067 = vmatpush.bf16.msra.mxu1 %v5932_v14  ;;  %v4267_v49 = vor.u32 %v5793_v42, %v4264_v43  ;;  %v5982_v54 = vld [vmem:[%s6251_s17 + $0x1f0] sm:$0xff]  ;;  %v5973_v57 = vld [vmem:[%s6251_s17 + $0x1a8] sm:$0xff]  ;;  %v5972_v62 = vld [vmem:[%s6251_s17 + $0x1a0] sm:$0xff] }
  0x1d   : > { %3096 = vmatpush.bf16.msra.mxu2 %v5940_v15  ;;  %v5966_v55 = vld [vmem:[%s6251_s17 + $0x170] sm:$0xff]  ;;  %v5957_v58 = vld [vmem:[%s6251_s17 + $0x128] sm:$0xff]  ;;  %v5956_v63 = vld [vmem:[%s6251_s17 + $0x120] sm:$0xff] }
  0x1e   : > { %3125 = vmatpush.bf16.msra.mxu3 %v5948_v16  ;;  %v5981_v59 = vld [vmem:[%s6251_s17 + $0x1e8] sm:$0xff]  ;;  %v5840_v0 = vld [vmem:[%s7610_s0 + $0x17c] sm:$0xf0]  ;;  %v5824_v1 = vld [vmem:[%s7610_s0 + $0x104] sm:$0xf] }
  0x1f   : > { %3039 = vmatpush.bf16.msra.mxu0 %v5923_v17  ;;  %v5965_v60 = vld [vmem:[%s6251_s17 + $0x168] sm:$0xff]  ;;  %v4384_v2 = vld [vmem:[%s7610_s0 + $0x180] sm:$0xf0]  ;;  %v5971_v9 = vld [vmem:[%s6251_s17 + $0x198] sm:$0xff]  ;;  %v4383_v11 = vor.u32 %v5840_v0, %v4382_v61 }
  0x20   : > { %3068 = vmatpush.bf16.msra.mxu1 %v5931_v18  ;;  %v4390_v3 = vld [vmem:[%s7610_s0 + $0x108] sm:$0xf]  ;;  %v5825_v5 = vld [vmem:[%s7610_s0 + $0x10c] sm:$0xf]  ;;  %v5980_v7 = vld [vmem:[%s6251_s17 + $0x1e0] sm:$0xff]  ;;  %v4387_v12 = vor.u32 %v5824_v1, %v4384_v2 }
  0x21   : > { %3097 = vmatpush.bf16.msra.mxu2 %v5939_v20  ;;  %v5841_v4 = vld [vmem:[%s7610_s0 + $0x184] sm:$0xf0]  ;;  %v4392_v6 = vld [vmem:[%s7610_s0 + $0x188] sm:$0xf0]  ;;  %v5964_v8 = vld [vmem:[%s6251_s17 + $0x160] sm:$0xff] }
  0x22   : > { %3126 = vmatpush.bf16.msra.mxu3 %v5947_v21  ;;  %v5955_v10 = vld [vmem:[%s6251_s17 + $0x118] sm:$0xff]  ;;  %v4391_v13 = vor.u32 %v5841_v4, %v4390_v3  ;;  %v4395_v14 = vor.u32 %v5825_v5, %v4392_v6  ;;  %v5970_v17 = vld [vmem:[%s6251_s17 + $0x190] sm:$0xff]  ;;  %v5969_v21 = vld [vmem:[%s6251_s17 + $0x188] sm:$0xff] }
  0x23   : > { %3040 = vmatpush.bf16.msra.mxu0 %v5922_v22  ;;  %v5979_v15 = vld [vmem:[%s6251_s17 + $0x1d8] sm:$0xff]  ;;  %v5954_v18 = vld [vmem:[%s6251_s17 + $0x110] sm:$0xff]  ;;  %v5953_v22 = vld [vmem:[%s6251_s17 + $0x108] sm:$0xff] }
  0x24   : > { %3069 = vmatpush.bf16.msra.mxu1 %v5930_v23  ;;  %v5963_v16 = vld [vmem:[%s6251_s17 + $0x158] sm:$0xff]  ;;  %v5978_v19 = vld [vmem:[%s6251_s17 + $0x1d0] sm:$0xff]  ;;  %v4510_v26 = vld [vmem:[%s7610_s0 + $0x200] sm:$0xf] }
  0x25   : > { %3098 = vmatpush.bf16.msra.mxu2 %v5938_v24  ;;  %v5962_v20 = vld [vmem:[%s6251_s17 + $0x150] sm:$0xff]  ;;  %v5977_v24 = vld [vmem:[%s6251_s17 + $0x1c8] sm:$0xff]  ;;  %v5968_v27 = vld [vmem:[%s6251_s17 + $0x180] sm:$0xff] }
  0x26   : > { %3127 = vmatpush.bf16.msra.mxu3 %v5946_v25  ;;  %v817_v23 = vld [vmem:[%s7611_s1 + $0x30] sm:$0xff]  ;;  %v5961_v25 = vld [vmem:[%s6251_s17 + $0x148] sm:$0xff]  ;;  %v6007_v42 = vld [vmem:[%s6251_s17 + $0x2b8] sm:$0xff] }
  0x27   : > { %3041 = vmatpush.bf16.msra.mxu0 %v5921_v28  ;;  %851 = vperm.xlu0 %6186, %v817_v23   ;;  %v5952_v28 = vld [vmem:[%s6251_s17 + $0x100] sm:$0xff]  ;;  %v4518_v32 = vld [vmem:[%s7610_s0 + $0x208] sm:$0xf]  ;;  %v5857_v34 = vld [vmem:[%s7610_s0 + $0x20c] sm:$0xf] }
  0x28   : > { %3070 = vmatpush.bf16.msra.mxu1 %v5929_v29  ;;  %v5872_v29 = vld [vmem:[%s7610_s0 + $0x27c] sm:$0xf0]  ;;  %v5873_v33 = vld [vmem:[%s7610_s0 + $0x284] sm:$0xf0]  ;;  %v5991_v43 = vld [vmem:[%s6251_s17 + $0x238] sm:$0xff] }
  0x29   : > { %3099 = vmatpush.bf16.msra.mxu2 %v5937_v30  ;;  %v5856_v30 = vld [vmem:[%s7610_s0 + $0x204] sm:$0xf]  ;;  %v4519_v40 = vor.u32 %v5873_v33, %v4518_v32  ;;  %v4646_v56 = vld [vmem:[%s7610_s0 + $0x308] sm:$0xf]  ;;  %v6011_v23 = vld [vmem:[%s6251_s17 + $0x2d8] sm:$0xff] }
  0x2a   : > { %3128 = vmatpush.bf16.msra.mxu3 %v5945_v31  ;;  %v4512_v31 = vld [vmem:[%s7610_s0 + $0x280] sm:$0xf0]  ;;  %v6005_v1 = vld [vmem:[%s6251_s17 + $0x2a8] sm:$0xff]  ;;  %v4400_v32 = vld [vmem:[%s7610_s0 + $0x190] sm:$0xf0] }
  0x2b   : > { %3042 = vmatpush.bf16.msra.mxu0 %v5920_v35  ;;  %v4520_v35 = vld [vmem:[%s7610_s0 + $0x288] sm:$0xf0]  ;;  %v4515_v39 = vor.u32 %v5856_v30, %v4512_v31  ;;  %v6004_v5 = vld [vmem:[%s6251_s17 + $0x2a0] sm:$0xff]  ;;  %v5842_v30 = vld [vmem:[%s7610_s0 + $0x18c] sm:$0xf0] }
  0x2c   : > { %3071 = vmatpush.bf16.msra.mxu1 %v5928_v36  ;;  %v5976_v36 = vld [vmem:[%s6251_s17 + $0x1c0] sm:$0xff]  ;;  %v4523_v41 = vor.u32 %v5857_v34, %v4520_v35  ;;  %v5989_v2 = vld [vmem:[%s6251_s17 + $0x228] sm:$0xff]  ;;  %v5826_v31 = vld [vmem:[%s7610_s0 + $0x114] sm:$0xf] }
  0x2d   : > { %3100 = vmatpush.bf16.msra.mxu2 %v5936_v37  ;;  %v5960_v37 = vld [vmem:[%s6251_s17 + $0x140] sm:$0xff]  ;;  %v6013_v3 = vld [vmem:[%s6251_s17 + $0x2e8] sm:$0xff]  ;;  %v4406_v33 = vld [vmem:[%s7610_s0 + $0x118] sm:$0xf] }
  0x2e   : > { %3129 = vmatpush.bf16.msra.mxu3 %v5944_v38  ;;  %3043 = vmatmul.bf16.vlgmr.msra.gmra.mxu0 %v4255_v46  ;;  %v4511_v38 = vor.u32 %v5872_v29, %v4510_v26  ;;  %v818_v46 = vld [vmem:[%s7611_s1 + $0x38] sm:$0xff]  ;;  %v5997_v4 = vld [vmem:[%s6251_s17 + $0x268] sm:$0xff]  ;;  %v5988_v6 = vld [vmem:[%s6251_s17 + $0x220] sm:$0xff] }
  0x2f   : > { %3151 = vmatpush.bf16.msrb.mxu0 %v5959_v45  ;;  %3072 = vmatmul.bf16.vlgmr.msra.gmra.mxu1 %v4259_v47  ;;  %v815_v45 = vld [vmem:[%s7611_s1 + $0x20] sm:$0xff]  ;;  %v5999_v47 = vld [vmem:[%s6251_s17 + $0x278] sm:$0xff]  ;;  %v5986_v26 = vld [vmem:[%s6251_s17 + $0x210] sm:$0xff] }
  0x30   : > { %3101 = vmatmul.bf16.vlgmr.msra.gmra.mxu2 %v4263_v48  ;;  %3180 = vmatpush.bf16.msrb.mxu1 %v5967_v51  ;;  %v6006_v48 = vld [vmem:[%s6251_s17 + $0x2b0] sm:$0xff]  ;;  %v5843_v34 = vld [vmem:[%s7610_s0 + $0x194] sm:$0xf0]  ;;  %v5827_v35 = vld [vmem:[%s7610_s0 + $0x11c] sm:$0xf] }
  0x31   : > { %3209 = vmatpush.bf16.msrb.mxu2 %v5975_v44  ;;  %3130 = vmatmul.bf16.vlgmr.msra.gmra.mxu3 %v4267_v49  ;;  %v6015_v44 = vld [vmem:[%s6251_s17 + $0x2f8] sm:$0xff]  ;;  %v5990_v49 = vld [vmem:[%s6251_s17 + $0x230] sm:$0xff] }
  0x32   : > { %3238 = vmatpush.bf16.msrb.mxu3 %v5983_v50  ;;  %841 = vperm.xlu2 %6188, %v815_v45   ;;  %v6014_v50 = vld [vmem:[%s6251_s17 + $0x2f0] sm:$0xff]  ;;  %v6000_v45 = vld [vmem:[%s6251_s17 + $0x280] sm:$0xff] }
  0x33   : > { %3152 = vmatpush.bf16.msrb.mxu0 %v5958_v53  ;;  %856 = vperm.xlu1 %6187, %v818_v46   ;;  %v5998_v51 = vld [vmem:[%s6251_s17 + $0x270] sm:$0xff]  ;;  %v5904_v53 = vld [vmem:[%s7610_s0 + $0x37c] sm:$0xf0] }
  0x34   : > { %3181 = vmatpush.bf16.msrb.mxu1 %v5966_v55  ;;  %v4640_v55 = vld [vmem:[%s7610_s0 + $0x380] sm:$0xf0]  ;;  %v4398_v29 = vld [vmem:[%s7610_s0 + $0x110] sm:$0xf] }
  0x35   : > { %3210 = vmatpush.bf16.msrb.mxu2 %v5974_v52  ;;  %v4638_v52 = vld [vmem:[%s7610_s0 + $0x300] sm:$0xf] }
  0x36   : > { %3239 = vmatpush.bf16.msrb.mxu3 %v5982_v54  ;;  %v5888_v54 = vld [vmem:[%s7610_s0 + $0x304] sm:$0xf]  ;;  %v4639_v61 = vor.u32 %v5904_v53, %v4638_v52  ;;  %v4528_v52 = vld [vmem:[%s7610_s0 + $0x290] sm:$0xf0]  ;;  %v4534_v53 = vld [vmem:[%s7610_s0 + $0x218] sm:$0xf] }
  0x37   : > { %3153 = vmatpush.bf16.msrb.mxu0 %v5957_v58  ;;  %v5905_v58 = vld [vmem:[%s7610_s0 + $0x384] sm:$0xf0]  ;;  %v5984_v46 = vld [vmem:[%s6251_s17 + $0x200] sm:$0xff] }
  0x38   : > { %3182 = vmatpush.bf16.msrb.mxu1 %v5965_v60  ;;  %v4648_v60 = vld [vmem:[%s7610_s0 + $0x388] sm:$0xf0] }
  0x39   : > { %3211 = vmatpush.bf16.msrb.mxu2 %v5973_v57  ;;  %v816_v57 = vld [vmem:[%s7611_s1 + $0x28] sm:$0xff] }
  0x3a   : > { %3240 = vmatpush.bf16.msrb.mxu3 %v5981_v59  ;;  %v5889_v59 = vld [vmem:[%s7610_s0 + $0x30c] sm:$0xf]  ;;  %846 = vperm.xlu2 %6188, %v816_v57  }
  0x3b   : > { %3154 = vmatpush.bf16.msrb.mxu0 %v5956_v63  ;;  %v4647_v63 = vor.u32 %v5905_v58, %v4646_v56  ;;  %v4651_v0 = vor.u32 %v5889_v59, %v4648_v60  ;;  %v4536_v56 = vld [vmem:[%s7610_s0 + $0x298] sm:$0xf0] }
  0x3c   : > { %3183 = vmatpush.bf16.msrb.mxu1 %v5964_v8  ;;  %v5996_v8 = vld [vmem:[%s6251_s17 + $0x260] sm:$0xff] }
  0x3d   : > { %3212 = vmatpush.bf16.msrb.mxu2 %v5972_v62  ;;  %v4643_v62 = vor.u32 %v5888_v54, %v4640_v55  ;;  %v5875_v54 = vld [vmem:[%s7610_s0 + $0x294] sm:$0xf0]  ;;  %v5859_v55 = vld [vmem:[%s7610_s0 + $0x21c] sm:$0xf] }
  0x3e   : > { %3241 = vmatpush.bf16.msrb.mxu3 %v5980_v7  ;;  %3048 = vmatmul.bf16.gmra.mxu0 %v4383_v11  ;;  %v6012_v7 = vld [vmem:[%s6251_s17 + $0x2e0] sm:$0xff]  ;;  %v5794_v11 = vld [vmem:[%s7610_s0 + $0x14] sm:$0xf]  ;;  %v4535_v59 = vor.u32 %v5875_v54, %v4534_v53  ;;  %v4539_v60 = vor.u32 %v5859_v55, %v4536_v56  ;;  %v6027_v55 = vld [vmem:[%s6251_s17 + $0x358] sm:$0xff] }
  0x3f   : > { %3155 = vmatpush.bf16.msrb.mxu0 %v5955_v10  ;;  %3077 = vmatmul.bf16.gmra.mxu1 %v4387_v12  ;;  %v5810_v10 = vld [vmem:[%s7610_s0 + $0x8c] sm:$0xf0]  ;;  %v4272_v12 = vld [vmem:[%s7610_s0 + $0x90] sm:$0xf0]  ;;  %v4414_v53 = vld [vmem:[%s7610_s0 + $0x120] sm:$0xf] }
  0x40   : > { %3106 = vmatmul.bf16.gmra.mxu2 %v4391_v13  ;;  %3184 = vmatpush.bf16.msrb.mxu1 %v5963_v16  ;;  %v4278_v13 = vld [vmem:[%s7610_s0 + $0x18] sm:$0xf]  ;;  %v4280_v16 = vld [vmem:[%s7610_s0 + $0x98] sm:$0xf0]  ;;  %v5844_v54 = vld [vmem:[%s7610_s0 + $0x19c] sm:$0xf0] }
  0x41   : > { %3213 = vmatpush.bf16.msrb.mxu2 %v5971_v9  ;;  %3135 = vmatmul.bf16.gmra.mxu3 %v4395_v14  ;;  %v4270_v9 = vld [vmem:[%s7610_s0 + $0x10] sm:$0xf]  ;;  %v5811_v14 = vld [vmem:[%s7610_s0 + $0x94] sm:$0xf0] }
  0x42   : > { %3242 = vmatpush.bf16.msrb.mxu3 %v5979_v15  ;;  %v5795_v15 = vld [vmem:[%s7610_s0 + $0x1c] sm:$0xf] }
  0x43   : > { %3156 = vmatpush.bf16.msrb.mxu0 %v5954_v18  ;;  %v4275_v18 = vor.u32 %v5794_v11, %v4272_v12  ;;  %v4664_v11 = vld [vmem:[%s7610_s0 + $0x398] sm:$0xf0] }
  0x44   : > { %3185 = vmatpush.bf16.msrb.mxu1 %v5962_v20  ;;  %v4283_v20 = vor.u32 %v5795_v15, %v4280_v16  ;;  %v6030_v16 = vld [vmem:[%s6251_s17 + $0x370] sm:$0xff] }
  0x45   : > { %3214 = vmatpush.bf16.msrb.mxu2 %v5970_v17  ;;  %v4271_v17 = vor.u32 %v5810_v10, %v4270_v9  ;;  %v5907_v9 = vld [vmem:[%s7610_s0 + $0x394] sm:$0xf0]  ;;  %v5891_v10 = vld [vmem:[%s7610_s0 + $0x31c] sm:$0xf] }
  0x46   : > { %3243 = vmatpush.bf16.msrb.mxu3 %v5978_v19  ;;  %v4279_v19 = vor.u32 %v5811_v14, %v4278_v13  ;;  %v4667_v15 = vor.u32 %v5891_v10, %v4664_v11 }
  0x47   : > { %3157 = vmatpush.bf16.msrb.mxu0 %v5953_v22  ;;  %v5987_v22 = vld [vmem:[%s6251_s17 + $0x218] sm:$0xff] }
  0x48   : > { %3186 = vmatpush.bf16.msrb.mxu1 %v5961_v25  ;;  %v6002_v25 = vld [vmem:[%s6251_s17 + $0x290] sm:$0xff] }
  0x49   : > { %3215 = vmatpush.bf16.msrb.mxu2 %v5969_v21  ;;  %v6003_v21 = vld [vmem:[%s6251_s17 + $0x298] sm:$0xff] }
  0x4a   : > { %3244 = vmatpush.bf16.msrb.mxu3 %v5977_v24  ;;  %v5995_v24 = vld [vmem:[%s6251_s17 + $0x258] sm:$0xff] }
  0x4b   : > { %3158 = vmatpush.bf16.msrb.mxu0 %v5952_v28  ;;  %v5994_v28 = vld [vmem:[%s6251_s17 + $0x250] sm:$0xff] }
  0x4c   : > { %3187 = vmatpush.bf16.msrb.mxu1 %v5960_v37  ;;  %v4399_v37 = vor.u32 %v5842_v30, %v4398_v29  ;;  %v4294_v29 = vld [vmem:[%s7610_s0 + $0x28] sm:$0xf] }
  0x4d   : > { %3216 = vmatpush.bf16.msrb.mxu2 %v5968_v27  ;;  %v6010_v27 = vld [vmem:[%s6251_s17 + $0x2d0] sm:$0xff]  ;;  %v5813_v30 = vld [vmem:[%s7610_s0 + $0xa4] sm:$0xf0] }
  0x4e   : > { %3245 = vmatpush.bf16.msrb.mxu3 %v5976_v36  ;;  %3053 = vmatmul.bf16.gmra.mxu0 %v4511_v38  ;;  %v4408_v36 = vld [vmem:[%s7610_s0 + $0x198] sm:$0xf0]  ;;  %v4403_v38 = vor.u32 %v5826_v31, %v4400_v32  ;;  %v5797_v31 = vld [vmem:[%s7610_s0 + $0x2c] sm:$0xf] }
  0x4f   : > { %3082 = vmatmul.bf16.gmra.mxu1 %v4515_v39  ;;  %3267 = vmatpush.bf16.msra.mxu0 %v5991_v43  ;;  %v4407_v39 = vor.u32 %v5843_v34, %v4406_v33  ;;  %v6009_v43 = vld [vmem:[%s6251_s17 + $0x2c8] sm:$0xff] }
  0x50   : > { %3111 = vmatmul.bf16.gmra.mxu2 %v4519_v40  ;;  %3296 = vmatpush.bf16.msra.mxu1 %v5999_v47  ;;  %v4411_v40 = vor.u32 %v5827_v35, %v4408_v36  ;;  %v6008_v47 = vld [vmem:[%s6251_s17 + $0x2c0] sm:$0xff]  ;;  %v4296_v32 = vld [vmem:[%s7610_s0 + $0xa8] sm:$0xf0] }
  0x51   : > { %3140 = vmatmul.bf16.gmra.mxu3 %v4523_v41  ;;  %3325 = vmatpush.bf16.msra.mxu2 %v6007_v42  ;;  %v6001_v41 = vld [vmem:[%s6251_s17 + $0x288] sm:$0xff] }
  0x52   : > { %3354 = vmatpush.bf16.msra.mxu3 %v6015_v44  ;;  %v5985_v42 = vld [vmem:[%s6251_s17 + $0x208] sm:$0xff] }
  0x53   : > { %3268 = vmatpush.bf16.msra.mxu0 %v5990_v49  ;;  %v5993_v44 = vld [vmem:[%s6251_s17 + $0x248] sm:$0xff]  ;;  %v4526_v49 = vld [vmem:[%s7610_s0 + $0x210] sm:$0xf] }
  0x54   : > { %3297 = vmatpush.bf16.msra.mxu1 %v5998_v51  ;;  %v5858_v51 = vld [vmem:[%s7610_s0 + $0x214] sm:$0xf] }
  0x55   : > { %3326 = vmatpush.bf16.msra.mxu2 %v6006_v48  ;;  %v5992_v48 = vld [vmem:[%s6251_s17 + $0x240] sm:$0xff]  ;;  %v4531_v58 = vor.u32 %v5858_v51, %v4528_v52 }
  0x56   : > { %3355 = vmatpush.bf16.msra.mxu3 %v6014_v50  ;;  %v5874_v50 = vld [vmem:[%s7610_s0 + $0x28c] sm:$0xf0] }
  0x57   : > { %3269 = vmatpush.bf16.msra.mxu0 %v5989_v2  ;;  %v4527_v57 = vor.u32 %v5874_v50, %v4526_v49  ;;  %v6031_v2 = vld [vmem:[%s6251_s17 + $0x378] sm:$0xff] }
  0x58   : > { %3298 = vmatpush.bf16.msra.mxu1 %v5997_v4  ;;  %v6022_v4 = vld [vmem:[%s6251_s17 + $0x330] sm:$0xff] }
  0x59   : > { %3327 = vmatpush.bf16.msra.mxu2 %v6005_v1  ;;  %v5906_v1 = vld [vmem:[%s7610_s0 + $0x38c] sm:$0xf0] }
  0x5a   : > { %3356 = vmatpush.bf16.msra.mxu3 %v6013_v3  ;;  %v6038_v3 = vld [vmem:[%s6251_s17 + $0x3b0] sm:$0xff] }
  0x5b   : > { %3270 = vmatpush.bf16.msra.mxu0 %v5988_v6  ;;  %v5890_v6 = vld [vmem:[%s7610_s0 + $0x314] sm:$0xf] }
  0x5c   : > { %3299 = vmatpush.bf16.msra.mxu1 %v5996_v8  ;;  %v4662_v8 = vld [vmem:[%s7610_s0 + $0x318] sm:$0xf] }
  0x5d   : > { %3328 = vmatpush.bf16.msra.mxu2 %v6004_v5  ;;  %v6046_v5 = vld [vmem:[%s6251_s17 + $0x3f0] sm:$0xff]  ;;  %v4663_v14 = vor.u32 %v5907_v9, %v4662_v8 }
  0x5e   : > { %3058 = vmatmul.bf16.gmra.mxu0 %v4639_v61  ;;  %3357 = vmatpush.bf16.msra.mxu3 %v6012_v7  ;;  %v6039_v61 = vld [vmem:[%s6251_s17 + $0x3b8] sm:$0xff]  ;;  %v4656_v7 = vld [vmem:[%s7610_s0 + $0x390] sm:$0xf0] }
  0x5f   : > { %3087 = vmatmul.bf16.gmra.mxu1 %v4643_v62  ;;  %3271 = vmatpush.bf16.msra.mxu0 %v5987_v22  ;;  %v6023_v62 = vld [vmem:[%s6251_s17 + $0x338] sm:$0xff]  ;;  %v4659_v13 = vor.u32 %v5890_v6, %v4656_v7  ;;  %v6029_v22 = vld [vmem:[%s6251_s17 + $0x368] sm:$0xff] }
  0x60   : > { %3116 = vmatmul.bf16.gmra.mxu2 %v4647_v63  ;;  %3300 = vmatpush.bf16.msra.mxu1 %v5995_v24  ;;  %v6047_v63 = vld [vmem:[%s6251_s17 + $0x3f8] sm:$0xff]  ;;  %v6020_v24 = vld [vmem:[%s6251_s17 + $0x320] sm:$0xff] }
  0x61   : > { %3145 = vmatmul.bf16.gmra.mxu3 %v4651_v0  ;;  %3329 = vmatpush.bf16.msra.mxu2 %v6003_v21  ;;  %v4654_v0 = vld [vmem:[%s7610_s0 + $0x310] sm:$0xf]  ;;  %v5812_v21 = vld [vmem:[%s7610_s0 + $0x9c] sm:$0xf0] }
  0x62   : > { %3358 = vmatpush.bf16.msra.mxu3 %v6011_v23  ;;  %v4655_v12 = vor.u32 %v5906_v1, %v4654_v0  ;;  %v6036_v23 = vld [vmem:[%s6251_s17 + $0x3a0] sm:$0xff]  ;;  %v5845_v0 = vld [vmem:[%s7610_s0 + $0x1a4] sm:$0xf0]  ;;  %v5829_v1 = vld [vmem:[%s7610_s0 + $0x12c] sm:$0xf] }
  0x63   : > { %3272 = vmatpush.bf16.msra.mxu0 %v5986_v26 }
  0x64   : > { %3301 = vmatpush.bf16.msra.mxu1 %v5994_v28  ;;  %v4288_v28 = vld [vmem:[%s7610_s0 + $0xa0] sm:$0xf0] }
  0x65   : > { %3330 = vmatpush.bf16.msra.mxu2 %v6002_v25  ;;  %v6044_v25 = vld [vmem:[%s6251_s17 + $0x3e0] sm:$0xff] }
  0x66   : > { %3359 = vmatpush.bf16.msra.mxu3 %v6010_v27  ;;  %v5796_v27 = vld [vmem:[%s7610_s0 + $0x24] sm:$0xf] }
  0x67   : > { %3273 = vmatpush.bf16.msra.mxu0 %v5985_v42  ;;  %v4291_v34 = vor.u32 %v5796_v27, %v4288_v28  ;;  %v6035_v42 = vld [vmem:[%s6251_s17 + $0x398] sm:$0xff]  ;;  %v4542_v27 = vld [vmem:[%s7610_s0 + $0x220] sm:$0xf] }
  0x68   : > { %3302 = vmatpush.bf16.msra.mxu1 %v5993_v44  ;;  %v6043_v44 = vld [vmem:[%s6251_s17 + $0x3d8] sm:$0xff]  ;;  %v5876_v28 = vld [vmem:[%s7610_s0 + $0x29c] sm:$0xf0] }
  0x69   : > { %3331 = vmatpush.bf16.msra.mxu2 %v6001_v41 }
  0x6a   : > { %3360 = vmatpush.bf16.msra.mxu3 %v6009_v43  ;;  %v6019_v43 = vld [vmem:[%s6251_s17 + $0x318] sm:$0xff] }
  0x6b   : > { %3274 = vmatpush.bf16.msra.mxu0 %v5984_v46 }
  0x6c   : > { %3303 = vmatpush.bf16.msra.mxu1 %v5992_v48 }
  0x6d   : > { %3332 = vmatpush.bf16.msra.mxu2 %v6000_v45 }
  0x6e   : > { %3159 = vmatmul.bf16.vlgmr.msrb.gmra.mxu0 %v4271_v17  ;;  %3361 = vmatpush.bf16.msra.mxu3 %v6008_v47  ;;  %v6037_v17 = vld [vmem:[%s6251_s17 + $0x3a8] sm:$0xff] }
  0x6f   : > { %3188 = vmatmul.bf16.vlgmr.msrb.gmra.mxu1 %v4275_v18  ;;  %3383 = vmatpush.bf16.msrb.mxu0 %v6023_v62  ;;  %v6021_v18 = vld [vmem:[%s6251_s17 + $0x328] sm:$0xff]  ;;  %v4416_v62 = vld [vmem:[%s7610_s0 + $0x1a0] sm:$0xf0] }
  0x70   : > { %3217 = vmatmul.bf16.vlgmr.msrb.gmra.mxu2 %v4279_v19  ;;  %3412 = vmatpush.bf16.msrb.mxu1 %v6031_v2  ;;  %v6045_v19 = vld [vmem:[%s6251_s17 + $0x3e8] sm:$0xff] }
  0x71   : > { %3246 = vmatmul.bf16.vlgmr.msrb.gmra.mxu3 %v4283_v20  ;;  %3441 = vmatpush.bf16.msrb.mxu2 %v6039_v61  ;;  %v4286_v20 = vld [vmem:[%s7610_s0 + $0x20] sm:$0xf]  ;;  %v5828_v61 = vld [vmem:[%s7610_s0 + $0x124] sm:$0xf]  ;;  %v4424_v2 = vld [vmem:[%s7610_s0 + $0x1a8] sm:$0xf0] }
  0x72   : > { %3470 = vmatpush.bf16.msrb.mxu3 %v6047_v63  ;;  %v4287_v33 = vor.u32 %v5812_v21, %v4286_v20  ;;  %v4422_v63 = vld [vmem:[%s7610_s0 + $0x128] sm:$0xf]  ;;  %v4419_v6 = vor.u32 %v5828_v61, %v4416_v62  ;;  %v4427_v11 = vor.u32 %v5829_v1, %v4424_v2  ;;  %v4670_v2 = vld [vmem:[%s7610_s0 + $0x320] sm:$0xf] }
  0x73   : > { %3384 = vmatpush.bf16.msrb.mxu0 %v6022_v4  ;;  %v4423_v10 = vor.u32 %v5845_v0, %v4422_v63 }
  0x74   : > { %3413 = vmatpush.bf16.msrb.mxu1 %v6030_v16  ;;  %v6033_v16 = vld [vmem:[%s6251_s17 + $0x388] sm:$0xff] }
  0x75   : > { %3442 = vmatpush.bf16.msrb.mxu2 %v6038_v3 }
  0x76   : > { %3471 = vmatpush.bf16.msrb.mxu3 %v6046_v5  ;;  %v4415_v5 = vor.u32 %v5844_v54, %v4414_v53 }
  0x77   : > { %3385 = vmatpush.bf16.msrb.mxu0 %v6021_v18  ;;  %v6041_v18 = vld [vmem:[%s6251_s17 + $0x3c8] sm:$0xff] }
  0x78   : > { %3414 = vmatpush.bf16.msrb.mxu1 %v6029_v22 }
  0x79   : > { %3443 = vmatpush.bf16.msrb.mxu2 %v6037_v17  ;;  %v6017_v17 = vld [vmem:[%s6251_s17 + $0x308] sm:$0xff] }
  0x7a   : > { %3472 = vmatpush.bf16.msrb.mxu3 %v6045_v19 }
  0x7b   : > { %3386 = vmatpush.bf16.msrb.mxu0 %v6020_v24 }
  0x7d   : > { %3444 = vmatpush.bf16.msrb.mxu2 %v6036_v23 }
  0x7e   : > { %3164 = vmatmul.bf16.gmra.mxu0 %v4399_v37  ;;  %3473 = vmatpush.bf16.msrb.mxu3 %v6044_v25  ;;  %v4295_v37 = vor.u32 %v5813_v30, %v4294_v29  ;;  %v6025_v29 = vld [vmem:[%s6251_s17 + $0x348] sm:$0xff] }
  0x7f   : > { %3193 = vmatmul.bf16.gmra.mxu1 %v4403_v38  ;;  %v822_v26 = vpop.permute.xlu0 %821  ;;  %v4299_v38 = vor.u32 %v5797_v31, %v4296_v32  ;;  %3387 = vmatpush.bf16.msrb.mxu0 %v6019_v43  ;;  %v6032_v31 = vld [vmem:[%s6251_s17 + $0x380] sm:$0xff]  ;;  %v4543_v43 = vor.u32 %v5876_v28, %v4542_v27 }
  0x80   : > { %3222 = vmatmul.bf16.gmra.mxu2 %v4407_v39  ;;  %v6016_v32 = vld [vmem:[%s6251_s17 + $0x300] sm:$0xff] }
  0x81   : > { %3251 = vmatmul.bf16.gmra.mxu3 %v4411_v40  ;;  %v6028_v40 = vld [vmem:[%s6251_s17 + $0x360] sm:$0xff]  ;;  %3445 = vmatpush.bf16.msrb.mxu2 %v6035_v42 }
  0x82   : > { %3415 = vmatpush.bf16.msrb.mxu1 %v6028_v40  ;;  %3474 = vmatpush.bf16.msrb.mxu3 %v6043_v44  ;;  %v4552_v40 = vld [vmem:[%s7610_s0 + $0x2a8] sm:$0xf0] }
  0x86   : > { %3416 = vmatpush.bf16.msrb.mxu1 %v6027_v55  ;;  %v6071_v55 = vld [vmem:[%s6251_s17 + $0x4b8] sm:$0xff] }
  0x87   : > { %v827_v45 = vpop.permute.xlu0 %826 }
  0x8e   : > { %3169 = vmatmul.bf16.gmra.mxu0 %v4527_v57  ;;  %v6034_v57 = vld [vmem:[%s6251_s17 + $0x390] sm:$0xff] }
  0x8f   : > { %3198 = vmatmul.bf16.gmra.mxu1 %v4531_v58  ;;  %v6018_v58 = vld [vmem:[%s6251_s17 + $0x310] sm:$0xff]  ;;  %3446 = vmatpush.bf16.msrb.mxu2 %v6034_v57  ;;  %v6079_v57 = vld [vmem:[%s6251_s17 + $0x4f8] sm:$0xff] }
  0x90   : > { %3227 = vmatmul.bf16.gmra.mxu2 %v4535_v59  ;;  %v6042_v59 = vld [vmem:[%s6251_s17 + $0x3d0] sm:$0xff]  ;;  %3388 = vmatpush.bf16.msrb.mxu0 %v6018_v58 }
  0x91   : > { %3256 = vmatmul.bf16.gmra.mxu3 %v4539_v60  ;;  %v832_v60 = vpop.permute.xlu1 %831 }
  0x92   : > { %3475 = vmatpush.bf16.msrb.mxu3 %v6042_v59 }
  0x93   : > { %3447 = vmatpush.bf16.msrb.mxu2 %v6033_v16 }
  0x94   : > { %3389 = vmatpush.bf16.msrb.mxu0 %v6017_v17 }
  0x96   : > { %3476 = vmatpush.bf16.msrb.mxu3 %v6041_v18 }
  0x97   : > { %3448 = vmatpush.bf16.msrb.mxu2 %v6032_v31  ;;  %v6069_v31 = vld [vmem:[%s6251_s17 + $0x4a8] sm:$0xff] }
  0x98   : > { %3390 = vmatpush.bf16.msrb.mxu0 %v6016_v32  ;;  %v6053_v32 = vld [vmem:[%s6251_s17 + $0x428] sm:$0xff] }
  0x99   : > { %v837_v19 = vpop.permute.xlu1 %836  ;;  %v852_v16 = vpop.permute.xlu0 %851 }
  0x9e   : > { %3174 = vmatmul.bf16.gmra.mxu0 %v4655_v12 }
  0x9f   : > { %3203 = vmatmul.bf16.gmra.mxu1 %v4659_v13 }
  0xa0   : > { %3232 = vmatmul.bf16.gmra.mxu2 %v4663_v14  ;;  %v6026_v14 = vld [vmem:[%s6251_s17 + $0x350] sm:$0xff] }
  0xa1   : > { %3261 = vmatmul.bf16.gmra.mxu3 %v4667_v15  ;;  %3417 = vmatpush.bf16.msrb.mxu1 %v6026_v14  ;;  %v5893_v14 = vld [vmem:[%s7610_s0 + $0x32c] sm:$0xf] }
  0xa5   : > { %3418 = vmatpush.bf16.msrb.mxu1 %v6025_v29  ;;  %v6062_v29 = vld [vmem:[%s6251_s17 + $0x470] sm:$0xff] }
  0xab   : > { %v3044_v35 = vpop.f32.mrf.mxu0 }
  0xac   : > { %v3073_v36 = vpop.f32.mrf.mxu1  ;;  %v3045_v39 = vadd.f32 %v3044_v35, %v822_v26  ;;  %v5860_v35 = vld [vmem:[%s7610_s0 + $0x224] sm:$0xf] }
  0xae   : > { %v3074_v41 = vadd.f32 %v3073_v36, %v3045_v39  ;;  %3275 = vmatmul.bf16.vlgmr.msra.gmra.mxu0 %v4287_v33  ;;  %v6040_v33 = vld [vmem:[%s6251_s17 + $0x3c0] sm:$0xff]  ;;  %v5861_v39 = vld [vmem:[%s7610_s0 + $0x22c] sm:$0xf] }
  0xaf   : > { %3304 = vmatmul.bf16.vlgmr.msra.gmra.mxu1 %v4291_v34  ;;  %v842_v34 = vpop.permute.xlu2 %841  ;;  %v4544_v36 = vld [vmem:[%s7610_s0 + $0x2a0] sm:$0xf0]  ;;  %3477 = vmatpush.bf16.msrb.mxu3 %v6040_v33  ;;  %v6077_v33 = vld [vmem:[%s6251_s17 + $0x4e8] sm:$0xff] }
  0xb0   : > { %3333 = vmatmul.bf16.vlgmr.msra.gmra.mxu2 %v4295_v37  ;;  %v4550_v37 = vld [vmem:[%s7610_s0 + $0x228] sm:$0xf]  ;;  %v4547_v44 = vor.u32 %v5860_v35, %v4544_v36 }
  0xb1   : > { %3362 = vmatmul.bf16.vlgmr.msra.gmra.mxu3 %v4299_v38  ;;  %v5877_v38 = vld [vmem:[%s7610_s0 + $0x2a4] sm:$0xf0]  ;;  %3557 = vmatpush.bf16.msra.mxu2 %v6071_v55  ;;  %v5799_v55 = vld [vmem:[%s7610_s0 + $0x3c] sm:$0xf] }
  0xb3   : > { %v3102_v46 = vpop.f32.mrf.mxu2  ;;  %v3046_v49 = vpop.f32.mrf.mxu0  ;;  %3586 = vmatpush.bf16.msra.mxu3 %v6079_v57 }
  0xb4   : > { %v3131_v47 = vpop.f32.mrf.mxu3  ;;  %v3103_v48 = vadd.f32 %v3102_v46, %v3074_v41  ;;  %v3075_v50 = vpop.f32.mrf.mxu1  ;;  %v3047_v51 = vadd.f32 %v3046_v49, %v827_v45  ;;  %v6024_v45 = vld [vmem:[%s6251_s17 + $0x340] sm:$0xff]  ;;  %v4551_v49 = vor.u32 %v5877_v38, %v4550_v37 }
  0xb5   : > { %3419 = vmatpush.bf16.msrb.mxu1 %v6024_v45 }
  0xb6   : > { %v6608_v52 = vadd.f32 %v3131_v47, %v3103_v48  ;;  %v3076_v56 = vadd.f32 %v3075_v50, %v3047_v51  ;;  %v4555_v50 = vor.u32 %v5861_v39, %v4552_v40 }
  0xb7   : > { %v847_v58 = vpop.permute.xlu2 %846 }
  0xbb   : > { %v3104_v3 = vpop.f32.mrf.mxu2  ;;  %v3049_v8 = vpop.f32.mrf.mxu0 }
  0xbc   : > { %v3133_v4 = vpop.f32.mrf.mxu3  ;;  %v3105_v7 = vadd.f32 %v3104_v3, %v3076_v56  ;;  %v3078_v9 = vpop.f32.mrf.mxu1  ;;  %v3050_v12 = vadd.f32 %v3049_v8, %v832_v60  ;;  %v6055_v56 = vld [vmem:[%s6251_s17 + $0x438] sm:$0xff]  ;;  %v5908_v3 = vld [vmem:[%s7610_s0 + $0x39c] sm:$0xf0]  ;;  %v6078_v8 = vld [vmem:[%s6251_s17 + $0x4f0] sm:$0xff] }
  0xbd   : > { %3499 = vmatpush.bf16.msra.mxu0 %v6055_v56  ;;  %3587 = vmatpush.bf16.msra.mxu3 %v6078_v8  ;;  %v4312_v56 = vld [vmem:[%s7610_s0 + $0xb8] sm:$0xf0] }
  0xbe   : > { %v6638_v13 = vadd.f32 %v3133_v4, %v3105_v7  ;;  %v3079_v15 = vadd.f32 %v3078_v9, %v3050_v12  ;;  %3280 = vmatmul.bf16.gmra.mxu0 %v4415_v5  ;;  %v6063_v4 = vld [vmem:[%s6251_s17 + $0x478] sm:$0xff]  ;;  %v6054_v7 = vld [vmem:[%s6251_s17 + $0x430] sm:$0xff]  ;;  %v5892_v9 = vld [vmem:[%s7610_s0 + $0x324] sm:$0xf] }
  0xbf   : > { %3309 = vmatmul.bf16.gmra.mxu1 %v4419_v6  ;;  %v6070_v6 = vld [vmem:[%s6251_s17 + $0x4b0] sm:$0xff]  ;;  %v5909_v12 = vld [vmem:[%s7610_s0 + $0x3a4] sm:$0xf0]  ;;  %v6051_v8 = vld [vmem:[%s6251_s17 + $0x418] sm:$0xff] }
  0xc0   : > { %3338 = vmatmul.bf16.gmra.mxu2 %v4423_v10  ;;  %v4672_v10 = vld [vmem:[%s7610_s0 + $0x3a0] sm:$0xf0]  ;;  %3528 = vmatpush.bf16.msra.mxu1 %v6063_v4 }
  0xc1   : > { %3367 = vmatmul.bf16.gmra.mxu3 %v4427_v11  ;;  %v4678_v11 = vld [vmem:[%s7610_s0 + $0x328] sm:$0xf]  ;;  %3558 = vmatpush.bf16.msra.mxu2 %v6070_v6 }
  0xc2   : > { %3500 = vmatpush.bf16.msra.mxu0 %v6054_v7  ;;  %3588 = vmatpush.bf16.msra.mxu3 %v6077_v33  ;;  %v6067_v7 = vld [vmem:[%s6251_s17 + $0x498] sm:$0xff] }
  0xc3   : > { %v3107_v20 = vpop.f32.mrf.mxu2  ;;  %v3051_v23 = vpop.f32.mrf.mxu0 }
  0xc4   : > { %v3136_v21 = vpop.f32.mrf.mxu3  ;;  %v3108_v22 = vadd.f32 %v3107_v20, %v3079_v15  ;;  %v3080_v24 = vpop.f32.mrf.mxu1  ;;  %v3052_v25 = vadd.f32 %v3051_v23, %v837_v19  ;;  %v4680_v15 = vld [vmem:[%s7610_s0 + $0x3a8] sm:$0xf0]  ;;  %v4671_v19 = vor.u32 %v5908_v3, %v4670_v2  ;;  %v4675_v20 = vor.u32 %v5892_v9, %v4672_v10  ;;  %3529 = vmatpush.bf16.msra.mxu1 %v6062_v29  ;;  %v6075_v9 = vld [vmem:[%s6251_s17 + $0x4d8] sm:$0xff] }
  0xc5   : > { %3559 = vmatpush.bf16.msra.mxu2 %v6069_v31  ;;  %v4315_v2 = vor.u32 %v5799_v55, %v4312_v56  ;;  %v5831_v29 = vld [vmem:[%s7610_s0 + $0x13c] sm:$0xf]  ;;  %v4558_v56 = vld [vmem:[%s7610_s0 + $0x230] sm:$0xf] }
  0xc6   : > { %v6644_v26 = vadd.f32 %v3136_v21, %v3108_v22  ;;  %v3081_v30 = vadd.f32 %v3080_v24, %v3052_v25  ;;  %v4679_v24 = vor.u32 %v5909_v12, %v4678_v11  ;;  %v4683_v25 = vor.u32 %v5893_v14, %v4680_v15  ;;  %3501 = vmatpush.bf16.msra.mxu0 %v6053_v32 }
  0xcb   : > { %v3109_v41 = vpop.f32.mrf.mxu2  ;;  %v3054_v47 = vpop.f32.mrf.mxu0 }
  0xcc   : > { %v3138_v42 = vpop.f32.mrf.mxu3  ;;  %v3110_v46 = vadd.f32 %v3109_v41, %v3081_v30  ;;  %v3083_v48 = vpop.f32.mrf.mxu1  ;;  %v3055_v51 = vadd.f32 %v3054_v47, %v842_v34  ;;  %v6052_v47 = vld [vmem:[%s6251_s17 + $0x420] sm:$0xff] }
  0xcd   : > { %v857_v34 = vpop.permute.xlu1 %856  ;;  %3502 = vmatpush.bf16.msra.mxu0 %v6052_v47  ;;  %v6073_v47 = vld [vmem:[%s6251_s17 + $0x4c8] sm:$0xff] }
  0xce   : > { %v6675_v53 = vadd.f32 %v3138_v42, %v3110_v46  ;;  %v3084_v54 = vadd.f32 %v3083_v48, %v3055_v51  ;;  %3285 = vmatmul.bf16.gmra.mxu0 %v4543_v43  ;;  %v4302_v42 = vld [vmem:[%s7610_s0 + $0x30] sm:$0xf]  ;;  %v6068_v46 = vld [vmem:[%s6251_s17 + $0x4a0] sm:$0xff]  ;;  %v4310_v51 = vld [vmem:[%s7610_s0 + $0x38] sm:$0xf] }
  0xcf   : > { %3314 = vmatmul.bf16.gmra.mxu1 %v4547_v44  ;;  %v5814_v43 = vld [vmem:[%s7610_s0 + $0xac] sm:$0xf0]  ;;  %v6061_v44 = vld [vmem:[%s6251_s17 + $0x468] sm:$0xff]  ;;  %v6076_v48 = vld [vmem:[%s6251_s17 + $0x4e0] sm:$0xff]  ;;  %3560 = vmatpush.bf16.msra.mxu2 %v6068_v46 }
  0xd0   : > { %3343 = vmatmul.bf16.gmra.mxu2 %v4551_v49  ;;  %v5798_v49 = vld [vmem:[%s7610_s0 + $0x34] sm:$0xf]  ;;  %3530 = vmatpush.bf16.msra.mxu1 %v6061_v44  ;;  %v6049_v46 = vld [vmem:[%s6251_s17 + $0x408] sm:$0xff] }
  0xd1   : > { %3372 = vmatmul.bf16.gmra.mxu3 %v4555_v50  ;;  %v4304_v50 = vld [vmem:[%s7610_s0 + $0xb0] sm:$0xf0]  ;;  %3503 = vmatpush.bf16.msra.mxu0 %v6051_v8 }
  0xd2   : > { %3589 = vmatpush.bf16.msra.mxu3 %v6076_v48 }
  0xd3   : > { %v3112_v59 = vpop.f32.mrf.mxu2  ;;  %v3056_v62 = vpop.f32.mrf.mxu0  ;;  %3561 = vmatpush.bf16.msra.mxu2 %v6067_v7 }
  0xd4   : > { %v3141_v60 = vpop.f32.mrf.mxu3  ;;  %v3113_v61 = vadd.f32 %v3112_v59, %v3084_v54  ;;  %v3085_v63 = vpop.f32.mrf.mxu1  ;;  %v3057_v0 = vadd.f32 %v3056_v62, %v847_v58  ;;  %v5815_v54 = vld [vmem:[%s7610_s0 + $0xb4] sm:$0xf0]  ;;  %v4303_v59 = vor.u32 %v5814_v43, %v4302_v42  ;;  %v6058_v43 = vld [vmem:[%s6251_s17 + $0x450] sm:$0xff] }
  0xd6   : > { %v6680_v1 = vadd.f32 %v3141_v60, %v3113_v61  ;;  %v3086_v5 = vadd.f32 %v3085_v63, %v3057_v0  ;;  %v4307_v60 = vor.u32 %v5798_v49, %v4304_v50  ;;  %v4311_v0 = vor.u32 %v5815_v54, %v4310_v51  ;;  %3590 = vmatpush.bf16.msra.mxu3 %v6075_v9 }
  0xdb   : > { %v3114_v17 = vpop.f32.mrf.mxu2  ;;  %v3059_v22 = vpop.f32.mrf.mxu0 }
  0xdc   : > { %v3143_v18 = vpop.f32.mrf.mxu3  ;;  %v3115_v21 = vadd.f32 %v3114_v17, %v3086_v5  ;;  %v3088_v23 = vpop.f32.mrf.mxu1  ;;  %v3060_v27 = vadd.f32 %v3059_v22, %v852_v16  ;;  %v6060_v5 = vld [vmem:[%s6251_s17 + $0x460] sm:$0xff]  ;;  %v4430_v17 = vld [vmem:[%s7610_s0 + $0x130] sm:$0xf] }
  0xdd   : > { %3531 = vmatpush.bf16.msra.mxu1 %v6060_v5  ;;  %v6050_v22 = vld [vmem:[%s6251_s17 + $0x410] sm:$0xff]  ;;  %v4568_v5 = vld [vmem:[%s7610_s0 + $0x2b8] sm:$0xf0] }
  0xde   : > { %v6710_v28 = vadd.f32 %v3143_v18, %v3115_v21  ;;  %v3089_v30 = vadd.f32 %v3088_v23, %v3060_v27  ;;  %3290 = vmatmul.bf16.gmra.mxu0 %v4671_v19  ;;  %v5846_v18 = vld [vmem:[%s7610_s0 + $0x1ac] sm:$0xf0]  ;;  %v6059_v19 = vld [vmem:[%s6251_s17 + $0x458] sm:$0xff] }
  0xdf   : > { %3319 = vmatmul.bf16.gmra.mxu1 %v4675_v20  ;;  %v6066_v21 = vld [vmem:[%s6251_s17 + $0x490] sm:$0xff]  ;;  %v5847_v27 = vld [vmem:[%s7610_s0 + $0x1b4] sm:$0xf0]  ;;  %3504 = vmatpush.bf16.msra.mxu0 %v6050_v22  ;;  %v4431_v33 = vor.u32 %v5846_v18, %v4430_v17 }
  0xe0   : > { %3348 = vmatmul.bf16.gmra.mxu2 %v4679_v24  ;;  %v6074_v23 = vld [vmem:[%s6251_s17 + $0x4d0] sm:$0xff]  ;;  %v6111_v22 = vld [vmem:[%s6251_s17 + $0x5f8] sm:$0xff] }
  0xe1   : > { %3377 = vmatmul.bf16.gmra.mxu3 %v4683_v25  ;;  %v5830_v24 = vld [vmem:[%s7610_s0 + $0x134] sm:$0xf]  ;;  %v4438_v25 = vld [vmem:[%s7610_s0 + $0x138] sm:$0xf]  ;;  %3532 = vmatpush.bf16.msra.mxu1 %v6059_v19 }
  0xe2   : > { %3562 = vmatpush.bf16.msra.mxu2 %v6066_v21  ;;  %3591 = vmatpush.bf16.msra.mxu3 %v6074_v23  ;;  %v6087_v21 = vld [vmem:[%s6251_s17 + $0x538] sm:$0xff] }
  0xe3   : > { %v3117_v35 = vpop.f32.mrf.mxu2  ;;  %v3061_v38 = vpop.f32.mrf.mxu0  ;;  %3505 = vmatpush.bf16.msra.mxu0 %v6049_v46 }
  0xe4   : > { %v3146_v36 = vpop.f32.mrf.mxu3  ;;  %v3118_v37 = vadd.f32 %v3117_v35, %v3089_v30  ;;  %v3090_v39 = vpop.f32.mrf.mxu1  ;;  %v3062_v40 = vadd.f32 %v3061_v38, %v857_v34  ;;  %v4440_v30 = vld [vmem:[%s7610_s0 + $0x1b8] sm:$0xf0]  ;;  %v4439_v38 = vor.u32 %v5847_v27, %v4438_v25 }
  0xe5   : > { %3533 = vmatpush.bf16.msra.mxu1 %v6058_v43  ;;  %v4696_v43 = vld [vmem:[%s7610_s0 + $0x3b8] sm:$0xf0] }
  0xe6   : > { %v6716_v41 = vadd.f32 %v3146_v36, %v3118_v37  ;;  %v3091_v45 = vadd.f32 %v3090_v39, %v3062_v40  ;;  %v4443_v39 = vor.u32 %v5831_v29, %v4440_v30  ;;  %3592 = vmatpush.bf16.msra.mxu3 %v6073_v47  ;;  %v4686_v30 = vld [vmem:[%s7610_s0 + $0x330] sm:$0xf] }
  0xeb   : > { %v3119_v57 = vpop.f32.mrf.mxu2  ;;  %v3160_v62 = vpop.f32.mrf.mxu0 }
  0xec   : > { %v3148_v58 = vpop.f32.mrf.mxu3  ;;  %v3120_v61 = vadd.f32 %v3119_v57, %v3091_v45  ;;  %v3189_v63 = vpop.f32.mrf.mxu1  ;;  %v3161_v3 = vadd.f32 %v3160_v62, %v6608_v52  ;;  %v6065_v45 = vld [vmem:[%s6251_s17 + $0x488] sm:$0xff]  ;;  %v5878_v57 = vld [vmem:[%s7610_s0 + $0x2ac] sm:$0xf0]  ;;  %v6072_v62 = vld [vmem:[%s6251_s17 + $0x4c0] sm:$0xff] }
  0xed   : > { %3563 = vmatpush.bf16.msra.mxu2 %v6065_v45  ;;  %3593 = vmatpush.bf16.msra.mxu3 %v6072_v62  ;;  %v4559_v8 = vor.u32 %v5878_v57, %v4558_v56  ;;  %v6094_v57 = vld [vmem:[%s6251_s17 + $0x570] sm:$0xff] }
  0xee   : > { %v6747_v4 = vadd.f32 %v3148_v58, %v3120_v61  ;;  %v3190_v6 = vadd.f32 %v3189_v63, %v3161_v3  ;;  %3391 = vmatmul.bf16.vlgmr.msrb.gmra.mxu0 %v4303_v59  ;;  %v6057_v58 = vld [vmem:[%s6251_s17 + $0x448] sm:$0xff]  ;;  %v6048_v61 = vld [vmem:[%s6251_s17 + $0x400] sm:$0xff]  ;;  %v4560_v63 = vld [vmem:[%s7610_s0 + $0x2b0] sm:$0xf0] }
  0xef   : > { %3420 = vmatmul.bf16.vlgmr.msrb.gmra.mxu1 %v4307_v60  ;;  %v6064_v60 = vld [vmem:[%s6251_s17 + $0x480] sm:$0xff]  ;;  %v5863_v3 = vld [vmem:[%s7610_s0 + $0x23c] sm:$0xf]  ;;  %3506 = vmatpush.bf16.msra.mxu0 %v6048_v61  ;;  %v6109_v61 = vld [vmem:[%s6251_s17 + $0x5e8] sm:$0xff] }
  0xf0   : > { %3449 = vmatmul.bf16.vlgmr.msrb.gmra.mxu2 %v4311_v0  ;;  %v4566_v0 = vld [vmem:[%s7610_s0 + $0x238] sm:$0xf]  ;;  %3534 = vmatpush.bf16.msra.mxu1 %v6057_v58 }
  0xf1   : > { %3478 = vmatmul.bf16.vlgmr.msrb.gmra.mxu3 %v4315_v2  ;;  %v5879_v2 = vld [vmem:[%s7610_s0 + $0x2b4] sm:$0xf0]  ;;  %3564 = vmatpush.bf16.msra.mxu2 %v6064_v60  ;;  %v6085_v60 = vld [vmem:[%s6251_s17 + $0x528] sm:$0xff] }
  0xf2   : > { %3702 = vmatpush.bf16.msrb.mxu3 %v6111_v22 }
  0xf3   : > { %v3218_v10 = vpop.f32.mrf.mxu2  ;;  %v3162_v12 = vpop.f32.mrf.mxu0  ;;  %3615 = vmatpush.bf16.msrb.mxu0 %v6087_v21 }
  0xf4   : > { %v3247_v52 = vpop.f32.mrf.mxu3  ;;  %v3219_v11 = vadd.f32 %v3218_v10, %v3190_v6  ;;  %v3191_v14 = vpop.f32.mrf.mxu1  ;;  %v3163_v15 = vadd.f32 %v3162_v12, %v6638_v13  ;;  %v4432_v13 = vld [vmem:[%s7610_s0 + $0x1b0] sm:$0xf0]  ;;  %v6056_v10 = vld [vmem:[%s6251_s17 + $0x440] sm:$0xff] }
  0xf5   : > { %v4435_v34 = vor.u32 %v5830_v24, %v4432_v13  ;;  %3535 = vmatpush.bf16.msra.mxu1 %v6056_v10  ;;  %v6084_v10 = vld [vmem:[%s6251_s17 + $0x520] sm:$0xff] }
  0xf6   : > { %v6754_v16 = vadd.f32 %v3247_v52, %v3219_v11  ;;  %v3192_v20 = vadd.f32 %v3191_v14, %v3163_v15  ;;  %v4567_v14 = vor.u32 %v5879_v2, %v4566_v0  ;;  %v4571_v15 = vor.u32 %v5863_v3, %v4568_v5  ;;  %v4318_v5 = vld [vmem:[%s7610_s0 + $0x40] sm:$0xf] }
  0xfb   : > { %v3220_v31 = vpop.f32.mrf.mxu2  ;;  %v3165_v36 = vpop.f32.mrf.mxu0 }
  0xfc   : > { %v3249_v32 = vpop.f32.mrf.mxu3  ;;  %v3221_v35 = vadd.f32 %v3220_v31, %v3192_v20  ;;  %v3194_v37 = vpop.f32.mrf.mxu1  ;;  %v3166_v40 = vadd.f32 %v3165_v36, %v6644_v26  ;;  %v6103_v20 = vld [vmem:[%s6251_s17 + $0x5b8] sm:$0xff]  ;;  %v5910_v31 = vld [vmem:[%s7610_s0 + $0x3ac] sm:$0xf0] }
  0xfd   : > { %3673 = vmatpush.bf16.msrb.mxu2 %v6103_v20  ;;  %v6110_v36 = vld [vmem:[%s6251_s17 + $0x5f0] sm:$0xff]  ;;  %v4687_v46 = vor.u32 %v5910_v31, %v4686_v30  ;;  %v6092_v31 = vld [vmem:[%s6251_s17 + $0x560] sm:$0xff] }
  0xfe   : > { %v6785_v42 = vadd.f32 %v3249_v32, %v3221_v35  ;;  %v3195_v44 = vadd.f32 %v3194_v37, %v3166_v40  ;;  %3396 = vmatmul.bf16.gmra.mxu0 %v4431_v33  ;;  %v6095_v32 = vld [vmem:[%s6251_s17 + $0x578] sm:$0xff]  ;;  %v6086_v35 = vld [vmem:[%s6251_s17 + $0x530] sm:$0xff]  ;;  %3703 = vmatpush.bf16.msrb.mxu3 %v6110_v36 }
  0xff   : > { %3425 = vmatmul.bf16.gmra.mxu1 %v4435_v34  ;;  %v6102_v34 = vld [vmem:[%s6251_s17 + $0x5b0] sm:$0xff]  ;;  %v5895_v40 = vld [vmem:[%s7610_s0 + $0x33c] sm:$0xf]  ;;  %3616 = vmatpush.bf16.msrb.mxu0 %v6086_v35 }
 0x100   : > { %3454 = vmatmul.bf16.gmra.mxu2 %v4439_v38  ;;  %v5894_v37 = vld [vmem:[%s7610_s0 + $0x334] sm:$0xf]  ;;  %v4694_v38 = vld [vmem:[%s7610_s0 + $0x338] sm:$0xf]  ;;  %3644 = vmatpush.bf16.msrb.mxu1 %v6095_v32 }
 0x101   : > { %3483 = vmatmul.bf16.gmra.mxu3 %v4443_v39  ;;  %v5911_v39 = vld [vmem:[%s7610_s0 + $0x3b4] sm:$0xf0]  ;;  %3674 = vmatpush.bf16.msrb.mxu2 %v6102_v34 }
 0x102   : > { %3704 = vmatpush.bf16.msrb.mxu3 %v6109_v61  ;;  %v6083_v34 = vld [vmem:[%s6251_s17 + $0x518] sm:$0xff] }
 0x103   : > { %v3223_v48 = vpop.f32.mrf.mxu2  ;;  %v3167_v50 = vpop.f32.mrf.mxu0  ;;  %3617 = vmatpush.bf16.msrb.mxu0 %v6085_v60  ;;  %v6107_v35 = vld [vmem:[%s6251_s17 + $0x5d8] sm:$0xff] }
 0x104   : > { %v3252_v26 = vpop.f32.mrf.mxu3  ;;  %v3224_v49 = vadd.f32 %v3223_v48, %v3195_v44  ;;  %v3196_v51 = vpop.f32.mrf.mxu1  ;;  %v3168_v54 = vadd.f32 %v3167_v50, %v6675_v53  ;;  %v5862_v53 = vld [vmem:[%s7610_s0 + $0x234] sm:$0xf]  ;;  %v4695_v50 = vor.u32 %v5911_v39, %v4694_v38  ;;  %3645 = vmatpush.bf16.msrb.mxu1 %v6094_v57  ;;  %v4456_v57 = vld [vmem:[%s7610_s0 + $0x1c8] sm:$0xf0] }
 0x105   : > { %v4563_v9 = vor.u32 %v5862_v53, %v4560_v63 }
 0x106   : > { %v6792_v55 = vadd.f32 %v3252_v26, %v3224_v49  ;;  %v3197_v59 = vadd.f32 %v3196_v51, %v3168_v54  ;;  %v4699_v51 = vor.u32 %v5895_v40, %v4696_v43  ;;  %v4446_v43 = vld [vmem:[%s7610_s0 + $0x140] sm:$0xf] }
 0x107   : > { %3618 = vmatpush.bf16.msrb.mxu0 %v6084_v10  ;;  %v6105_v10 = vld [vmem:[%s6251_s17 + $0x5c8] sm:$0xff] }
 0x10b   : > { %v3225_v6 = vpop.f32.mrf.mxu2  ;;  %v3170_v11 = vpop.f32.mrf.mxu0  ;;  %3619 = vmatpush.bf16.msrb.mxu0 %v6083_v34 }
 0x10c   : > { %v3254_v7 = vpop.f32.mrf.mxu3  ;;  %v3226_v52 = vadd.f32 %v3225_v6, %v3197_v59  ;;  %v3199_v12 = vpop.f32.mrf.mxu1  ;;  %v3171_v17 = vadd.f32 %v3170_v11, %v6680_v1  ;;  %v6101_v59 = vld [vmem:[%s6251_s17 + $0x5a8] sm:$0xff]  ;;  %v5816_v6 = vld [vmem:[%s7610_s0 + $0xbc] sm:$0xf0]  ;;  %v5800_v11 = vld [vmem:[%s7610_s0 + $0x44] sm:$0xf] }
 0x10d   : > { %3675 = vmatpush.bf16.msrb.mxu2 %v6101_v59  ;;  %v4319_v21 = vor.u32 %v5816_v6, %v4318_v5  ;;  %v6090_v6 = vld [vmem:[%s6251_s17 + $0x550] sm:$0xff] }
 0x10e   : > { %v6824_v18 = vadd.f32 %v3254_v7, %v3226_v52  ;;  %v3200_v19 = vadd.f32 %v3199_v12, %v3171_v17  ;;  %3401 = vmatmul.bf16.gmra.mxu0 %v4559_v8  ;;  %v6093_v7 = vld [vmem:[%s6251_s17 + $0x568] sm:$0xff]  ;;  %v6108_v52 = vld [vmem:[%s6251_s17 + $0x5e0] sm:$0xff] }
 0x10f   : > { %3430 = vmatmul.bf16.gmra.mxu1 %v4563_v9  ;;  %v6100_v9 = vld [vmem:[%s6251_s17 + $0x5a0] sm:$0xff]  ;;  %v4326_v12 = vld [vmem:[%s7610_s0 + $0x48] sm:$0xf]  ;;  %v4328_v17 = vld [vmem:[%s7610_s0 + $0xc8] sm:$0xf0]  ;;  %3705 = vmatpush.bf16.msrb.mxu3 %v6108_v52 }
 0x110   : > { %3459 = vmatmul.bf16.gmra.mxu2 %v4567_v14  ;;  %3646 = vmatpush.bf16.msrb.mxu1 %v6093_v7  ;;  %v5817_v14 = vld [vmem:[%s7610_s0 + $0xc4] sm:$0xf0] }
 0x111   : > { %3488 = vmatmul.bf16.gmra.mxu3 %v4571_v15  ;;  %v5801_v15 = vld [vmem:[%s7610_s0 + $0x4c] sm:$0xf]  ;;  %3676 = vmatpush.bf16.msrb.mxu2 %v6100_v9 }
 0x112   : > { %v6081_v9 = vld [vmem:[%s6251_s17 + $0x508] sm:$0xff] }
 0x113   : > { %v3228_v23 = vpop.f32.mrf.mxu2  ;;  %v3172_v13 = vpop.f32.mrf.mxu0  ;;  %3706 = vmatpush.bf16.msrb.mxu3 %v6107_v35 }
 0x114   : > { %v3257_v24 = vpop.f32.mrf.mxu3  ;;  %v3229_v1 = vadd.f32 %v3228_v23, %v3200_v19  ;;  %v3201_v25 = vpop.f32.mrf.mxu1  ;;  %v3173_v27 = vadd.f32 %v3172_v13, %v6710_v28  ;;  %v4688_v28 = vld [vmem:[%s7610_s0 + $0x3b0] sm:$0xf0]  ;;  %v4327_v13 = vor.u32 %v5817_v14, %v4326_v12  ;;  %3647 = vmatpush.bf16.msrb.mxu1 %v6092_v31  ;;  %v4584_v31 = vld [vmem:[%s7610_s0 + $0x2c8] sm:$0xf0] }
 0x115   : > { %v4691_v47 = vor.u32 %v5894_v37, %v4688_v28 }
 0x116   : > { %v6830_v29 = vadd.f32 %v3257_v24, %v3229_v1  ;;  %v3202_v33 = vadd.f32 %v3201_v25, %v3173_v27  ;;  %v4331_v25 = vor.u32 %v5801_v15, %v4328_v17  ;;  %v4574_v17 = vld [vmem:[%s7610_s0 + $0x240] sm:$0xf] }
 0x11b   : > { %v3230_v44 = vpop.f32.mrf.mxu2  ;;  %v3175_v26 = vpop.f32.mrf.mxu0 }
 0x11c   : > { %v3259_v45 = vpop.f32.mrf.mxu3  ;;  %v3231_v48 = vadd.f32 %v3230_v44, %v3202_v33  ;;  %v3204_v49 = vpop.f32.mrf.mxu1  ;;  %v3176_v54 = vadd.f32 %v3175_v26, %v6716_v41  ;;  %v6099_v33 = vld [vmem:[%s6251_s17 + $0x598] sm:$0xff]  ;;  %v5848_v44 = vld [vmem:[%s7610_s0 + $0x1bc] sm:$0xf0]  ;;  %v6106_v26 = vld [vmem:[%s6251_s17 + $0x5d0] sm:$0xff] }
 0x11d   : > { %3677 = vmatpush.bf16.msrb.mxu2 %v6099_v33  ;;  %3707 = vmatpush.bf16.msrb.mxu3 %v6106_v26  ;;  %v4447_v60 = vor.u32 %v5848_v44, %v4446_v43 }
 0x11e   : > { %v6861_v56 = vadd.f32 %v3259_v45, %v3231_v48  ;;  %v3205_v58 = vadd.f32 %v3204_v49, %v3176_v54  ;;  %3406 = vmatmul.bf16.gmra.mxu0 %v4687_v46  ;;  %v6091_v45 = vld [vmem:[%s6251_s17 + $0x558] sm:$0xff]  ;;  %v6082_v48 = vld [vmem:[%s6251_s17 + $0x510] sm:$0xff]  ;;  %v5832_v49 = vld [vmem:[%s7610_s0 + $0x144] sm:$0xf] }
 0x11f   : > { %3435 = vmatmul.bf16.gmra.mxu1 %v4691_v47  ;;  %v6098_v47 = vld [vmem:[%s6251_s17 + $0x590] sm:$0xff]  ;;  %v5833_v54 = vld [vmem:[%s7610_s0 + $0x14c] sm:$0xf]  ;;  %3620 = vmatpush.bf16.msrb.mxu0 %v6082_v48  ;;  %v6143_v48 = vld [vmem:[%s6251_s17 + $0x6f8] sm:$0xff] }
 0x120   : > { %3464 = vmatmul.bf16.gmra.mxu2 %v4695_v50  ;;  %v4454_v50 = vld [vmem:[%s7610_s0 + $0x148] sm:$0xf]  ;;  %3648 = vmatpush.bf16.msrb.mxu1 %v6091_v45 }
 0x121   : > { %3493 = vmatmul.bf16.gmra.mxu3 %v4699_v51  ;;  %v5849_v51 = vld [vmem:[%s7610_s0 + $0x1c4] sm:$0xf0]  ;;  %3678 = vmatpush.bf16.msrb.mxu2 %v6098_v47  ;;  %v6119_v47 = vld [vmem:[%s6251_s17 + $0x638] sm:$0xff] }
 0x122   : > { %3708 = vmatpush.bf16.msrb.mxu3 %v6105_v10 }
 0x123   : > { %v3233_v62 = vpop.f32.mrf.mxu2  ;;  %v3177_v63 = vpop.f32.mrf.mxu0  ;;  %3621 = vmatpush.bf16.msrb.mxu0 %v6081_v9 }
 0x124   : > { %v3262_v41 = vpop.f32.mrf.mxu3  ;;  %v3234_v53 = vadd.f32 %v3233_v62, %v3205_v58  ;;  %v3206_v0 = vpop.f32.mrf.mxu1  ;;  %v3178_v2 = vadd.f32 %v3177_v63, %v6747_v4  ;;  %v4320_v4 = vld [vmem:[%s7610_s0 + $0xc0] sm:$0xf0]  ;;  %v4455_v63 = vor.u32 %v5849_v51, %v4454_v50  ;;  %3649 = vmatpush.bf16.msrb.mxu1 %v6090_v6  ;;  %v4712_v6 = vld [vmem:[%s7610_s0 + $0x3c8] sm:$0xf0] }
 0x125   : > { %v4323_v22 = vor.u32 %v5800_v11, %v4320_v4 }
 0x126   : > { %v6868_v3 = vadd.f32 %v3262_v41, %v3234_v53  ;;  %v3207_v8 = vadd.f32 %v3206_v0, %v3178_v2  ;;  %v4459_v0 = vor.u32 %v5833_v54, %v4456_v57  ;;  %v4702_v57 = vld [vmem:[%s7610_s0 + $0x340] sm:$0xf] }
 0x12b   : > { %v3235_v19 = vpop.f32.mrf.mxu2  ;;  %v3276_v24 = vpop.f32.mrf.mxu0 }
 0x12c   : > { %v3264_v20 = vpop.f32.mrf.mxu3  ;;  %v3236_v23 = vadd.f32 %v3235_v19, %v3207_v8  ;;  %v3305_v1 = vpop.f32.mrf.mxu1  ;;  %v3277_v27 = vadd.f32 %v3276_v24, %v6754_v16  ;;  %v6097_v8 = vld [vmem:[%s6251_s17 + $0x588] sm:$0xff]  ;;  %v5880_v19 = vld [vmem:[%s7610_s0 + $0x2bc] sm:$0xf0] }
 0x12d   : > { %3679 = vmatpush.bf16.msrb.mxu2 %v6097_v8  ;;  %v6104_v24 = vld [vmem:[%s6251_s17 + $0x5c0] sm:$0xff]  ;;  %v4575_v34 = vor.u32 %v5880_v19, %v4574_v17  ;;  %v6126_v19 = vld [vmem:[%s6251_s17 + $0x670] sm:$0xff] }
 0x12e   : > { %v6899_v30 = vadd.f32 %v3264_v20, %v3236_v23  ;;  %v3306_v32 = vadd.f32 %v3305_v1, %v3277_v27  ;;  %3507 = vmatmul.bf16.vlgmr.msra.gmra.mxu0 %v4319_v21  ;;  %v6089_v20 = vld [vmem:[%s6251_s17 + $0x548] sm:$0xff]  ;;  %v6080_v23 = vld [vmem:[%s6251_s17 + $0x500] sm:$0xff]  ;;  %3709 = vmatpush.bf16.msrb.mxu3 %v6104_v24 }
 0x12f   : > { %3536 = vmatmul.bf16.vlgmr.msra.gmra.mxu1 %v4323_v22  ;;  %v6096_v22 = vld [vmem:[%s6251_s17 + $0x580] sm:$0xff]  ;;  %v5865_v27 = vld [vmem:[%s7610_s0 + $0x24c] sm:$0xf]  ;;  %3622 = vmatpush.bf16.msrb.mxu0 %v6080_v23 }
 0x130   : > { %3565 = vmatmul.bf16.vlgmr.msra.gmra.mxu2 %v4327_v13  ;;  %v4576_v1 = vld [vmem:[%s7610_s0 + $0x2c0] sm:$0xf0]  ;;  %v4582_v13 = vld [vmem:[%s7610_s0 + $0x248] sm:$0xf]  ;;  %3650 = vmatpush.bf16.msrb.mxu1 %v6089_v20 }
 0x131   : > { %3594 = vmatmul.bf16.vlgmr.msra.gmra.mxu3 %v4331_v25  ;;  %v5881_v25 = vld [vmem:[%s7610_s0 + $0x2c4] sm:$0xf0]  ;;  %3680 = vmatpush.bf16.msrb.mxu2 %v6096_v22 }
 0x132   : > { %3818 = vmatpush.bf16.msra.mxu3 %v6143_v48  ;;  %v6117_v22 = vld [vmem:[%s6251_s17 + $0x628] sm:$0xff] }
 0x133   : > { %v3334_v36 = vpop.f32.mrf.mxu2  ;;  %v3278_v28 = vpop.f32.mrf.mxu0  ;;  %3731 = vmatpush.bf16.msra.mxu0 %v6119_v47  ;;  %v6141_v23 = vld [vmem:[%s6251_s17 + $0x6e8] sm:$0xff] }
 0x134   : > { %v3363_v16 = vpop.f32.mrf.mxu3  ;;  %v3335_v37 = vadd.f32 %v3334_v36, %v3306_v32  ;;  %v3307_v38 = vpop.f32.mrf.mxu1  ;;  %v3279_v39 = vadd.f32 %v3278_v28, %v6785_v42  ;;  %v4448_v42 = vld [vmem:[%s7610_s0 + $0x1c0] sm:$0xf0] }
 0x135   : > { %v4451_v61 = vor.u32 %v5832_v49, %v4448_v42  ;;  %v6088_v36 = vld [vmem:[%s6251_s17 + $0x540] sm:$0xff] }
 0x136   : > { %v6906_v40 = vadd.f32 %v3363_v16, %v3335_v37  ;;  %v3308_v46 = vadd.f32 %v3307_v38, %v3279_v39  ;;  %v4583_v38 = vor.u32 %v5881_v25, %v4582_v13  ;;  %v4587_v39 = vor.u32 %v5865_v27, %v4584_v31  ;;  %3651 = vmatpush.bf16.msrb.mxu1 %v6088_v36  ;;  %v4334_v31 = vld [vmem:[%s7610_s0 + $0x50] sm:$0xf]  ;;  %v6116_v36 = vld [vmem:[%s6251_s17 + $0x620] sm:$0xff] }
 0x13b   : > { %v3336_v58 = vpop.f32.mrf.mxu2  ;;  %v3281_v41 = vpop.f32.mrf.mxu0 }
 0x13c   : > { %v3365_v59 = vpop.f32.mrf.mxu3  ;;  %v3337_v62 = vadd.f32 %v3336_v58, %v3308_v46  ;;  %v3310_v53 = vpop.f32.mrf.mxu1  ;;  %v3282_v2 = vadd.f32 %v3281_v41, %v6792_v55  ;;  %v6135_v46 = vld [vmem:[%s6251_s17 + $0x6b8] sm:$0xff]  ;;  %v5912_v58 = vld [vmem:[%s7610_s0 + $0x3bc] sm:$0xf0]  ;;  %v6142_v41 = vld [vmem:[%s6251_s17 + $0x6f0] sm:$0xff] }
 0x13d   : > { %3789 = vmatpush.bf16.msra.mxu2 %v6135_v46  ;;  %3819 = vmatpush.bf16.msra.mxu3 %v6142_v41  ;;  %v4703_v9 = vor.u32 %v5912_v58, %v4702_v57  ;;  %v6124_v58 = vld [vmem:[%s6251_s17 + $0x660] sm:$0xff] }
 0x13e   : > { %v6937_v5 = vadd.f32 %v3365_v59, %v3337_v62  ;;  %v3311_v7 = vadd.f32 %v3310_v53, %v3282_v2  ;;  %3512 = vmatmul.bf16.gmra.mxu0 %v4447_v60  ;;  %v6127_v59 = vld [vmem:[%s6251_s17 + $0x678] sm:$0xff]  ;;  %v6118_v62 = vld [vmem:[%s6251_s17 + $0x630] sm:$0xff]  ;;  %v5896_v53 = vld [vmem:[%s7610_s0 + $0x344] sm:$0xf] }
 0x13f   : > { %3541 = vmatmul.bf16.gmra.mxu1 %v4451_v61  ;;  %v6134_v61 = vld [vmem:[%s6251_s17 + $0x6b0] sm:$0xff]  ;;  %v5897_v2 = vld [vmem:[%s7610_s0 + $0x34c] sm:$0xf]  ;;  %3732 = vmatpush.bf16.msra.mxu0 %v6118_v62  ;;  %v6139_v62 = vld [vmem:[%s6251_s17 + $0x6d8] sm:$0xff] }
 0x140   : > { %3570 = vmatmul.bf16.gmra.mxu2 %v4455_v63  ;;  %v4710_v63 = vld [vmem:[%s7610_s0 + $0x348] sm:$0xf]  ;;  %3760 = vmatpush.bf16.msra.mxu1 %v6127_v59 }
 0x141   : > { %3599 = vmatmul.bf16.gmra.mxu3 %v4459_v0  ;;  %v5913_v0 = vld [vmem:[%s7610_s0 + $0x3c4] sm:$0xf0]  ;;  %3790 = vmatpush.bf16.msra.mxu2 %v6134_v61  ;;  %v6115_v61 = vld [vmem:[%s6251_s17 + $0x618] sm:$0xff] }
 0x142   : > { %3820 = vmatpush.bf16.msra.mxu3 %v6141_v23 }
 0x143   : > { %v3339_v52 = vpop.f32.mrf.mxu2  ;;  %v3283_v4 = vpop.f32.mrf.mxu0  ;;  %3733 = vmatpush.bf16.msra.mxu0 %v6117_v22 }
 0x144   : > { %v3368_v55 = vpop.f32.mrf.mxu3  ;;  %v3340_v11 = vadd.f32 %v3339_v52, %v3311_v7  ;;  %v3312_v12 = vpop.f32.mrf.mxu1  ;;  %v3284_v14 = vadd.f32 %v3283_v4, %v6824_v18  ;;  %v5864_v18 = vld [vmem:[%s7610_s0 + $0x244] sm:$0xf]  ;;  %v4711_v4 = vor.u32 %v5913_v0, %v4710_v63  ;;  %3761 = vmatpush.bf16.msra.mxu1 %v6126_v19  ;;  %v4472_v19 = vld [vmem:[%s7610_s0 + $0x1d8] sm:$0xf0] }
 0x145   : > { %v4579_v35 = vor.u32 %v5864_v18, %v4576_v1 }
 0x146   : > { %v6944_v15 = vadd.f32 %v3368_v55, %v3340_v11  ;;  %v3313_v21 = vadd.f32 %v3312_v12, %v3284_v14  ;;  %v4715_v12 = vor.u32 %v5897_v2, %v4712_v6  ;;  %v4462_v6 = vld [vmem:[%s7610_s0 + $0x150] sm:$0xf] }
 0x147   : > { %3734 = vmatpush.bf16.msra.mxu0 %v6116_v36  ;;  %v6137_v36 = vld [vmem:[%s6251_s17 + $0x6c8] sm:$0xff] }
 0x14b   : > { %v3341_v32 = vpop.f32.mrf.mxu2  ;;  %v3286_v37 = vpop.f32.mrf.mxu0  ;;  %3735 = vmatpush.bf16.msra.mxu0 %v6115_v61 }
 0x14c   : > { %v3370_v33 = vpop.f32.mrf.mxu3  ;;  %v3342_v16 = vadd.f32 %v3341_v32, %v3313_v21  ;;  %v3315_v28 = vpop.f32.mrf.mxu1  ;;  %v3287_v43 = vadd.f32 %v3286_v37, %v6830_v29  ;;  %v6133_v21 = vld [vmem:[%s6251_s17 + $0x6a8] sm:$0xff]  ;;  %v5818_v32 = vld [vmem:[%s7610_s0 + $0xcc] sm:$0xf0]  ;;  %v5802_v37 = vld [vmem:[%s7610_s0 + $0x54] sm:$0xf] }
 0x14d   : > { %3791 = vmatpush.bf16.msra.mxu2 %v6133_v21  ;;  %v4335_v47 = vor.u32 %v5818_v32, %v4334_v31  ;;  %v6122_v32 = vld [vmem:[%s6251_s17 + $0x650] sm:$0xff] }
 0x14e   : > { %v6976_v44 = vadd.f32 %v3370_v33, %v3342_v16  ;;  %v3316_v45 = vadd.f32 %v3315_v28, %v3287_v43  ;;  %3517 = vmatmul.bf16.gmra.mxu0 %v4575_v34  ;;  %v6125_v33 = vld [vmem:[%s6251_s17 + $0x668] sm:$0xff]  ;;  %v6140_v16 = vld [vmem:[%s6251_s17 + $0x6e0] sm:$0xff]  ;;  %v4342_v28 = vld [vmem:[%s7610_s0 + $0x58] sm:$0xf] }
 0x14f   : > { %3546 = vmatmul.bf16.gmra.mxu1 %v4579_v35  ;;  %v6132_v35 = vld [vmem:[%s6251_s17 + $0x6a0] sm:$0xff]  ;;  %v4344_v43 = vld [vmem:[%s7610_s0 + $0xd8] sm:$0xf0]  ;;  %3821 = vmatpush.bf16.msra.mxu3 %v6140_v16 }
 0x150   : > { %3575 = vmatmul.bf16.gmra.mxu2 %v4583_v38  ;;  %3762 = vmatpush.bf16.msra.mxu1 %v6125_v33  ;;  %v5819_v38 = vld [vmem:[%s7610_s0 + $0xd4] sm:$0xf0] }
 0x151   : > { %3604 = vmatmul.bf16.gmra.mxu3 %v4587_v39  ;;  %v5803_v39 = vld [vmem:[%s7610_s0 + $0x5c] sm:$0xf]  ;;  %3792 = vmatpush.bf16.msra.mxu2 %v6132_v35  ;;  %v6113_v35 = vld [vmem:[%s6251_s17 + $0x608] sm:$0xff] }
 0x153   : > { %v3344_v26 = vpop.f32.mrf.mxu2  ;;  %v3288_v42 = vpop.f32.mrf.mxu0  ;;  %3822 = vmatpush.bf16.msra.mxu3 %v6139_v62 }
 0x154   : > { %v3373_v49 = vpop.f32.mrf.mxu3  ;;  %v3345_v29 = vadd.f32 %v3344_v26, %v3316_v45  ;;  %v3317_v50 = vpop.f32.mrf.mxu1  ;;  %v3289_v51 = vadd.f32 %v3288_v42, %v6861_v56  ;;  %v4704_v56 = vld [vmem:[%s7610_s0 + $0x3c0] sm:$0xf0]  ;;  %v4343_v42 = vor.u32 %v5819_v38, %v4342_v28  ;;  %3763 = vmatpush.bf16.msra.mxu1 %v6124_v58  ;;  %v4600_v58 = vld [vmem:[%s7610_s0 + $0x2d8] sm:$0xf0] }
 0x155   : > { %v4707_v10 = vor.u32 %v5896_v53, %v4704_v56 }
 0x156   : > { %v6982_v54 = vadd.f32 %v3373_v49, %v3345_v29  ;;  %v3318_v60 = vadd.f32 %v3317_v50, %v3289_v51  ;;  %v4347_v50 = vor.u32 %v5803_v39, %v4344_v43  ;;  %v4590_v43 = vld [vmem:[%s7610_s0 + $0x250] sm:$0xf] }
 0x15b   : > { %v3346_v7 = vpop.f32.mrf.mxu2  ;;  %v3291_v55 = vpop.f32.mrf.mxu0 }
 0x15c   : > { %v3375_v8 = vpop.f32.mrf.mxu3  ;;  %v3347_v52 = vadd.f32 %v3346_v7, %v3318_v60  ;;  %v3320_v11 = vpop.f32.mrf.mxu1  ;;  %v3292_v14 = vadd.f32 %v3291_v55, %v6868_v3  ;;  %v6131_v60 = vld [vmem:[%s6251_s17 + $0x698] sm:$0xff]  ;;  %v5850_v7 = vld [vmem:[%s7610_s0 + $0x1cc] sm:$0xf0] }
 0x15d   : > { %3793 = vmatpush.bf16.msra.mxu2 %v6131_v60  ;;  %v6138_v55 = vld [vmem:[%s6251_s17 + $0x6d0] sm:$0xff]  ;;  %v4463_v22 = vor.u32 %v5850_v7, %v4462_v6 }
 0x15e   : > { %v7013_v17 = vadd.f32 %v3375_v8, %v3347_v52  ;;  %v3321_v20 = vadd.f32 %v3320_v11, %v3292_v14  ;;  %3522 = vmatmul.bf16.gmra.mxu0 %v4703_v9  ;;  %v6123_v8 = vld [vmem:[%s6251_s17 + $0x658] sm:$0xff]  ;;  %v6114_v52 = vld [vmem:[%s6251_s17 + $0x610] sm:$0xff]  ;;  %3823 = vmatpush.bf16.msra.mxu3 %v6138_v55 }
 0x15f   : > { %3551 = vmatmul.bf16.gmra.mxu1 %v4707_v10  ;;  %v6130_v10 = vld [vmem:[%s6251_s17 + $0x690] sm:$0xff]  ;;  %v5835_v14 = vld [vmem:[%s7610_s0 + $0x15c] sm:$0xf]  ;;  %3736 = vmatpush.bf16.msra.mxu0 %v6114_v52 }
 0x160   : > { %3580 = vmatmul.bf16.gmra.mxu2 %v4711_v4  ;;  %v5834_v11 = vld [vmem:[%s7610_s0 + $0x154] sm:$0xf]  ;;  %v4470_v4 = vld [vmem:[%s7610_s0 + $0x158] sm:$0xf]  ;;  %3764 = vmatpush.bf16.msra.mxu1 %v6123_v8 }
 0x161   : > { %3609 = vmatmul.bf16.gmra.mxu3 %v4715_v12  ;;  %v5851_v12 = vld [vmem:[%s7610_s0 + $0x1d4] sm:$0xf0]  ;;  %3794 = vmatpush.bf16.msra.mxu2 %v6130_v10 }
 0x162   : > { %3824 = vmatpush.bf16.msra.mxu3 %v6137_v36  ;;  %v6151_v10 = vld [vmem:[%s6251_s17 + $0x738] sm:$0xff] }
 0x163   : > { %v3349_v24 = vpop.f32.mrf.mxu2  ;;  %v3293_v1 = vpop.f32.mrf.mxu0  ;;  %3737 = vmatpush.bf16.msra.mxu0 %v6113_v35  ;;  %v6175_v52 = vld [vmem:[%s6251_s17 + $0x7f8] sm:$0xff] }
 0x164   : > { %v3378_v3 = vpop.f32.mrf.mxu3  ;;  %v3350_v18 = vadd.f32 %v3349_v24, %v3321_v20  ;;  %v3322_v13 = vpop.f32.mrf.mxu1  ;;  %v3294_v25 = vadd.f32 %v3293_v1, %v6899_v30  ;;  %v4336_v30 = vld [vmem:[%s7610_s0 + $0xd0] sm:$0xf0]  ;;  %v4471_v1 = vor.u32 %v5851_v12, %v4470_v4  ;;  %3765 = vmatpush.bf16.msra.mxu1 %v6122_v32  ;;  %v4728_v32 = vld [vmem:[%s7610_s0 + $0x3d8] sm:$0xf0] }
 0x165   : > { %v4339_v48 = vor.u32 %v5802_v37, %v4336_v30 }
 0x166   : > { %v7020_v27 = vadd.f32 %v3378_v3, %v3350_v18  ;;  %v3323_v34 = vadd.f32 %v3322_v13, %v3294_v25  ;;  %v4475_v13 = vor.u32 %v5835_v14, %v4472_v19  ;;  %v4718_v19 = vld [vmem:[%s7610_s0 + $0x350] sm:$0xf] }
 0x16b   : > { %v3351_v45 = vpop.f32.mrf.mxu2  ;;  %v3392_v49 = vpop.f32.mrf.mxu0 }
 0x16c   : > { %v3380_v46 = vpop.f32.mrf.mxu3  ;;  %v3352_v26 = vadd.f32 %v3351_v45, %v3323_v34  ;;  %v3421_v29 = vpop.f32.mrf.mxu1  ;;  %v3393_v51 = vadd.f32 %v3392_v49, %v6906_v40  ;;  %v6129_v34 = vld [vmem:[%s6251_s17 + $0x688] sm:$0xff]  ;;  %v5882_v45 = vld [vmem:[%s7610_s0 + $0x2cc] sm:$0xf0]  ;;  %v6136_v49 = vld [vmem:[%s6251_s17 + $0x6c0] sm:$0xff] }
 0x16d   : > { %3795 = vmatpush.bf16.msra.mxu2 %v6129_v34  ;;  %3825 = vmatpush.bf16.msra.mxu3 %v6136_v49  ;;  %v4591_v61 = vor.u32 %v5882_v45, %v4590_v43  ;;  %v6158_v45 = vld [vmem:[%s6251_s17 + $0x770] sm:$0xff] }
 0x16e   : > { %v7051_v57 = vadd.f32 %v3380_v46, %v3352_v26  ;;  %v3422_v59 = vadd.f32 %v3421_v29, %v3393_v51  ;;  %3623 = vmatmul.bf16.vlgmr.msrb.gmra.mxu0 %v4335_v47  ;;  %v6121_v46 = vld [vmem:[%s6251_s17 + $0x648] sm:$0xff]  ;;  %v6112_v26 = vld [vmem:[%s6251_s17 + $0x600] sm:$0xff]  ;;  %v4592_v29 = vld [vmem:[%s7610_s0 + $0x2d0] sm:$0xf0] }
 0x16f   : > { %3652 = vmatmul.bf16.vlgmr.msrb.gmra.mxu1 %v4339_v48  ;;  %v6128_v48 = vld [vmem:[%s6251_s17 + $0x680] sm:$0xff]  ;;  %v5867_v51 = vld [vmem:[%s7610_s0 + $0x25c] sm:$0xf]  ;;  %3738 = vmatpush.bf16.msra.mxu0 %v6112_v26  ;;  %v6173_v26 = vld [vmem:[%s6251_s17 + $0x7e8] sm:$0xff] }
 0x170   : > { %3681 = vmatmul.bf16.vlgmr.msrb.gmra.mxu2 %v4343_v42  ;;  %v4598_v42 = vld [vmem:[%s7610_s0 + $0x258] sm:$0xf]  ;;  %3766 = vmatpush.bf16.msra.mxu1 %v6121_v46 }
 0x171   : > { %3710 = vmatmul.bf16.vlgmr.msrb.gmra.mxu3 %v4347_v50  ;;  %v5883_v50 = vld [vmem:[%s7610_s0 + $0x2d4] sm:$0xf0]  ;;  %3796 = vmatpush.bf16.msra.mxu2 %v6128_v48  ;;  %v6149_v48 = vld [vmem:[%s6251_s17 + $0x728] sm:$0xff] }
 0x172   : > { %3934 = vmatpush.bf16.msrb.mxu3 %v6175_v52 }
 0x173   : > { %v3450_v41 = vpop.f32.mrf.mxu2  ;;  %v3394_v56 = vpop.f32.mrf.mxu0  ;;  %3847 = vmatpush.bf16.msrb.mxu0 %v6151_v10 }
 0x174   : > { %v3479_v40 = vpop.f32.mrf.mxu3  ;;  %v3451_v53 = vadd.f32 %v3450_v41, %v3422_v59  ;;  %v3423_v63 = vpop.f32.mrf.mxu1  ;;  %v3395_v0 = vadd.f32 %v3394_v56, %v6937_v5  ;;  %v4464_v5 = vld [vmem:[%s7610_s0 + $0x1d0] sm:$0xf0]  ;;  %v6120_v41 = vld [vmem:[%s6251_s17 + $0x640] sm:$0xff] }
 0x175   : > { %v4467_v23 = vor.u32 %v5834_v11, %v4464_v5  ;;  %3767 = vmatpush.bf16.msra.mxu1 %v6120_v41  ;;  %v6148_v41 = vld [vmem:[%s6251_s17 + $0x720] sm:$0xff] }
 0x176   : > { %v7058_v2 = vadd.f32 %v3479_v40, %v3451_v53  ;;  %v3424_v9 = vadd.f32 %v3423_v63, %v3395_v0  ;;  %v4599_v63 = vor.u32 %v5883_v50, %v4598_v42  ;;  %v4603_v0 = vor.u32 %v5867_v51, %v4600_v58  ;;  %v4350_v58 = vld [vmem:[%s7610_s0 + $0x60] sm:$0xf] }
 0x17b   : > { %v3452_v20 = vpop.f32.mrf.mxu2  ;;  %v3397_v3 = vpop.f32.mrf.mxu0 }
 0x17c   : > { %v3481_v21 = vpop.f32.mrf.mxu3  ;;  %v3453_v24 = vadd.f32 %v3452_v20, %v3424_v9  ;;  %v3426_v18 = vpop.f32.mrf.mxu1  ;;  %v3398_v25 = vadd.f32 %v3397_v3, %v6944_v15  ;;  %v6167_v9 = vld [vmem:[%s6251_s17 + $0x7b8] sm:$0xff]  ;;  %v5914_v20 = vld [vmem:[%s7610_s0 + $0x3cc] sm:$0xf0] }
 0x17d   : > { %3905 = vmatpush.bf16.msrb.mxu2 %v6167_v9  ;;  %v6174_v3 = vld [vmem:[%s6251_s17 + $0x7f0] sm:$0xff]  ;;  %v4719_v35 = vor.u32 %v5914_v20, %v4718_v19  ;;  %v6156_v20 = vld [vmem:[%s6251_s17 + $0x760] sm:$0xff] }
 0x17e   : > { %v7089_v31 = vadd.f32 %v3481_v21, %v3453_v24  ;;  %v3427_v33 = vadd.f32 %v3426_v18, %v3398_v25  ;;  %3628 = vmatmul.bf16.gmra.mxu0 %v4463_v22  ;;  %v6159_v21 = vld [vmem:[%s6251_s17 + $0x778] sm:$0xff]  ;;  %v6150_v24 = vld [vmem:[%s6251_s17 + $0x730] sm:$0xff]  ;;  %3935 = vmatpush.bf16.msrb.mxu3 %v6174_v3 }
 0x17f   : > { %3657 = vmatmul.bf16.gmra.mxu1 %v4467_v23  ;;  %v6166_v23 = vld [vmem:[%s6251_s17 + $0x7b0] sm:$0xff]  ;;  %v5899_v25 = vld [vmem:[%s7610_s0 + $0x35c] sm:$0xf]  ;;  %3848 = vmatpush.bf16.msrb.mxu0 %v6150_v24 }
 0x180   : > { %3686 = vmatmul.bf16.gmra.mxu2 %v4471_v1  ;;  %v5898_v18 = vld [vmem:[%s7610_s0 + $0x354] sm:$0xf]  ;;  %v4726_v1 = vld [vmem:[%s7610_s0 + $0x358] sm:$0xf]  ;;  %3876 = vmatpush.bf16.msrb.mxu1 %v6159_v21 }
 0x181   : > { %3715 = vmatmul.bf16.gmra.mxu3 %v4475_v13  ;;  %v5915_v13 = vld [vmem:[%s7610_s0 + $0x3d4] sm:$0xf0]  ;;  %3906 = vmatpush.bf16.msrb.mxu2 %v6166_v23 }
 0x182   : > { %3936 = vmatpush.bf16.msrb.mxu3 %v6173_v26  ;;  %v6147_v23 = vld [vmem:[%s6251_s17 + $0x718] sm:$0xff] }
 0x183   : > { %v3455_v16 = vpop.f32.mrf.mxu2  ;;  %v3399_v30 = vpop.f32.mrf.mxu0  ;;  %3849 = vmatpush.bf16.msrb.mxu0 %v6149_v48  ;;  %v6171_v24 = vld [vmem:[%s6251_s17 + $0x7d8] sm:$0xff] }
 0x184   : > { %v3484_v15 = vpop.f32.mrf.mxu3  ;;  %v3456_v37 = vadd.f32 %v3455_v16, %v3427_v33  ;;  %v3428_v28 = vpop.f32.mrf.mxu1  ;;  %v3400_v38 = vadd.f32 %v3399_v30, %v6976_v44  ;;  %v5866_v44 = vld [vmem:[%s7610_s0 + $0x254] sm:$0xf]  ;;  %v4727_v30 = vor.u32 %v5915_v13, %v4726_v1  ;;  %3877 = vmatpush.bf16.msrb.mxu1 %v6158_v45  ;;  %v4488_v45 = vld [vmem:[%s7610_s0 + $0x1e8] sm:$0xf0] }
 0x185   : > { %v4595_v62 = vor.u32 %v5866_v44, %v4592_v29 }
 0x186   : > { %v7096_v39 = vadd.f32 %v3484_v15, %v3456_v37  ;;  %v3429_v47 = vadd.f32 %v3428_v28, %v3400_v38  ;;  %v4731_v28 = vor.u32 %v5899_v25, %v4728_v32  ;;  %v4478_v32 = vld [vmem:[%s7610_s0 + $0x160] sm:$0xf] }
 0x187   : > { %3850 = vmatpush.bf16.msrb.mxu0 %v6148_v41  ;;  %v6169_v41 = vld [vmem:[%s6251_s17 + $0x7c8] sm:$0xff] }
 0x18b   : > { %v3457_v59 = vpop.f32.mrf.mxu2  ;;  %v3402_v53 = vpop.f32.mrf.mxu0  ;;  %3851 = vmatpush.bf16.msrb.mxu0 %v6147_v23 }
 0x18c   : > { %v3486_v60 = vpop.f32.mrf.mxu3  ;;  %v3458_v40 = vadd.f32 %v3457_v59, %v3429_v47  ;;  %v3431_v56 = vpop.f32.mrf.mxu1  ;;  %v3403_v6 = vadd.f32 %v3402_v53, %v6982_v54  ;;  %v6165_v47 = vld [vmem:[%s6251_s17 + $0x7a8] sm:$0xff]  ;;  %v5820_v59 = vld [vmem:[%s7610_s0 + $0xdc] sm:$0xf0]  ;;  %v5804_v53 = vld [vmem:[%s7610_s0 + $0x64] sm:$0xf] }
 0x18d   : > { %3907 = vmatpush.bf16.msrb.mxu2 %v6165_v47  ;;  %v4351_v10 = vor.u32 %v5820_v59, %v4350_v58  ;;  %v6154_v59 = vld [vmem:[%s6251_s17 + $0x750] sm:$0xff] }
 0x18e   : > { %v7128_v7 = vadd.f32 %v3486_v60, %v3458_v40  ;;  %v3432_v8 = vadd.f32 %v3431_v56, %v3403_v6  ;;  %3633 = vmatmul.bf16.gmra.mxu0 %v4591_v61  ;;  %v6157_v60 = vld [vmem:[%s6251_s17 + $0x768] sm:$0xff]  ;;  %v6172_v40 = vld [vmem:[%s6251_s17 + $0x7e0] sm:$0xff] }
 0x18f   : > { %3662 = vmatmul.bf16.gmra.mxu1 %v4595_v62  ;;  %v6164_v62 = vld [vmem:[%s6251_s17 + $0x7a0] sm:$0xff]  ;;  %v4358_v56 = vld [vmem:[%s7610_s0 + $0x68] sm:$0xf]  ;;  %v4360_v6 = vld [vmem:[%s7610_s0 + $0xe8] sm:$0xf0]  ;;  %3937 = vmatpush.bf16.msrb.mxu3 %v6172_v40 }
 0x190   : > { %3691 = vmatmul.bf16.gmra.mxu2 %v4599_v63  ;;  %3878 = vmatpush.bf16.msrb.mxu1 %v6157_v60  ;;  %v5821_v63 = vld [vmem:[%s7610_s0 + $0xe4] sm:$0xf0] }
 0x191   : > { %3720 = vmatmul.bf16.gmra.mxu3 %v4603_v0  ;;  %v5805_v0 = vld [vmem:[%s7610_s0 + $0x6c] sm:$0xf]  ;;  %3908 = vmatpush.bf16.msrb.mxu2 %v6164_v62 }
 0x192   : > { %v6145_v62 = vld [vmem:[%s6251_s17 + $0x708] sm:$0xff] }
 0x193   : > { %v3460_v55 = vpop.f32.mrf.mxu2  ;;  %v3404_v5 = vpop.f32.mrf.mxu0  ;;  %3938 = vmatpush.bf16.msrb.mxu3 %v6171_v24 }
 0x194   : > { %v3489_v11 = vpop.f32.mrf.mxu3  ;;  %v3461_v54 = vadd.f32 %v3460_v55, %v3432_v8  ;;  %v3433_v4 = vpop.f32.mrf.mxu1  ;;  %v3405_v12 = vadd.f32 %v3404_v5, %v7013_v17  ;;  %v4720_v17 = vld [vmem:[%s7610_s0 + $0x3d0] sm:$0xf0]  ;;  %v4359_v5 = vor.u32 %v5821_v63, %v4358_v56  ;;  %3879 = vmatpush.bf16.msrb.mxu1 %v6156_v20  ;;  %v4616_v20 = vld [vmem:[%s7610_s0 + $0x2e8] sm:$0xf0] }
 0x195   : > { %v4723_v36 = vor.u32 %v5898_v18, %v4720_v17 }
 0x196   : > { %v7134_v14 = vadd.f32 %v3489_v11, %v3461_v54  ;;  %v3434_v22 = vadd.f32 %v3433_v4, %v3405_v12  ;;  %v4363_v4 = vor.u32 %v5805_v0, %v4360_v6  ;;  %v4606_v6 = vld [vmem:[%s7610_s0 + $0x260] sm:$0xf] }
 0x19b   : > { %v3462_v33 = vpop.f32.mrf.mxu2  ;;  %v3407_v15 = vpop.f32.mrf.mxu0 }
 0x19c   : > { %v3491_v34 = vpop.f32.mrf.mxu3  ;;  %v3463_v16 = vadd.f32 %v3462_v33, %v3434_v22  ;;  %v3436_v37 = vpop.f32.mrf.mxu1  ;;  %v3408_v38 = vadd.f32 %v3407_v15, %v7020_v27  ;;  %v6163_v22 = vld [vmem:[%s6251_s17 + $0x798] sm:$0xff]  ;;  %v5852_v33 = vld [vmem:[%s7610_s0 + $0x1dc] sm:$0xf0]  ;;  %v6170_v15 = vld [vmem:[%s6251_s17 + $0x7d0] sm:$0xff] }
 0x19d   : > { %3909 = vmatpush.bf16.msrb.mxu2 %v6163_v22  ;;  %3939 = vmatpush.bf16.msrb.mxu3 %v6170_v15  ;;  %v4479_v48 = vor.u32 %v5852_v33, %v4478_v32 }
 0x19e   : > { %v7165_v43 = vadd.f32 %v3491_v34, %v3463_v16  ;;  %v3437_v46 = vadd.f32 %v3436_v37, %v3408_v38  ;;  %3638 = vmatmul.bf16.gmra.mxu0 %v4719_v35  ;;  %v6155_v34 = vld [vmem:[%s6251_s17 + $0x758] sm:$0xff]  ;;  %v6146_v16 = vld [vmem:[%s6251_s17 + $0x710] sm:$0xff]  ;;  %v5836_v37 = vld [vmem:[%s7610_s0 + $0x164] sm:$0xf] }
 0x19f   : > { %3667 = vmatmul.bf16.gmra.mxu1 %v4723_v36  ;;  %v6162_v36 = vld [vmem:[%s6251_s17 + $0x790] sm:$0xff]  ;;  %v5837_v38 = vld [vmem:[%s7610_s0 + $0x16c] sm:$0xf]  ;;  %3852 = vmatpush.bf16.msrb.mxu0 %v6146_v16 }
 0x1a0   : > { %3696 = vmatmul.bf16.gmra.mxu2 %v4727_v30  ;;  %v4486_v30 = vld [vmem:[%s7610_s0 + $0x168] sm:$0xf]  ;;  %3880 = vmatpush.bf16.msrb.mxu1 %v6155_v34 }
 0x1a1   : > { %3725 = vmatmul.bf16.gmra.mxu3 %v4731_v28  ;;  %v5853_v28 = vld [vmem:[%s7610_s0 + $0x1e4] sm:$0xf0]  ;;  %3910 = vmatpush.bf16.msrb.mxu2 %v6162_v36 }
 0x1a2   : > { %3940 = vmatpush.bf16.msrb.mxu3 %v6169_v41 }
 0x1a3   : > { %v3465_v49 = vpop.f32.mrf.mxu2  ;;  %v3409_v29 = vpop.f32.mrf.mxu0  ;;  %3853 = vmatpush.bf16.msrb.mxu0 %v6145_v62 }
 0x1a4   : > { %v3494_v27 = vpop.f32.mrf.mxu3  ;;  %v3466_v44 = vadd.f32 %v3465_v49, %v3437_v46  ;;  %v3438_v42 = vpop.f32.mrf.mxu1  ;;  %v3410_v50 = vadd.f32 %v3409_v29, %v7051_v57  ;;  %v4352_v57 = vld [vmem:[%s7610_s0 + $0xe0] sm:$0xf0]  ;;  %v4487_v29 = vor.u32 %v5853_v28, %v4486_v30  ;;  %3881 = vmatpush.bf16.msrb.mxu1 %v6154_v59 }
 0x1a5   : > { %v4355_v52 = vor.u32 %v5804_v53, %v4352_v57 }
 0x1a6   : > { %v7172_v51 = vadd.f32 %v3494_v27, %v3466_v44  ;;  %v3439_v61 = vadd.f32 %v3438_v42, %v3410_v50  ;;  %v4491_v42 = vor.u32 %v5837_v38, %v4488_v45  ;;  %v5916_v38 = vld [vmem:[%s7610_s0 + $0x3dc] sm:$0xf0]  ;;  %v5900_v45 = vld [vmem:[%s7610_s0 + $0x364] sm:$0xf] }
 0x1ab   : > { %v3467_v8 = vpop.f32.mrf.mxu2  ;;  %v3508_v11 = vpop.f32.mrf.mxu0 }
 0x1ac   : > { %v3496_v9 = vpop.f32.mrf.mxu3  ;;  %v3468_v55 = vadd.f32 %v3467_v8, %v3439_v61  ;;  %v3537_v54 = vpop.f32.mrf.mxu1  ;;  %v3509_v12 = vadd.f32 %v3508_v11, %v7058_v2  ;;  %v6161_v61 = vld [vmem:[%s6251_s17 + $0x788] sm:$0xff]  ;;  %v5884_v8 = vld [vmem:[%s7610_s0 + $0x2dc] sm:$0xf0] }
 0x1ad   : > { %3911 = vmatpush.bf16.msrb.mxu2 %v6161_v61  ;;  %v6168_v11 = vld [vmem:[%s6251_s17 + $0x7c0] sm:$0xff]  ;;  %v4607_v23 = vor.u32 %v5884_v8, %v4606_v6 }
 0x1ae   : > { %v7203_v19 = vadd.f32 %v3496_v9, %v3468_v55  ;;  %v3538_v21 = vadd.f32 %v3537_v54, %v3509_v12  ;;  %3739 = vmatmul.bf16.vlgmr.msra.gmra.mxu0 %v4351_v10  ;;  %v6153_v9 = vld [vmem:[%s6251_s17 + $0x748] sm:$0xff]  ;;  %v6144_v55 = vld [vmem:[%s6251_s17 + $0x700] sm:$0xff]  ;;  %3941 = vmatpush.bf16.msrb.mxu3 %v6168_v11  ;;  %v5823_v11 = vld [vmem:[%s7610_s0 + $0xf4] sm:$0xf0] }
 0x1af   : > { %3768 = vmatmul.bf16.vlgmr.msra.gmra.mxu1 %v4355_v52  ;;  %v6160_v52 = vld [vmem:[%s6251_s17 + $0x780] sm:$0xff]  ;;  %v5869_v12 = vld [vmem:[%s7610_s0 + $0x26c] sm:$0xf]  ;;  %3854 = vmatpush.bf16.msrb.mxu0 %v6144_v55  ;;  %v4368_v55 = vld [vmem:[%s7610_s0 + $0xf0] sm:$0xf0] }
 0x1b0   : > { %3797 = vmatmul.bf16.vlgmr.msra.gmra.mxu2 %v4359_v5  ;;  %v4608_v54 = vld [vmem:[%s7610_s0 + $0x2e0] sm:$0xf0]  ;;  %v4614_v5 = vld [vmem:[%s7610_s0 + $0x268] sm:$0xf]  ;;  %3882 = vmatpush.bf16.msrb.mxu1 %v6153_v9 }
 0x1b1   : > { %3826 = vmatmul.bf16.vlgmr.msra.gmra.mxu3 %v4363_v4  ;;  %v5885_v4 = vld [vmem:[%s7610_s0 + $0x2e4] sm:$0xf0]  ;;  %3912 = vmatpush.bf16.msrb.mxu2 %v6160_v52  ;;  %v5806_v52 = vld [vmem:[%s7610_s0 + $0x74] sm:$0xf] }
 0x1b3   : > { %v3566_v3 = vpop.f32.mrf.mxu2  ;;  %v3510_v17 = vpop.f32.mrf.mxu0 }
 0x1b4   : > { %v3595_v2 = vpop.f32.mrf.mxu3  ;;  %v3567_v18 = vadd.f32 %v3566_v3, %v3538_v21  ;;  %v3539_v1 = vpop.f32.mrf.mxu1  ;;  %v3511_v13 = vadd.f32 %v3510_v17, %v7089_v31  ;;  %v4480_v31 = vld [vmem:[%s7610_s0 + $0x1e0] sm:$0xf0] }
 0x1b5   : > { %v4483_v26 = vor.u32 %v5836_v37, %v4480_v31  ;;  %v6152_v3 = vld [vmem:[%s6251_s17 + $0x740] sm:$0xff] }
 0x1b6   : > { %v7210_v25 = vadd.f32 %v3595_v2, %v3567_v18  ;;  %v3540_v35 = vadd.f32 %v3539_v1, %v3511_v13  ;;  %v4615_v1 = vor.u32 %v5885_v4, %v4614_v5  ;;  %v4619_v13 = vor.u32 %v5869_v12, %v4616_v20  ;;  %3883 = vmatpush.bf16.msrb.mxu1 %v6152_v3 }
 0x1b7   : > { %v4371_v20 = vor.u32 %v5806_v52, %v4368_v55  ;;  %v4632_v52 = vld [vmem:[%s7610_s0 + $0x2f8] sm:$0xf0] }
 0x1bb   : > { %v3568_v46 = vpop.f32.mrf.mxu2  ;;  %v3513_v27 = vpop.f32.mrf.mxu0 }
 0x1bc   : > { %v3597_v47 = vpop.f32.mrf.mxu3  ;;  %v3569_v49 = vadd.f32 %v3568_v46, %v3540_v35  ;;  %v3542_v44 = vpop.f32.mrf.mxu1  ;;  %v3514_v50 = vadd.f32 %v3513_v27, %v7096_v39  ;;  %v4736_v46 = vld [vmem:[%s7610_s0 + $0x3e0] sm:$0xf0] }
 0x1be   : > { %v7241_v58 = vadd.f32 %v3597_v47, %v3569_v49  ;;  %v3543_v60 = vadd.f32 %v3542_v44, %v3514_v50  ;;  %3744 = vmatmul.bf16.gmra.mxu0 %v4479_v48  ;;  %v5917_v47 = vld [vmem:[%s7610_s0 + $0x3e4] sm:$0xf0]  ;;  %v5901_v48 = vld [vmem:[%s7610_s0 + $0x36c] sm:$0xf] }
 0x1bf   : > { %3773 = vmatmul.bf16.gmra.mxu1 %v4483_v26  ;;  %v4744_v26 = vld [vmem:[%s7610_s0 + $0x3e8] sm:$0xf0] }
 0x1c0   : > { %3802 = vmatmul.bf16.gmra.mxu2 %v4487_v29  ;;  %v4739_v29 = vor.u32 %v5900_v45, %v4736_v46  ;;  %v4747_v61 = vor.u32 %v5901_v48, %v4744_v26  ;;  %v4504_v45 = vld [vmem:[%s7610_s0 + $0x1f8] sm:$0xf0] }
 0x1c1   : > { %3831 = vmatmul.bf16.gmra.mxu3 %v4491_v42 }
 0x1c3   : > { %v3571_v40 = vpop.f32.mrf.mxu2  ;;  %v3515_v57 = vpop.f32.mrf.mxu0 }
 0x1c4   : > { %v3600_v39 = vpop.f32.mrf.mxu3  ;;  %v3572_v53 = vadd.f32 %v3571_v40, %v3543_v60  ;;  %v3544_v56 = vpop.f32.mrf.mxu1  ;;  %v3516_v63 = vadd.f32 %v3515_v57, %v7128_v7  ;;  %v5868_v7 = vld [vmem:[%s7610_s0 + $0x264] sm:$0xf] }
 0x1c5   : > { %v4611_v24 = vor.u32 %v5868_v7, %v4608_v54  ;;  %v5807_v7 = vld [vmem:[%s7610_s0 + $0x7c] sm:$0xf] }
 0x1c6   : > { %v7248_v0 = vadd.f32 %v3600_v39, %v3572_v53  ;;  %v3545_v10 = vadd.f32 %v3544_v56, %v3516_v63  ;;  %v4376_v54 = vld [vmem:[%s7610_s0 + $0xf8] sm:$0xf0] }
 0x1c7   : > { %v4379_v3 = vor.u32 %v5807_v7, %v4376_v54 }
 0x1cb   : > { %v3573_v21 = vpop.f32.mrf.mxu2  ;;  %v3518_v18 = vpop.f32.mrf.mxu0 }
 0x1cc   : > { %v3602_v22 = vpop.f32.mrf.mxu3  ;;  %v3574_v2 = vadd.f32 %v3573_v21, %v3545_v10  ;;  %v3547_v17 = vpop.f32.mrf.mxu1  ;;  %v3519_v32 = vadd.f32 %v3518_v18, %v7134_v14  ;;  %v4734_v14 = vld [vmem:[%s7610_s0 + $0x360] sm:$0xf]  ;;  %v5822_v10 = vld [vmem:[%s7610_s0 + $0xec] sm:$0xf0] }
 0x1cd   : > { %v4735_v44 = vor.u32 %v5916_v38, %v4734_v14  ;;  %v5855_v14 = vld [vmem:[%s7610_s0 + $0x1f4] sm:$0xf0]  ;;  %v5839_v38 = vld [vmem:[%s7610_s0 + $0x17c] sm:$0xf] }
 0x1ce   : > { %v7280_v33 = vadd.f32 %v3602_v22, %v3574_v2  ;;  %v3548_v34 = vadd.f32 %v3547_v17, %v3519_v32  ;;  %3749 = vmatmul.bf16.gmra.mxu0 %v4607_v23 }
 0x1cf   : > { %3778 = vmatmul.bf16.gmra.mxu1 %v4611_v24 }
 0x1d0   : > { %3807 = vmatmul.bf16.gmra.mxu2 %v4615_v1 }
 0x1d1   : > { %3836 = vmatmul.bf16.gmra.mxu3 %v4619_v13 }
 0x1d3   : > { %v3576_v35 = vpop.f32.mrf.mxu2  ;;  %v3520_v15 = vpop.f32.mrf.mxu0 }
 0x1d4   : > { %v3605_v36 = vpop.f32.mrf.mxu3  ;;  %v3577_v16 = vadd.f32 %v3576_v35, %v3548_v34  ;;  %v3549_v37 = vpop.f32.mrf.mxu1  ;;  %v3521_v31 = vadd.f32 %v3520_v15, %v7165_v43  ;;  %v4742_v43 = vld [vmem:[%s7610_s0 + $0x368] sm:$0xf] }
 0x1d5   : > { %v4743_v60 = vor.u32 %v5917_v47, %v4742_v43 }
 0x1d6   : > { %v7283_v30 = vadd.f32 %v3605_v36, %v3577_v16  ;;  %v3550_v28 = vadd.f32 %v3549_v37, %v3521_v31  ;;  %v5854_v37 = vld [vmem:[%s7610_s0 + $0x1ec] sm:$0xf0]  ;;  %v5838_v31 = vld [vmem:[%s7610_s0 + $0x174] sm:$0xf] }
 0x1db   : > { %v3578_v49 = vpop.f32.mrf.mxu2  ;;  %v3523_v50 = vpop.f32.mrf.mxu0 }
 0x1dc   : > { %v3607_v27 = vpop.f32.mrf.mxu3  ;;  %v3579_v42 = vadd.f32 %v3578_v49, %v3550_v28  ;;  %v3552_v59 = vpop.f32.mrf.mxu1  ;;  %v3524_v62 = vadd.f32 %v3523_v50, %v7172_v51  ;;  %v4366_v51 = vld [vmem:[%s7610_s0 + $0x70] sm:$0xf]  ;;  %v4496_v28 = vld [vmem:[%s7610_s0 + $0x1f0] sm:$0xf0] }
 0x1dd   : > { %v4367_v12 = vor.u32 %v5822_v10, %v4366_v51  ;;  %v4499_v48 = vor.u32 %v5838_v31, %v4496_v28  ;;  %v5887_v51 = vld [vmem:[%s7610_s0 + $0x2f4] sm:$0xf0]  ;;  %v5871_v10 = vld [vmem:[%s7610_s0 + $0x27c] sm:$0xf] }
 0x1de   : > { %v7310_v41 = vadd.f32 %v3607_v27, %v3579_v42  ;;  %v3553_v40 = vadd.f32 %v3552_v59, %v3524_v62  ;;  %3754 = vmatmul.bf16.gmra.mxu0 %v4735_v44  ;;  %v4760_v31 = vld [vmem:[%s7610_s0 + $0x3f8] sm:$0xf0] }
 0x1df   : > { %3783 = vmatmul.bf16.gmra.mxu1 %v4739_v29  ;;  %v4507_v29 = vor.u32 %v5839_v38, %v4504_v45 }
 0x1e0   : > { %3812 = vmatmul.bf16.gmra.mxu2 %v4743_v60 }
 0x1e1   : > { %3841 = vmatmul.bf16.gmra.mxu3 %v4747_v61 }
 0x1e3   : > { %v3581_v39 = vpop.f32.mrf.mxu2  ;;  %v3525_v56 = vpop.f32.mrf.mxu0 }
 0x1e4   : > { %v3610_v53 = vpop.f32.mrf.mxu3  ;;  %v3582_v57 = vadd.f32 %v3581_v39, %v3553_v40  ;;  %v3554_v63 = vpop.f32.mrf.mxu1  ;;  %v3526_v6 = vadd.f32 %v3525_v56, %v7203_v19  ;;  %v4374_v19 = vld [vmem:[%s7610_s0 + $0x78] sm:$0xf] }
 0x1e5   : > { %v4375_v24 = vor.u32 %v5823_v11, %v4374_v19 }
 0x1e6   : > { %v7313_v8 = vadd.f32 %v3610_v53, %v3582_v57  ;;  %v3555_v9 = vadd.f32 %v3554_v63, %v3526_v6  ;;  %v5886_v63 = vld [vmem:[%s7610_s0 + $0x2ec] sm:$0xf0]  ;;  %v5870_v6 = vld [vmem:[%s7610_s0 + $0x274] sm:$0xf] }
 0x1eb   : > { %v3583_v5 = vpop.f32.mrf.mxu2  ;;  %v3624_v22 = vpop.f32.mrf.mxu0 }
 0x1ec   : > { %v3612_v4 = vpop.f32.mrf.mxu3  ;;  %v3584_v21 = vadd.f32 %v3583_v5, %v3555_v9  ;;  %v3653_v23 = vpop.f32.mrf.mxu1  ;;  %v3625_v2 = vadd.f32 %v3624_v22, %v7210_v25  ;;  %v4494_v25 = vld [vmem:[%s7610_s0 + $0x170] sm:$0xf]  ;;  %v4624_v9 = vld [vmem:[%s7610_s0 + $0x2f0] sm:$0xf0] }
 0x1ed   : > { %v4495_v47 = vor.u32 %v5854_v37, %v4494_v25  ;;  %v4627_v7 = vor.u32 %v5870_v6, %v4624_v9  ;;  %v5919_v25 = vld [vmem:[%s7610_s0 + $0x3f4] sm:$0xf0]  ;;  %v5903_v37 = vld [vmem:[%s7610_s0 + $0x37c] sm:$0xf] }
 0x1ee   : > { %v7340_v18 = vadd.f32 %v3612_v4, %v3584_v21  ;;  %v3654_v17 = vadd.f32 %v3653_v23, %v3625_v2  ;;  %3855 = vmatmul.bf16.vlgmr.msrb.gmra.mxu0 %v4367_v12 }
 0x1ef   : > { %3884 = vmatmul.bf16.vlgmr.msrb.gmra.mxu1 %v4371_v20  ;;  %v4635_v20 = vor.u32 %v5871_v10, %v4632_v52 }
 0x1f0   : > { %3913 = vmatmul.bf16.vlgmr.msrb.gmra.mxu2 %v4375_v24 }
 0x1f1   : > { %3942 = vmatmul.bf16.vlgmr.msrb.gmra.mxu3 %v4379_v3 }
 0x1f3   : > { %v3682_v1 = vpop.f32.mrf.mxu2  ;;  %v3626_v34 = vpop.f32.mrf.mxu0 }
 0x1f4   : > { %v3711_v13 = vpop.f32.mrf.mxu3  ;;  %v3683_v32 = vadd.f32 %v3682_v1, %v3654_v17  ;;  %v3655_v35 = vpop.f32.mrf.mxu1  ;;  %v3627_v36 = vadd.f32 %v3626_v34, %v7241_v58  ;;  %v4502_v58 = vld [vmem:[%s7610_s0 + $0x178] sm:$0xf] }
 0x1f5   : > { %v4503_v44 = vor.u32 %v5855_v14, %v4502_v58 }
 0x1f6   : > { %v7343_v16 = vadd.f32 %v3711_v13, %v3683_v32  ;;  %v3656_v15 = vadd.f32 %v3655_v35, %v3627_v36  ;;  %v5918_v35 = vld [vmem:[%s7610_s0 + $0x3ec] sm:$0xf0]  ;;  %v5902_v36 = vld [vmem:[%s7610_s0 + $0x374] sm:$0xf] }
 0x1fb   : > { %v3684_v46 = vpop.f32.mrf.mxu2  ;;  %v3629_v49 = vpop.f32.mrf.mxu0 }
 0x1fc   : > { %v3713_v43 = vpop.f32.mrf.mxu3  ;;  %v3685_v26 = vadd.f32 %v3684_v46, %v3656_v15  ;;  %v3658_v27 = vpop.f32.mrf.mxu1  ;;  %v3630_v42 = vadd.f32 %v3629_v49, %v7248_v0  ;;  %v4622_v0 = vld [vmem:[%s7610_s0 + $0x270] sm:$0xf]  ;;  %v4752_v15 = vld [vmem:[%s7610_s0 + $0x3f0] sm:$0xf0] }
 0x1fd   : > { %v4623_v11 = vor.u32 %v5886_v63, %v4622_v0  ;;  %v4755_v38 = vor.u32 %v5902_v36, %v4752_v15 }
 0x1fe   : > { %v7370_v50 = vadd.f32 %v3713_v43, %v3685_v26  ;;  %v3659_v59 = vadd.f32 %v3658_v27, %v3630_v42  ;;  %3860 = vmatmul.bf16.gmra.mxu0 %v4495_v47 }
 0x1ff   : > { %3889 = vmatmul.bf16.gmra.mxu1 %v4499_v48  ;;  %v4763_v48 = vor.u32 %v5903_v37, %v4760_v31 }
 0x200   : > { %3918 = vmatmul.bf16.gmra.mxu2 %v4503_v44 }
 0x201   : > { %3947 = vmatmul.bf16.gmra.mxu3 %v4507_v29 }
 0x203   : > { %v3687_v60 = vpop.f32.mrf.mxu2  ;;  %v3631_v40 = vpop.f32.mrf.mxu0 }
 0x204   : > { %v3716_v61 = vpop.f32.mrf.mxu3  ;;  %v3688_v62 = vadd.f32 %v3687_v60, %v3659_v59  ;;  %v3660_v39 = vpop.f32.mrf.mxu1  ;;  %v3632_v53 = vadd.f32 %v3631_v40, %v7280_v33  ;;  %v4630_v33 = vld [vmem:[%s7610_s0 + $0x278] sm:$0xf] }
 0x205   : > { %v4631_v12 = vor.u32 %v5887_v51, %v4630_v33 }
 0x206   : > { %v7373_v57 = vadd.f32 %v3716_v61, %v3688_v62  ;;  %v3661_v56 = vadd.f32 %v3660_v39, %v3632_v53 }
 0x20b   : > { %v3689_v55 = vpop.f32.mrf.mxu2  ;;  %v3634_v5 = vpop.f32.mrf.mxu0 }
 0x20c   : > { %v3718_v19 = vpop.f32.mrf.mxu3  ;;  %v3690_v54 = vadd.f32 %v3689_v55, %v3661_v56  ;;  %v3663_v4 = vpop.f32.mrf.mxu1  ;;  %v3635_v21 = vadd.f32 %v3634_v5, %v7283_v30  ;;  %v4750_v30 = vld [vmem:[%s7610_s0 + $0x370] sm:$0xf] }
 0x20d   : > { %v4751_v14 = vor.u32 %v5918_v35, %v4750_v30 }
 0x20e   : > { %v7400_v22 = vadd.f32 %v3718_v19, %v3690_v54  ;;  %v3664_v23 = vadd.f32 %v3663_v4, %v3635_v21  ;;  %3865 = vmatmul.bf16.gmra.mxu0 %v4623_v11 }
 0x20f   : > { %3894 = vmatmul.bf16.gmra.mxu1 %v4627_v7 }
 0x210   : > { %3923 = vmatmul.bf16.gmra.mxu2 %v4631_v12 }
 0x211   : > { %3952 = vmatmul.bf16.gmra.mxu3 %v4635_v20 }
 0x213   : > { %v3692_v24 = vpop.f32.mrf.mxu2  ;;  %v3636_v17 = vpop.f32.mrf.mxu0 }
 0x214   : > { %v3721_v3 = vpop.f32.mrf.mxu3  ;;  %v3693_v2 = vadd.f32 %v3692_v24, %v3664_v23  ;;  %v3665_v1 = vpop.f32.mrf.mxu1  ;;  %v3637_v13 = vadd.f32 %v3636_v17, %v7310_v41  ;;  %v4758_v41 = vld [vmem:[%s7610_s0 + $0x378] sm:$0xf] }
 0x215   : > { %v4759_v47 = vor.u32 %v5919_v25, %v4758_v41 }
 0x216   : > { %v7403_v32 = vadd.f32 %v3721_v3, %v3693_v2  ;;  %v3666_v34 = vadd.f32 %v3665_v1, %v3637_v13 }
 0x21b   : > { %v3694_v28 = vpop.f32.mrf.mxu2  ;;  %v3639_v46 = vpop.f32.mrf.mxu0 }
 0x21c   : > { %v3723_v58 = vpop.f32.mrf.mxu3  ;;  %v3695_v45 = vadd.f32 %v3694_v28, %v3666_v34  ;;  %v3668_v43 = vpop.f32.mrf.mxu1  ;;  %v3640_v26 = vadd.f32 %v3639_v46, %v7313_v8 }
 0x21e   : > { %v7430_v49 = vadd.f32 %v3723_v58, %v3695_v45  ;;  %v3669_v27 = vadd.f32 %v3668_v43, %v3640_v26  ;;  %3870 = vmatmul.bf16.gmra.mxu0 %v4751_v14 }
 0x21f   : > { %3899 = vmatmul.bf16.gmra.mxu1 %v4755_v38 }
 0x220   : > { %3928 = vmatmul.bf16.gmra.mxu2 %v4759_v47 }
 0x221   : > { %3957 = vmatmul.bf16.gmra.mxu3 %v4763_v48 }
 0x223   : > { %v3697_v44 = vpop.f32.mrf.mxu2  ;;  %v3641_v59 = vpop.f32.mrf.mxu0 }
 0x224   : > { %v3726_v29 = vpop.f32.mrf.mxu3  ;;  %v3698_v42 = vadd.f32 %v3697_v44, %v3669_v27  ;;  %v3670_v60 = vpop.f32.mrf.mxu1  ;;  %v3642_v61 = vadd.f32 %v3641_v59, %v7340_v18 }
 0x226   : > { %v7433_v62 = vadd.f32 %v3726_v29, %v3698_v42  ;;  %v3671_v40 = vadd.f32 %v3670_v60, %v3642_v61 }
 0x22b   : > { %v3699_v39 = vpop.f32.mrf.mxu2  ;;  %v3740_v56 = vpop.f32.mrf.mxu0 }
 0x22c   : > { %v3728_v53 = vpop.f32.mrf.mxu3  ;;  %v3700_v8 = vadd.f32 %v3699_v39, %v3671_v40  ;;  %v3769_v0 = vpop.f32.mrf.mxu1  ;;  %v3741_v34 = vadd.f32 %v3740_v56, %v7343_v16 }
 0x22e   : > { %v7435_v63 = vadd.f32 %v3728_v53, %v3700_v8  ;;  %v3770_v41 = vadd.f32 %v3769_v0, %v3741_v34 }
 0x233   : > { %v3798_v6 = vpop.f32.mrf.mxu2  ;;  %v3742_v33 = vpop.f32.mrf.mxu0 }
 0x234   : > { %v3827_v9 = vpop.f32.mrf.mxu3  ;;  %v3771_v51 = vpop.f32.mrf.mxu1  ;;  %v3799_v25 = vadd.f32 %v3798_v6, %v3770_v41  ;;  %v3743_v37 = vadd.f32 %v3742_v33, %v7370_v50 }
 0x236   : > { %v3828_v58 = vadd.f32 %v3827_v9, %v3799_v25  ;;  %v3772_v16 = vadd.f32 %v3771_v51, %v3743_v37 }
 0x23b   : > { %v3800_v10 = vpop.f32.mrf.mxu2  ;;  %v3745_v55 = vpop.f32.mrf.mxu0 }
 0x23c   : > { %v3829_v52 = vpop.f32.mrf.mxu3  ;;  %v3774_v19 = vpop.f32.mrf.mxu1  ;;  %v3801_v46 = vadd.f32 %v3800_v10, %v3772_v16  ;;  %v3746_v43 = vadd.f32 %v3745_v55, %v7373_v57 }
 0x23e   : > { %v3830_v27 = vadd.f32 %v3829_v52, %v3801_v46  ;;  %v3775_v50 = vadd.f32 %v3774_v19, %v3746_v43 }
 0x243   : > { %v3803_v11 = vpop.f32.mrf.mxu2  ;;  %v3747_v7 = vpop.f32.mrf.mxu0 }
 0x244   : > { %v3832_v18 = vpop.f32.mrf.mxu3  ;;  %v3776_v54 = vpop.f32.mrf.mxu1  ;;  %v3804_v61 = vadd.f32 %v3803_v11, %v3775_v50  ;;  %v3748_v39 = vadd.f32 %v3747_v7, %v7400_v22 }
 0x246   : > { %v3833_v56 = vadd.f32 %v3832_v18, %v3804_v61  ;;  %v3777_v33 = vadd.f32 %v3776_v54, %v3748_v39 }
 0x24b   : > { %v3805_v5 = vpop.f32.mrf.mxu2  ;;  %v3750_v12 = vpop.f32.mrf.mxu0 }
 0x24c   : > { %v3834_v4 = vpop.f32.mrf.mxu3  ;;  %v3779_v20 = vpop.f32.mrf.mxu1  ;;  %v3806_v52 = vadd.f32 %v3805_v5, %v3777_v33  ;;  %v3751_v19 = vadd.f32 %v3750_v12, %v7403_v32 }
 0x24e   : > { %v3835_v34 = vadd.f32 %v3834_v4, %v3806_v52  ;;  %v3780_v37 = vadd.f32 %v3779_v20, %v3751_v19 }
 0x253   : > { %v7437_v21 = vpop.f32.mrf.mxu2  ;;  %v7441_v24 = vpop.f32.mrf.mxu0 }
 0x254   : > { %v7439_v23 = vpop.f32.mrf.mxu3  ;;  %v7443_v3 = vpop.f32.mrf.mxu1  ;;  %v3753_v32 = vadd.f32 %v7441_v24, %v7430_v49 }
 0x256   : > { %v3782_v43 = vadd.f32 %v7443_v3, %v3753_v32 }
 0x25b   : > { %v7445_v2 = vpop.f32.mrf.mxu2  ;;  %v7449_v1 = vpop.f32.mrf.mxu0 }
 0x25c   : > { %v7447_v17 = vpop.f32.mrf.mxu3  ;;  %v7451_v13 = vpop.f32.mrf.mxu1  ;;  %v3756_v49 = vadd.f32 %v7449_v1, %v7433_v62 }
 0x25e   : > { %v3785_v50 = vadd.f32 %v7451_v13, %v3756_v49 }
 0x263   : > { %v7454_v30 = vpop.f32.mrf.mxu2  ;;  %v7458_v36 = vpop.f32.mrf.mxu0 }
 0x264   : > { %v7456_v35 = vpop.f32.mrf.mxu3  ;;  %v7460_v15 = vpop.f32.mrf.mxu1  ;;  %v3814_v61 = vadd.f32 %v7454_v30, %v3785_v50  ;;  %v3758_v62 = vadd.f32 %v7458_v36, %v7435_v63 }
 0x266   : > { %v3787_v13 = vadd.f32 %v7460_v15, %v3758_v62 }
 0x26b   : > { %v7463_v31 = vpop.f32.mrf.mxu2  ;;  %v3856_v14 = vpop.f32.mrf.mxu0 }
 0x26c   : > { %v7465_v28 = vpop.f32.mrf.mxu3  ;;  %v3885_v38 = vpop.f32.mrf.mxu1  ;;  %v3857_v45 = vadd.f32 %v3856_v14, %v3828_v58  ;;  %v3809_v14 = vadd.f32 %v7437_v21, %v3780_v37 }
 0x26e   : > { %v3886_v47 = vadd.f32 %v3885_v38, %v3857_v45  ;;  %v3838_v4 = vadd.f32 %v7439_v23, %v3809_v14 }
 0x273   : > { %v3914_v48 = vpop.f32.mrf.mxu2  ;;  %v3858_v29 = vpop.f32.mrf.mxu0 }
 0x274   : > { %v3943_v26 = vpop.f32.mrf.mxu3  ;;  %v3915_v44 = vadd.f32 %v3914_v48, %v3886_v47  ;;  %v3887_v42 = vpop.f32.mrf.mxu1  ;;  %v3859_v60 = vadd.f32 %v3858_v29, %v3830_v27  ;;  %v3811_v48 = vadd.f32 %v7445_v2, %v3782_v43 }
 0x276   : > { %v7468_v59 = vadd.f32 %v3943_v26, %v3915_v44  ;;  %v3888_v57 = vadd.f32 %v3887_v42, %v3859_v60  ;;  %v3840_v44 = vadd.f32 %v7447_v17, %v3811_v48 }
 0x278   : > { %v3964_v40 = vsel %vm3963_vm0, %v7468_v59, 0.0 }
 0x279   : > { %3965 = vadd.xlane.f32.xlu2 %v3964_v40 }
 0x27b   : > { %v3916_v53 = vpop.f32.mrf.mxu2  ;;  %v3861_v6 = vpop.f32.mrf.mxu0 }
 0x27c   : > { %v3945_v8 = vpop.f32.mrf.mxu3  ;;  %v3917_v0 = vadd.f32 %v3916_v53, %v3888_v57  ;;  %v3890_v9 = vpop.f32.mrf.mxu1  ;;  %v3862_v10 = vadd.f32 %v3861_v6, %v3833_v56  ;;  %v3843_v57 = vadd.f32 %v7456_v35, %v3814_v61  ;;  %v3816_v6 = vadd.f32 %v7463_v31, %v3787_v13 }
 0x27e   : > { %v7473_v51 = vadd.f32 %v3945_v8, %v3917_v0  ;;  %v3891_v11 = vadd.f32 %v3890_v9, %v3862_v10  ;;  %v3845_v10 = vadd.f32 %v7465_v28, %v3816_v6 }
 0x280   : > { %v3967_v55 = vsel %vm3963_vm0, %v7473_v51, 0.0 }
 0x281   : > { %3968 = vadd.xlane.f32.xlu0 %v3967_v55 }
 0x283   : > { %v3919_v22 = vpop.f32.mrf.mxu2  ;;  %v3863_v18 = vpop.f32.mrf.mxu0 }
 0x284   : > { %v3948_v7 = vpop.f32.mrf.mxu3  ;;  %v3920_v41 = vadd.f32 %v3919_v22, %v3891_v11  ;;  %v3892_v25 = vpop.f32.mrf.mxu1  ;;  %v3864_v54 = vadd.f32 %v3863_v18, %v3835_v34 }
 0x286   : > { %v7478_v58 = vadd.f32 %v3948_v7, %v3920_v41  ;;  %v3893_v12 = vadd.f32 %v3892_v25, %v3864_v54  ;;  %v6216_v25 = vmov 27.0  }
 0x287   : > { %6189 = vrcp.f32 %v6216_v25 }
 0x288   : > { %v3970_v5 = vsel %vm3963_vm0, %v7478_v58, 0.0 }
 0x289   : > { %3971 = vadd.xlane.f32.xlu1 %v3970_v5 }
 0x28b   : > { %v3921_v38 = vpop.f32.mrf.mxu2  ;;  %v3866_v46 = vpop.f32.mrf.mxu0 }
 0x28c   : > { %v3950_v16 = vpop.f32.mrf.mxu3  ;;  %v3922_v45 = vadd.f32 %v3921_v38, %v3893_v12  ;;  %v3895_v20 = vpop.f32.mrf.mxu1  ;;  %v3867_v21 = vadd.f32 %v3866_v46, %v3838_v4 }
 0x28d   : > { %v6190_v37 = vpop.eup %6189 }
 0x28e   : > { %v7487_v47 = vadd.f32 %v3950_v16, %v3922_v45  ;;  %v3896_v24 = vadd.f32 %v3895_v20, %v3867_v21  ;;  %v3989_v28 = vmul.f32 27.0, %v6190_v37  ;;  %vm3993_vm1 = vweird.f32 %v6190_v37 }
 0x290   : > { %v3973_v26 = vsel %vm3963_vm0, %v7487_v47, 0.0  ;;  %v3990_v54 = vsub.f32 1.0, %v3989_v28 }
 0x291   : > { %3974 = vadd.xlane.f32.xlu2 %v3973_v26 }
 0x292   : > { %v3991_v14 = vmul.f32 %v6190_v37, %v3990_v54 }
 0x293   : > { %v3924_v27 = vpop.f32.mrf.mxu2  ;;  %v3868_v42 = vpop.f32.mrf.mxu0 }
 0x294   : > { %v3953_v23 = vpop.f32.mrf.mxu3  ;;  %v3925_v29 = vadd.f32 %v3924_v27, %v3896_v24  ;;  %v3897_v3 = vpop.f32.mrf.mxu1  ;;  %v3869_v2 = vadd.f32 %v3868_v42, %v3840_v44  ;;  %v3992_v5 = vadd.f32 %v6190_v37, %v3991_v14 }
 0x296   : > { %v7496_v60 = vadd.f32 %v3953_v23, %v3925_v29  ;;  %v3898_v1 = vadd.f32 %v3897_v3, %v3869_v2  ;;  %v7513_v32 = vsel %vm3993_vm1, %v6190_v37, %v3992_v5 }
 0x298   : > { %v3976_v40 = vsel %vm3963_vm0, %v7496_v60, 0.0 }
 0x299   : > { %3977 = vadd.xlane.f32.xlu2 %v3976_v40 }
 0x29b   : > { %v3926_v39 = vpop.f32.mrf.mxu2  ;;  %v3871_v8 = vpop.f32.mrf.mxu0 }
 0x29c   : > { %v3955_v17 = vpop.f32.mrf.mxu3  ;;  %v3927_v53 = vadd.f32 %v3926_v39, %v3898_v1  ;;  %v3872_v0 = vadd.f32 %v3871_v8, %v3843_v57  ;;  %v3900_v30 = vpop.f32.mrf.mxu1 }
 0x29e   : > { %v7505_v56 = vadd.f32 %v3955_v17, %v3927_v53  ;;  %v3901_v63 = vadd.f32 %v3900_v30, %v3872_v0 }
 0x2a0   : > { %v3979_v9 = vsel %vm3963_vm0, %v7505_v56, 0.0 }
 0x2a1   : > { %3980 = vadd.xlane.f32.xlu0 %v3979_v9 }
 0x2a3   : > { %v3929_v36 = vpop.f32.mrf.mxu2  ;;  %v3873_v52 = vpop.f32.mrf.mxu0 }
 0x2a4   : > { %v3958_v33 = vpop.f32.mrf.mxu3  ;;  %v3930_v35 = vadd.f32 %v3929_v36, %v3901_v63  ;;  %v3874_v19 = vadd.f32 %v3873_v52, %v3845_v10  ;;  %v3902_v11 = vpop.f32.mrf.mxu1 }
 0x2a6   : > { %v3959_v55 = vadd.f32 %v3958_v33, %v3930_v35  ;;  %v3903_v22 = vadd.f32 %v3902_v11, %v3874_v19 }
 0x2a8   : > { %v3982_v15 = vsel %vm3963_vm0, %v3959_v55, 0.0 }
 0x2a9   : > { %3983 = vadd.xlane.f32.xlu1 %v3982_v15 }
 0x2ab   : > { %v3931_v7 = vpop.f32.mrf.mxu2 }
 0x2ac   : > { %v3932_v31 = vadd.f32 %v3931_v7, %v3903_v22  ;;  %v3960_v34 = vpop.f32.mrf.mxu3 }
 0x2ae   : > { %v3961_v41 = vadd.f32 %v3960_v34, %v3932_v31 }
 0x2b0   : > { %v3985_v18 = vsel %vm3963_vm0, %v3961_v41, 0.0 }
 0x2b1   : > { %3986 = vadd.xlane.f32.xlu2 %v3985_v18 }
 0x2ec   : > { %v3966_v12 = vpop.xlane.xlu2 %3965 }
 0x2ed   : > { %v3995_v38 = vmul.f32 %v7513_v32, %v3966_v12 }
 0x2ef   : > { %v7517_v16 = vsub.f32 %v7468_v59, %v3995_v38 }
 0x2f1   : > { %v4011_v4 = vmul.f32 %v7517_v16, %v7517_v16 }
 0x2f3   : > { %v4019_v45 = vsel %vm3963_vm0, %v4011_v4, 0.0 }
 0x2f4   : > { %v3969_v46 = vpop.xlane.xlu0 %3968  ;;  %4020 = vadd.xlane.f32.xlu0 %v4019_v45 }
 0x2f5   : > { %v3996_v20 = vmul.f32 %v7513_v32, %v3969_v46 }
 0x2f7   : > { %v7524_v43 = vsub.f32 %v7473_v51, %v3996_v20 }
 0x2f9   : > { %v4012_v21 = vmul.f32 %v7524_v43, %v7524_v43 }
 0x2fb   : > { %v4022_v48 = vsel %vm3963_vm0, %v4012_v21, 0.0 }
 0x2fc   : > { %v3972_v26 = vpop.xlane.xlu1 %3971  ;;  %4023 = vadd.xlane.f32.xlu1 %v4022_v48 }
 0x2fd   : > { %v3997_v59 = vmul.f32 %v7513_v32, %v3972_v26 }
 0x2ff   : > { %v7531_v49 = vsub.f32 %v7478_v58, %v3997_v59 }
 0x301   : > { %v4013_v24 = vmul.f32 %v7531_v49, %v7531_v49 }
 0x303   : > { %v4025_v27 = vsel %vm3963_vm0, %v4013_v24, 0.0 }
 0x304   : > { %4026 = vadd.xlane.f32.xlu2 %v4025_v27  ;;  %v3975_v51 = vpop.xlane.xlu2 %3974 }
 0x305   : > { %v3998_v23 = vmul.f32 %v7513_v32, %v3975_v51 }
 0x307   : > { %v7538_v44 = vsub.f32 %v7487_v47, %v3998_v23 }
 0x309   : > { %v4014_v29 = vmul.f32 %v7538_v44, %v7538_v44 }
 0x30b   : > { %v4028_v42 = vsel %vm3963_vm0, %v4014_v29, 0.0 }
 0x30c   : > { %4029 = vadd.xlane.f32.xlu0 %v4028_v42  ;;  %v3978_v58 = vpop.xlane.xlu2 %3977 }
 0x30d   : > { %v3999_v3 = vmul.f32 %v7513_v32, %v3978_v58 }
 0x30f   : > { %v7545_v50 = vsub.f32 %v7496_v60, %v3999_v3 }
 0x311   : > { %v4015_v2 = vmul.f32 %v7545_v50, %v7545_v50 }
 0x313   : > { %v4031_v61 = vsel %vm3963_vm0, %v4015_v2, 0.0 }
 0x314   : > { %v3981_v40 = vpop.xlane.xlu0 %3980  ;;  %4032 = vadd.xlane.f32.xlu1 %v4031_v61 }
 0x315   : > { %v4000_v47 = vmul.f32 %v7513_v32, %v3981_v40 }
 0x317   : > { %v7552_v62 = vsub.f32 %v7505_v56, %v4000_v47 }
 0x319   : > { %v4016_v1 = vmul.f32 %v7552_v62, %v7552_v62 }
 0x31b   : > { %v4034_v39 = vsel %vm3963_vm0, %v4016_v1, 0.0 }
 0x31c   : > { %v3984_v17 = vpop.xlane.xlu1 %3983  ;;  %4035 = vadd.xlane.f32.xlu2 %v4034_v39 }
 0x31d   : > { %v4001_v60 = vmul.f32 %v7513_v32, %v3984_v17 }
 0x31f   : > { %v7558_v57 = vsub.f32 %v3959_v55, %v4001_v60 }
 0x321   : > { %v4017_v53 = vmul.f32 %v7558_v57, %v7558_v57 }
 0x323   : > { %v4037_v8 = vsel %vm3963_vm0, %v4017_v53, 0.0 }
 0x324   : > { %4038 = vadd.xlane.f32.xlu0 %v4037_v8  ;;  %v3987_v13 = vpop.xlane.xlu2 %3986 }
 0x325   : > { %v4002_v56 = vmul.f32 %v7513_v32, %v3987_v13 }
 0x327   : > { %v7564_v0 = vsub.f32 %v3961_v41, %v4002_v56 }
 0x329   : > { %v4018_v30 = vmul.f32 %v7564_v0, %v7564_v0 }
 0x32b   : > { %v4040_v6 = vsel %vm3963_vm0, %v4018_v30, 0.0 }
 0x32c   : > { %4041 = vadd.xlane.f32.xlu1 %v4040_v6 }
 0x367   : > { %v4021_v9 = vpop.xlane.xlu0 %4020 }
 0x368   : > { %v4043_v63 = vmul.f32 %v4021_v9, %v7513_v32 }
 0x36a   : > { %v4051_v36 = vadd.f32 1e-05, %v4043_v63 }
 0x36c   : > { %6191 = vrsqrt.f32 %v4051_v36  ;;  %vm4065_vm3 = vweird.f32 %v4051_v36 }
 0x36f   : > { %v4024_v33 = vpop.xlane.xlu1 %4023 }
 0x370   : > { %v4044_v10 = vmul.f32 %v4024_v33, %v7513_v32 }
 0x372   : > { %v6192_v35 = vpop.eup %6191  ;;  %v4052_v52 = vadd.f32 1e-05, %v4044_v10 }
 0x373   : > { %v4060_v55 = vmul.f32 %v6192_v35, %v4051_v36  ;;  %vm4066_vm2 = vweird.f32 %v6192_v35 }
 0x374   : > { %6193 = vrsqrt.f32 %v4052_v52  ;;  %vm4067_vm4 = vmor %vm4065_vm3, %vm4066_vm2  ;;  %vm4075_vm8 = vweird.f32 %v4052_v52 }
 0x375   : > { %v4061_v19 = vmul.f32 %v6192_v35, %v4060_v55 }
 0x377   : > { %v4062_v15 = vmul.f32 0.5, %v4061_v19  ;;  %v4027_v11 = vpop.xlane.xlu2 %4026 }
 0x378   : > { %v4045_v22 = vmul.f32 %v4027_v11, %v7513_v32 }
 0x379   : > { %v4063_v7 = vsub.f32 1.5, %v4062_v15 }
 0x37a   : > { %v6194_v31 = vpop.eup %6193  ;;  %v4053_v34 = vadd.f32 1e-05, %v4045_v22 }
 0x37b   : > { %v4064_v41 = vmul.f32 %v6192_v35, %v4063_v7  ;;  %v4070_v18 = vmul.f32 %v6194_v31, %v4052_v52  ;;  %vm4076_vm6 = vweird.f32 %v6194_v31 }
 0x37c   : > { %6195 = vrsqrt.f32 %v4053_v34  ;;  %vm4077_vm9 = vmor %vm4075_vm8, %vm4076_vm6  ;;  %vm4085_vm12 = vweird.f32 %v4053_v34 }
 0x37d   : > { %v4068_v25 = vsel %vm4067_vm4, %v6192_v35, %v4064_v41  ;;  %v4071_v37 = vmul.f32 %v6194_v31, %v4070_v18 }
 0x37e   : > { %v4139_v28 = vmul.f32 %v4068_v25, %v7517_v16 }
 0x37f   : > { %v4072_v54 = vmul.f32 0.5, %v4071_v37  ;;  %v4030_v14 = vpop.xlane.xlu0 %4029 }
 0x380   : > { %vm4147_vm5 = vcmp.ge.f32.partialorder %v4139_v28, 0.0  ;;  %v4155_v5 = vmul.f32 0.2, %v4139_v28  ;;  %v4046_v12 = vmul.f32 %v4030_v14, %v7513_v32 }
 0x381   : > { %v4073_v38 = vsub.f32 1.5, %v4072_v54 }
 0x382   : > { %v6196_v4 = vpop.eup %6195  ;;  %v4163_v45 = vsel %vm4147_vm5, %v4139_v28, %v4155_v5  ;;  %v4054_v46 = vadd.f32 1e-05, %v4046_v12 }
 0x383   : > { %v4171_v16 = vpack.c.bf16 %v4163_v45, %v4163_v45  ;;  %v4074_v20 = vmul.f32 %v6194_v31, %v4073_v38  ;;  %v4080_v21 = vmul.f32 %v6196_v4, %v4053_v34  ;;  %vm4086_vm11 = vweird.f32 %v6196_v4 }
 0x384   : > { %6197 = vrsqrt.f32 %v4054_v46  ;;  %vm4087_vm13 = vmor %vm4085_vm12, %vm4086_vm11  ;;  %vm4095_vm0 = vweird.f32 %v4054_v46 }
 0x385   : > { %4180 = vst.msk [vmem:[%s7578_s16] sm:$0xf] %vm4179_vm7, %v4171_v16  ;;  %v4078_v48 = vsel %vm4077_vm9, %v6194_v31, %v4074_v20  ;;  %v4081_v26 = vmul.f32 %v6196_v4, %v4080_v21 }
 0x386   : > { %v4140_v59 = vmul.f32 %v4078_v48, %v7524_v43 }
 0x387   : > { %v4082_v24 = vmul.f32 0.5, %v4081_v26  ;;  %v4033_v27 = vpop.xlane.xlu1 %4032 }
 0x388   : > { %vm4148_vm10 = vcmp.ge.f32.partialorder %v4140_v59, 0.0  ;;  %v4156_v51 = vmul.f32 0.2, %v4140_v59  ;;  %v4047_v23 = vmul.f32 %v4033_v27, %v7513_v32 }
 0x389   : > { %v4083_v29 = vsub.f32 1.5, %v4082_v24 }
 0x38a   : > { %v6198_v42 = vpop.eup %6197  ;;  %v4164_v58 = vsel %vm4148_vm10, %v4140_v59, %v4156_v51  ;;  %v4055_v3 = vadd.f32 1e-05, %v4047_v23 }
 0x38b   : > { %v4172_v2 = vpack.c.bf16 %v4164_v58, %v4164_v58  ;;  %v4084_v61 = vmul.f32 %v6196_v4, %v4083_v29  ;;  %v4090_v40 = vmul.f32 %v6198_v42, %v4054_v46  ;;  %vm4096_vm15 = vweird.f32 %v6198_v42 }
 0x38c   : > { %6199 = vrsqrt.f32 %v4055_v3  ;;  %vm4097_vm1 = vmor %vm4095_vm0, %vm4096_vm15  ;;  %vm4105_vm4 = vweird.f32 %v4055_v3 }
 0x38d   : > { %4181 = vst.msk [vmem:[%s7578_s16 + $0x4] sm:$0xf] %vm4179_vm7, %v4172_v2  ;;  %v4088_v43 = vsel %vm4087_vm13, %v6196_v4, %v4084_v61  ;;  %v4091_v47 = vmul.f32 %v6198_v42, %v4090_v40 }
 0x38e   : > { %v4141_v1 = vmul.f32 %v4088_v43, %v7531_v49 }
 0x38f   : > { %v4092_v39 = vmul.f32 0.5, %v4091_v47  ;;  %v4036_v17 = vpop.xlane.xlu2 %4035 }
 0x390   : > { %vm4149_vm14 = vcmp.ge.f32.partialorder %v4141_v1, 0.0  ;;  %v4157_v60 = vmul.f32 0.2, %v4141_v1  ;;  %v4048_v53 = vmul.f32 %v4036_v17, %v7513_v32 }
 0x391   : > { %v4093_v8 = vsub.f32 1.5, %v4092_v39 }
 0x392   : > { %v6200_v13 = vpop.eup %6199  ;;  %v4165_v56 = vsel %vm4149_vm14, %v4141_v1, %v4157_v60  ;;  %v4056_v30 = vadd.f32 1e-05, %v4048_v53 }
 0x393   : > { %v4173_v6 = vpack.c.bf16 %v4165_v56, %v4165_v56  ;;  %v4094_v9 = vmul.f32 %v6198_v42, %v4093_v8  ;;  %v4100_v63 = vmul.f32 %v6200_v13, %v4055_v3  ;;  %vm4106_vm3 = vweird.f32 %v6200_v13 }
 0x394   : > { %6201 = vrsqrt.f32 %v4056_v30  ;;  %vm4107_vm5 = vmor %vm4105_vm4, %vm4106_vm3  ;;  %vm4115_vm9 = vweird.f32 %v4056_v30 }
 0x395   : > { %4182 = vst.msk [vmem:[%s7578_s16 + $0x8] sm:$0xf] %vm4179_vm7, %v4173_v6  ;;  %v4098_v49 = vsel %vm4097_vm1, %v6198_v42, %v4094_v9  ;;  %v4101_v36 = vmul.f32 %v6200_v13, %v4100_v63 }
 0x396   : > { %v4142_v33 = vmul.f32 %v4098_v49, %v7538_v44 }
 0x397   : > { %v4102_v10 = vmul.f32 0.5, %v4101_v36  ;;  %v4039_v35 = vpop.xlane.xlu0 %4038 }
 0x398   : > { %vm4150_vm2 = vcmp.ge.f32.partialorder %v4142_v33, 0.0  ;;  %v4158_v52 = vmul.f32 0.2, %v4142_v33  ;;  %v4049_v55 = vmul.f32 %v4039_v35, %v7513_v32 }
 0x399   : > { %v4103_v19 = vsub.f32 1.5, %v4102_v10 }
 0x39a   : > { %v6202_v15 = vpop.eup %6201  ;;  %v4166_v11 = vsel %vm4150_vm2, %v4142_v33, %v4158_v52  ;;  %v4057_v22 = vadd.f32 1e-05, %v4049_v55 }
 0x39b   : > { %v4174_v7 = vpack.c.bf16 %v4166_v11, %v4166_v11  ;;  %v4104_v31 = vmul.f32 %v6200_v13, %v4103_v19  ;;  %v4110_v34 = vmul.f32 %v6202_v15, %v4056_v30  ;;  %vm4116_vm8 = vweird.f32 %v6202_v15 }
 0x39c   : > { %6203 = vrsqrt.f32 %v4057_v22  ;;  %vm4117_vm10 = vmor %vm4115_vm9, %vm4116_vm8  ;;  %vm4125_vm13 = vweird.f32 %v4057_v22 }
 0x39d   : > { %4183 = vst.msk [vmem:[%s7578_s16 + $0xc] sm:$0xf] %vm4179_vm7, %v4174_v7  ;;  %v4108_v44 = vsel %vm4107_vm5, %v6200_v13, %v4104_v31  ;;  %v4111_v41 = vmul.f32 %v6202_v15, %v4110_v34 }
 0x39e   : > { %v4143_v18 = vmul.f32 %v4108_v44, %v7545_v50 }
 0x39f   : > { %v4112_v25 = vmul.f32 0.5, %v4111_v41  ;;  %v4042_v37 = vpop.xlane.xlu1 %4041 }
 0x3a0   : > { %vm4151_vm6 = vcmp.ge.f32.partialorder %v4143_v18, 0.0  ;;  %v4159_v28 = vmul.f32 0.2, %v4143_v18  ;;  %v4050_v54 = vmul.f32 %v4042_v37, %v7513_v32 }
 0x3a1   : > { %v4113_v14 = vsub.f32 1.5, %v4112_v25 }
 0x3a2   : > { %v6204_v5 = vpop.eup %6203  ;;  %v4167_v12 = vsel %vm4151_vm6, %v4143_v18, %v4159_v28  ;;  %v4058_v38 = vadd.f32 1e-05, %v4050_v54 }
 0x3a3   : > { %v4175_v4 = vpack.c.bf16 %v4167_v12, %v4167_v12  ;;  %v4114_v45 = vmul.f32 %v6202_v15, %v4113_v14  ;;  %v4120_v46 = vmul.f32 %v6204_v5, %v4057_v22  ;;  %vm4126_vm12 = vweird.f32 %v6204_v5 }
 0x3a4   : > { %6205 = vrsqrt.f32 %v4058_v38  ;;  %vm4127_vm14 = vmor %vm4125_vm13, %vm4126_vm12  ;;  %vm4135_vm1 = vweird.f32 %v4058_v38 }
 0x3a5   : > { %4184 = vst.msk [vmem:[%s7578_s16 + $0x10] sm:$0xf] %vm4179_vm7, %v4175_v4  ;;  %v4118_v50 = vsel %vm4117_vm10, %v6202_v15, %v4114_v45  ;;  %v4121_v16 = vmul.f32 %v6204_v5, %v4120_v46 }
 0x3a6   : > { %v4144_v20 = vmul.f32 %v4118_v50, %v7552_v62 }
 0x3a7   : > { %v4122_v21 = vmul.f32 0.5, %v4121_v16 }
 0x3a8   : > { %vm4152_vm11 = vcmp.ge.f32.partialorder %v4144_v20, 0.0  ;;  %v4160_v32 = vmul.f32 0.2, %v4144_v20 }
 0x3a9   : > { %v4123_v48 = vsub.f32 1.5, %v4122_v21 }
 0x3aa   : > { %v6206_v26 = vpop.eup %6205  ;;  %v4168_v59 = vsel %vm4152_vm11, %v4144_v20, %v4160_v32 }
 0x3ab   : > { %v4176_v24 = vpack.c.bf16 %v4168_v59, %v4168_v59  ;;  %v4124_v27 = vmul.f32 %v6204_v5, %v4123_v48  ;;  %v4130_v51 = vmul.f32 %v6206_v26, %v4058_v38  ;;  %vm4136_vm0 = vweird.f32 %v6206_v26 }
 0x3ac   : > { %vm4137_vm2 = vmor %vm4135_vm1, %vm4136_vm0 }
 0x3ad   : > { %4185 = vst.msk [vmem:[%s7578_s16 + $0x14] sm:$0xf] %vm4179_vm7, %v4176_v24  ;;  %v4128_v23 = vsel %vm4127_vm14, %v6204_v5, %v4124_v27  ;;  %v4131_v29 = vmul.f32 %v6206_v26, %v4130_v51 }
 0x3ae   : > { %v4145_v42 = vmul.f32 %v4128_v23, %v7558_v57 }
 0x3af   : > { %v4132_v62 = vmul.f32 0.5, %v4131_v29 }
 0x3b0   : > { %vm4153_vm15 = vcmp.ge.f32.partialorder %v4145_v42, 0.0  ;;  %v4161_v58 = vmul.f32 0.2, %v4145_v42 }
 0x3b1   : > { %v4133_v3 = vsub.f32 1.5, %v4132_v62 }
 0x3b2   : > { %v4169_v2 = vsel %vm4153_vm15, %v4145_v42, %v4161_v58 }
 0x3b3   : > { %v4177_v61 = vpack.c.bf16 %v4169_v2, %v4169_v2  ;;  %v4134_v40 = vmul.f32 %v6206_v26, %v4133_v3 }
 0x3b5   : > { %4186 = vst.msk [vmem:[%s7578_s16 + $0x18] sm:$0xf] %vm4179_vm7, %v4177_v61  ;;  %v4138_v43 = vsel %vm4137_vm2, %v6206_v26, %v4134_v40 }
 0x3b6   : > { %v4146_v47 = vmul.f32 %v4138_v43, %v7564_v0 }
 0x3b8   : > { %vm4154_vm3 = vcmp.ge.f32.partialorder %v4146_v47, 0.0  ;;  %v4162_v1 = vmul.f32 0.2, %v4146_v47 }
 0x3ba   : > { %v4170_v39 = vsel %vm4154_vm3, %v4146_v47, %v4162_v1 }
 0x3bb   : > { %v4178_v57 = vpack.c.bf16 %v4170_v39, %v4170_v39 }
 0x3bd   : > { %4187 = vst.msk [vmem:[%s7578_s16 + $0x1c] sm:$0xf] %vm4179_vm7, %v4178_v57 }
 0x3be PF: > { %s13_s12 = sadd.s32 1, %s6213_s12  }
 0x3bf   : > { %p10_p4 = scmp.ge.s32.totalorder %s13_s12, 4  }
 0x3c1   :  { %12 = sbr.rel (!%p10_p4) target bundleno = 1 (0x1), region = 62 }

// kernel: reverse
= control target key start
LH: loop header
LB: loop body
LE: loop exit
PB: predicated region body
PF: predicated region fallthrough
CT: control target
= control target key end

     0   :  { %s2288_s6 = smov 0   ;;  %s2290_s7 = smov 0   ;;  %s2659_s0 = inlined_call_operand.vmem [shape: bf16[4096,64,4,4,4], index: 0, kind: input, shape index: {}]   ;;  %s2660_s1 = inlined_call_operand.vmem [shape: bf16[4096,64,4,4,4], index: 1, kind: output, shape index: {}]  }
   0x1   :  { %2661 = sst [smem:[#allocation4_spill]] %s2659_s0  ;;  %s2292_s8 = smov 0  }
   0x2   :  { %s2294_s9 = smov 0   ;;  %s2296_s10 = smov 0  }
   0x3   :  { %s2298_s11 = smov 0   ;;  %s2300_s12 = smov 0  }
   0x4   :  { %s2302_s13 = smov 0   ;;  %s2304_s14 = smov 0  }
   0x5   :  { %s2306_s15 = smov 0   ;;  %s2308_s16 = smov 0  }
   0x6   :  { %s2310_s17 = smov 0   ;;  %s2312_s18 = smov 0  }
   0x7   :  { %s2314_s19 = smov 0   ;;  %s2316_s20 = smov 0  }
   0x8   :  { %s2318_s21 = smov 0   ;;  %s2320_s22 = smov 0  }
   0x9   :  { %s2322_s23 = smov 0   ;;  %s2324_s24 = smov 0  }
   0xa   :  { %s2326_s25 = smov 0   ;;  %s2328_s26 = smov 0  }
   0xb   :  { %s2330_s27 = smov 0   ;;  %s2332_s28 = smov 0  }
   0xc   :  { %s2334_s29 = smov 0   ;;  %s2336_s30 = smov 0  }
   0xd LB: > { %s76_s2 = sadd.s32 1, %s2260_s26  ;;  %s80_s3 = sadd.s32 1, %s2264_s27  ;;  %s2276_s30 = sphi %s2336_s30, %s7_s30   ;;  %s2272_s29 = sphi %s2334_s29, %s2693_s29   ;;  %s2268_s28 = sphi %s2332_s28, %s2692_s28   ;;  %s2264_s27 = sphi %s2330_s27, %s2691_s27   ;;  %s2260_s26 = sphi %s2328_s26, %s2690_s26   ;;  %s2256_s25 = sphi %s2326_s25, %s2689_s25   ;;  %s2252_s24 = sphi %s2324_s24, %s2688_s24   ;;  %s2248_s23 = sphi %s2322_s23, %s2687_s23   ;;  %s2244_s22 = sphi %s2320_s22, %s2686_s22   ;;  %s2240_s21 = sphi %s2318_s21, %s2685_s21   ;;  %s2236_s20 = sphi %s2316_s20, %s2684_s20   ;;  %s2232_s19 = sphi %s2314_s19, %s2683_s19   ;;  %s2228_s18 = sphi %s2312_s18, %s2682_s18   ;;  %s2224_s17 = sphi %s2310_s17, %s2681_s17   ;;  %s2220_s16 = sphi %s2308_s16, %s2680_s16   ;;  %s2216_s15 = sphi %s2306_s15, %s2679_s15   ;;  %s2212_s14 = sphi %s2304_s14, %s2678_s14   ;;  %s2208_s13 = sphi %s2302_s13, %s2676_s13   ;;  %s2204_s12 = sphi %s2300_s12, %s2674_s12   ;;  %s2200_s11 = sphi %s2298_s11, %s2672_s11   ;;  %s2196_s10 = sphi %s2296_s10, %s2671_s10   ;;  %s2192_s9 = sphi %s2294_s9, %s2670_s9   ;;  %s2188_s8 = sphi %s2292_s8, %s2669_s8   ;;  %s2184_s7 = sphi %s2290_s7, %s2668_s7   ;;  %s2180_s6 = sphi %s2288_s6, %s2667_s6  }
   0xe   : > { %p78_p0 = scmp.ge.s32.totalorder %s76_s2, 2  ;;  %p1351_p1 = scmp.ge.s32.totalorder %s2276_s30, 5 }
   0xf   : > { %p134_p2 = scmp.lt.s32.totalorder %s2276_s30, 133  ;;  %s84_s4 = sadd.s32 1, %s2268_s28 }
  0x10   : > { %s2695_s2 = smov (%p78_p0, %s76_s2), 0  ;;  %s2697_s3 = smov (!%p78_p0, %s80_s3), %s2264_s27 }
  0x11   : > { %p82_p3 = scmp.ge.s32.totalorder %s2697_s3, 4  ;;  %p135_p4 = pnand %p1351_p1, %p134_p2 }
  0x12   : > { %s88_s5 = sadd.s32 1, %s2272_s29  ;;  %s1352_s6 = sshll.u32 (!%p135_p4), %s2180_s6, 2 }
  0x13   : > { %s2699_s3 = smov (%p82_p3, %s2697_s3), 0  ;;  %s2701_s4 = smov (!%p82_p3, %s84_s4), %s2268_s28 }
  0x14   : > { %2662 = sst [smem:[#allocation1_spill]] %s2699_s3  ;;  %p86_p5 = scmp.ge.s32.totalorder %s2701_s4, 4 }
  0x15   : > { %s191_s3 = ssub.s32 (!%p135_p4), 3, %s2184_s7  ;;  %p200_p10 = scmp.lt.s32.totalorder (!%p135_p4), %s1352_s6, 7 }
  0x16   : > { %s2703_s4 = smov (%p86_p5, %s2701_s4), 0  ;;  %s2705_s5 = smov (!%p86_p5, %s88_s5), %s2272_s29 }
  0x17   : > { %2663 = sst [smem:[#allocation2_spill]] %s2703_s4  ;;  %p90_p6 = scmp.ge.s32.totalorder %s2705_s5, 4 }
  0x18   : > { %138 = sbr.rel (%p135_p4) target bundleno = 109 (0x6d), region = 20  ;;  %s190_s4 = ssub.s32 (!%p135_p4), 3, %s2188_s8 }
  0x19   : > { %s2707_s5 = smov (%p90_p6, %s2705_s5), 0  ;;  %p196_p8 = scmp.lt.s32.totalorder (!%p135_p4), %s190_s4, 3 }
  0x1a   : > { %2664 = sst [smem:[#allocation3_spill]] %s2707_s5  ;;  %s189_s5 = ssub.s32 (!%p135_p4), 3, %s2192_s9 }
  0x1b   : > { %p194_p7 = scmp.lt.s32.totalorder (!%p135_p4), %s189_s5, 3  ;;  %p198_p9 = scmp.lt.s32.totalorder (!%p135_p4), %s191_s3, 3 }
  0x1c   : > { %p221_p11 = scmp.lt.s32.totalorder (!%p135_p4), %s2192_s9, 3  ;;  %p223_p12 = scmp.lt.s32.totalorder (!%p135_p4), %s2188_s8, 3 }
  0x1d   : > { %s2709_s5 = smov (!%p194_p7, %s189_s5), 3  ;;  %s2711_s4 = smov (!%p196_p8, %s190_s4), 3 }
  0x1e   : > { %s2713_s3 = smov (!%p198_p9, %s191_s3), 3  ;;  %s2715_s6 = smov (!%p200_p10, %s1352_s6), 7 }
  0x1f   : > { %s1354_s3 = sshll.u32 %s2713_s3, 8  ;;  %s1355_s4 = sshll.u32 %s2711_s4, 10 }
  0x20   : > { %s1353_s6 = sshll.u32 %s2715_s6, 5  ;;  %s1356_s5 = sshll.u32 %s2709_s5, 12 }
  0x21   : > { %s207_s3 = sadd.s32 %s1354_s3, %s1353_s6  ;;  %p225_p13 = scmp.lt.s32.totalorder %s2184_s7, 3 }
  0x22   : > { %s209_s4 = sadd.s32 %s1355_s4, %s207_s3  ;;  %s2717_s9 = smov (!%p221_p11, %s2192_s9), 3 }
  0x23   : > { %s211_s5 = sadd.s32 %s1356_s5, %s209_s4  ;;  %s2719_s8 = smov (!%p223_p12, %s2188_s8), 3 }
  0x24   : > { %s1357_s3 = sshll.u32 %s211_s5, 2  ;;  %s2721_s7 = smov (!%p225_p13, %s2184_s7), 3 }
  0x25   : > { %s2665_s0 = sld [smem:[#allocation4_spill]]  ;;  %s1361_s8 = sshll.u32 %s2719_s8, 10 }
  0x26   : > { %s1360_s7 = sshll.u32 %s2721_s7, 8  ;;  %s1362_s9 = sshll.u32 %s2717_s9, 12 }
  0x27   : > { %s234_s6 = sadd.s32 %s1360_s7, %s1353_s6 }
  0x28   : > { %s236_s4 = sadd.s32 %s1361_s8, %s234_s6 }
  0x29   : > { %s238_s5 = sadd.s32 %s1362_s9, %s236_s4 }
  0x2a   : > { %s1363_s8 = sshll.u32 %s238_s5, 2 }
  0x2b   : > { %s2443_s3 = scalar_lea.vmem %s2665_s0, %s1357_s3  ;;  %s2451_s6 = scalar_lea.vmem %s2660_s1, %s1363_s8 }
  0x2c   : > { %v1814_v0 = vld [vmem:[%s2443_s3] sm:$0xff]  ;;  %v1818_v4 = vld [vmem:[%s2443_s3 + $0x8] sm:$0xff]  ;;  %v1822_v8 = vld [vmem:[%s2443_s3 + $0x10] sm:$0xff] }
  0x2d   : > { %v1815_v1 = vld [vmem:[%s2443_s3 + $0x80] sm:$0xff]  ;;  %1373 = vst [vmem:[%s2451_s6] sm:$0xff] %v1814_v0  ;;  %v1819_v5 = vld [vmem:[%s2443_s3 + $0x88] sm:$0xff]  ;;  %v1823_v9 = vld [vmem:[%s2443_s3 + $0x90] sm:$0xff] }
  0x2e   : > { %v1816_v2 = vld [vmem:[%s2443_s3 + $0x100] sm:$0xff]  ;;  %1379 = vst [vmem:[%s2451_s6 + $0x80] sm:$0xff] %v1815_v1  ;;  %v1820_v6 = vld [vmem:[%s2443_s3 + $0x108] sm:$0xff]  ;;  %v1824_v10 = vld [vmem:[%s2443_s3 + $0x110] sm:$0xff] }
  0x2f   : > { %v1817_v3 = vld [vmem:[%s2443_s3 + $0x180] sm:$0xff]  ;;  %1385 = vst [vmem:[%s2451_s6 + $0x100] sm:$0xff] %v1816_v2  ;;  %v1821_v7 = vld [vmem:[%s2443_s3 + $0x188] sm:$0xff]  ;;  %v1825_v11 = vld [vmem:[%s2443_s3 + $0x190] sm:$0xff] }
  0x30   : > { %1391 = vst [vmem:[%s2451_s6 + $0x180] sm:$0xff] %v1817_v3  ;;  %v1826_v12 = vld [vmem:[%s2443_s3 + $0x18] sm:$0xff]  ;;  %v1830_v16 = vld [vmem:[%s2443_s3 + $0x20] sm:$0xff]  ;;  %v1834_v20 = vld [vmem:[%s2443_s3 + $0x28] sm:$0xff] }
  0x31   : > { %1401 = vst [vmem:[%s2451_s6 + $0x8] sm:$0xff] %v1818_v4  ;;  %v1827_v13 = vld [vmem:[%s2443_s3 + $0x98] sm:$0xff]  ;;  %v1831_v17 = vld [vmem:[%s2443_s3 + $0xa0] sm:$0xff]  ;;  %v1835_v21 = vld [vmem:[%s2443_s3 + $0xa8] sm:$0xff] }
  0x32   : > { %1407 = vst [vmem:[%s2451_s6 + $0x88] sm:$0xff] %v1819_v5  ;;  %v1828_v14 = vld [vmem:[%s2443_s3 + $0x118] sm:$0xff]  ;;  %v1832_v18 = vld [vmem:[%s2443_s3 + $0x120] sm:$0xff]  ;;  %v1836_v22 = vld [vmem:[%s2443_s3 + $0x128] sm:$0xff] }
  0x33   : > { %1413 = vst [vmem:[%s2451_s6 + $0x108] sm:$0xff] %v1820_v6  ;;  %v1829_v15 = vld [vmem:[%s2443_s3 + $0x198] sm:$0xff]  ;;  %v1833_v19 = vld [vmem:[%s2443_s3 + $0x1a0] sm:$0xff]  ;;  %v1837_v23 = vld [vmem:[%s2443_s3 + $0x1a8] sm:$0xff] }
  0x34   : > { %1419 = vst [vmem:[%s2451_s6 + $0x188] sm:$0xff] %v1821_v7  ;;  %v1838_v24 = vld [vmem:[%s2443_s3 + $0x30] sm:$0xff]  ;;  %v1842_v28 = vld [vmem:[%s2443_s3 + $0x38] sm:$0xff]  ;;  %v1846_v32 = vld [vmem:[%s2443_s3 + $0x40] sm:$0xff] }
  0x35   : > { %1429 = vst [vmem:[%s2451_s6 + $0x10] sm:$0xff] %v1822_v8  ;;  %v1839_v25 = vld [vmem:[%s2443_s3 + $0xb0] sm:$0xff]  ;;  %v1843_v29 = vld [vmem:[%s2443_s3 + $0xb8] sm:$0xff]  ;;  %v1847_v33 = vld [vmem:[%s2443_s3 + $0xc0] sm:$0xff] }
  0x36   : > { %1435 = vst [vmem:[%s2451_s6 + $0x90] sm:$0xff] %v1823_v9  ;;  %v1840_v26 = vld [vmem:[%s2443_s3 + $0x130] sm:$0xff]  ;;  %v1844_v30 = vld [vmem:[%s2443_s3 + $0x138] sm:$0xff]  ;;  %v1848_v34 = vld [vmem:[%s2443_s3 + $0x140] sm:$0xff] }
  0x37   : > { %1441 = vst [vmem:[%s2451_s6 + $0x110] sm:$0xff] %v1824_v10  ;;  %v1841_v27 = vld [vmem:[%s2443_s3 + $0x1b0] sm:$0xff]  ;;  %v1845_v31 = vld [vmem:[%s2443_s3 + $0x1b8] sm:$0xff]  ;;  %v1849_v35 = vld [vmem:[%s2443_s3 + $0x1c0] sm:$0xff] }
  0x38   : > { %1447 = vst [vmem:[%s2451_s6 + $0x190] sm:$0xff] %v1825_v11  ;;  %v1850_v36 = vld [vmem:[%s2443_s3 + $0x48] sm:$0xff]  ;;  %v1854_v40 = vld [vmem:[%s2443_s3 + $0x50] sm:$0xff]  ;;  %v1858_v44 = vld [vmem:[%s2443_s3 + $0x58] sm:$0xff] }
  0x39   : > { %1457 = vst [vmem:[%s2451_s6 + $0x18] sm:$0xff] %v1826_v12  ;;  %v1851_v37 = vld [vmem:[%s2443_s3 + $0xc8] sm:$0xff]  ;;  %v1855_v41 = vld [vmem:[%s2443_s3 + $0xd0] sm:$0xff]  ;;  %v1859_v45 = vld [vmem:[%s2443_s3 + $0xd8] sm:$0xff] }
  0x3a   : > { %1463 = vst [vmem:[%s2451_s6 + $0x98] sm:$0xff] %v1827_v13  ;;  %v1852_v38 = vld [vmem:[%s2443_s3 + $0x148] sm:$0xff]  ;;  %v1856_v42 = vld [vmem:[%s2443_s3 + $0x150] sm:$0xff]  ;;  %v1860_v46 = vld [vmem:[%s2443_s3 + $0x158] sm:$0xff] }
  0x3b   : > { %1469 = vst [vmem:[%s2451_s6 + $0x118] sm:$0xff] %v1828_v14  ;;  %v1853_v39 = vld [vmem:[%s2443_s3 + $0x1c8] sm:$0xff]  ;;  %v1857_v43 = vld [vmem:[%s2443_s3 + $0x1d0] sm:$0xff]  ;;  %v1861_v47 = vld [vmem:[%s2443_s3 + $0x1d8] sm:$0xff] }
  0x3c   : > { %1475 = vst [vmem:[%s2451_s6 + $0x198] sm:$0xff] %v1829_v15  ;;  %v1862_v48 = vld [vmem:[%s2443_s3 + $0x60] sm:$0xff]  ;;  %v1866_v52 = vld [vmem:[%s2443_s3 + $0x68] sm:$0xff]  ;;  %v1870_v56 = vld [vmem:[%s2443_s3 + $0x70] sm:$0xff] }
  0x3d   : > { %1485 = vst [vmem:[%s2451_s6 + $0x20] sm:$0xff] %v1830_v16  ;;  %v1863_v49 = vld [vmem:[%s2443_s3 + $0xe0] sm:$0xff]  ;;  %v1867_v53 = vld [vmem:[%s2443_s3 + $0xe8] sm:$0xff]  ;;  %v1871_v57 = vld [vmem:[%s2443_s3 + $0xf0] sm:$0xff] }
  0x3e   : > { %1491 = vst [vmem:[%s2451_s6 + $0xa0] sm:$0xff] %v1831_v17  ;;  %v1864_v50 = vld [vmem:[%s2443_s3 + $0x160] sm:$0xff]  ;;  %v1868_v54 = vld [vmem:[%s2443_s3 + $0x168] sm:$0xff]  ;;  %v1872_v58 = vld [vmem:[%s2443_s3 + $0x170] sm:$0xff] }
  0x3f   : > { %1497 = vst [vmem:[%s2451_s6 + $0x120] sm:$0xff] %v1832_v18  ;;  %v1865_v51 = vld [vmem:[%s2443_s3 + $0x1e0] sm:$0xff]  ;;  %v1869_v55 = vld [vmem:[%s2443_s3 + $0x1e8] sm:$0xff]  ;;  %v1873_v59 = vld [vmem:[%s2443_s3 + $0x1f0] sm:$0xff] }
  0x40   : > { %1503 = vst [vmem:[%s2451_s6 + $0x1a0] sm:$0xff] %v1833_v19  ;;  %v1874_v60 = vld [vmem:[%s2443_s3 + $0x78] sm:$0xff] }
  0x41   : > { %1513 = vst [vmem:[%s2451_s6 + $0x28] sm:$0xff] %v1834_v20  ;;  %v1875_v61 = vld [vmem:[%s2443_s3 + $0xf8] sm:$0xff] }
  0x42   : > { %1519 = vst [vmem:[%s2451_s6 + $0xa8] sm:$0xff] %v1835_v21  ;;  %v1876_v62 = vld [vmem:[%s2443_s3 + $0x178] sm:$0xff] }
  0x43   : > { %1525 = vst [vmem:[%s2451_s6 + $0x128] sm:$0xff] %v1836_v22  ;;  %v1877_v63 = vld [vmem:[%s2443_s3 + $0x1f8] sm:$0xff] }
  0x44   : > { %1531 = vst [vmem:[%s2451_s6 + $0x1a8] sm:$0xff] %v1837_v23 }
  0x45   : > { %1541 = vst [vmem:[%s2451_s6 + $0x30] sm:$0xff] %v1838_v24 }
  0x46   : > { %1547 = vst [vmem:[%s2451_s6 + $0xb0] sm:$0xff] %v1839_v25 }
  0x47   : > { %1553 = vst [vmem:[%s2451_s6 + $0x130] sm:$0xff] %v1840_v26 }
  0x48   : > { %1559 = vst [vmem:[%s2451_s6 + $0x1b0] sm:$0xff] %v1841_v27 }
  0x49   : > { %1569 = vst [vmem:[%s2451_s6 + $0x38] sm:$0xff] %v1842_v28 }
  0x4a   : > { %1575 = vst [vmem:[%s2451_s6 + $0xb8] sm:$0xff] %v1843_v29 }
  0x4b   : > { %1581 = vst [vmem:[%s2451_s6 + $0x138] sm:$0xff] %v1844_v30 }
  0x4c   : > { %1587 = vst [vmem:[%s2451_s6 + $0x1b8] sm:$0xff] %v1845_v31 }
  0x4d   : > { %1597 = vst [vmem:[%s2451_s6 + $0x40] sm:$0xff] %v1846_v32 }
  0x4e   : > { %1603 = vst [vmem:[%s2451_s6 + $0xc0] sm:$0xff] %v1847_v33 }
  0x4f   : > { %1609 = vst [vmem:[%s2451_s6 + $0x140] sm:$0xff] %v1848_v34 }
  0x50   : > { %1615 = vst [vmem:[%s2451_s6 + $0x1c0] sm:$0xff] %v1849_v35 }
  0x51   : > { %1625 = vst [vmem:[%s2451_s6 + $0x48] sm:$0xff] %v1850_v36 }
  0x52   : > { %1631 = vst [vmem:[%s2451_s6 + $0xc8] sm:$0xff] %v1851_v37 }
  0x53   : > { %1637 = vst [vmem:[%s2451_s6 + $0x148] sm:$0xff] %v1852_v38 }
  0x54   : > { %1643 = vst [vmem:[%s2451_s6 + $0x1c8] sm:$0xff] %v1853_v39 }
  0x55   : > { %1653 = vst [vmem:[%s2451_s6 + $0x50] sm:$0xff] %v1854_v40 }
  0x56   : > { %1659 = vst [vmem:[%s2451_s6 + $0xd0] sm:$0xff] %v1855_v41 }
  0x57   : > { %1665 = vst [vmem:[%s2451_s6 + $0x150] sm:$0xff] %v1856_v42 }
  0x58   : > { %1671 = vst [vmem:[%s2451_s6 + $0x1d0] sm:$0xff] %v1857_v43 }
  0x59   : > { %1681 = vst [vmem:[%s2451_s6 + $0x58] sm:$0xff] %v1858_v44 }
  0x5a   : > { %1687 = vst [vmem:[%s2451_s6 + $0xd8] sm:$0xff] %v1859_v45 }
  0x5b   : > { %1693 = vst [vmem:[%s2451_s6 + $0x158] sm:$0xff] %v1860_v46 }
  0x5c   : > { %1699 = vst [vmem:[%s2451_s6 + $0x1d8] sm:$0xff] %v1861_v47 }
  0x5d   : > { %1709 = vst [vmem:[%s2451_s6 + $0x60] sm:$0xff] %v1862_v48 }
  0x5e   : > { %1715 = vst [vmem:[%s2451_s6 + $0xe0] sm:$0xff] %v1863_v49 }
  0x5f   : > { %1721 = vst [vmem:[%s2451_s6 + $0x160] sm:$0xff] %v1864_v50 }
  0x60   : > { %1727 = vst [vmem:[%s2451_s6 + $0x1e0] sm:$0xff] %v1865_v51 }
  0x61   : > { %1737 = vst [vmem:[%s2451_s6 + $0x68] sm:$0xff] %v1866_v52 }
  0x62   : > { %1743 = vst [vmem:[%s2451_s6 + $0xe8] sm:$0xff] %v1867_v53 }
  0x63   : > { %1749 = vst [vmem:[%s2451_s6 + $0x168] sm:$0xff] %v1868_v54 }
  0x64   : > { %1755 = vst [vmem:[%s2451_s6 + $0x1e8] sm:$0xff] %v1869_v55 }
  0x65   : > { %1765 = vst [vmem:[%s2451_s6 + $0x70] sm:$0xff] %v1870_v56 }
  0x66   : > { %1771 = vst [vmem:[%s2451_s6 + $0xf0] sm:$0xff] %v1871_v57 }
  0x67   : > { %1777 = vst [vmem:[%s2451_s6 + $0x170] sm:$0xff] %v1872_v58 }
  0x68   : > { %1783 = vst [vmem:[%s2451_s6 + $0x1f0] sm:$0xff] %v1873_v59 }
  0x69   : > { %1793 = vst [vmem:[%s2451_s6 + $0x78] sm:$0xff] %v1874_v60 }
  0x6a   : > { %1799 = vst [vmem:[%s2451_s6 + $0xf8] sm:$0xff] %v1875_v61 }
  0x6b   : > { %1805 = vst [vmem:[%s2451_s6 + $0x178] sm:$0xff] %v1876_v62 }
  0x6c   : > { %1811 = vst [vmem:[%s2451_s6 + $0x1f8] sm:$0xff] %v1877_v63 }
  0x6d PF: > { %s7_s30 = sadd.s32 1, %s2276_s30   ;;  %s2667_s6 = smov %s2196_s10 }
  0x6e   : > { %p2579_p0 = scmp.ge.s32.totalorder %s7_s30, 138   ;;  %s2668_s7 = smov %s2200_s11 }
  0x6f   : > { %s2669_s8 = smov %s2204_s12  ;;  %s2670_s9 = smov %s2208_s13 }
  0x70   : > { %s2671_s10 = smov %s2212_s14  ;;  %s2672_s11 = smov %s2216_s15 }
  0x71   : > { %s2673_s4 = sld [smem:[#allocation1_spill]]  ;;  %s2674_s12 = smov %s2220_s16 }
  0x72   : > { %s2675_s5 = sld [smem:[#allocation2_spill]]  ;;  %s2676_s13 = smov %s2224_s17 }
  0x73   : > { %s2677_s0 = sld [smem:[#allocation3_spill]]  ;;  %s2678_s14 = smov %s2228_s18 }
  0x74   : > { %s2679_s15 = smov %s2232_s19  ;;  %s2680_s16 = smov %s2236_s20 }
  0x75   : > { %s2681_s17 = smov %s2240_s21  ;;  %s2682_s18 = smov %s2244_s22 }
  0x76   : > { %s2683_s19 = smov %s2248_s23  ;;  %s2684_s20 = smov %s2252_s24 }
  0x77   : > { %s2685_s21 = smov %s2256_s25  ;;  %s2686_s22 = smov %s2260_s26 }
  0x78   : > { %s2687_s23 = smov %s2264_s27  ;;  %s2688_s24 = smov %s2268_s28 }
  0x79   : > { %s2689_s25 = smov %s2272_s29  ;;  %s2690_s26 = smov %s2695_s2 }
  0x7a   : > { %s2691_s27 = smov %s2673_s4  ;;  %s2692_s28 = smov %s2675_s5 }
  0x7b   : > { %s2693_s29 = smov %s2677_s0  ;;  %6 = sbr.rel (!%p2579_p0) target bundleno = 13 (0xd), region = 359 }

// kernel: nlayer_discriminator3d_forward.11
= control target key start
LH: loop header
LB: loop body
LE: loop exit
PB: predicated region body
PF: predicated region fallthrough
CT: control target
= control target key end

     0   :  { %s4097_s14 = smov 0   ;;  %s4400_s0 = inlined_call_operand.vmem [shape: bf16[1,4096], index: 0, kind: input, shape index: {}]   ;;  %s4401_s1 = inlined_call_operand.<no memory space> [shape: f32[1,1], index: 1, kind: input, shape index: {}]   ;;  %s4402_s2 = inlined_call_operand.vmem [shape: bf16[2,4096,8], index: 2, kind: input, shape index: {}]   ;;  %s4403_s3 = inlined_call_operand.vmem [shape: f32[2,1,8], index: 3, kind: output, shape index: {}]  }
   0x1   :  { %v8_v0 = vstv %s4401_s1 }
   0x2   :  { %9 = vst [vmem:[#allocation2] sm:$0x1] %v8_v0 }
   0x3 LB: > { %s2765_s15 = sadd.s32 4294967295, %s4071_s14   ;;  %p2769_p0 = scmp.ge.s32.totalorder %s4071_s14, 1  ;;  %s4071_s14 = sphi %s4097_s14, %s15_s14  }
   0x4   : > { %p139_p1 = scmp.lt.s32.totalorder %s4071_s14, 3 }
   0x6   : > { %p140_p2 = pnand %p2769_p0, %p139_p1 }
   0x7   : > { %p161_p3 = scmp.lt.s32.totalorder (!%p140_p2), %s2765_s15, 1 }
   0x8   : > { %143 = sbr.rel (%p140_p2) target bundleno = 415 (0x19f), region = 32 }
   0xd   : > { %s4405_s15 = smov (!%p161_p3, %s2765_s15), 1  ;;  %v169_v21 = vld [vmem:[%s4400_s0] sm:$0xff]  ;;  %v4073_v51 = vmov 0   ;;  %v685_v54 = vld [vmem:[#allocation2] sm:$0x1]  ;;  %vm2716_vm0 = vcmask 57344  }
   0xe   : > { %s3798_s1 = sshll.u32 %s4405_s15, 11  ;;  %693 = vst [vmem:[#allocation1] ss:$9 sm:$0xff] %v169_v21  ;;  %4064 = vset.pattern.permute.xlu0 %v4073_v51  ;;  %v170_v55 = vld [vmem:[%s4400_s0 + $0x8] sm:$0xff]  ;;  %s168_s29 = scalar_lea.vmem %s4403_s3, %s4405_s15 }
   0xf   : > { %s4111_s18 = scalar_lea.vmem %s4402_s2, %s3798_s1  ;;  %688 = vperm.xlu0 %4064, %v685_v54  }
  0x10   : > { %v3806_v1 = vld [vmem:[%s4111_s18 + $0x38] sm:$0xff]  ;;  %v3805_v5 = vld [vmem:[%s4111_s18 + $0x30] sm:$0xff]  ;;  %v3804_v9 = vld [vmem:[%s4111_s18 + $0x28] sm:$0xff] }
  0x11   : > { %v3814_v2 = vld [vmem:[%s4111_s18 + $0x78] sm:$0xff]  ;;  %2300 = vmatpush.bf16.msra.mxu0 %v3806_v1  ;;  %v3813_v6 = vld [vmem:[%s4111_s18 + $0x70] sm:$0xff]  ;;  %v3812_v10 = vld [vmem:[%s4111_s18 + $0x68] sm:$0xff] }
  0x12   : > { %v3822_v3 = vld [vmem:[%s4111_s18 + $0xb8] sm:$0xff]  ;;  %2313 = vmatpush.bf16.msra.mxu1 %v3814_v2  ;;  %v3821_v7 = vld [vmem:[%s4111_s18 + $0xb0] sm:$0xff]  ;;  %v3820_v11 = vld [vmem:[%s4111_s18 + $0xa8] sm:$0xff] }
  0x13   : > { %v3830_v4 = vld [vmem:[%s4111_s18 + $0xf8] sm:$0xff]  ;;  %2326 = vmatpush.bf16.msra.mxu2 %v3822_v3  ;;  %v3829_v8 = vld [vmem:[%s4111_s18 + $0xf0] sm:$0xff]  ;;  %v3828_v12 = vld [vmem:[%s4111_s18 + $0xe8] sm:$0xff] }
  0x14   : > { %2339 = vmatpush.bf16.msra.mxu3 %v3830_v4  ;;  %v3803_v13 = vld [vmem:[%s4111_s18 + $0x20] sm:$0xff]  ;;  %v3802_v17 = vld [vmem:[%s4111_s18 + $0x18] sm:$0xff]  ;;  %v3801_v22 = vld [vmem:[%s4111_s18 + $0x10] sm:$0xff] }
  0x15   : > { %2301 = vmatpush.bf16.msra.mxu0 %v3805_v5  ;;  %v3811_v14 = vld [vmem:[%s4111_s18 + $0x60] sm:$0xff]  ;;  %v3810_v18 = vld [vmem:[%s4111_s18 + $0x58] sm:$0xff]  ;;  %v3809_v23 = vld [vmem:[%s4111_s18 + $0x50] sm:$0xff] }
  0x16   : > { %2314 = vmatpush.bf16.msra.mxu1 %v3813_v6  ;;  %v3819_v15 = vld [vmem:[%s4111_s18 + $0xa0] sm:$0xff]  ;;  %v3818_v19 = vld [vmem:[%s4111_s18 + $0x98] sm:$0xff]  ;;  %v3817_v24 = vld [vmem:[%s4111_s18 + $0x90] sm:$0xff] }
  0x17   : > { %2327 = vmatpush.bf16.msra.mxu2 %v3821_v7  ;;  %v3827_v16 = vld [vmem:[%s4111_s18 + $0xe0] sm:$0xff]  ;;  %v3826_v20 = vld [vmem:[%s4111_s18 + $0xd8] sm:$0xff]  ;;  %v3825_v25 = vld [vmem:[%s4111_s18 + $0xd0] sm:$0xff] }
  0x18   : > { %2340 = vmatpush.bf16.msra.mxu3 %v3829_v8  ;;  %v3800_v26 = vld [vmem:[%s4111_s18 + $0x8] sm:$0xff]  ;;  %v3799_v30 = vld [vmem:[%s4111_s18] sm:$0xff]  ;;  %v3838_v34 = vld [vmem:[%s4111_s18 + $0x138] sm:$0xff] }
  0x19   : > { %2302 = vmatpush.bf16.msra.mxu0 %v3804_v9  ;;  %v3808_v27 = vld [vmem:[%s4111_s18 + $0x48] sm:$0xff]  ;;  %v3807_v31 = vld [vmem:[%s4111_s18 + $0x40] sm:$0xff]  ;;  %v3846_v35 = vld [vmem:[%s4111_s18 + $0x178] sm:$0xff] }
  0x1a   : > { %2315 = vmatpush.bf16.msra.mxu1 %v3812_v10  ;;  %v3816_v28 = vld [vmem:[%s4111_s18 + $0x88] sm:$0xff]  ;;  %v3815_v32 = vld [vmem:[%s4111_s18 + $0x80] sm:$0xff]  ;;  %v3854_v36 = vld [vmem:[%s4111_s18 + $0x1b8] sm:$0xff] }
  0x1b   : > { %2328 = vmatpush.bf16.msra.mxu2 %v3820_v11  ;;  %v3824_v29 = vld [vmem:[%s4111_s18 + $0xc8] sm:$0xff]  ;;  %v3823_v33 = vld [vmem:[%s4111_s18 + $0xc0] sm:$0xff]  ;;  %v3862_v37 = vld [vmem:[%s4111_s18 + $0x1f8] sm:$0xff] }
  0x1c   : > { %2341 = vmatpush.bf16.msra.mxu3 %v3828_v12  ;;  %v3837_v38 = vld [vmem:[%s4111_s18 + $0x130] sm:$0xff]  ;;  %v694_v40 = vld [vmem:[#allocation1] sm:$0xff]  ;;  %v3836_v46 = vld [vmem:[%s4111_s18 + $0x128] sm:$0xff] }
  0x1d   : > { %2303 = vmatpush.bf16.msra.mxu0 %v3803_v13  ;;  %v696_v39 = vld [vmem:[#allocation1 + $0x12] sm:$0xff]  ;;  %v697_v42 = vld [vmem:[#allocation1 + $0x1b] sm:$0xff]  ;;  %v695_v43 = vld [vmem:[#allocation1 + $0x9] sm:$0xff] }
  0x1e   : > { %2316 = vmatpush.bf16.msra.mxu1 %v3811_v14  ;;  %v3845_v41 = vld [vmem:[%s4111_s18 + $0x170] sm:$0xff]  ;;  %v3844_v47 = vld [vmem:[%s4111_s18 + $0x168] sm:$0xff]  ;;  %v4164_v53 = vld [vmem:[#allocation1 + $0x3f] sm:$0xff] }
  0x1f   : > { %2329 = vmatpush.bf16.msra.mxu2 %v3819_v15  ;;  %v3853_v44 = vld [vmem:[%s4111_s18 + $0x1b0] sm:$0xff]  ;;  %v3852_v48 = vld [vmem:[%s4111_s18 + $0x1a8] sm:$0xff]  ;;  %v3835_v57 = vld [vmem:[%s4111_s18 + $0x120] sm:$0xff] }
  0x20   : > { %2342 = vmatpush.bf16.msra.mxu3 %v3827_v16  ;;  %v3861_v45 = vld [vmem:[%s4111_s18 + $0x1f0] sm:$0xff]  ;;  %v3860_v49 = vld [vmem:[%s4111_s18 + $0x1e8] sm:$0xff]  ;;  %v3843_v58 = vld [vmem:[%s4111_s18 + $0x160] sm:$0xff] }
  0x21   : > { %2304 = vmatpush.bf16.msra.mxu0 %v3802_v17  ;;  %v4160_v50 = vld [vmem:[#allocation1 + $0x36] sm:$0xff]  ;;  %v4162_v52 = vld [vmem:[#allocation1 + $0x24] sm:$0xff]  ;;  %v699_v56 = vld [vmem:[#allocation1 + $0x2d] sm:$0xff] }
  0x22   : > { %2317 = vmatpush.bf16.msra.mxu1 %v3810_v18  ;;  %703 = vst [vmem:[#allocation1] ss:$9 sm:$0xff] %v170_v55  ;;  %v3851_v59 = vld [vmem:[%s4111_s18 + $0x1a0] sm:$0xff]  ;;  %v3834_v61 = vld [vmem:[%s4111_s18 + $0x118] sm:$0xff]  ;;  %v3833_v1 = vld [vmem:[%s4111_s18 + $0x110] sm:$0xff] }
  0x23   : > { %2330 = vmatpush.bf16.msra.mxu2 %v3818_v19  ;;  %v3859_v60 = vld [vmem:[%s4111_s18 + $0x1e0] sm:$0xff]  ;;  %v3842_v62 = vld [vmem:[%s4111_s18 + $0x158] sm:$0xff]  ;;  %v3841_v2 = vld [vmem:[%s4111_s18 + $0x150] sm:$0xff] }
  0x24   : > { %2343 = vmatpush.bf16.msra.mxu3 %v3826_v20  ;;  %v3850_v63 = vld [vmem:[%s4111_s18 + $0x198] sm:$0xff]  ;;  %v3849_v3 = vld [vmem:[%s4111_s18 + $0x190] sm:$0xff]  ;;  %v3832_v5 = vld [vmem:[%s4111_s18 + $0x108] sm:$0xff] }
  0x25   : > { %2305 = vmatpush.bf16.msra.mxu0 %v3801_v22  ;;  %v3858_v0 = vld [vmem:[%s4111_s18 + $0x1d8] sm:$0xff]  ;;  %v3857_v4 = vld [vmem:[%s4111_s18 + $0x1d0] sm:$0xff]  ;;  %v3840_v6 = vld [vmem:[%s4111_s18 + $0x148] sm:$0xff] }
  0x26   : > { %2318 = vmatpush.bf16.msra.mxu1 %v3809_v23  ;;  %v3848_v7 = vld [vmem:[%s4111_s18 + $0x188] sm:$0xff]  ;;  %v3831_v9 = vld [vmem:[%s4111_s18 + $0x100] sm:$0xff]  ;;  %v3870_v13 = vld [vmem:[%s4111_s18 + $0x238] sm:$0xff] }
  0x27   : > { %2331 = vmatpush.bf16.msra.mxu2 %v3817_v24  ;;  %v3856_v8 = vld [vmem:[%s4111_s18 + $0x1c8] sm:$0xff]  ;;  %v3839_v10 = vld [vmem:[%s4111_s18 + $0x140] sm:$0xff]  ;;  %v3878_v14 = vld [vmem:[%s4111_s18 + $0x278] sm:$0xff] }
  0x28   : > { %2344 = vmatpush.bf16.msra.mxu3 %v3825_v25  ;;  %v3847_v11 = vld [vmem:[%s4111_s18 + $0x180] sm:$0xff]  ;;  %v3886_v15 = vld [vmem:[%s4111_s18 + $0x2b8] sm:$0xff]  ;;  %v3869_v17 = vld [vmem:[%s4111_s18 + $0x230] sm:$0xff] }
  0x29   : > { %2306 = vmatpush.bf16.msra.mxu0 %v3800_v26  ;;  %v3855_v12 = vld [vmem:[%s4111_s18 + $0x1c0] sm:$0xff]  ;;  %v3894_v16 = vld [vmem:[%s4111_s18 + $0x2f8] sm:$0xff]  ;;  %v3877_v18 = vld [vmem:[%s4111_s18 + $0x270] sm:$0xff] }
  0x2a   : > { %2319 = vmatpush.bf16.msra.mxu1 %v3808_v27  ;;  %v3885_v19 = vld [vmem:[%s4111_s18 + $0x2b0] sm:$0xff]  ;;  %v3868_v21 = vld [vmem:[%s4111_s18 + $0x228] sm:$0xff]  ;;  %v3867_v25 = vld [vmem:[%s4111_s18 + $0x220] sm:$0xff] }
  0x2b   : > { %2332 = vmatpush.bf16.msra.mxu2 %v3816_v28  ;;  %v3893_v20 = vld [vmem:[%s4111_s18 + $0x2f0] sm:$0xff]  ;;  %v3876_v22 = vld [vmem:[%s4111_s18 + $0x268] sm:$0xff]  ;;  %v3875_v26 = vld [vmem:[%s4111_s18 + $0x260] sm:$0xff] }
  0x2c   : > { %2345 = vmatpush.bf16.msra.mxu3 %v3824_v29  ;;  %v3884_v23 = vld [vmem:[%s4111_s18 + $0x2a8] sm:$0xff]  ;;  %v3883_v27 = vld [vmem:[%s4111_s18 + $0x2a0] sm:$0xff]  ;;  %v3866_v29 = vld [vmem:[%s4111_s18 + $0x218] sm:$0xff] }
  0x2d   : > { %2307 = vmatpush.bf16.msra.mxu0 %v3799_v30  ;;  %v3892_v24 = vld [vmem:[%s4111_s18 + $0x2e8] sm:$0xff]  ;;  %v3891_v28 = vld [vmem:[%s4111_s18 + $0x2e0] sm:$0xff]  ;;  %v3874_v30 = vld [vmem:[%s4111_s18 + $0x258] sm:$0xff] }
  0x2e   : > { %2320 = vmatpush.bf16.msra.mxu1 %v3807_v31  ;;  %v3882_v31 = vld [vmem:[%s4111_s18 + $0x298] sm:$0xff]  ;;  %v705_v51 = vld [vmem:[#allocation1 + $0x9] sm:$0xff] }
  0x2f   : > { %2333 = vmatpush.bf16.msra.mxu2 %v3815_v32  ;;  %v3890_v32 = vld [vmem:[%s4111_s18 + $0x2d8] sm:$0xff]  ;;  %v3909_v54 = vld [vmem:[%s4111_s18 + $0x370] sm:$0xff] }
  0x30   : > { %2346 = vmatpush.bf16.msra.mxu3 %v3823_v33  ;;  %2308 = vmatmul.bf16.vlgmr.msra.gmra.mxu0 %v694_v40  ;;  %v3865_v33 = vld [vmem:[%s4111_s18 + $0x210] sm:$0xff]  ;;  %v3888_v40 = vld [vmem:[%s4111_s18 + $0x2c8] sm:$0xff] }
  0x31   : > { %2352 = vmatpush.bf16.msrb.mxu0 %v3838_v34  ;;  %2321 = vmatmul.bf16.vlgmr.msra.gmra.mxu1 %v695_v43  ;;  %v3873_v34 = vld [vmem:[%s4111_s18 + $0x250] sm:$0xff]  ;;  %v3879_v43 = vld [vmem:[%s4111_s18 + $0x280] sm:$0xff] }
  0x32   : > { %2365 = vmatpush.bf16.msrb.mxu1 %v3846_v35  ;;  %2334 = vmatmul.bf16.vlgmr.msra.gmra.mxu2 %v696_v39  ;;  %v3881_v35 = vld [vmem:[%s4111_s18 + $0x290] sm:$0xff]  ;;  %v3880_v39 = vld [vmem:[%s4111_s18 + $0x288] sm:$0xff] }
  0x33   : > { %2378 = vmatpush.bf16.msrb.mxu2 %v3854_v36  ;;  %2347 = vmatmul.bf16.vlgmr.msra.gmra.mxu3 %v697_v42  ;;  %v3889_v36 = vld [vmem:[%s4111_s18 + $0x2d0] sm:$0xff]  ;;  %v3871_v42 = vld [vmem:[%s4111_s18 + $0x240] sm:$0xff] }
  0x34   : > { %2391 = vmatpush.bf16.msrb.mxu3 %v3862_v37  ;;  %v3864_v37 = vld [vmem:[%s4111_s18 + $0x208] sm:$0xff]  ;;  %v3917_v55 = vld [vmem:[%s4111_s18 + $0x3b0] sm:$0xff] }
  0x35   : > { %2353 = vmatpush.bf16.msrb.mxu0 %v3837_v38  ;;  %v3872_v38 = vld [vmem:[%s4111_s18 + $0x248] sm:$0xff] }
  0x36   : > { %2366 = vmatpush.bf16.msrb.mxu1 %v3845_v41  ;;  %v3863_v41 = vld [vmem:[%s4111_s18 + $0x200] sm:$0xff] }
  0x37   : > { %2379 = vmatpush.bf16.msrb.mxu2 %v3853_v44  ;;  %v3887_v44 = vld [vmem:[%s4111_s18 + $0x2c0] sm:$0xff] }
  0x38   : > { %2392 = vmatpush.bf16.msrb.mxu3 %v3861_v45  ;;  %v3902_v45 = vld [vmem:[%s4111_s18 + $0x338] sm:$0xff] }
  0x39   : > { %2354 = vmatpush.bf16.msrb.mxu0 %v3836_v46  ;;  %v3910_v46 = vld [vmem:[%s4111_s18 + $0x378] sm:$0xff] }
  0x3a   : > { %2367 = vmatpush.bf16.msrb.mxu1 %v3844_v47  ;;  %v3918_v47 = vld [vmem:[%s4111_s18 + $0x3b8] sm:$0xff] }
  0x3b   : > { %2380 = vmatpush.bf16.msrb.mxu2 %v3852_v48  ;;  %v3926_v48 = vld [vmem:[%s4111_s18 + $0x3f8] sm:$0xff] }
  0x3c   : > { %2393 = vmatpush.bf16.msrb.mxu3 %v3860_v49  ;;  %v704_v49 = vld [vmem:[#allocation1] sm:$0xff] }
  0x3d   : > { %2355 = vmatpush.bf16.msrb.mxu0 %v3835_v57  ;;  %v3900_v57 = vld [vmem:[%s4111_s18 + $0x328] sm:$0xff] }
  0x3e   : > { %2368 = vmatpush.bf16.msrb.mxu1 %v3843_v58  ;;  %v3908_v58 = vld [vmem:[%s4111_s18 + $0x368] sm:$0xff] }
  0x3f   : > { %2381 = vmatpush.bf16.msrb.mxu2 %v3851_v59  ;;  %v3916_v59 = vld [vmem:[%s4111_s18 + $0x3a8] sm:$0xff] }
  0x40   : > { %2394 = vmatpush.bf16.msrb.mxu3 %v3859_v60  ;;  %v3924_v60 = vld [vmem:[%s4111_s18 + $0x3e8] sm:$0xff] }
  0x41   : > { %2356 = vmatpush.bf16.msrb.mxu0 %v3834_v61  ;;  %v3899_v61 = vld [vmem:[%s4111_s18 + $0x320] sm:$0xff] }
  0x42   : > { %2369 = vmatpush.bf16.msrb.mxu1 %v3842_v62  ;;  %v3907_v62 = vld [vmem:[%s4111_s18 + $0x360] sm:$0xff] }
  0x43   : > { %2382 = vmatpush.bf16.msrb.mxu2 %v3850_v63  ;;  %v3915_v63 = vld [vmem:[%s4111_s18 + $0x3a0] sm:$0xff] }
  0x44   : > { %2395 = vmatpush.bf16.msrb.mxu3 %v3858_v0  ;;  %v3923_v0 = vld [vmem:[%s4111_s18 + $0x3e0] sm:$0xff] }
  0x45   : > { %2357 = vmatpush.bf16.msrb.mxu0 %v3833_v1  ;;  %v3898_v1 = vld [vmem:[%s4111_s18 + $0x318] sm:$0xff] }
  0x46   : > { %2370 = vmatpush.bf16.msrb.mxu1 %v3841_v2  ;;  %v3906_v2 = vld [vmem:[%s4111_s18 + $0x358] sm:$0xff] }
  0x47   : > { %2383 = vmatpush.bf16.msrb.mxu2 %v3849_v3  ;;  %v3914_v3 = vld [vmem:[%s4111_s18 + $0x398] sm:$0xff] }
  0x48   : > { %2396 = vmatpush.bf16.msrb.mxu3 %v3857_v4  ;;  %v3922_v4 = vld [vmem:[%s4111_s18 + $0x3d8] sm:$0xff] }
  0x49   : > { %2358 = vmatpush.bf16.msrb.mxu0 %v3832_v5  ;;  %v3897_v5 = vld [vmem:[%s4111_s18 + $0x310] sm:$0xff] }
  0x4a   : > { %2371 = vmatpush.bf16.msrb.mxu1 %v3840_v6  ;;  %v3905_v6 = vld [vmem:[%s4111_s18 + $0x350] sm:$0xff] }
  0x4b   : > { %2384 = vmatpush.bf16.msrb.mxu2 %v3848_v7  ;;  %v3913_v7 = vld [vmem:[%s4111_s18 + $0x390] sm:$0xff] }
  0x4c   : > { %2397 = vmatpush.bf16.msrb.mxu3 %v3856_v8  ;;  %v3921_v8 = vld [vmem:[%s4111_s18 + $0x3d0] sm:$0xff] }
  0x4d   : > { %2359 = vmatpush.bf16.msrb.mxu0 %v3831_v9  ;;  %v3896_v9 = vld [vmem:[%s4111_s18 + $0x308] sm:$0xff] }
  0x4e   : > { %2372 = vmatpush.bf16.msrb.mxu1 %v3839_v10  ;;  %v3904_v10 = vld [vmem:[%s4111_s18 + $0x348] sm:$0xff] }
  0x4f   : > { %2385 = vmatpush.bf16.msrb.mxu2 %v3847_v11  ;;  %v3912_v11 = vld [vmem:[%s4111_s18 + $0x388] sm:$0xff] }
  0x50   : > { %2398 = vmatpush.bf16.msrb.mxu3 %v3855_v12  ;;  %2360 = vmatmul.bf16.vlgmr.msrb.gmra.mxu0 %v4162_v52  ;;  %v707_v52 = vld [vmem:[#allocation1 + $0x1b] sm:$0xff]  ;;  %v3920_v12 = vld [vmem:[%s4111_s18 + $0x3c8] sm:$0xff] }
  0x51   : > { %2404 = vmatpush.bf16.msra.mxu0 %v3870_v13  ;;  %2373 = vmatmul.bf16.vlgmr.msrb.gmra.mxu1 %v699_v56  ;;  %v3925_v56 = vld [vmem:[%s4111_s18 + $0x3f0] sm:$0xff]  ;;  %v708_v13 = vld [vmem:[#allocation1 + $0x24] sm:$0xff] }
  0x52   : > { %2417 = vmatpush.bf16.msra.mxu1 %v3878_v14  ;;  %2386 = vmatmul.bf16.vlgmr.msrb.gmra.mxu2 %v4160_v50  ;;  %v706_v50 = vld [vmem:[#allocation1 + $0x12] sm:$0xff] }
  0x53   : > { %2430 = vmatpush.bf16.msra.mxu2 %v3886_v15  ;;  %2399 = vmatmul.bf16.vlgmr.msrb.gmra.mxu3 %v4164_v53  ;;  %v3901_v53 = vld [vmem:[%s4111_s18 + $0x330] sm:$0xff] }
  0x54   : > { %2443 = vmatpush.bf16.msra.mxu3 %v3894_v16  ;;  %v710_v14 = vld [vmem:[#allocation1 + $0x36] sm:$0xff]  ;;  %v709_v15 = vld [vmem:[#allocation1 + $0x2d] sm:$0xff]  ;;  %v711_v16 = vld [vmem:[#allocation1 + $0x3f] sm:$0xff] }
  0x55   : > { %2405 = vmatpush.bf16.msra.mxu0 %v3869_v17  ;;  %v171_v17 = vld [vmem:[%s4400_s0 + $0x10] sm:$0xff] }
  0x56   : > { %2418 = vmatpush.bf16.msra.mxu1 %v3877_v18  ;;  %713 = vst [vmem:[#allocation1] ss:$9 sm:$0xff] %v171_v17  ;;  %v3895_v18 = vld [vmem:[%s4111_s18 + $0x300] sm:$0xff]  ;;  %v3970_v17 = vld [vmem:[%s4111_s18 + $0x558] sm:$0xff] }
  0x57   : > { %2431 = vmatpush.bf16.msra.mxu2 %v3885_v19  ;;  %v3903_v19 = vld [vmem:[%s4111_s18 + $0x340] sm:$0xff] }
  0x58   : > { %2444 = vmatpush.bf16.msra.mxu3 %v3893_v20  ;;  %v3911_v20 = vld [vmem:[%s4111_s18 + $0x380] sm:$0xff] }
  0x59   : > { %2406 = vmatpush.bf16.msra.mxu0 %v3868_v21  ;;  %v3919_v21 = vld [vmem:[%s4111_s18 + $0x3c0] sm:$0xff] }
  0x5a   : > { %2419 = vmatpush.bf16.msra.mxu1 %v3876_v22  ;;  %v3934_v22 = vld [vmem:[%s4111_s18 + $0x438] sm:$0xff] }
  0x5b   : > { %2432 = vmatpush.bf16.msra.mxu2 %v3884_v23  ;;  %v3942_v23 = vld [vmem:[%s4111_s18 + $0x478] sm:$0xff] }
  0x5c   : > { %2445 = vmatpush.bf16.msra.mxu3 %v3892_v24  ;;  %v3950_v24 = vld [vmem:[%s4111_s18 + $0x4b8] sm:$0xff] }
  0x5d   : > { %2407 = vmatpush.bf16.msra.mxu0 %v3867_v25  ;;  %v3958_v25 = vld [vmem:[%s4111_s18 + $0x4f8] sm:$0xff] }
  0x5e   : > { %2420 = vmatpush.bf16.msra.mxu1 %v3875_v26  ;;  %v3933_v26 = vld [vmem:[%s4111_s18 + $0x430] sm:$0xff] }
  0x5f   : > { %2433 = vmatpush.bf16.msra.mxu2 %v3883_v27  ;;  %v3941_v27 = vld [vmem:[%s4111_s18 + $0x470] sm:$0xff] }
  0x60   : > { %2446 = vmatpush.bf16.msra.mxu3 %v3891_v28  ;;  %v3949_v28 = vld [vmem:[%s4111_s18 + $0x4b0] sm:$0xff] }
  0x61   : > { %2408 = vmatpush.bf16.msra.mxu0 %v3866_v29  ;;  %v3957_v29 = vld [vmem:[%s4111_s18 + $0x4f0] sm:$0xff] }
  0x62   : > { %2421 = vmatpush.bf16.msra.mxu1 %v3874_v30  ;;  %v3932_v30 = vld [vmem:[%s4111_s18 + $0x428] sm:$0xff] }
  0x63   : > { %2434 = vmatpush.bf16.msra.mxu2 %v3882_v31  ;;  %v3940_v31 = vld [vmem:[%s4111_s18 + $0x468] sm:$0xff] }
  0x64   : > { %2447 = vmatpush.bf16.msra.mxu3 %v3890_v32  ;;  %v3948_v32 = vld [vmem:[%s4111_s18 + $0x4a8] sm:$0xff] }
  0x65   : > { %2409 = vmatpush.bf16.msra.mxu0 %v3865_v33  ;;  %v3956_v33 = vld [vmem:[%s4111_s18 + $0x4e8] sm:$0xff] }
  0x66   : > { %2422 = vmatpush.bf16.msra.mxu1 %v3873_v34  ;;  %v3931_v34 = vld [vmem:[%s4111_s18 + $0x420] sm:$0xff] }
  0x67   : > { %2435 = vmatpush.bf16.msra.mxu2 %v3881_v35  ;;  %v3939_v35 = vld [vmem:[%s4111_s18 + $0x460] sm:$0xff] }
  0x68   : > { %2448 = vmatpush.bf16.msra.mxu3 %v3889_v36  ;;  %v3947_v36 = vld [vmem:[%s4111_s18 + $0x4a0] sm:$0xff] }
  0x69   : > { %2410 = vmatpush.bf16.msra.mxu0 %v3864_v37  ;;  %v3955_v37 = vld [vmem:[%s4111_s18 + $0x4e0] sm:$0xff] }
  0x6a   : > { %2423 = vmatpush.bf16.msra.mxu1 %v3872_v38  ;;  %v3930_v38 = vld [vmem:[%s4111_s18 + $0x418] sm:$0xff] }
  0x6b   : > { %2436 = vmatpush.bf16.msra.mxu2 %v3880_v39  ;;  %v3938_v39 = vld [vmem:[%s4111_s18 + $0x458] sm:$0xff] }
  0x6c   : > { %2449 = vmatpush.bf16.msra.mxu3 %v3888_v40  ;;  %v3946_v40 = vld [vmem:[%s4111_s18 + $0x498] sm:$0xff] }
  0x6d   : > { %2411 = vmatpush.bf16.msra.mxu0 %v3863_v41  ;;  %v3954_v41 = vld [vmem:[%s4111_s18 + $0x4d8] sm:$0xff] }
  0x6e   : > { %2424 = vmatpush.bf16.msra.mxu1 %v3871_v42  ;;  %v3929_v42 = vld [vmem:[%s4111_s18 + $0x410] sm:$0xff] }
  0x6f   : > { %2437 = vmatpush.bf16.msra.mxu2 %v3879_v43  ;;  %v3937_v43 = vld [vmem:[%s4111_s18 + $0x450] sm:$0xff] }
  0x70   : > { %2450 = vmatpush.bf16.msra.mxu3 %v3887_v44  ;;  %2412 = vmatmul.bf16.vlgmr.msra.gmra.mxu0 %v704_v49  ;;  %v3945_v44 = vld [vmem:[%s4111_s18 + $0x490] sm:$0xff]  ;;  %v3952_v49 = vld [vmem:[%s4111_s18 + $0x4c8] sm:$0xff] }
  0x71   : > { %2456 = vmatpush.bf16.msrb.mxu0 %v3902_v45  ;;  %2425 = vmatmul.bf16.vlgmr.msra.gmra.mxu1 %v705_v51  ;;  %v3953_v45 = vld [vmem:[%s4111_s18 + $0x4d0] sm:$0xff]  ;;  %v3935_v51 = vld [vmem:[%s4111_s18 + $0x440] sm:$0xff] }
  0x72   : > { %2469 = vmatpush.bf16.msrb.mxu1 %v3910_v46  ;;  %2438 = vmatmul.bf16.vlgmr.msra.gmra.mxu2 %v706_v50  ;;  %v3928_v46 = vld [vmem:[%s4111_s18 + $0x408] sm:$0xff]  ;;  %v3927_v50 = vld [vmem:[%s4111_s18 + $0x400] sm:$0xff] }
  0x73   : > { %2482 = vmatpush.bf16.msrb.mxu2 %v3918_v47  ;;  %2451 = vmatmul.bf16.vlgmr.msra.gmra.mxu3 %v707_v52  ;;  %v3936_v47 = vld [vmem:[%s4111_s18 + $0x448] sm:$0xff]  ;;  %v3943_v52 = vld [vmem:[%s4111_s18 + $0x480] sm:$0xff] }
  0x74   : > { %2495 = vmatpush.bf16.msrb.mxu3 %v3926_v48  ;;  %v3944_v48 = vld [vmem:[%s4111_s18 + $0x488] sm:$0xff] }
  0x75   : > { %2457 = vmatpush.bf16.msrb.mxu0 %v3901_v53  ;;  %v3951_v53 = vld [vmem:[%s4111_s18 + $0x4c0] sm:$0xff] }
  0x76   : > { %2470 = vmatpush.bf16.msrb.mxu1 %v3909_v54  ;;  %v3966_v54 = vld [vmem:[%s4111_s18 + $0x538] sm:$0xff] }
  0x77   : > { %2483 = vmatpush.bf16.msrb.mxu2 %v3917_v55  ;;  %v3974_v55 = vld [vmem:[%s4111_s18 + $0x578] sm:$0xff] }
  0x78   : > { %2496 = vmatpush.bf16.msrb.mxu3 %v3925_v56  ;;  %v3982_v56 = vld [vmem:[%s4111_s18 + $0x5b8] sm:$0xff] }
  0x79   : > { %2458 = vmatpush.bf16.msrb.mxu0 %v3900_v57  ;;  %v3990_v57 = vld [vmem:[%s4111_s18 + $0x5f8] sm:$0xff] }
  0x7a   : > { %2471 = vmatpush.bf16.msrb.mxu1 %v3908_v58  ;;  %v714_v58 = vld [vmem:[#allocation1] sm:$0xff] }
  0x7b   : > { %2484 = vmatpush.bf16.msrb.mxu2 %v3916_v59  ;;  %v716_v59 = vld [vmem:[#allocation1 + $0x12] sm:$0xff] }
  0x7c   : > { %2497 = vmatpush.bf16.msrb.mxu3 %v3924_v60  ;;  %v715_v60 = vld [vmem:[#allocation1 + $0x9] sm:$0xff] }
  0x7d   : > { %2459 = vmatpush.bf16.msrb.mxu0 %v3899_v61  ;;  %v717_v61 = vld [vmem:[#allocation1 + $0x1b] sm:$0xff] }
  0x7e   : > { %2472 = vmatpush.bf16.msrb.mxu1 %v3907_v62  ;;  %v3965_v62 = vld [vmem:[%s4111_s18 + $0x530] sm:$0xff] }
  0x7f   : > { %2485 = vmatpush.bf16.msrb.mxu2 %v3915_v63  ;;  %v3973_v63 = vld [vmem:[%s4111_s18 + $0x570] sm:$0xff] }
  0x80   : > { %2498 = vmatpush.bf16.msrb.mxu3 %v3923_v0  ;;  %v3981_v0 = vld [vmem:[%s4111_s18 + $0x5b0] sm:$0xff] }
  0x81   : > { %2460 = vmatpush.bf16.msrb.mxu0 %v3898_v1  ;;  %v3989_v1 = vld [vmem:[%s4111_s18 + $0x5f0] sm:$0xff] }
  0x82   : > { %2473 = vmatpush.bf16.msrb.mxu1 %v3906_v2  ;;  %v3964_v2 = vld [vmem:[%s4111_s18 + $0x528] sm:$0xff] }
  0x83   : > { %2486 = vmatpush.bf16.msrb.mxu2 %v3914_v3  ;;  %v3972_v3 = vld [vmem:[%s4111_s18 + $0x568] sm:$0xff] }
  0x84   : > { %2499 = vmatpush.bf16.msrb.mxu3 %v3922_v4  ;;  %v689_v4 = vpop.permute.xlu0 %688 }
  0x85   : > { %2461 = vmatpush.bf16.msrb.mxu0 %v3897_v5  ;;  %v3980_v5 = vld [vmem:[%s4111_s18 + $0x5a8] sm:$0xff] }
  0x86   : > { %2474 = vmatpush.bf16.msrb.mxu1 %v3905_v6  ;;  %v3988_v6 = vld [vmem:[%s4111_s18 + $0x5e8] sm:$0xff] }
  0x87   : > { %2487 = vmatpush.bf16.msrb.mxu2 %v3913_v7  ;;  %v691_v7 = vperm.slane %v689_v4, 0  ;;  %v4018_v4 = vld [vmem:[%s4111_s18 + $0x6d8] sm:$0xff] }
  0x88   : > { %2500 = vmatpush.bf16.msrb.mxu3 %v3921_v8 }
  0x89   : > { %2462 = vmatpush.bf16.msrb.mxu0 %v3896_v9  ;;  %v3963_v9 = vld [vmem:[%s4111_s18 + $0x520] sm:$0xff] }
  0x8a   : > { %2475 = vmatpush.bf16.msrb.mxu1 %v3904_v10  ;;  %v3971_v10 = vld [vmem:[%s4111_s18 + $0x560] sm:$0xff] }
  0x8b   : > { %2488 = vmatpush.bf16.msrb.mxu2 %v3912_v11 }
  0x8c   : > { %2501 = vmatpush.bf16.msrb.mxu3 %v3920_v12 }
  0x8d   : > { %2463 = vmatpush.bf16.msrb.mxu0 %v3895_v18  ;;  %v3978_v18 = vld [vmem:[%s4111_s18 + $0x598] sm:$0xff] }
  0x8e   : > { %2476 = vmatpush.bf16.msrb.mxu1 %v3903_v19  ;;  %v3986_v19 = vld [vmem:[%s4111_s18 + $0x5d8] sm:$0xff] }
  0x8f   : > { %2489 = vmatpush.bf16.msrb.mxu2 %v3911_v20 }
  0x90   : > { %2502 = vmatpush.bf16.msrb.mxu3 %v3919_v21  ;;  %2464 = vmatmul.bf16.vlgmr.msrb.gmra.mxu0 %v708_v13  ;;  %v3979_v13 = vld [vmem:[%s4111_s18 + $0x5a0] sm:$0xff] }
  0x91   : > { %2508 = vmatpush.bf16.msra.mxu0 %v3934_v22  ;;  %2477 = vmatmul.bf16.vlgmr.msrb.gmra.mxu1 %v709_v15 }
  0x92   : > { %2521 = vmatpush.bf16.msra.mxu1 %v3942_v23  ;;  %2490 = vmatmul.bf16.vlgmr.msrb.gmra.mxu2 %v710_v14  ;;  %v3987_v14 = vld [vmem:[%s4111_s18 + $0x5e0] sm:$0xff] }
  0x93   : > { %2534 = vmatpush.bf16.msra.mxu2 %v3950_v24  ;;  %2503 = vmatmul.bf16.vlgmr.msrb.gmra.mxu3 %v711_v16  ;;  %v3962_v16 = vld [vmem:[%s4111_s18 + $0x518] sm:$0xff]  ;;  %v3961_v24 = vld [vmem:[%s4111_s18 + $0x510] sm:$0xff] }
  0x94   : > { %2547 = vmatpush.bf16.msra.mxu3 %v3958_v25  ;;  %v3969_v25 = vld [vmem:[%s4111_s18 + $0x550] sm:$0xff] }
  0x95   : > { %2509 = vmatpush.bf16.msra.mxu0 %v3933_v26 }
  0x96   : > { %2522 = vmatpush.bf16.msra.mxu1 %v3941_v27 }
  0x97   : > { %2535 = vmatpush.bf16.msra.mxu2 %v3949_v28  ;;  %v3977_v28 = vld [vmem:[%s4111_s18 + $0x590] sm:$0xff] }
  0x98   : > { %2548 = vmatpush.bf16.msra.mxu3 %v3957_v29  ;;  %v3985_v29 = vld [vmem:[%s4111_s18 + $0x5d0] sm:$0xff] }
  0x99   : > { %2510 = vmatpush.bf16.msra.mxu0 %v3932_v30  ;;  %v3960_v30 = vld [vmem:[%s4111_s18 + $0x508] sm:$0xff] }
  0x9a   : > { %2523 = vmatpush.bf16.msra.mxu1 %v3940_v31  ;;  %v3968_v31 = vld [vmem:[%s4111_s18 + $0x548] sm:$0xff] }
  0x9b   : > { %2536 = vmatpush.bf16.msra.mxu2 %v3948_v32  ;;  %v3976_v32 = vld [vmem:[%s4111_s18 + $0x588] sm:$0xff] }
  0x9c   : > { %2549 = vmatpush.bf16.msra.mxu3 %v3956_v33  ;;  %v3984_v33 = vld [vmem:[%s4111_s18 + $0x5c8] sm:$0xff] }
  0x9d   : > { %2511 = vmatpush.bf16.msra.mxu0 %v3931_v34  ;;  %v718_v34 = vld [vmem:[#allocation1 + $0x24] sm:$0xff] }
  0x9e   : > { %2524 = vmatpush.bf16.msra.mxu1 %v3939_v35  ;;  %v720_v35 = vld [vmem:[#allocation1 + $0x36] sm:$0xff] }
  0x9f   : > { %2537 = vmatpush.bf16.msra.mxu2 %v3947_v36 }
  0xa0   : > { %2550 = vmatpush.bf16.msra.mxu3 %v3955_v37  ;;  %v719_v37 = vld [vmem:[#allocation1 + $0x2d] sm:$0xff] }
  0xa1   : > { %2512 = vmatpush.bf16.msra.mxu0 %v3930_v38  ;;  %v721_v38 = vld [vmem:[#allocation1 + $0x3f] sm:$0xff] }
  0xa2   : > { %2525 = vmatpush.bf16.msra.mxu1 %v3938_v39 }
  0xa3   : > { %2538 = vmatpush.bf16.msra.mxu2 %v3946_v40  ;;  %v172_v40 = vld [vmem:[%s4400_s0 + $0x18] sm:$0xff] }
  0xa4   : > { %2551 = vmatpush.bf16.msra.mxu3 %v3954_v41  ;;  %723 = vst [vmem:[#allocation1] ss:$9 sm:$0xff] %v172_v40  ;;  %v3959_v41 = vld [vmem:[%s4111_s18 + $0x500] sm:$0xff]  ;;  %v4052_v40 = vld [vmem:[%s4111_s18 + $0x7e8] sm:$0xff] }
  0xa5   : > { %2513 = vmatpush.bf16.msra.mxu0 %v3929_v42  ;;  %v3967_v42 = vld [vmem:[%s4111_s18 + $0x540] sm:$0xff] }
  0xa6   : > { %2526 = vmatpush.bf16.msra.mxu1 %v3937_v43  ;;  %v3975_v43 = vld [vmem:[%s4111_s18 + $0x580] sm:$0xff] }
  0xa7   : > { %2539 = vmatpush.bf16.msra.mxu2 %v3945_v44  ;;  %v3983_v44 = vld [vmem:[%s4111_s18 + $0x5c0] sm:$0xff] }
  0xa8   : > { %2552 = vmatpush.bf16.msra.mxu3 %v3953_v45  ;;  %v3998_v45 = vld [vmem:[%s4111_s18 + $0x638] sm:$0xff] }
  0xa9   : > { %2514 = vmatpush.bf16.msra.mxu0 %v3928_v46  ;;  %v4006_v46 = vld [vmem:[%s4111_s18 + $0x678] sm:$0xff] }
  0xaa   : > { %2527 = vmatpush.bf16.msra.mxu1 %v3936_v47  ;;  %v4014_v47 = vld [vmem:[%s4111_s18 + $0x6b8] sm:$0xff] }
  0xab   : > { %2540 = vmatpush.bf16.msra.mxu2 %v3944_v48  ;;  %v4022_v48 = vld [vmem:[%s4111_s18 + $0x6f8] sm:$0xff] }
  0xac   : > { %2553 = vmatpush.bf16.msra.mxu3 %v3952_v49  ;;  %v3997_v49 = vld [vmem:[%s4111_s18 + $0x630] sm:$0xff] }
  0xad   : > { %2515 = vmatpush.bf16.msra.mxu0 %v3927_v50  ;;  %v2309_v8 = vpop.f32.mrf.mxu0  ;;  %v4005_v50 = vld [vmem:[%s4111_s18 + $0x670] sm:$0xff] }
  0xae   : > { %2528 = vmatpush.bf16.msra.mxu1 %v3935_v51  ;;  %v2322_v11 = vpop.f32.mrf.mxu1  ;;  %v2310_v12 = vadd.f32 %v2309_v8, %v691_v7  ;;  %v4013_v51 = vld [vmem:[%s4111_s18 + $0x6b0] sm:$0xff] }
  0xaf   : > { %2541 = vmatpush.bf16.msra.mxu2 %v3943_v52  ;;  %v4021_v52 = vld [vmem:[%s4111_s18 + $0x6f0] sm:$0xff] }
  0xb0   : > { %2554 = vmatpush.bf16.msra.mxu3 %v3951_v53  ;;  %2516 = vmatmul.bf16.vlgmr.msra.gmra.mxu0 %v714_v58  ;;  %v2323_v15 = vadd.f32 %v2322_v11, %v2310_v12  ;;  %v3996_v53 = vld [vmem:[%s4111_s18 + $0x628] sm:$0xff]  ;;  %v3995_v58 = vld [vmem:[%s4111_s18 + $0x620] sm:$0xff] }
  0xb1   : > { %2560 = vmatpush.bf16.msrb.mxu0 %v3966_v54  ;;  %2529 = vmatmul.bf16.vlgmr.msra.gmra.mxu1 %v715_v60  ;;  %v4004_v54 = vld [vmem:[%s4111_s18 + $0x668] sm:$0xff] }
  0xb2   : > { %2573 = vmatpush.bf16.msrb.mxu1 %v3974_v55  ;;  %2542 = vmatmul.bf16.vlgmr.msra.gmra.mxu2 %v716_v59  ;;  %v4012_v55 = vld [vmem:[%s4111_s18 + $0x6a8] sm:$0xff]  ;;  %v4003_v59 = vld [vmem:[%s4111_s18 + $0x660] sm:$0xff] }
  0xb3   : > { %2586 = vmatpush.bf16.msrb.mxu2 %v3982_v56  ;;  %2555 = vmatmul.bf16.vlgmr.msra.gmra.mxu3 %v717_v61  ;;  %v4020_v56 = vld [vmem:[%s4111_s18 + $0x6e8] sm:$0xff] }
  0xb4   : > { %2599 = vmatpush.bf16.msrb.mxu3 %v3990_v57 }
  0xb5   : > { %2561 = vmatpush.bf16.msrb.mxu0 %v3965_v62  ;;  %v2335_v20 = vpop.f32.mrf.mxu2  ;;  %v2311_v23 = vpop.f32.mrf.mxu0  ;;  %v4011_v62 = vld [vmem:[%s4111_s18 + $0x6a0] sm:$0xff] }
  0xb6   : > { %2574 = vmatpush.bf16.msrb.mxu1 %v3973_v63  ;;  %v2336_v21 = vadd.f32 %v2335_v20, %v2323_v15  ;;  %v2348_v22 = vpop.f32.mrf.mxu3  ;;  %v2324_v27 = vpop.f32.mrf.mxu1  ;;  %v4019_v63 = vld [vmem:[%s4111_s18 + $0x6e0] sm:$0xff]  ;;  %v3992_v15 = vld [vmem:[%s4111_s18 + $0x608] sm:$0xff] }
  0xb7   : > { %2587 = vmatpush.bf16.msrb.mxu2 %v3981_v0  ;;  %v4007_v23 = vld [vmem:[%s4111_s18 + $0x680] sm:$0xff]  ;;  %v4046_v27 = vld [vmem:[%s4111_s18 + $0x7b8] sm:$0xff] }
  0xb8   : > { %2600 = vmatpush.bf16.msrb.mxu3 %v3989_v1  ;;  %v4313_v26 = vadd.f32 %v2348_v22, %v2336_v21  ;;  %v3994_v1 = vld [vmem:[%s4111_s18 + $0x618] sm:$0xff]  ;;  %v3991_v21 = vld [vmem:[%s4111_s18 + $0x600] sm:$0xff] }
  0xb9   : > { %2562 = vmatpush.bf16.msrb.mxu0 %v3964_v2  ;;  %v4002_v2 = vld [vmem:[%s4111_s18 + $0x658] sm:$0xff]  ;;  %v3999_v22 = vld [vmem:[%s4111_s18 + $0x640] sm:$0xff] }
  0xba   : > { %2575 = vmatpush.bf16.msrb.mxu1 %v3972_v3  ;;  %v4010_v3 = vld [vmem:[%s4111_s18 + $0x698] sm:$0xff] }
  0xbb   : > { %2588 = vmatpush.bf16.msrb.mxu2 %v3980_v5 }
  0xbc   : > { %2601 = vmatpush.bf16.msrb.mxu3 %v3988_v6 }
  0xbd   : > { %2563 = vmatpush.bf16.msrb.mxu0 %v3963_v9  ;;  %v2337_v36 = vpop.f32.mrf.mxu2  ;;  %v3993_v9 = vld [vmem:[%s4111_s18 + $0x610] sm:$0xff] }
  0xbe   : > { %2576 = vmatpush.bf16.msrb.mxu1 %v3971_v10  ;;  %v2350_v39 = vpop.f32.mrf.mxu3  ;;  %v4001_v10 = vld [vmem:[%s4111_s18 + $0x650] sm:$0xff] }
  0xbf   : > { %2589 = vmatpush.bf16.msrb.mxu2 %v3979_v13  ;;  %v4009_v13 = vld [vmem:[%s4111_s18 + $0x690] sm:$0xff]  ;;  %v4044_v39 = vld [vmem:[%s4111_s18 + $0x7a8] sm:$0xff] }
  0xc0   : > { %2602 = vmatpush.bf16.msrb.mxu3 %v3987_v14  ;;  %v4017_v14 = vld [vmem:[%s4111_s18 + $0x6d0] sm:$0xff] }
  0xc1   : > { %2564 = vmatpush.bf16.msrb.mxu0 %v3962_v16  ;;  %v4000_v16 = vld [vmem:[%s4111_s18 + $0x648] sm:$0xff]  ;;  %v4053_v36 = vld [vmem:[%s4111_s18 + $0x7f0] sm:$0xff] }
  0xc2   : > { %2577 = vmatpush.bf16.msrb.mxu1 %v3970_v17  ;;  %v4008_v17 = vld [vmem:[%s4111_s18 + $0x688] sm:$0xff] }
  0xc3   : > { %2590 = vmatpush.bf16.msrb.mxu2 %v3978_v18  ;;  %v4016_v18 = vld [vmem:[%s4111_s18 + $0x6c8] sm:$0xff] }
  0xc4   : > { %2603 = vmatpush.bf16.msrb.mxu3 %v3986_v19 }
  0xc5   : > { %2565 = vmatpush.bf16.msrb.mxu0 %v3961_v24  ;;  %v4015_v24 = vld [vmem:[%s4111_s18 + $0x6c0] sm:$0xff] }
  0xc6   : > { %2578 = vmatpush.bf16.msrb.mxu1 %v3969_v25  ;;  %v4030_v25 = vld [vmem:[%s4111_s18 + $0x738] sm:$0xff] }
  0xc7   : > { %2591 = vmatpush.bf16.msrb.mxu2 %v3977_v28  ;;  %v4054_v28 = vld [vmem:[%s4111_s18 + $0x7f8] sm:$0xff] }
  0xc8   : > { %2604 = vmatpush.bf16.msrb.mxu3 %v3985_v29  ;;  %v724_v29 = vld [vmem:[#allocation1] sm:$0xff] }
  0xc9   : > { %2566 = vmatpush.bf16.msrb.mxu0 %v3960_v30  ;;  %v726_v30 = vld [vmem:[#allocation1 + $0x12] sm:$0xff] }
  0xca   : > { %2579 = vmatpush.bf16.msrb.mxu1 %v3968_v31  ;;  %v725_v31 = vld [vmem:[#allocation1 + $0x9] sm:$0xff] }
  0xcb   : > { %2592 = vmatpush.bf16.msrb.mxu2 %v3976_v32  ;;  %v727_v32 = vld [vmem:[#allocation1 + $0x1b] sm:$0xff] }
  0xcc   : > { %2605 = vmatpush.bf16.msrb.mxu3 %v3984_v33  ;;  %v4029_v33 = vld [vmem:[%s4111_s18 + $0x730] sm:$0xff] }
  0xcd   : > { %2567 = vmatpush.bf16.msrb.mxu0 %v3959_v41  ;;  %v2361_v57 = vpop.f32.mrf.mxu0 }
  0xce   : > { %2580 = vmatpush.bf16.msrb.mxu1 %v3967_v42  ;;  %v2362_v60 = vadd.f32 %v2361_v57, %v4313_v26  ;;  %v2374_v61 = vpop.f32.mrf.mxu1  ;;  %v4038_v26 = vld [vmem:[%s4111_s18 + $0x778] sm:$0xff] }
  0xcf   : > { %2593 = vmatpush.bf16.msrb.mxu2 %v3975_v43  ;;  %v4027_v43 = vld [vmem:[%s4111_s18 + $0x720] sm:$0xff] }
  0xd0   : > { %2606 = vmatpush.bf16.msrb.mxu3 %v3983_v44  ;;  %2568 = vmatmul.bf16.vlgmr.msrb.gmra.mxu0 %v718_v34  ;;  %v2375_v0 = vadd.f32 %v2374_v61, %v2362_v60  ;;  %v4037_v34 = vld [vmem:[%s4111_s18 + $0x770] sm:$0xff]  ;;  %v4035_v44 = vld [vmem:[%s4111_s18 + $0x760] sm:$0xff] }
  0xd1   : > { %2612 = vmatpush.bf16.msra.mxu0 %v3998_v45  ;;  %2581 = vmatmul.bf16.vlgmr.msrb.gmra.mxu1 %v719_v37  ;;  %v4028_v37 = vld [vmem:[%s4111_s18 + $0x728] sm:$0xff]  ;;  %v4041_v61 = vld [vmem:[%s4111_s18 + $0x790] sm:$0xff] }
  0xd2   : > { %2625 = vmatpush.bf16.msra.mxu1 %v4006_v46  ;;  %2594 = vmatmul.bf16.vlgmr.msrb.gmra.mxu2 %v720_v35  ;;  %v4045_v35 = vld [vmem:[%s4111_s18 + $0x7b0] sm:$0xff]  ;;  %v4043_v46 = vld [vmem:[%s4111_s18 + $0x7a0] sm:$0xff] }
  0xd3   : > { %2638 = vmatpush.bf16.msra.mxu2 %v4014_v47  ;;  %2607 = vmatmul.bf16.vlgmr.msrb.gmra.mxu3 %v721_v38  ;;  %v4036_v38 = vld [vmem:[%s4111_s18 + $0x768] sm:$0xff]  ;;  %v4051_v47 = vld [vmem:[%s4111_s18 + $0x7e0] sm:$0xff] }
  0xd4   : > { %2651 = vmatpush.bf16.msra.mxu3 %v4022_v48 }
  0xd5   : > { %2613 = vmatpush.bf16.msra.mxu0 %v3997_v49  ;;  %v2387_v5 = vpop.f32.mrf.mxu2  ;;  %v2363_v8 = vpop.f32.mrf.mxu0  ;;  %v4026_v49 = vld [vmem:[%s4111_s18 + $0x718] sm:$0xff] }
  0xd6   : > { %2626 = vmatpush.bf16.msra.mxu1 %v4005_v50  ;;  %v2388_v6 = vadd.f32 %v2387_v5, %v2375_v0  ;;  %v2400_v7 = vpop.f32.mrf.mxu3  ;;  %v2376_v12 = vpop.f32.mrf.mxu1  ;;  %v4034_v50 = vld [vmem:[%s4111_s18 + $0x758] sm:$0xff]  ;;  %v4032_v0 = vld [vmem:[%s4111_s18 + $0x748] sm:$0xff]  ;;  %v4023_v5 = vld [vmem:[%s4111_s18 + $0x700] sm:$0xff] }
  0xd7   : > { %2639 = vmatpush.bf16.msra.mxu2 %v4013_v51  ;;  %v4042_v51 = vld [vmem:[%s4111_s18 + $0x798] sm:$0xff]  ;;  %v4047_v8 = vld [vmem:[%s4111_s18 + $0x7c0] sm:$0xff] }
  0xd8   : > { %2652 = vmatpush.bf16.msra.mxu3 %v4021_v52  ;;  %v2401_v11 = vadd.f32 %v2400_v7, %v2388_v6  ;;  %v4050_v52 = vld [vmem:[%s4111_s18 + $0x7d8] sm:$0xff]  ;;  %v4031_v6 = vld [vmem:[%s4111_s18 + $0x740] sm:$0xff] }
  0xd9   : > { %2614 = vmatpush.bf16.msra.mxu0 %v3996_v53  ;;  %v4039_v7 = vld [vmem:[%s4111_s18 + $0x780] sm:$0xff] }
  0xda   : > { %2627 = vmatpush.bf16.msra.mxu1 %v4004_v54  ;;  %v731_v12 = vld [vmem:[#allocation1 + $0x3f] sm:$0xff] }
  0xdb   : > { %2640 = vmatpush.bf16.msra.mxu2 %v4012_v55 }
  0xdc   : > { %2653 = vmatpush.bf16.msra.mxu3 %v4020_v56 }
  0xdd   : > { %2615 = vmatpush.bf16.msra.mxu0 %v3995_v58  ;;  %v2389_v19 = vpop.f32.mrf.mxu2  ;;  %v4025_v58 = vld [vmem:[%s4111_s18 + $0x710] sm:$0xff] }
  0xde   : > { %2628 = vmatpush.bf16.msra.mxu1 %v4003_v59  ;;  %v2402_v20 = vpop.f32.mrf.mxu3  ;;  %v4033_v59 = vld [vmem:[%s4111_s18 + $0x750] sm:$0xff] }
  0xdf   : > { %2641 = vmatpush.bf16.msra.mxu2 %v4011_v62  ;;  %v4049_v62 = vld [vmem:[%s4111_s18 + $0x7d0] sm:$0xff] }
  0xe0   : > { %2654 = vmatpush.bf16.msra.mxu3 %v4019_v63  ;;  %v4024_v63 = vld [vmem:[%s4111_s18 + $0x708] sm:$0xff] }
  0xe1   : > { %2616 = vmatpush.bf16.msra.mxu0 %v3994_v1  ;;  %v4040_v1 = vld [vmem:[%s4111_s18 + $0x788] sm:$0xff] }
  0xe2   : > { %2629 = vmatpush.bf16.msra.mxu1 %v4002_v2  ;;  %v4048_v2 = vld [vmem:[%s4111_s18 + $0x7c8] sm:$0xff] }
  0xe3   : > { %2642 = vmatpush.bf16.msra.mxu2 %v4010_v3 }
  0xe4   : > { %2655 = vmatpush.bf16.msra.mxu3 %v4018_v4 }
  0xe5   : > { %2617 = vmatpush.bf16.msra.mxu0 %v3993_v9  ;;  %v728_v9 = vld [vmem:[#allocation1 + $0x24] sm:$0xff] }
  0xe6   : > { %2630 = vmatpush.bf16.msra.mxu1 %v4001_v10  ;;  %v729_v10 = vld [vmem:[#allocation1 + $0x2d] sm:$0xff] }
  0xe7   : > { %2643 = vmatpush.bf16.msra.mxu2 %v4009_v13 }
  0xe8   : > { %2656 = vmatpush.bf16.msra.mxu3 %v4017_v14 }
  0xe9   : > { %2618 = vmatpush.bf16.msra.mxu0 %v3992_v15 }
  0xea   : > { %2631 = vmatpush.bf16.msra.mxu1 %v4000_v16 }
  0xeb   : > { %2644 = vmatpush.bf16.msra.mxu2 %v4008_v17 }
  0xec   : > { %2657 = vmatpush.bf16.msra.mxu3 %v4016_v18 }
  0xed   : > { %2619 = vmatpush.bf16.msra.mxu0 %v3991_v21  ;;  %v2413_v41 = vpop.f32.mrf.mxu0 }
  0xee   : > { %2632 = vmatpush.bf16.msra.mxu1 %v3999_v22  ;;  %v2414_v42 = vadd.f32 %v2413_v41, %v2401_v11  ;;  %v2426_v45 = vpop.f32.mrf.mxu1  ;;  %v730_v11 = vld [vmem:[#allocation1 + $0x36] sm:$0xff] }
  0xef   : > { %2645 = vmatpush.bf16.msra.mxu2 %v4007_v23 }
  0xf0   : > { %2658 = vmatpush.bf16.msra.mxu3 %v4015_v24  ;;  %2620 = vmatmul.bf16.vlgmr.msra.gmra.mxu0 %v724_v29  ;;  %v2427_v48 = vadd.f32 %v2426_v45, %v2414_v42 }
  0xf1   : > { %2664 = vmatpush.bf16.msrb.mxu0 %v4030_v25  ;;  %2633 = vmatmul.bf16.vlgmr.msra.gmra.mxu1 %v725_v31 }
  0xf2   : > { %2677 = vmatpush.bf16.msrb.mxu1 %v4038_v26  ;;  %2646 = vmatmul.bf16.vlgmr.msra.gmra.mxu2 %v726_v30 }
  0xf3   : > { %2690 = vmatpush.bf16.msrb.mxu2 %v4046_v27  ;;  %2659 = vmatmul.bf16.vlgmr.msra.gmra.mxu3 %v727_v32 }
  0xf4   : > { %2703 = vmatpush.bf16.msrb.mxu3 %v4054_v28 }
  0xf5   : > { %2665 = vmatpush.bf16.msrb.mxu0 %v4029_v33  ;;  %v2439_v53 = vpop.f32.mrf.mxu2  ;;  %v2415_v56 = vpop.f32.mrf.mxu0 }
  0xf6   : > { %2678 = vmatpush.bf16.msrb.mxu1 %v4037_v34  ;;  %v2440_v54 = vadd.f32 %v2439_v53, %v2427_v48  ;;  %v2452_v55 = vpop.f32.mrf.mxu3  ;;  %v2428_v60 = vpop.f32.mrf.mxu1 }
  0xf7   : > { %2691 = vmatpush.bf16.msrb.mxu2 %v4045_v35 }
  0xf8   : > { %2704 = vmatpush.bf16.msrb.mxu3 %v4053_v36  ;;  %v2453_v57 = vadd.f32 %v2452_v55, %v2440_v54 }
  0xf9   : > { %2666 = vmatpush.bf16.msrb.mxu0 %v4028_v37 }
  0xfa   : > { %2679 = vmatpush.bf16.msrb.mxu1 %v4036_v38 }
  0xfb   : > { %2692 = vmatpush.bf16.msrb.mxu2 %v4044_v39 }
  0xfc   : > { %2705 = vmatpush.bf16.msrb.mxu3 %v4052_v40 }
  0xfd   : > { %2667 = vmatpush.bf16.msrb.mxu0 %v4027_v43  ;;  %v2441_v3 = vpop.f32.mrf.mxu2 }
  0xfe   : > { %2680 = vmatpush.bf16.msrb.mxu1 %v4035_v44  ;;  %v2454_v4 = vpop.f32.mrf.mxu3 }
  0xff   : > { %2693 = vmatpush.bf16.msrb.mxu2 %v4043_v46 }
 0x100   : > { %2706 = vmatpush.bf16.msrb.mxu3 %v4051_v47 }
 0x101   : > { %2668 = vmatpush.bf16.msrb.mxu0 %v4026_v49 }
 0x102   : > { %2681 = vmatpush.bf16.msrb.mxu1 %v4034_v50 }
 0x103   : > { %2694 = vmatpush.bf16.msrb.mxu2 %v4042_v51 }
 0x104   : > { %2707 = vmatpush.bf16.msrb.mxu3 %v4050_v52 }
 0x105   : > { %2669 = vmatpush.bf16.msrb.mxu0 %v4025_v58 }
 0x106   : > { %2682 = vmatpush.bf16.msrb.mxu1 %v4033_v59 }
 0x107   : > { %2695 = vmatpush.bf16.msrb.mxu2 %v4041_v61 }
 0x108   : > { %2708 = vmatpush.bf16.msrb.mxu3 %v4049_v62 }
 0x109   : > { %2670 = vmatpush.bf16.msrb.mxu0 %v4024_v63 }
 0x10a   : > { %2683 = vmatpush.bf16.msrb.mxu1 %v4032_v0 }
 0x10b   : > { %2696 = vmatpush.bf16.msrb.mxu2 %v4040_v1 }
 0x10c   : > { %2709 = vmatpush.bf16.msrb.mxu3 %v4048_v2 }
 0x10d   : > { %2671 = vmatpush.bf16.msrb.mxu0 %v4023_v5  ;;  %v2465_v13 = vpop.f32.mrf.mxu0 }
 0x10e   : > { %2684 = vmatpush.bf16.msrb.mxu1 %v4031_v6  ;;  %v2466_v14 = vadd.f32 %v2465_v13, %v2453_v57  ;;  %v2478_v15 = vpop.f32.mrf.mxu1 }
 0x10f   : > { %2697 = vmatpush.bf16.msrb.mxu2 %v4039_v7 }
 0x110   : > { %2710 = vmatpush.bf16.msrb.mxu3 %v4047_v8  ;;  %2672 = vmatmul.bf16.vlgmr.msrb.gmra.mxu0 %v728_v9  ;;  %v2479_v16 = vadd.f32 %v2478_v15, %v2466_v14 }
 0x111   : > { %2685 = vmatmul.bf16.vlgmr.msrb.gmra.mxu1 %v729_v10 }
 0x112   : > { %2698 = vmatmul.bf16.vlgmr.msrb.gmra.mxu2 %v730_v11 }
 0x113   : > { %2711 = vmatmul.bf16.vlgmr.msrb.gmra.mxu3 %v731_v12 }
 0x115   : > { %v2491_v17 = vpop.f32.mrf.mxu2  ;;  %v2467_v20 = vpop.f32.mrf.mxu0 }
 0x116   : > { %v2492_v18 = vadd.f32 %v2491_v17, %v2479_v16  ;;  %v2504_v19 = vpop.f32.mrf.mxu3  ;;  %v2480_v22 = vpop.f32.mrf.mxu1 }
 0x118   : > { %v2505_v21 = vadd.f32 %v2504_v19, %v2492_v18 }
 0x11d   : > { %v2493_v23 = vpop.f32.mrf.mxu2 }
 0x11e   : > { %v2506_v24 = vpop.f32.mrf.mxu3 }
 0x12d   : > { %v2517_v25 = vpop.f32.mrf.mxu0 }
 0x12e   : > { %v2518_v26 = vadd.f32 %v2517_v25, %v2505_v21  ;;  %v2530_v27 = vpop.f32.mrf.mxu1 }
 0x130   : > { %v2531_v28 = vadd.f32 %v2530_v27, %v2518_v26 }
 0x135   : > { %v2543_v29 = vpop.f32.mrf.mxu2  ;;  %v2519_v32 = vpop.f32.mrf.mxu0 }
 0x136   : > { %v2544_v30 = vadd.f32 %v2543_v29, %v2531_v28  ;;  %v2556_v31 = vpop.f32.mrf.mxu3  ;;  %v2532_v34 = vpop.f32.mrf.mxu1 }
 0x138   : > { %v2557_v33 = vadd.f32 %v2556_v31, %v2544_v30 }
 0x13d   : > { %v2545_v35 = vpop.f32.mrf.mxu2 }
 0x13e   : > { %v2558_v36 = vpop.f32.mrf.mxu3 }
 0x14d   : > { %v2569_v37 = vpop.f32.mrf.mxu0 }
 0x14e   : > { %v2582_v38 = vpop.f32.mrf.mxu1  ;;  %v2570_v48 = vadd.f32 %v2569_v37, %v2557_v33 }
 0x150   : > { %v2583_v52 = vadd.f32 %v2582_v38, %v2570_v48 }
 0x155   : > { %v2595_v39 = vpop.f32.mrf.mxu2  ;;  %v2571_v41 = vpop.f32.mrf.mxu0 }
 0x156   : > { %v2608_v40 = vpop.f32.mrf.mxu3  ;;  %v2584_v42 = vpop.f32.mrf.mxu1  ;;  %v2596_v53 = vadd.f32 %v2595_v39, %v2583_v52 }
 0x158   : > { %v2609_v56 = vadd.f32 %v2608_v40, %v2596_v53 }
 0x15d   : > { %v2597_v43 = vpop.f32.mrf.mxu2 }
 0x15e   : > { %v2610_v44 = vpop.f32.mrf.mxu3 }
 0x16d   : > { %v2621_v45 = vpop.f32.mrf.mxu0 }
 0x16e   : > { %v2634_v46 = vpop.f32.mrf.mxu1  ;;  %v2622_v57 = vadd.f32 %v2621_v45, %v2609_v56 }
 0x170   : > { %v2635_v58 = vadd.f32 %v2634_v46, %v2622_v57 }
 0x175   : > { %v2647_v47 = vpop.f32.mrf.mxu2  ;;  %v2623_v50 = vpop.f32.mrf.mxu0 }
 0x176   : > { %v2660_v49 = vpop.f32.mrf.mxu3  ;;  %v2636_v51 = vpop.f32.mrf.mxu1  ;;  %v2648_v59 = vadd.f32 %v2647_v47, %v2635_v58 }
 0x178   : > { %v2661_v60 = vadd.f32 %v2660_v49, %v2648_v59 }
 0x17d   : > { %v2649_v54 = vpop.f32.mrf.mxu2 }
 0x17e   : > { %v2662_v55 = vpop.f32.mrf.mxu3 }
 0x18d   : > { %v2673_v61 = vpop.f32.mrf.mxu0 }
 0x18e   : > { %v2686_v62 = vpop.f32.mrf.mxu1  ;;  %v2674_v63 = vadd.f32 %v2673_v61, %v2661_v60 }
 0x190   : > { %v2687_v0 = vadd.f32 %v2686_v62, %v2674_v63 }
 0x195   : > { %v2699_v1 = vpop.f32.mrf.mxu2  ;;  %v2675_v4 = vpop.f32.mrf.mxu0 }
 0x196   : > { %v2712_v2 = vpop.f32.mrf.mxu3  ;;  %v2700_v3 = vadd.f32 %v2699_v1, %v2687_v0  ;;  %v2688_v5 = vpop.f32.mrf.mxu1 }
 0x198   : > { %v2713_v6 = vadd.f32 %v2712_v2, %v2700_v3 }
 0x19a   : > { %2717 = vst.msk [vmem:[%s168_s29] sm:$0x1] %vm2716_vm0, %v2713_v6 }
 0x19d   : > { %v2701_v7 = vpop.f32.mrf.mxu2 }
 0x19e   : > { %v2714_v8 = vpop.f32.mrf.mxu3 }
 0x19f PF: > { %s15_s14 = sadd.s32 1, %s4071_s14  }
 0x1a0   : > { %p12_p4 = scmp.ge.s32.totalorder %s15_s14, 4  }
 0x1a2   :  { %14 = sbr.rel (!%p12_p4) target bundleno = 3 (0x3), region = 62 }

</bundles_post_ra>
